<compile_context>
chip_gen: v5e
topology: v5e:2x2
jax: 0.10.0
libtpu: 0.0.40
codegen_flags: <defaults>
</compile_context>

<pallas_src>
import functools

import numpy as np

import jax
import jax.numpy as jnp
from jax.experimental import pallas as pl
from jax.experimental.pallas import tpu as pltpu


# ----------------------------- Pallas kernels -----------------------------

def _fused_block_kernel(p_ref, w_ref, s_ref, scale_ref, off_ref, o_ref):
    """Conv(as matmul) + 2x2 AvgPool(as matmul with 0/1 matrix) + BN + ReLU.

    p_ref:     (OH*OW, 9*Cin)   im2col patches for one batch element
    w_ref:     (9*Cin, Cout)    conv weights (conv bias folded into off_ref)
    s_ref:     (PH*PW, OH*OW)   0/1 pooling window-summation matrix
    scale_ref: (1, Cout)        0.25 * gamma / sqrt(var + eps)
    off_ref:   (1, Cout)        (conv_bias - mean) * gamma/sqrt(var+eps) + beta
    o_ref:     (PH*PW, Cout)
    """
    conv = jnp.dot(p_ref[...], w_ref[...], preferred_element_type=jnp.float32)
    pooled = jnp.dot(s_ref[...], conv, preferred_element_type=jnp.float32)
    o_ref[...] = jnp.maximum(pooled * scale_ref[...] + off_ref[...], 0.0)


def _classifier_kernel(x_ref, w1_ref, b1_ref, w2_ref, b2_ref, o_ref):
    """FC1 + ReLU + (dropout identity) + FC2 + ReLU + Softmax(dim=-1)."""
    h = jnp.maximum(
        jnp.dot(x_ref[...], w1_ref[...], preferred_element_type=jnp.float32)
        + b1_ref[...],
        0.0,
    )
    # TODO(synk): Dropout is identity (inference semantics).
    z = jnp.maximum(
        jnp.dot(h, w2_ref[...], preferred_element_type=jnp.float32)
        + b2_ref[...],
        0.0,
    )
    z = z - jnp.max(z, axis=-1, keepdims=True)
    e = jnp.exp(z)
    o_ref[...] = e / jnp.sum(e, axis=-1, keepdims=True)


# --------------------------- pallas_call wrappers ---------------------------

def _zero_map(nd, i):
    return (0,) * nd


def fused_block(patches, w2d, S, scale, offset):
    """patches: (N, M, K); one fused conv/pool/BN/ReLU kernel per batch element."""
    N, M, K = patches.shape
    Cout = w2d.shape[1]
    PHPW = S.shape[0]
    return pl.pallas_call(
        _fused_block_kernel,
        out_shape=jax.ShapeDtypeStruct((N, PHPW, Cout), jnp.float32),
        grid=(N,),
        in_specs=[
            pl.BlockSpec((None, M, K), lambda b: (b, 0, 0)),   # per-batch patches
            pl.BlockSpec((K, Cout), lambda b: (0, 0)),          # weights (resident)
            pl.BlockSpec((PHPW, M), lambda b: (0, 0)),          # pool matrix (resident)
            pl.BlockSpec((1, Cout), lambda b: (0, 0)),
            pl.BlockSpec((1, Cout), lambda b: (0, 0)),
        ],
        out_specs=pl.BlockSpec((None, PHPW, Cout), lambda b: (b, 0, 0)),
        compiler_params=pltpu.CompilerParams(
            dimension_semantics=("parallel",)),                 # megacore: 1 batch / TC
    )(patches, w2d, S, scale, offset)


def classifier(x, w1, b1, w2, b2):
    """Fused FC1+ReLU+FC2+ReLU+softmax, single full-block kernel (N is tiny)."""
    N = x.shape[0]
    n_out = w2.shape[1]
    args = (x, w1, b1, w2, b2)
    in_specs = [
        pl.BlockSpec(a.shape, functools.partial(_zero_map, a.ndim)) for a in args
    ]
    return pl.pallas_call(
        _classifier_kernel,
        out_shape=jax.ShapeDtypeStruct((N, n_out), jnp.float32),
        grid=(1,),
        in_specs=in_specs,
        out_specs=pl.BlockSpec((N, n_out), functools.partial(_zero_map, 2)),
    )(*args)


# ------------------------------- JAX glue -------------------------------

def im2col(x, k, stride):
    """x: (N, H, W, C) -> (N, OH*OW, k*k*C); columns ordered (kh, kw, cin)."""
    N, H, W, C = x.shape
    OH = (H - k) // stride + 1
    OW = (W - k) // stride + 1
    cols = []
    for kh in range(k):
        for kw in range(k):
            cols.append(
                x[:, kh: kh + stride * OH: stride, kw: kw + stride * OW: stride, :]
            )
    p = jnp.concatenate(cols, axis=-1)               # (N, OH, OW, k*k*C)
    return p.reshape(N, OH * OW, k * k * C), OH, OW


def pool_sum_matrix(OH, OW):
    """0/1 matrix (PH*PW, OH*OW) that sums each 2x2 window (floor behavior,
    matching torch AvgPool2d(kernel_size=2)); the 1/4 factor is folded into the
    BN scale."""
    PH, PW = OH // 2, OW // 2
    S = np.zeros((PH * PW, OH * OW), np.float32)
    for pi in range(PH):
        for pj in range(PW):
            row = pi * PW + pj
            for di in range(2):
                for dj in range(2):
                    S[row, (2 * pi + di) * OW + (2 * pj + dj)] = 1.0
    return jnp.asarray(S)


def rotation_model_forward(x_nchw, params):
    x = jnp.transpose(x_nchw, (0, 2, 3, 1)).astype(jnp.float32)   # NCHW -> NHWC
    N = x.shape[0]

    for blk, stride in (("b1", 1), ("b2", 2), ("b3", 1)):
        p = params[blk]
        patches, OH, OW = im2col(x, 3, stride)
        out = fused_block(patches, p["w"], p["S"], p["scale"], p["offset"])
        PH, PW = OH // 2, OW // 2
        Cout = p["w"].shape[1]
        x = out.reshape(N, PH, PW, Cout)

    # flatten in torch's view(N, -1) order over (N, C, H, W)
    x = jnp.transpose(x, (0, 3, 1, 2)).reshape(N, -1)

    return classifier(x, params["fc1_w"], params["fc1_b"],
                      params["fc2_w"], params["fc2_b"])


# ------------------------------ parameters ------------------------------

def _out_size(s, k, st):
    return (s - k) // st + 1


def init_params(key, in_channels, img_size):
    keys = jax.random.split(key, 5)

    # spatial sizes through the three blocks
    oh1 = _out_size(img_size, 3, 1); p1 = oh1 // 2
    oh2 = _out_size(p1, 3, 2);       p2 = oh2 // 2
    oh3 = _out_size(p2, 3, 1);       p3 = oh3 // 2
    flat = p3 * p3 * 128

    def conv_block(k, cin, cout, oh, ow):
        kw_, kb, kg, kbe, km, kv = jax.random.split(k, 6)
        fan_in = 3 * 3 * cin
        w = jax.random.normal(kw_, (3, 3, cin, cout), jnp.float32) / np.sqrt(fan_in)
        b = 0.01 * jax.random.normal(kb, (cout,), jnp.float32)
        gamma = 1.0 + 0.1 * jax.random.normal(kg, (cout,), jnp.float32)
        beta = 0.1 * jax.random.normal(kbe, (cout,), jnp.float32)
        mean = 0.1 * jax.random.normal(km, (cout,), jnp.float32)
        var = 1.0 + 0.1 * jnp.abs(jax.random.normal(kv, (cout,), jnp.float32))
        s = gamma / jnp.sqrt(var + 1e-5)                 # eval-mode BN scale
        # fold: BN( 0.25 * sum_window(conv_nobias) + conv_bias )
        scale_eff = (0.25 * s).reshape(1, cout)
        off_eff = ((b - mean) * s + beta).reshape(1, cout)
        return dict(
            w=w.reshape(9 * cin, cout),                  # rows ordered (kh, kw, cin)
            S=pool_sum_matrix(oh, ow),
            scale=scale_eff,
            offset=off_eff,
        )

    def fc_init(k, cin, cout):
        kw_, kb = jax.random.split(k)
        w = jax.random.normal(kw_, (cin, cout), jnp.float32) / np.sqrt(cin)
        b = 0.01 * jax.random.normal(kb, (cout,), jnp.float32)
        return w, b.reshape(1, cout)

    fc1_w, fc1_b = fc_init(keys[3], flat, 64)
    fc2_w, fc2_b = fc_init(keys[4], 64, 4)

    params = dict(
        b1=conv_block(keys[0], in_channels, 64, oh1, oh1),
        b2=conv_block(keys[1], 64, 128, oh2, oh2),
        b3=conv_block(keys[2], 128, 128, oh3, oh3),
        fc1_w=fc1_w, fc1_b=fc1_b, fc2_w=fc2_w, fc2_b=fc2_b,
    )
    return params


# --------------------------------- main ---------------------------------

if __name__ == "__main__":
    IMG_SIZE = 40          # gives 1x1x128 features -> classifier in_features = 128
    BATCH = 2
    IN_CH = 1              # rgb=False

    root = jax.random.PRNGKey(0)
    k_params, k_input = jax.random.split(root)

    params = init_params(k_params, IN_CH, IMG_SIZE)
    x = jax.random.normal(k_input, (BATCH, IN_CH, IMG_SIZE, IMG_SIZE), jnp.float32)

    fwd = jax.jit(rotation_model_forward)
    out = jax.block_until_ready(fwd(x, params))

    assert out.shape == (BATCH, 4)
    # softmax rows must sum to ~1
    assert bool(jnp.all(jnp.abs(jnp.sum(out, axis=-1) - 1.0) < 1e-3))
    print("KERNEL_OK")
</pallas_src>

<mosaic_0001>
module attributes {stable_mosaic.version = 11 : i64} {
  func.func @_fused_block_kernel(%arg0: i32, %arg1: memref<1x1444x9xf32, #tpu.memory_space<vmem>>, %arg2: memref<9x64xf32, #tpu.memory_space<vmem>>, %arg3: memref<361x1444xf32, #tpu.memory_space<vmem>>, %arg4: memref<1x64xf32, #tpu.memory_space<vmem>>, %arg5: memref<1x64xf32, #tpu.memory_space<vmem>>, %arg6: memref<1x361x64xf32, #tpu.memory_space<vmem>>) attributes {dimension_semantics = [#tpu.dimension_semantics<parallel>], iteration_bounds = array<i64: 2>, scalar_prefetch = 0 : i64, scratch_operands = 0 : i64, tpu.core_type = #tpu.core_type<tc>, window_params = [{transform_indices = @transform_0, window_bounds = array<i64: 1, 1444, 9>}, {pipeline_mode = #tpu.pipeline_mode<synchronous>, transform_indices = @transform_1, window_bounds = array<i64: 9, 64>}, {pipeline_mode = #tpu.pipeline_mode<synchronous>, transform_indices = @transform_2, window_bounds = array<i64: 361, 1444>}, {pipeline_mode = #tpu.pipeline_mode<synchronous>, transform_indices = @transform_3, window_bounds = array<i64: 1, 64>}, {pipeline_mode = #tpu.pipeline_mode<synchronous>, transform_indices = @transform_4, window_bounds = array<i64: 1, 64>}, {transform_indices = @transform_5, window_bounds = array<i64: 1, 361, 64>}]} {
    %c0 = arith.constant 0 : index
    %c0_0 = arith.constant 0 : index
    %c0_1 = arith.constant 0 : index
    %0 = vector.load %arg1[%c0, %c0_0, %c0_1] : memref<1x1444x9xf32, #tpu.memory_space<vmem>>, vector<1x1444x9xf32>
    %1 = vector.shape_cast %0 : vector<1x1444x9xf32> to vector<1444x9xf32>
    %c0_2 = arith.constant 0 : index
    %c0_3 = arith.constant 0 : index
    %2 = vector.load %arg2[%c0_2, %c0_3] : memref<9x64xf32, #tpu.memory_space<vmem>>, vector<9x64xf32>
    %cst = arith.constant dense<0.000000e+00> : vector<1444x64xf32>
    %3 = tpu.matmul %1, %2, %cst {dimension_numbers = #tpu.dot_dimension_numbers<[1], [0], [0], [1], [0, 0, 1, 1], [], []>} : vector<1444x9xf32>, vector<9x64xf32>, vector<1444x64xf32> -> vector<1444x64xf32>
    %c0_4 = arith.constant 0 : index
    %c0_5 = arith.constant 0 : index
    %4 = vector.load %arg3[%c0_4, %c0_5] : memref<361x1444xf32, #tpu.memory_space<vmem>>, vector<361x1444xf32>
    %cst_6 = arith.constant dense<0.000000e+00> : vector<361x64xf32>
    %5 = tpu.matmul %4, %3, %cst_6 {dimension_numbers = #tpu.dot_dimension_numbers<[1], [0], [0], [1], [0, 0, 1, 1], [], []>} : vector<361x1444xf32>, vector<1444x64xf32>, vector<361x64xf32> -> vector<361x64xf32>
    %c0_7 = arith.constant 0 : index
    %c0_8 = arith.constant 0 : index
    %6 = vector.load %arg4[%c0_7, %c0_8] : memref<1x64xf32, #tpu.memory_space<vmem>>, vector<1x64xf32>
    %7 = vector.broadcast %6 : vector<1x64xf32> to vector<361x64xf32>
    %8 = arith.mulf %5, %7 : vector<361x64xf32>
    %c0_9 = arith.constant 0 : index
    %c0_10 = arith.constant 0 : index
    %9 = vector.load %arg5[%c0_9, %c0_10] : memref<1x64xf32, #tpu.memory_space<vmem>>, vector<1x64xf32>
    %10 = vector.broadcast %9 : vector<1x64xf32> to vector<361x64xf32>
    %11 = arith.addf %8, %10 : vector<361x64xf32>
    %cst_11 = arith.constant 0.000000e+00 : f32
    %12 = vector.broadcast %cst_11 : f32 to vector<361x64xf32>
    %13 = arith.maximumf %11, %12 : vector<361x64xf32>
    %c0_12 = arith.constant 0 : index
    %c0_13 = arith.constant 0 : index
    %c0_14 = arith.constant 0 : index
    %14 = vector.load %arg6[%c0_12, %c0_13, %c0_14] : memref<1x361x64xf32, #tpu.memory_space<vmem>>, vector<1x361x64xf32>
    %15 = vector.shape_cast %14 : vector<1x361x64xf32> to vector<361x64xf32>
    %16 = vector.shape_cast %13 : vector<361x64xf32> to vector<1x361x64xf32>
    tpu.vector_store %arg6[%c0_12, %c0_13, %c0_14], %16 {strides = array<i32>} : memref<1x361x64xf32, #tpu.memory_space<vmem>>, vector<1x361x64xf32>,
    return
  }
  func.func @transform_0(%arg0: i32) -> (i32, i32, i32) {
    %c0_i32 = arith.constant 0 : i32
    %c0_i32_0 = arith.constant 0 : i32
    %c0_i32_1 = arith.constant 0 : i32
    return %arg0, %c0_i32, %c0_i32_0 : i32, i32, i32
  }
  func.func @transform_1(%arg0: i32) -> (i32, i32) {
    %c0_i32 = arith.constant 0 : i32
    %c0_i32_0 = arith.constant 0 : i32
    %c0_i32_1 = arith.constant 0 : i32
    return %c0_i32, %c0_i32_0 : i32, i32
  }
  func.func @transform_2(%arg0: i32) -> (i32, i32) {
    %c0_i32 = arith.constant 0 : i32
    %c0_i32_0 = arith.constant 0 : i32
    %c0_i32_1 = arith.constant 0 : i32
    return %c0_i32, %c0_i32_0 : i32, i32
  }
  func.func @transform_3(%arg0: i32) -> (i32, i32) {
    %c0_i32 = arith.constant 0 : i32
    %c0_i32_0 = arith.constant 0 : i32
    %c0_i32_1 = arith.constant 0 : i32
    return %c0_i32, %c0_i32_0 : i32, i32
  }
  func.func @transform_4(%arg0: i32) -> (i32, i32) {
    %c0_i32 = arith.constant 0 : i32
    %c0_i32_0 = arith.constant 0 : i32
    %c0_i32_1 = arith.constant 0 : i32
    return %c0_i32, %c0_i32_0 : i32, i32
  }
  func.func @transform_5(%arg0: i32) -> (i32, i32, i32) {
    %c0_i32 = arith.constant 0 : i32
    %c0_i32_0 = arith.constant 0 : i32
    %c0_i32_1 = arith.constant 0 : i32
    return %arg0, %c0_i32, %c0_i32_0 : i32, i32, i32
  }
}

module attributes {stable_mosaic.version = 11 : i64} {
  func.func @_fused_block_kernel(%arg0: i32, %arg1: memref<1x81x576xf32, #tpu.memory_space<vmem>>, %arg2: memref<576x128xf32, #tpu.memory_space<vmem>>, %arg3: memref<16x81xf32, #tpu.memory_space<vmem>>, %arg4: memref<1x128xf32, #tpu.memory_space<vmem>>, %arg5: memref<1x128xf32, #tpu.memory_space<vmem>>, %arg6: memref<1x16x128xf32, #tpu.memory_space<vmem>>) attributes {dimension_semantics = [#tpu.dimension_semantics<parallel>], iteration_bounds = array<i64: 2>, scalar_prefetch = 0 : i64, scratch_operands = 0 : i64, tpu.core_type = #tpu.core_type<tc>, window_params = [{transform_indices = @transform_0, window_bounds = array<i64: 1, 81, 576>}, {pipeline_mode = #tpu.pipeline_mode<synchronous>, transform_indices = @transform_1, window_bounds = array<i64: 576, 128>}, {pipeline_mode = #tpu.pipeline_mode<synchronous>, transform_indices = @transform_2, window_bounds = array<i64: 16, 81>}, {pipeline_mode = #tpu.pipeline_mode<synchronous>, transform_indices = @transform_3, window_bounds = array<i64: 1, 128>}, {pipeline_mode = #tpu.pipeline_mode<synchronous>, transform_indices = @transform_4, window_bounds = array<i64: 1, 128>}, {transform_indices = @transform_5, window_bounds = array<i64: 1, 16, 128>}]} {
    %c0 = arith.constant 0 : index
    %c0_0 = arith.constant 0 : index
    %c0_1 = arith.constant 0 : index
    %0 = vector.load %arg1[%c0, %c0_0, %c0_1] : memref<1x81x576xf32, #tpu.memory_space<vmem>>, vector<1x81x576xf32>
    %1 = vector.shape_cast %0 : vector<1x81x576xf32> to vector<81x576xf32>
    %c0_2 = arith.constant 0 : index
    %c0_3 = arith.constant 0 : index
    %2 = vector.load %arg2[%c0_2, %c0_3] : memref<576x128xf32, #tpu.memory_space<vmem>>, vector<576x128xf32>
    %cst = arith.constant dense<0.000000e+00> : vector<81x128xf32>
    %3 = tpu.matmul %1, %2, %cst {dimension_numbers = #tpu.dot_dimension_numbers<[1], [0], [0], [1], [0, 0, 1, 1], [], []>} : vector<81x576xf32>, vector<576x128xf32>, vector<81x128xf32> -> vector<81x128xf32>
    %c0_4 = arith.constant 0 : index
    %c0_5 = arith.constant 0 : index
    %4 = vector.load %arg3[%c0_4, %c0_5] : memref<16x81xf32, #tpu.memory_space<vmem>>, vector<16x81xf32>
    %cst_6 = arith.constant dense<0.000000e+00> : vector<16x128xf32>
    %5 = tpu.matmul %4, %3, %cst_6 {dimension_numbers = #tpu.dot_dimension_numbers<[1], [0], [0], [1], [0, 0, 1, 1], [], []>} : vector<16x81xf32>, vector<81x128xf32>, vector<16x128xf32> -> vector<16x128xf32>
    %c0_7 = arith.constant 0 : index
    %c0_8 = arith.constant 0 : index
    %6 = vector.load %arg4[%c0_7, %c0_8] : memref<1x128xf32, #tpu.memory_space<vmem>>, vector<1x128xf32>
    %7 = vector.broadcast %6 : vector<1x128xf32> to vector<16x128xf32>
    %8 = arith.mulf %5, %7 : vector<16x128xf32>
    %c0_9 = arith.constant 0 : index
    %c0_10 = arith.constant 0 : index
    %9 = vector.load %arg5[%c0_9, %c0_10] : memref<1x128xf32, #tpu.memory_space<vmem>>, vector<1x128xf32>
    %10 = vector.broadcast %9 : vector<1x128xf32> to vector<16x128xf32>
    %11 = arith.addf %8, %10 : vector<16x128xf32>
    %cst_11 = arith.constant 0.000000e+00 : f32
    %12 = vector.broadcast %cst_11 : f32 to vector<16x128xf32>
    %13 = arith.maximumf %11, %12 : vector<16x128xf32>
    %c0_12 = arith.constant 0 : index
    %c0_13 = arith.constant 0 : index
    %c0_14 = arith.constant 0 : index
    %14 = vector.load %arg6[%c0_12, %c0_13, %c0_14] : memref<1x16x128xf32, #tpu.memory_space<vmem>>, vector<1x16x128xf32>
    %15 = vector.shape_cast %14 : vector<1x16x128xf32> to vector<16x128xf32>
    %16 = vector.shape_cast %13 : vector<16x128xf32> to vector<1x16x128xf32>
    tpu.vector_store %arg6[%c0_12, %c0_13, %c0_14], %16 {strides = array<i32>} : memref<1x16x128xf32, #tpu.memory_space<vmem>>, vector<1x16x128xf32>,
    return
  }
  func.func @transform_0(%arg0: i32) -> (i32, i32, i32) {
    %c0_i32 = arith.constant 0 : i32
    %c0_i32_0 = arith.constant 0 : i32
    %c0_i32_1 = arith.constant 0 : i32
    return %arg0, %c0_i32, %c0_i32_0 : i32, i32, i32
  }
  func.func @transform_1(%arg0: i32) -> (i32, i32) {
    %c0_i32 = arith.constant 0 : i32
    %c0_i32_0 = arith.constant 0 : i32
    %c0_i32_1 = arith.constant 0 : i32
    return %c0_i32, %c0_i32_0 : i32, i32
  }
  func.func @transform_2(%arg0: i32) -> (i32, i32) {
    %c0_i32 = arith.constant 0 : i32
    %c0_i32_0 = arith.constant 0 : i32
    %c0_i32_1 = arith.constant 0 : i32
    return %c0_i32, %c0_i32_0 : i32, i32
  }
  func.func @transform_3(%arg0: i32) -> (i32, i32) {
    %c0_i32 = arith.constant 0 : i32
    %c0_i32_0 = arith.constant 0 : i32
    %c0_i32_1 = arith.constant 0 : i32
    return %c0_i32, %c0_i32_0 : i32, i32
  }
  func.func @transform_4(%arg0: i32) -> (i32, i32) {
    %c0_i32 = arith.constant 0 : i32
    %c0_i32_0 = arith.constant 0 : i32
    %c0_i32_1 = arith.constant 0 : i32
    return %c0_i32, %c0_i32_0 : i32, i32
  }
  func.func @transform_5(%arg0: i32) -> (i32, i32, i32) {
    %c0_i32 = arith.constant 0 : i32
    %c0_i32_0 = arith.constant 0 : i32
    %c0_i32_1 = arith.constant 0 : i32
    return %arg0, %c0_i32, %c0_i32_0 : i32, i32, i32
  }
}

module attributes {stable_mosaic.version = 11 : i64} {
  func.func @_fused_block_kernel(%arg0: i32, %arg1: memref<1x4x1152xf32, #tpu.memory_space<vmem>>, %arg2: memref<1152x128xf32, #tpu.memory_space<vmem>>, %arg3: memref<1x4xf32, #tpu.memory_space<vmem>>, %arg4: memref<1x128xf32, #tpu.memory_space<vmem>>, %arg5: memref<1x128xf32, #tpu.memory_space<vmem>>, %arg6: memref<1x1x128xf32, #tpu.memory_space<vmem>>) attributes {dimension_semantics = [#tpu.dimension_semantics<parallel>], iteration_bounds = array<i64: 2>, scalar_prefetch = 0 : i64, scratch_operands = 0 : i64, tpu.core_type = #tpu.core_type<tc>, window_params = [{transform_indices = @transform_0, window_bounds = array<i64: 1, 4, 1152>}, {pipeline_mode = #tpu.pipeline_mode<synchronous>, transform_indices = @transform_1, window_bounds = array<i64: 1152, 128>}, {pipeline_mode = #tpu.pipeline_mode<synchronous>, transform_indices = @transform_2, window_bounds = array<i64: 1, 4>}, {pipeline_mode = #tpu.pipeline_mode<synchronous>, transform_indices = @transform_3, window_bounds = array<i64: 1, 128>}, {pipeline_mode = #tpu.pipeline_mode<synchronous>, transform_indices = @transform_4, window_bounds = array<i64: 1, 128>}, {transform_indices = @transform_5, window_bounds = array<i64: 1, 1, 128>}]} {
    %c0 = arith.constant 0 : index
    %c0_0 = arith.constant 0 : index
    %c0_1 = arith.constant 0 : index
    %0 = vector.load %arg1[%c0, %c0_0, %c0_1] : memref<1x4x1152xf32, #tpu.memory_space<vmem>>, vector<1x4x1152xf32>
    %1 = vector.shape_cast %0 : vector<1x4x1152xf32> to vector<4x1152xf32>
    %c0_2 = arith.constant 0 : index
    %c0_3 = arith.constant 0 : index
    %2 = vector.load %arg2[%c0_2, %c0_3] : memref<1152x128xf32, #tpu.memory_space<vmem>>, vector<1152x128xf32>
    %cst = arith.constant dense<0.000000e+00> : vector<4x128xf32>
    %3 = tpu.matmul %1, %2, %cst {dimension_numbers = #tpu.dot_dimension_numbers<[1], [0], [0], [1], [0, 0, 1, 1], [], []>} : vector<4x1152xf32>, vector<1152x128xf32>, vector<4x128xf32> -> vector<4x128xf32>
    %c0_4 = arith.constant 0 : index
    %c0_5 = arith.constant 0 : index
    %4 = vector.load %arg3[%c0_4, %c0_5] : memref<1x4xf32, #tpu.memory_space<vmem>>, vector<1x4xf32>
    %cst_6 = arith.constant dense<0.000000e+00> : vector<1x128xf32>
    %5 = tpu.matmul %4, %3, %cst_6 {dimension_numbers = #tpu.dot_dimension_numbers<[1], [0], [0], [1], [0, 0, 1, 1], [], []>} : vector<1x4xf32>, vector<4x128xf32>, vector<1x128xf32> -> vector<1x128xf32>
    %c0_7 = arith.constant 0 : index
    %c0_8 = arith.constant 0 : index
    %6 = vector.load %arg4[%c0_7, %c0_8] : memref<1x128xf32, #tpu.memory_space<vmem>>, vector<1x128xf32>
    %7 = arith.mulf %5, %6 : vector<1x128xf32>
    %c0_9 = arith.constant 0 : index
    %c0_10 = arith.constant 0 : index
    %8 = vector.load %arg5[%c0_9, %c0_10] : memref<1x128xf32, #tpu.memory_space<vmem>>, vector<1x128xf32>
    %9 = arith.addf %7, %8 : vector<1x128xf32>
    %cst_11 = arith.constant 0.000000e+00 : f32
    %10 = vector.broadcast %cst_11 : f32 to vector<1x128xf32>
    %11 = arith.maximumf %9, %10 : vector<1x128xf32>
    %c0_12 = arith.constant 0 : index
    %c0_13 = arith.constant 0 : index
    %c0_14 = arith.constant 0 : index
    %12 = vector.load %arg6[%c0_12, %c0_13, %c0_14] : memref<1x1x128xf32, #tpu.memory_space<vmem>>, vector<1x1x128xf32>
    %13 = vector.shape_cast %12 : vector<1x1x128xf32> to vector<1x128xf32>
    %14 = vector.shape_cast %11 : vector<1x128xf32> to vector<1x1x128xf32>
    tpu.vector_store %arg6[%c0_12, %c0_13, %c0_14], %14 {strides = array<i32>} : memref<1x1x128xf32, #tpu.memory_space<vmem>>, vector<1x1x128xf32>,
    return
  }
  func.func @transform_0(%arg0: i32) -> (i32, i32, i32) {
    %c0_i32 = arith.constant 0 : i32
    %c0_i32_0 = arith.constant 0 : i32
    %c0_i32_1 = arith.constant 0 : i32
    return %arg0, %c0_i32, %c0_i32_0 : i32, i32, i32
  }
  func.func @transform_1(%arg0: i32) -> (i32, i32) {
    %c0_i32 = arith.constant 0 : i32
    %c0_i32_0 = arith.constant 0 : i32
    %c0_i32_1 = arith.constant 0 : i32
    return %c0_i32, %c0_i32_0 : i32, i32
  }
  func.func @transform_2(%arg0: i32) -> (i32, i32) {
    %c0_i32 = arith.constant 0 : i32
    %c0_i32_0 = arith.constant 0 : i32
    %c0_i32_1 = arith.constant 0 : i32
    return %c0_i32, %c0_i32_0 : i32, i32
  }
  func.func @transform_3(%arg0: i32) -> (i32, i32) {
    %c0_i32 = arith.constant 0 : i32
    %c0_i32_0 = arith.constant 0 : i32
    %c0_i32_1 = arith.constant 0 : i32
    return %c0_i32, %c0_i32_0 : i32, i32
  }
  func.func @transform_4(%arg0: i32) -> (i32, i32) {
    %c0_i32 = arith.constant 0 : i32
    %c0_i32_0 = arith.constant 0 : i32
    %c0_i32_1 = arith.constant 0 : i32
    return %c0_i32, %c0_i32_0 : i32, i32
  }
  func.func @transform_5(%arg0: i32) -> (i32, i32, i32) {
    %c0_i32 = arith.constant 0 : i32
    %c0_i32_0 = arith.constant 0 : i32
    %c0_i32_1 = arith.constant 0 : i32
    return %arg0, %c0_i32, %c0_i32_0 : i32, i32, i32
  }
}

module attributes {stable_mosaic.version = 11 : i64} {
  func.func @_classifier_kernel(%arg0: i32, %arg1: memref<2x128xf32, #tpu.memory_space<vmem>>, %arg2: memref<128x64xf32, #tpu.memory_space<vmem>>, %arg3: memref<1x64xf32, #tpu.memory_space<vmem>>, %arg4: memref<64x4xf32, #tpu.memory_space<vmem>>, %arg5: memref<1x4xf32, #tpu.memory_space<vmem>>, %arg6: memref<2x4xf32, #tpu.memory_space<vmem>>) attributes {dimension_semantics = [#tpu.dimension_semantics<arbitrary>], iteration_bounds = array<i64: 1>, scalar_prefetch = 0 : i64, scratch_operands = 0 : i64, tpu.core_type = #tpu.core_type<tc>, window_params = [{pipeline_mode = #tpu.pipeline_mode<synchronous>, transform_indices = @transform_0, window_bounds = array<i64: 2, 128>}, {pipeline_mode = #tpu.pipeline_mode<synchronous>, transform_indices = @transform_1, window_bounds = array<i64: 128, 64>}, {pipeline_mode = #tpu.pipeline_mode<synchronous>, transform_indices = @transform_2, window_bounds = array<i64: 1, 64>}, {pipeline_mode = #tpu.pipeline_mode<synchronous>, transform_indices = @transform_3, window_bounds = array<i64: 64, 4>}, {pipeline_mode = #tpu.pipeline_mode<synchronous>, transform_indices = @transform_4, window_bounds = array<i64: 1, 4>}, {pipeline_mode = #tpu.pipeline_mode<synchronous>, transform_indices = @transform_5, window_bounds = array<i64: 2, 4>}]} {
    %c0 = arith.constant 0 : index
    %c0_0 = arith.constant 0 : index
    %0 = vector.load %arg1[%c0, %c0_0] : memref<2x128xf32, #tpu.memory_space<vmem>>, vector<2x128xf32>
    %c0_1 = arith.constant 0 : index
    %c0_2 = arith.constant 0 : index
    %1 = vector.load %arg2[%c0_1, %c0_2] : memref<128x64xf32, #tpu.memory_space<vmem>>, vector<128x64xf32>
    %cst = arith.constant dense<0.000000e+00> : vector<2x64xf32>
    %2 = tpu.matmul %0, %1, %cst {dimension_numbers = #tpu.dot_dimension_numbers<[1], [0], [0], [1], [0, 0, 1, 1], [], []>} : vector<2x128xf32>, vector<128x64xf32>, vector<2x64xf32> -> vector<2x64xf32>
    %c0_3 = arith.constant 0 : index
    %c0_4 = arith.constant 0 : index
    %3 = vector.load %arg3[%c0_3, %c0_4] : memref<1x64xf32, #tpu.memory_space<vmem>>, vector<1x64xf32>
    %4 = vector.broadcast %3 : vector<1x64xf32> to vector<2x64xf32>
    %5 = arith.addf %2, %4 : vector<2x64xf32>
    %cst_5 = arith.constant 0.000000e+00 : f32
    %6 = vector.broadcast %cst_5 : f32 to vector<2x64xf32>
    %7 = arith.maximumf %5, %6 : vector<2x64xf32>
    %c0_6 = arith.constant 0 : index
    %c0_7 = arith.constant 0 : index
    %8 = vector.load %arg4[%c0_6, %c0_7] : memref<64x4xf32, #tpu.memory_space<vmem>>, vector<64x4xf32>
    %cst_8 = arith.constant dense<0.000000e+00> : vector<2x4xf32>
    %9 = tpu.matmul %7, %8, %cst_8 {dimension_numbers = #tpu.dot_dimension_numbers<[1], [0], [0], [1], [0, 0, 1, 1], [], []>} : vector<2x64xf32>, vector<64x4xf32>, vector<2x4xf32> -> vector<2x4xf32>
    %c0_9 = arith.constant 0 : index
    %c0_10 = arith.constant 0 : index
    %10 = vector.load %arg5[%c0_9, %c0_10] : memref<1x4xf32, #tpu.memory_space<vmem>>, vector<1x4xf32>
    %11 = vector.broadcast %10 : vector<1x4xf32> to vector<2x4xf32>
    %12 = arith.addf %9, %11 : vector<2x4xf32>
    %cst_11 = arith.constant 0.000000e+00 : f32
    %13 = vector.broadcast %cst_11 : f32 to vector<2x4xf32>
    %14 = arith.maximumf %12, %13 : vector<2x4xf32>
    %cst_12 = arith.constant dense<0xFF800000> : vector<2xf32>
    %15 = vector.multi_reduction <maximumf>, %14, %cst_12 [1] : vector<2x4xf32> to vector<2xf32>
    %16 = vector.shape_cast %15 : vector<2xf32> to vector<2x1xf32>
    %17 = vector.broadcast %16 : vector<2x1xf32> to vector<2x4xf32>
    %18 = arith.subf %14, %17 : vector<2x4xf32>
    %19 = math.exp %18 : vector<2x4xf32>
    %cst_13 = arith.constant dense<0.000000e+00> : vector<2xf32>
    %20 = vector.multi_reduction <add>, %19, %cst_13 [1] : vector<2x4xf32> to vector<2xf32>
    %21 = vector.shape_cast %20 : vector<2xf32> to vector<2x1xf32>
    %22 = vector.broadcast %21 : vector<2x1xf32> to vector<2x4xf32>
    %23 = arith.divf %19, %22 : vector<2x4xf32>
    %c0_14 = arith.constant 0 : index
    %c0_15 = arith.constant 0 : index
    %24 = vector.load %arg6[%c0_14, %c0_15] : memref<2x4xf32, #tpu.memory_space<vmem>>, vector<2x4xf32>
    tpu.vector_store %arg6[%c0_14, %c0_15], %23 {strides = array<i32>} : memref<2x4xf32, #tpu.memory_space<vmem>>, vector<2x4xf32>,
    return
  }
  func.func @transform_0(%arg0: i32) -> (i32, i32) {
    %c0_i32 = arith.constant 0 : i32
    %c0_i32_0 = arith.constant 0 : i32
    %c0_i32_1 = arith.constant 0 : i32
    return %c0_i32, %c0_i32_0 : i32, i32
  }
  func.func @transform_1(%arg0: i32) -> (i32, i32) {
    %c0_i32 = arith.constant 0 : i32
    %c0_i32_0 = arith.constant 0 : i32
    %c0_i32_1 = arith.constant 0 : i32
    return %c0_i32, %c0_i32_0 : i32, i32
  }
  func.func @transform_2(%arg0: i32) -> (i32, i32) {
    %c0_i32 = arith.constant 0 : i32
    %c0_i32_0 = arith.constant 0 : i32
    %c0_i32_1 = arith.constant 0 : i32
    return %c0_i32, %c0_i32_0 : i32, i32
  }
  func.func @transform_3(%arg0: i32) -> (i32, i32) {
    %c0_i32 = arith.constant 0 : i32
    %c0_i32_0 = arith.constant 0 : i32
    %c0_i32_1 = arith.constant 0 : i32
    return %c0_i32, %c0_i32_0 : i32, i32
  }
  func.func @transform_4(%arg0: i32) -> (i32, i32) {
    %c0_i32 = arith.constant 0 : i32
    %c0_i32_0 = arith.constant 0 : i32
    %c0_i32_1 = arith.constant 0 : i32
    return %c0_i32, %c0_i32_0 : i32, i32
  }
  func.func @transform_5(%arg0: i32) -> (i32, i32) {
    %c0_i32 = arith.constant 0 : i32
    %c0_i32_0 = arith.constant 0 : i32
    %c0_i32_1 = arith.constant 0 : i32
    return %c0_i32, %c0_i32_0 : i32, i32
  }
}

</mosaic_0001>

<bundles_post_ra>
// kernel: rotation_model_forward.5
= control target key start
LH: loop header
LB: loop body
LE: loop exit
PB: predicated region body
PF: predicated region fallthrough
CT: control target
= control target key end

     0   :  { %s849_s18 = smov 0   ;;  %s1191_s0 = inlined_call_operand.vmem [shape: f32[2,81,576], index: 0, kind: input, shape index: {}]   ;;  %s1192_s1 = inlined_call_operand.vmem [shape: f32[576,128], index: 1, kind: input, shape index: {}]   ;;  %s1193_s2 = inlined_call_operand.vmem [shape: f32[16,81], index: 2, kind: input, shape index: {}]   ;;  %s1194_s3 = inlined_call_operand.vmem [shape: f32[1,128], index: 3, kind: input, shape index: {}]   ;;  %s1195_s4 = inlined_call_operand.vmem [shape: f32[1,128], index: 4, kind: input, shape index: {}]   ;;  %s1196_s5 = inlined_call_operand.vmem [shape: f32[2,16,128], index: 5, kind: output, shape index: {}]  }
   0x1 LB: > { %s743_s19 = sadd.s32 4294967295, %s817_s18   ;;  %p747_p0 = scmp.ge.s32.totalorder %s817_s18, 1  ;;  %s817_s18 = sphi %s849_s18, %s15_s18  }
   0x2   : > { %p187_p1 = scmp.lt.s32.totalorder %s817_s18, 3 }
   0x4   : > { %p188_p2 = pnand %p747_p0, %p187_p1 }
   0x5   : > { %p215_p3 = scmp.lt.s32.totalorder (!%p188_p2), %s743_s19, 1 }
   0x6   : > { %191 = sbr.rel (%p188_p2) target bundleno = 455 (0x1c7), region = 40 }
   0xb   : > { %v295_v0 = vld [vmem:[%s1192_s1 + $0x78] sm:$0xff]  ;;  %v294_v2 = vld [vmem:[%s1192_s1 + $0x70] sm:$0xff]  ;;  %v293_v4 = vld [vmem:[%s1192_s1 + $0x68] sm:$0xff]  ;;  %s1198_s19 = smov (!%p215_p3, %s743_s19), 1  ;;  %vm352_vm0 = vcmask 523264   ;;  %vm645_vm1 = vcmask 1040384  }
   0xc   : > { %v311_v1 = vld [vmem:[%s1192_s1 + $0xf8] sm:$0xff]  ;;  %768 = vmatpush.msra.mxu2 %v295_v0  ;;  %v310_v3 = vld [vmem:[%s1192_s1 + $0xf0] sm:$0xff]  ;;  %769 = vmatpush.msra.mxu3 %v295_v0  ;;  %v309_v5 = vld [vmem:[%s1192_s1 + $0xe8] sm:$0xff]  ;;  %s800_s26 = smul.u32 440, %s1198_s19  ;;  %vm638_vm2 = vcmask 662528   ;;  %s767_s16 = sshll.u32 %s1198_s19, 4 }
   0xd   : > { %436 = vmatpush.msra.mxu1 %v311_v1  ;;  %386 = vmatpush.msra.mxu0 %v295_v0  ;;  %v292_v6 = vld [vmem:[%s1192_s1 + $0x60] sm:$0xff]  ;;  %v291_v8 = vld [vmem:[%s1192_s1 + $0x58] sm:$0xff]  ;;  %v290_v10 = vld [vmem:[%s1192_s1 + $0x50] sm:$0xff]  ;;  %s224_s21 = scalar_lea.vmem %s1196_s5, %s767_s16 }
   0xe   : > { %770 = vmatpush.msra.mxu2 %v294_v2  ;;  %771 = vmatpush.msra.mxu3 %v294_v2  ;;  %v308_v7 = vld [vmem:[%s1192_s1 + $0xe0] sm:$0xff]  ;;  %v307_v9 = vld [vmem:[%s1192_s1 + $0xd8] sm:$0xff]  ;;  %v306_v11 = vld [vmem:[%s1192_s1 + $0xd0] sm:$0xff]  ;;  %s957_s12 = scalar_lea.vmem %s1191_s0, %s800_s26 }
   0xf   : > { %437 = vmatpush.msra.mxu1 %v310_v3  ;;  %387 = vmatpush.msra.mxu0 %v294_v2  ;;  %v289_v12 = vld [vmem:[%s1192_s1 + $0x48] sm:$0xff]  ;;  %v288_v14 = vld [vmem:[%s1192_s1 + $0x40] sm:$0xff]  ;;  %v287_v16 = vld [vmem:[%s1192_s1 + $0x38] sm:$0xff] }
  0x10   : > { %772 = vmatpush.msra.mxu2 %v293_v4  ;;  %773 = vmatpush.msra.mxu3 %v293_v4  ;;  %v305_v13 = vld [vmem:[%s1192_s1 + $0xc8] sm:$0xff]  ;;  %v304_v15 = vld [vmem:[%s1192_s1 + $0xc0] sm:$0xff]  ;;  %v303_v17 = vld [vmem:[%s1192_s1 + $0xb8] sm:$0xff] }
  0x11   : > { %438 = vmatpush.msra.mxu1 %v309_v5  ;;  %388 = vmatpush.msra.mxu0 %v293_v4  ;;  %v286_v18 = vld [vmem:[%s1192_s1 + $0x30] sm:$0xff]  ;;  %v285_v20 = vld [vmem:[%s1192_s1 + $0x28] sm:$0xff]  ;;  %v284_v22 = vld [vmem:[%s1192_s1 + $0x20] sm:$0xff] }
  0x12   : > { %774 = vmatpush.msra.mxu2 %v292_v6  ;;  %775 = vmatpush.msra.mxu3 %v292_v6  ;;  %v302_v19 = vld [vmem:[%s1192_s1 + $0xb0] sm:$0xff]  ;;  %v301_v21 = vld [vmem:[%s1192_s1 + $0xa8] sm:$0xff]  ;;  %v300_v23 = vld [vmem:[%s1192_s1 + $0xa0] sm:$0xff] }
  0x13   : > { %439 = vmatpush.msra.mxu1 %v308_v7  ;;  %389 = vmatpush.msra.mxu0 %v292_v6  ;;  %v283_v24 = vld [vmem:[%s1192_s1 + $0x18] sm:$0xff]  ;;  %v282_v26 = vld [vmem:[%s1192_s1 + $0x10] sm:$0xff]  ;;  %v281_v28 = vld [vmem:[%s1192_s1 + $0x8] sm:$0xff] }
  0x14   : > { %776 = vmatpush.msra.mxu2 %v291_v8  ;;  %777 = vmatpush.msra.mxu3 %v291_v8  ;;  %v299_v25 = vld [vmem:[%s1192_s1 + $0x98] sm:$0xff]  ;;  %v298_v27 = vld [vmem:[%s1192_s1 + $0x90] sm:$0xff]  ;;  %v297_v29 = vld [vmem:[%s1192_s1 + $0x88] sm:$0xff] }
  0x15   : > { %440 = vmatpush.msra.mxu1 %v307_v9  ;;  %390 = vmatpush.msra.mxu0 %v291_v8  ;;  %v280_v30 = vld [vmem:[%s1192_s1] sm:$0xff]  ;;  %v226_v33 = vld [vmem:[%s957_s12 + $0x8] sm:$0xff]  ;;  %v327_v34 = vld [vmem:[%s1192_s1 + $0x178] sm:$0xff] }
  0x16   : > { %778 = vmatpush.msra.mxu2 %v290_v10  ;;  %779 = vmatpush.msra.mxu3 %v290_v10  ;;  %v296_v31 = vld [vmem:[%s1192_s1 + $0x80] sm:$0xff]  ;;  %v343_v35 = vld [vmem:[%s1192_s1 + $0x1f8] sm:$0xff]  ;;  %v326_v36 = vld [vmem:[%s1192_s1 + $0x170] sm:$0xff] }
  0x17   : > { %441 = vmatpush.msra.mxu1 %v306_v11  ;;  %391 = vmatpush.msra.mxu0 %v290_v10  ;;  %v245_v32 = vld [vmem:[%s957_s12 + $0xa0] sm:$0xff]  ;;  %v342_v38 = vld [vmem:[%s1192_s1 + $0x1f0] sm:$0xff]  ;;  %v351_v39 = vld [vmem:[%s1192_s1 + $0x238] sm:$0xff] }
  0x18   : > { %780 = vmatpush.msra.mxu2 %v289_v12  ;;  %781 = vmatpush.msra.mxu3 %v289_v12  ;;  %v225_v37 = vld [vmem:[%s957_s12] sm:$0xff]  ;;  %v325_v40 = vld [vmem:[%s1192_s1 + $0x168] sm:$0xff]  ;;  %v350_v43 = vld [vmem:[%s1192_s1 + $0x230] sm:$0xff] }
  0x19   : > { %442 = vmatpush.msra.mxu1 %v305_v13  ;;  %392 = vmatpush.msra.mxu0 %v289_v12  ;;  %v265_v41 = vld [vmem:[%s957_s12 + $0x140] sm:$0xff]  ;;  %v341_v42 = vld [vmem:[%s1192_s1 + $0x1e8] sm:$0xff]  ;;  %v231_v46 = vld [vmem:[%s957_s12 + $0x30] sm:$0xff] }
  0x1a   : > { %782 = vmatpush.msra.mxu2 %v288_v14  ;;  %783 = vmatpush.msra.mxu3 %v288_v14  ;;  %v324_v44 = vld [vmem:[%s1192_s1 + $0x160] sm:$0xff]  ;;  %v250_v45 = vld [vmem:[%s957_s12 + $0xc8] sm:$0xff]  ;;  %v323_v47 = vld [vmem:[%s1192_s1 + $0x158] sm:$0xff] }
  0x1b   : > { %443 = vmatpush.msra.mxu1 %v304_v15  ;;  %393 = vmatpush.msra.mxu0 %v288_v14  ;;  %v340_v48 = vld [vmem:[%s1192_s1 + $0x1e0] sm:$0xff]  ;;  %v349_v49 = vld [vmem:[%s1192_s1 + $0x228] sm:$0xff]  ;;  %v322_v50 = vld [vmem:[%s1192_s1 + $0x150] sm:$0xff] }
  0x1c   : > { %784 = vmatpush.msra.mxu2 %v287_v16  ;;  %785 = vmatpush.msra.mxu3 %v287_v16  ;;  %v339_v51 = vld [vmem:[%s1192_s1 + $0x1d8] sm:$0xff]  ;;  %v230_v52 = vld [vmem:[%s957_s12 + $0x28] sm:$0xff]  ;;  %v338_v54 = vld [vmem:[%s1192_s1 + $0x1d0] sm:$0xff] }
  0x1d   : > { %444 = vmatpush.msra.mxu1 %v303_v17  ;;  %394 = vmatpush.msra.mxu0 %v287_v16  ;;  %v321_v53 = vld [vmem:[%s1192_s1 + $0x148] sm:$0xff]  ;;  %v348_v56 = vld [vmem:[%s1192_s1 + $0x220] sm:$0xff]  ;;  %v255_v59 = vld [vmem:[%s957_s12 + $0xf0] sm:$0xff] }
  0x1e   : > { %786 = vmatpush.msra.mxu2 %v286_v18  ;;  %787 = vmatpush.msra.mxu3 %v286_v18  ;;  %v270_v55 = vld [vmem:[%s957_s12 + $0x168] sm:$0xff]  ;;  %v320_v57 = vld [vmem:[%s1192_s1 + $0x140] sm:$0xff]  ;;  %v236_v60 = vld [vmem:[%s957_s12 + $0x58] sm:$0xff] }
  0x1f   : > { %445 = vmatpush.msra.mxu1 %v302_v19  ;;  %395 = vmatpush.msra.mxu0 %v286_v18  ;;  %v337_v58 = vld [vmem:[%s1192_s1 + $0x1c8] sm:$0xff]  ;;  %v319_v61 = vld [vmem:[%s1192_s1 + $0x138] sm:$0xff]  ;;  %v336_v62 = vld [vmem:[%s1192_s1 + $0x1c0] sm:$0xff] }
  0x20   : > { %788 = vmatpush.msra.mxu2 %v285_v20  ;;  %789 = vmatpush.msra.mxu3 %v285_v20  ;;  %v347_v63 = vld [vmem:[%s1192_s1 + $0x218] sm:$0xff]  ;;  %v318_v0 = vld [vmem:[%s1192_s1 + $0x130] sm:$0xff]  ;;  %v317_v3 = vld [vmem:[%s1192_s1 + $0x128] sm:$0xff] }
  0x21   : > { %446 = vmatpush.msra.mxu1 %v301_v21  ;;  %396 = vmatpush.msra.mxu0 %v285_v20  ;;  %v335_v1 = vld [vmem:[%s1192_s1 + $0x1b8] sm:$0xff]  ;;  %v235_v2 = vld [vmem:[%s957_s12 + $0x50] sm:$0xff]  ;;  %v316_v7 = vld [vmem:[%s1192_s1 + $0x120] sm:$0xff] }
  0x22   : > { %790 = vmatpush.msra.mxu2 %v284_v22  ;;  %791 = vmatpush.msra.mxu3 %v284_v22  ;;  %v334_v4 = vld [vmem:[%s1192_s1 + $0x1b0] sm:$0xff]  ;;  %v333_v8 = vld [vmem:[%s1192_s1 + $0x1a8] sm:$0xff]  ;;  %v260_v9 = vld [vmem:[%s957_s12 + $0x118] sm:$0xff] }
  0x23   : > { %447 = vmatpush.msra.mxu1 %v300_v23  ;;  %397 = vmatpush.msra.mxu0 %v284_v22  ;;  %v275_v5 = vld [vmem:[%s957_s12 + $0x190] sm:$0x1]  ;;  %v241_v10 = vld [vmem:[%s957_s12 + $0x80] sm:$0xff]  ;;  %v315_v11 = vld [vmem:[%s1192_s1 + $0x118] sm:$0xff] }
  0x24   : > { %792 = vmatpush.msra.mxu2 %v283_v24  ;;  %793 = vmatpush.msra.mxu3 %v283_v24  ;;  %v346_v6 = vld [vmem:[%s1192_s1 + $0x210] sm:$0xff]  ;;  %v332_v12 = vld [vmem:[%s1192_s1 + $0x1a0] sm:$0xff]  ;;  %v345_v13 = vld [vmem:[%s1192_s1 + $0x208] sm:$0xff] }
  0x25   : > { %448 = vmatpush.msra.mxu1 %v299_v25  ;;  %398 = vmatpush.msra.mxu0 %v283_v24  ;;  %v314_v14 = vld [vmem:[%s1192_s1 + $0x110] sm:$0xff]  ;;  %v331_v15 = vld [vmem:[%s1192_s1 + $0x198] sm:$0xff]  ;;  %v313_v17 = vld [vmem:[%s1192_s1 + $0x108] sm:$0xff] }
  0x26   : > { %794 = vmatpush.msra.mxu2 %v282_v26  ;;  %795 = vmatpush.msra.mxu3 %v282_v26  ;;  %v240_v16 = vld [vmem:[%s957_s12 + $0x78] sm:$0xff]  ;;  %v330_v18 = vld [vmem:[%s1192_s1 + $0x190] sm:$0xff]  ;;  %v344_v19 = vld [vmem:[%s1192_s1 + $0x200] sm:$0xff] }
  0x27   : > { %449 = vmatpush.msra.mxu1 %v298_v27  ;;  %399 = vmatpush.msra.mxu0 %v282_v26  ;;  %v312_v20 = vld [vmem:[%s1192_s1 + $0x100] sm:$0xff]  ;;  %v329_v21 = vld [vmem:[%s1192_s1 + $0x188] sm:$0xff]  ;;  %v227_v23 = vld [vmem:[%s957_s12 + $0x10] sm:$0xff] }
  0x28   : > { %796 = vmatpush.msra.mxu2 %v281_v28  ;;  %797 = vmatpush.msra.mxu3 %v281_v28  ;;  %v246_v22 = vld [vmem:[%s957_s12 + $0xa8] sm:$0xff]  ;;  %v328_v24 = vld [vmem:[%s1192_s1 + $0x180] sm:$0xff]  ;;  %v228_v25 = vld [vmem:[%s957_s12 + $0x18] sm:$0xff] }
  0x29   : > { %450 = vmatpush.msra.mxu1 %v297_v29  ;;  %400 = vmatpush.msra.mxu0 %v281_v28  ;;  %v229_v26 = vld [vmem:[%s957_s12 + $0x20] sm:$0xff]  ;;  %v251_v27 = vld [vmem:[%s957_s12 + $0xd0] sm:$0xff]  ;;  %v232_v28 = vld [vmem:[%s957_s12 + $0x38] sm:$0xff] }
  0x2a   : > { %798 = vmatpush.msra.mxu2 %v280_v30  ;;  %799 = vmatpush.msra.mxu3 %v280_v30  ;;  %v233_v29 = vld [vmem:[%s957_s12 + $0x40] sm:$0xff] }
  0x2b   : > { %451 = vmatpush.msra.mxu1 %v296_v31  ;;  %414 = vmatmul.f32.vlgmr.msra.gmra.mxu2 %v245_v32  ;;  %v256_v31 = vld [vmem:[%s957_s12 + $0xf8] sm:$0xff]  ;;  %v237_v32 = vld [vmem:[%s957_s12 + $0x60] sm:$0xff] }
  0x2c   : > { %452 = vmatmul.f32.vlgmr.msra.gmra.mxu1 %v226_v33  ;;  %486 = vmatpush.msrb.mxu2 %v327_v34  ;;  %v238_v33 = vld [vmem:[%s957_s12 + $0x68] sm:$0xff]  ;;  %v239_v34 = vld [vmem:[%s957_s12 + $0x70] sm:$0xff] }
  0x2d   : > { %536 = vmatpush.msrb.mxu3 %v343_v35  ;;  %401 = vmatpush.msra.mxu0 %v280_v30  ;;  %v234_v30 = vld [vmem:[%s957_s12 + $0x48] sm:$0xff]  ;;  %v261_v35 = vld [vmem:[%s957_s12 + $0x120] sm:$0xff] }
  0x2e   : > { %487 = vmatpush.msrb.mxu2 %v326_v36  ;;  %402 = vmatmul.f32.vlgmr.msra.gmra.mxu0 %v225_v37  ;;  %v242_v36 = vld [vmem:[%s957_s12 + $0x88] sm:$0xff]  ;;  %v243_v37 = vld [vmem:[%s957_s12 + $0x90] sm:$0xff] }
  0x2f   : > { %537 = vmatpush.msrb.mxu3 %v342_v38  ;;  %594 = vmatpush.msrb.mxu0 %v351_v39  ;;  %v244_v38 = vld [vmem:[%s957_s12 + $0x98] sm:$0xff]  ;;  %v266_v39 = vld [vmem:[%s957_s12 + $0x148] sm:$0xff] }
  0x30   : > { %488 = vmatpush.msrb.mxu2 %v325_v40  ;;  %426 = vmatmul.f32.vlgmr.msra.gmra.mxu3 %v265_v41  ;;  %v247_v40 = vld [vmem:[%s957_s12 + $0xb0] sm:$0xff]  ;;  %v248_v41 = vld [vmem:[%s957_s12 + $0xb8] sm:$0xff] }
  0x31   : > { %538 = vmatpush.msrb.mxu3 %v341_v42  ;;  %595 = vmatpush.msrb.mxu0 %v350_v43  ;;  %v249_v42 = vld [vmem:[%s957_s12 + $0xc0] sm:$0xff]  ;;  %v271_v43 = vld [vmem:[%s957_s12 + $0x170] sm:$0xff] }
  0x32   : > { %489 = vmatpush.msrb.mxu2 %v324_v44  ;;  %v252_v44 = vld [vmem:[%s957_s12 + $0xd8] sm:$0xff] }
  0x33   : > { %417 = vmatmul.f32.gmra.mxu2 %v250_v45  ;;  %539 = vmatpush.msrb.mxu3 %v340_v48  ;;  %v253_v45 = vld [vmem:[%s957_s12 + $0xe0] sm:$0xff] }
  0x34   : > { %455 = vmatmul.f32.gmra.mxu1 %v231_v46  ;;  %490 = vmatpush.msrb.mxu2 %v323_v47  ;;  %v254_v46 = vld [vmem:[%s957_s12 + $0xe8] sm:$0xff]  ;;  %v276_v47 = vld [vmem:[%s957_s12 + $0x198] sm:$0x1]  ;;  %v257_v48 = vld [vmem:[%s957_s12 + $0x100] sm:$0xff] }
  0x35   : > { %596 = vmatpush.msrb.mxu0 %v349_v49  ;;  %540 = vmatpush.msrb.mxu3 %v339_v51  ;;  %v258_v49 = vld [vmem:[%s957_s12 + $0x108] sm:$0xff] }
  0x36   : > { %491 = vmatpush.msrb.mxu2 %v322_v50  ;;  %405 = vmatmul.f32.gmra.mxu0 %v230_v52  ;;  %v259_v50 = vld [vmem:[%s957_s12 + $0x110] sm:$0xff]  ;;  %v262_v51 = vld [vmem:[%s957_s12 + $0x128] sm:$0xff] }
  0x37   : > { %541 = vmatpush.msrb.mxu3 %v338_v54  ;;  %597 = vmatpush.msrb.mxu0 %v348_v56  ;;  %v263_v52 = vld [vmem:[%s957_s12 + $0x130] sm:$0xff]  ;;  %v269_v56 = vld [vmem:[%s957_s12 + $0x160] sm:$0xff] }
  0x38   : > { %492 = vmatpush.msrb.mxu2 %v321_v53  ;;  %429 = vmatmul.f32.gmra.mxu3 %v270_v55  ;;  %v264_v53 = vld [vmem:[%s957_s12 + $0x138] sm:$0xff]  ;;  %v267_v54 = vld [vmem:[%s957_s12 + $0x150] sm:$0xff] }
  0x39   : > { %542 = vmatpush.msrb.mxu3 %v337_v58  ;;  %598 = vmatpush.msrb.mxu0 %v347_v63  ;;  %v268_v55 = vld [vmem:[%s957_s12 + $0x158] sm:$0xff]  ;;  %v273_v58 = vld [vmem:[%s957_s12 + $0x180] sm:$0xff] }
  0x3a   : > { %493 = vmatpush.msrb.mxu2 %v320_v57  ;;  %v272_v57 = vld [vmem:[%s957_s12 + $0x178] sm:$0xff] }
  0x3b   : > { %420 = vmatmul.f32.gmra.mxu2 %v255_v59  ;;  %543 = vmatpush.msrb.mxu3 %v336_v62  ;;  %v274_v59 = vld [vmem:[%s957_s12 + $0x188] sm:$0xff]  ;;  %v279_v62 = vld [vmem:[%s957_s12 + $0x1b0] sm:$0x1] }
  0x3c   : > { %458 = vmatmul.f32.gmra.mxu1 %v236_v60  ;;  %494 = vmatpush.msrb.mxu2 %v319_v61  ;;  %v277_v60 = vld [vmem:[%s957_s12 + $0x1a0] sm:$0x1]  ;;  %v278_v61 = vld [vmem:[%s957_s12 + $0x1a8] sm:$0x1] }
  0x3d   : > { %544 = vmatpush.msrb.mxu3 %v335_v1  ;;  %599 = vmatpush.msrb.mxu0 %v346_v6 }
  0x3e   : > { %495 = vmatpush.msrb.mxu2 %v318_v0  ;;  %408 = vmatmul.f32.gmra.mxu0 %v235_v2 }
  0x3f   : > { %545 = vmatpush.msrb.mxu3 %v334_v4  ;;  %600 = vmatpush.msrb.mxu0 %v345_v13 }
  0x40   : > { %496 = vmatpush.msrb.mxu2 %v317_v3  ;;  %432 = vmatmul.f32.gmra.mxu3 %v275_v5 }
  0x41   : > { %546 = vmatpush.msrb.mxu3 %v333_v8  ;;  %601 = vmatpush.msrb.mxu0 %v344_v19 }
  0x42   : > { %497 = vmatpush.msrb.mxu2 %v316_v7 }
  0x43   : > { %423 = vmatmul.f32.gmra.mxu2 %v260_v9  ;;  %547 = vmatpush.msrb.mxu3 %v332_v12 }
  0x44   : > { %461 = vmatmul.f32.gmra.mxu1 %v241_v10  ;;  %498 = vmatpush.msrb.mxu2 %v315_v11 }
  0x45   : > { %548 = vmatpush.msrb.mxu3 %v331_v15 }
  0x46   : > { %499 = vmatpush.msrb.mxu2 %v314_v14  ;;  %411 = vmatmul.f32.gmra.mxu0 %v240_v16 }
  0x47   : > { %549 = vmatpush.msrb.mxu3 %v330_v18 }
  0x48   : > { %500 = vmatpush.msrb.mxu2 %v313_v17 }
  0x49   : > { %550 = vmatpush.msrb.mxu3 %v329_v21 }
  0x4a   : > { %501 = vmatpush.msrb.mxu2 %v312_v20 }
  0x4b   : > { %502 = vmatmul.f32.vlgmr.msrb.gmra.mxu2 %v227_v23  ;;  %551 = vmatpush.msrb.mxu3 %v328_v24 }
  0x4c   : > { %464 = vmatmul.f32.gmra.mxu1 %v246_v22  ;;  %552 = vmatmul.f32.vlgmr.msrb.gmra.mxu3 %v228_v25 }
  0x4e   : > { %751 = vmatmul.msk.f32.vlgmr.msrb.gmra.mxu0 %vm352_vm0, %v229_v26 }
  0x53   : > { %505 = vmatmul.f32.gmra.mxu2 %v232_v28 }
  0x54   : > { %467 = vmatmul.f32.gmra.mxu1 %v251_v27  ;;  %555 = vmatmul.f32.gmra.mxu3 %v233_v29 }
  0x56   : > { %752 = vmatmul.msk.f32.gmra.mxu0 %vm352_vm0, %v234_v30 }
  0x5b   : > { %508 = vmatmul.f32.gmra.mxu2 %v237_v32 }
  0x5c   : > { %470 = vmatmul.f32.gmra.mxu1 %v256_v31  ;;  %558 = vmatmul.f32.gmra.mxu3 %v238_v33 }
  0x5e   : > { %753 = vmatmul.msk.f32.gmra.mxu0 %vm352_vm0, %v239_v34 }
  0x63   : > { %511 = vmatmul.f32.gmra.mxu2 %v242_v36 }
  0x64   : > { %473 = vmatmul.f32.gmra.mxu1 %v261_v35  ;;  %561 = vmatmul.f32.gmra.mxu3 %v243_v37 }
  0x66   : > { %754 = vmatmul.msk.f32.gmra.mxu0 %vm352_vm0, %v244_v38 }
  0x6b   : > { %514 = vmatmul.f32.gmra.mxu2 %v247_v40 }
  0x6c   : > { %476 = vmatmul.f32.gmra.mxu1 %v266_v39  ;;  %564 = vmatmul.f32.gmra.mxu3 %v248_v41 }
  0x6e   : > { %755 = vmatmul.msk.f32.gmra.mxu0 %vm352_vm0, %v249_v42 }
  0x73   : > { %517 = vmatmul.f32.gmra.mxu2 %v252_v44 }
  0x74   : > { %479 = vmatmul.f32.gmra.mxu1 %v271_v43  ;;  %567 = vmatmul.f32.gmra.mxu3 %v253_v45 }
  0x76   : > { %756 = vmatmul.msk.f32.gmra.mxu0 %vm352_vm0, %v254_v46 }
  0x7b   : > { %520 = vmatmul.f32.gmra.mxu2 %v257_v48 }
  0x7c   : > { %482 = vmatmul.f32.gmra.mxu1 %v276_v47  ;;  %570 = vmatmul.f32.gmra.mxu3 %v258_v49 }
  0x7e   : > { %757 = vmatmul.msk.f32.gmra.mxu0 %vm352_vm0, %v259_v50 }
  0x83   : > { %523 = vmatmul.f32.gmra.mxu2 %v262_v51 }
  0x84   : > { %573 = vmatmul.f32.gmra.mxu3 %v263_v52 }
  0x86   : > { %758 = vmatmul.msk.f32.gmra.mxu0 %vm352_vm0, %v264_v53 }
  0x8b   : > { %526 = vmatmul.f32.gmra.mxu2 %v267_v54 }
  0x8c   : > { %576 = vmatmul.f32.gmra.mxu3 %v268_v55 }
  0x8e   : > { %759 = vmatmul.msk.f32.gmra.mxu0 %vm352_vm0, %v269_v56 }
  0x93   : > { %529 = vmatmul.f32.gmra.mxu2 %v272_v57 }
  0x94   : > { %579 = vmatmul.f32.gmra.mxu3 %v273_v58 }
  0x96   : > { %760 = vmatmul.msk.f32.gmra.mxu0 %vm352_vm0, %v274_v59 }
  0x9b   : > { %532 = vmatmul.f32.gmra.mxu2 %v277_v60 }
  0x9c   : > { %582 = vmatmul.f32.gmra.mxu3 %v278_v61 }
  0x9e   : > { %761 = vmatmul.msk.f32.gmra.mxu0 %vm352_vm0, %v279_v62 }
  0xa9   : > { %v453_v63 = vpop.f32.mrf.mxu1 }
  0xab   : > { %v403_v0 = vpop.f32.mrf.mxu0 }
  0xac   : > { %v454_v1 = vadd.f32 %v453_v63, %v403_v0 }
  0xae   : > { %v1151_v2 = vpop.f32.mrf.mxu2 }
  0xb1   : > { %v456_v3 = vpop.f32.mrf.mxu1 }
  0xb3   : > { %v1153_v4 = vpop.f32.mrf.mxu3  ;;  %v406_v5 = vpop.f32.mrf.mxu0 }
  0xb4   : > { %v457_v6 = vadd.f32 %v456_v3, %v406_v5 }
  0xb6   : > { %v1155_v7 = vpop.f32.mrf.mxu2 }
  0xb9   : > { %v459_v8 = vpop.f32.mrf.mxu1 }
  0xbb   : > { %v430_v9 = vpop.f32.mrf.mxu3  ;;  %v409_v10 = vpop.f32.mrf.mxu0 }
  0xbc   : > { %v460_v11 = vadd.f32 %v459_v8, %v409_v10 }
  0xbe   : > { %v1157_v12 = vpop.f32.mrf.mxu2 }
  0xc1   : > { %v462_v13 = vpop.f32.mrf.mxu1 }
  0xc3   : > { %v412_v14 = vpop.f32.mrf.mxu0  ;;  %v433_v17 = vpop.f32.mrf.mxu3 }
  0xc4   : > { %v463_v15 = vadd.f32 %v462_v13, %v412_v14 }
  0xc6   : > { %v424_v16 = vpop.f32.mrf.mxu2 }
  0xc9   : > { %v465_v31 = vpop.f32.mrf.mxu1 }
  0xcb   : > { %v603_v18 = vpop.f32.mrf.mxu0 }
  0xce   : > { %v503_v19 = vpop.f32.mrf.mxu2 }
  0xcf   : > { %v504_v20 = vadd.f32 %v503_v19, %v454_v1  ;;  %v553_v21 = vpop.f32.mrf.mxu3 }
  0xd1   : > { %v554_v22 = vadd.f32 %v553_v21, %v504_v20  ;;  %v468_v40 = vpop.f32.mrf.mxu1 }
  0xd3   : > { %v1159_v23 = vadd.f32 %v603_v18, %v554_v22  ;;  %v606_v24 = vpop.f32.mrf.mxu0 }
  0xd6   : > { %v506_v25 = vpop.f32.mrf.mxu2 }
  0xd7   : > { %v507_v26 = vadd.f32 %v506_v25, %v457_v6  ;;  %v556_v27 = vpop.f32.mrf.mxu3  ;;  %v469_v25 = vadd.f32 %v468_v40, %v1155_v7 }
  0xd9   : > { %v557_v28 = vadd.f32 %v556_v27, %v507_v26  ;;  %v471_v47 = vpop.f32.mrf.mxu1 }
  0xda   : > { %v472_v20 = vadd.f32 %v471_v47, %v1157_v12 }
  0xdb   : > { %v1161_v29 = vadd.f32 %v606_v24, %v557_v28  ;;  %v609_v30 = vpop.f32.mrf.mxu0 }
  0xde   : > { %v509_v32 = vpop.f32.mrf.mxu2 }
  0xdf   : > { %v510_v33 = vadd.f32 %v509_v32, %v460_v11  ;;  %v559_v34 = vpop.f32.mrf.mxu3 }
  0xe1   : > { %v560_v35 = vadd.f32 %v559_v34, %v510_v33  ;;  %v474_v51 = vpop.f32.mrf.mxu1 }
  0xe2   : > { %v475_v13 = vadd.f32 %v474_v51, %v424_v16 }
  0xe3   : > { %v1163_v36 = vadd.f32 %v609_v30, %v560_v35  ;;  %v612_v37 = vpop.f32.mrf.mxu0 }
  0xe6   : > { %v512_v38 = vpop.f32.mrf.mxu2 }
  0xe7   : > { %v513_v39 = vadd.f32 %v512_v38, %v463_v15  ;;  %v562_v41 = vpop.f32.mrf.mxu3 }
  0xe9   : > { %v563_v42 = vadd.f32 %v562_v41, %v513_v39  ;;  %v477_v56 = vpop.f32.mrf.mxu1  ;;  %v809_v39 = vld [vmem:[%s1194_s3] ss:$0 sm:$0xff] }
  0xea   : > { %v478_v6 = vadd.f32 %v477_v56, %v1153_v4  ;;  %v466_v4 = vadd.f32 %v465_v31, %v1151_v2  ;;  %v636_v2 = vld [vmem:[%s1193_s2] sm:$0xff]  ;;  %v637_v31 = vld [vmem:[%s1193_s2 + $0x8] sm:$0xff] }
  0xeb   : > { %v613_v43 = vadd.f32 %v612_v37, %v563_v42  ;;  %v615_v44 = vpop.f32.mrf.mxu0 }
  0xee   : > { %v515_v45 = vpop.f32.mrf.mxu2 }
  0xef   : > { %v565_v46 = vpop.f32.mrf.mxu3  ;;  %v516_v30 = vadd.f32 %v515_v45, %v466_v4 }
  0xf1   : > { %v480_v61 = vpop.f32.mrf.mxu1  ;;  %v566_v35 = vadd.f32 %v565_v46, %v516_v30 }
  0xf2   : > { %v481_v5 = vadd.f32 %v480_v61, %v430_v9 }
  0xf3   : > { %v618_v48 = vpop.f32.mrf.mxu0  ;;  %v616_v38 = vadd.f32 %v615_v44, %v566_v35 }
  0xf6   : > { %v518_v49 = vpop.f32.mrf.mxu2 }
  0xf7   : > { %v568_v50 = vpop.f32.mrf.mxu3 }
  0xf9   : > { %v483_v3 = vpop.f32.mrf.mxu1 }
  0xfa   : > { %v484_v8 = vadd.f32 %v483_v3, %v433_v17  ;;  %v519_v17 = vadd.f32 %v518_v49, %v469_v25 }
  0xfb   : > { %v621_v52 = vpop.f32.mrf.mxu0 }
  0xfc   : > { %v569_v12 = vadd.f32 %v568_v50, %v519_v17 }
  0xfe   : > { %v521_v53 = vpop.f32.mrf.mxu2  ;;  %v619_v7 = vadd.f32 %v618_v48, %v569_v12 }
  0xff   : > { %v571_v54 = vpop.f32.mrf.mxu3  ;;  %v522_v26 = vadd.f32 %v521_v53, %v472_v20 }
 0x101   : > { %v572_v32 = vadd.f32 %v571_v54, %v522_v26 }
 0x103   : > { %v624_v55 = vpop.f32.mrf.mxu0  ;;  %v622_v37 = vadd.f32 %v621_v52, %v572_v32 }
 0x106   : > { %v524_v57 = vpop.f32.mrf.mxu2 }
 0x107   : > { %v574_v58 = vpop.f32.mrf.mxu3  ;;  %v525_v21 = vadd.f32 %v524_v57, %v475_v13 }
 0x109   : > { %v575_v28 = vadd.f32 %v574_v58, %v525_v21 }
 0x10b   : > { %v627_v59 = vpop.f32.mrf.mxu0  ;;  %v625_v34 = vadd.f32 %v624_v55, %v575_v28 }
 0x10e   : > { %v527_v60 = vpop.f32.mrf.mxu2 }
 0x10f   : > { %v577_v62 = vpop.f32.mrf.mxu3  ;;  %v528_v14 = vadd.f32 %v527_v60, %v478_v6 }
 0x111   : > { %v578_v9 = vadd.f32 %v577_v62, %v528_v14 }
 0x113   : > { %v630_v0 = vpop.f32.mrf.mxu0  ;;  %v628_v33 = vadd.f32 %v627_v59, %v578_v9 }
 0x116   : > { %v530_v63 = vpop.f32.mrf.mxu2 }
 0x117   : > { %v580_v1 = vpop.f32.mrf.mxu3  ;;  %v531_v10 = vadd.f32 %v530_v63, %v481_v5 }
 0x119   : > { %v581_v22 = vadd.f32 %v580_v1, %v531_v10 }
 0x11b   : > { %v633_v19 = vpop.f32.mrf.mxu0  ;;  %v631_v16 = vadd.f32 %v630_v0, %v581_v22 }
 0x11e   : > { %v533_v11 = vpop.f32.mrf.mxu2 }
 0x11f   : > { %v534_v15 = vadd.f32 %v533_v11, %v484_v8  ;;  %v583_v18 = vpop.f32.mrf.mxu3 }
 0x121   : > { %v584_v24 = vadd.f32 %v583_v18, %v534_v15 }
 0x123   : > { %v634_v27 = vadd.f32 %v633_v19, %v584_v24 }
 0x125   : > { %762 = vmatpush.msk.msrb.mxu1 %vm645_vm1, %v634_v27 }
 0x127   : > { %655 = vmatpush.msrb.mxu1 %v631_v16 }
 0x129   : > { %656 = vmatpush.msrb.mxu1 %v628_v33 }
 0x12b   : > { %657 = vmatpush.msrb.mxu1 %v625_v34 }
 0x12d   : > { %658 = vmatpush.msrb.mxu1 %v622_v37 }
 0x12f   : > { %659 = vmatpush.msrb.mxu1 %v619_v7 }
 0x131   : > { %660 = vmatpush.msrb.mxu1 %v616_v38 }
 0x133   : > { %661 = vmatpush.msrb.mxu1 %v613_v43 }
 0x135   : > { %662 = vmatpush.msrb.mxu1 %v1163_v36 }
 0x137   : > { %663 = vmatpush.msrb.mxu1 %v1161_v29  ;;  %v810_v29 = vld [vmem:[%s1195_s4] ss:$0 sm:$0xff] }
 0x139   : > { %664 = vmatpush.msrb.mxu1 %v1159_v23 }
 0x13a   : > { %763 = vmatmul.msk.f32.vlgmr.msrb.gmra.mxu1 %vm638_vm2, %v636_v2 }
 0x142   : > { %764 = vmatmul.msk.f32.gmra.mxu1 %vm638_vm2, %v637_v31 }
 0x1b7   : > { %v666_v36 = vpop.f32.mrf.mxu1 }
 0x1b8   : > { %v676_v40 = vmul.f32 %v809_v39, %v666_v36 }
 0x1ba   : > { %v682_v41 = vadd.f32 %v810_v29, %v676_v40 }
 0x1bc   : > { %v684_v23 = vmax.f32 %v682_v41, 0.0 }
 0x1be   : > { %686 = vst [vmem:[%s224_s21] sm:$0xff] %v684_v23 }
 0x1bf   : > { %v669_v42 = vpop.f32.mrf.mxu1 }
 0x1c0   : > { %v677_v43 = vmul.f32 %v809_v39, %v669_v42 }
 0x1c2   : > { %v683_v44 = vadd.f32 %v810_v29, %v677_v43 }
 0x1c4   : > { %v685_v45 = vmax.f32 %v683_v44, 0.0 }
 0x1c6   : > { %687 = vst [vmem:[%s224_s21 + $0x8] sm:$0xff] %v685_v45 }
 0x1c7 PF: > { %s15_s18 = sadd.s32 1, %s817_s18  }
 0x1c8   : > { %p12_p4 = scmp.ge.s32.totalorder %s15_s18, 4  }
 0x1ca   :  { %14 = sbr.rel (!%p12_p4) target bundleno = 1 (0x1), region = 70 }

// kernel: rotation_model_forward.4
= control target key start
LH: loop header
LB: loop body
LE: loop exit
PB: predicated region body
PF: predicated region fallthrough
CT: control target
= control target key end

     0   :  { %s4626_s18 = smov 0   ;;  %s8717_s0 = inlined_call_operand.vmem [shape: f32[2,1444,9], index: 0, kind: input, shape index: {}]   ;;  %s8718_s1 = inlined_call_operand.vmem [shape: f32[9,64], index: 1, kind: input, shape index: {}]   ;;  %s8719_s2 = inlined_call_operand.vmem [shape: f32[361,1444], index: 2, kind: input, shape index: {}]   ;;  %s8720_s3 = inlined_call_operand.vmem [shape: f32[1,64], index: 3, kind: input, shape index: {}]   ;;  %s8721_s4 = inlined_call_operand.vmem [shape: f32[1,64], index: 4, kind: input, shape index: {}]   ;;  %s8722_s5 = inlined_call_operand.vmem [shape: f32[2,361,64], index: 5, kind: output, shape index: {}]  }
   0x1 LB: > { %s4320_s19 = sadd.s32 4294967295, %s4594_s18   ;;  %p4324_p0 = scmp.ge.s32.totalorder %s4594_s18, 1  ;;  %s4594_s18 = sphi %s4626_s18, %s15_s18  }
   0x2   : > { %p187_p1 = scmp.lt.s32.totalorder %s4594_s18, 3 }
   0x4   : > { %p188_p2 = pnand %p4324_p0, %p187_p1 }
   0x6   : > { %191 = sbr.rel (%p188_p2) target bundleno = 2188 (0x88c), region = 40 }
   0xb   : > { %v407_v0 = vld [vmem:[%s8718_s1 + $0x8] sm:$0x1]  ;;  %vm952_vm0 = vcmask 1040384   ;;  %v406_v1 = vld [vmem:[%s8718_s1] sm:$0xff]  ;;  %p215_p3 = scmp.lt.s32.totalorder %s4320_s19, 1  ;;  %vm408_vm1 = vcmask 72704  }
   0xc   : > { %4327 = vmatpush.msk.msra.mxu0 %vm952_vm0, %v407_v0  ;;  %v1528_v56 = vld [vmem:[%s8719_s2 + $0x60] sm:$0xff]  ;;  %vm2207_vm2 = vcmask 1043456   ;;  %vm2068_vm3 = vcmask 293888   ;;  %vm4217_vm4 = vcmask 523264   ;;  %vm4263_vm5 = vcmask 516096  }
   0xd   : > { %s9152_s19 = smov (!%p215_p3, %s4320_s19), 1  ;;  %v1540_v59 = vld [vmem:[%s8719_s2 + $0xc0] sm:$0xff] }
   0xe   : > { %971 = vmatpush.msra.mxu0 %v406_v1  ;;  %s4574_s24 = smul.u32 1448, %s9152_s19  ;;  %v1552_v62 = vld [vmem:[%s8719_s2 + $0x120] sm:$0xff] }
   0xf   : > { %v1564_v1 = vld [vmem:[%s8719_s2 + $0x180] sm:$0xff]  ;;  %s4575_s23 = smul.u32 368, %s9152_s19 }
  0x10   : > { %s4646_s27 = scalar_lea.vmem %s8717_s0, %s4574_s24 }
  0x11   : > { %v225_v2 = vld [vmem:[%s4646_s27] sm:$0xff]  ;;  %v226_v3 = vld [vmem:[%s4646_s27 + $0x8] sm:$0xff]  ;;  %v227_v4 = vld [vmem:[%s4646_s27 + $0x10] sm:$0xff]  ;;  %s8002_s30 = scalar_lea.vmem %s8722_s5, %s4575_s23 }
  0x12   : > { %4328 = vmatmul.msk.f32.vlgmr.msra.gmra.mxu0 %vm408_vm1, %v225_v2  ;;  %v228_v5 = vld [vmem:[%s4646_s27 + $0x18] sm:$0xff]  ;;  %v229_v6 = vld [vmem:[%s4646_s27 + $0x20] sm:$0xff]  ;;  %v230_v7 = vld [vmem:[%s4646_s27 + $0x28] sm:$0xff] }
  0x13   : > { %v231_v8 = vld [vmem:[%s4646_s27 + $0x30] sm:$0xff]  ;;  %v232_v9 = vld [vmem:[%s4646_s27 + $0x38] sm:$0xff]  ;;  %v233_v10 = vld [vmem:[%s4646_s27 + $0x40] sm:$0xff] }
  0x14   : > { %v234_v11 = vld [vmem:[%s4646_s27 + $0x48] sm:$0xff]  ;;  %v235_v12 = vld [vmem:[%s4646_s27 + $0x50] sm:$0xff]  ;;  %v236_v13 = vld [vmem:[%s4646_s27 + $0x58] sm:$0xff] }
  0x15   : > { %v237_v14 = vld [vmem:[%s4646_s27 + $0x60] sm:$0xff]  ;;  %v238_v15 = vld [vmem:[%s4646_s27 + $0x68] sm:$0xff]  ;;  %v239_v16 = vld [vmem:[%s4646_s27 + $0x70] sm:$0xff] }
  0x16   : > { %v240_v17 = vld [vmem:[%s4646_s27 + $0x78] sm:$0xff]  ;;  %v241_v19 = vld [vmem:[%s4646_s27 + $0x80] sm:$0xff]  ;;  %v242_v21 = vld [vmem:[%s4646_s27 + $0x88] sm:$0xff] }
  0x17   : > { %v243_v23 = vld [vmem:[%s4646_s27 + $0x90] sm:$0xff]  ;;  %v244_v25 = vld [vmem:[%s4646_s27 + $0x98] sm:$0xff]  ;;  %v245_v27 = vld [vmem:[%s4646_s27 + $0xa0] sm:$0xff] }
  0x18   : > { %v246_v29 = vld [vmem:[%s4646_s27 + $0xa8] sm:$0xff]  ;;  %v247_v31 = vld [vmem:[%s4646_s27 + $0xb0] sm:$0xff]  ;;  %v248_v33 = vld [vmem:[%s4646_s27 + $0xb8] sm:$0xff] }
  0x19   : > { %v249_v35 = vld [vmem:[%s4646_s27 + $0xc0] sm:$0xff]  ;;  %v250_v37 = vld [vmem:[%s4646_s27 + $0xc8] sm:$0xff]  ;;  %v251_v39 = vld [vmem:[%s4646_s27 + $0xd0] sm:$0xff] }
  0x1a   : > { %4329 = vmatmul.msk.f32.gmra.mxu0 %vm408_vm1, %v226_v3  ;;  %v252_v41 = vld [vmem:[%s4646_s27 + $0xd8] sm:$0xff]  ;;  %v253_v43 = vld [vmem:[%s4646_s27 + $0xe0] sm:$0xff]  ;;  %v254_v45 = vld [vmem:[%s4646_s27 + $0xe8] sm:$0xff] }
  0x1b   : > { %v255_v47 = vld [vmem:[%s4646_s27 + $0xf0] sm:$0xff]  ;;  %v256_v49 = vld [vmem:[%s4646_s27 + $0xf8] sm:$0xff]  ;;  %v257_v51 = vld [vmem:[%s4646_s27 + $0x100] sm:$0xff] }
  0x1c   : > { %v258_v53 = vld [vmem:[%s4646_s27 + $0x108] sm:$0xff]  ;;  %v259_v55 = vld [vmem:[%s4646_s27 + $0x110] sm:$0xff]  ;;  %v260_v58 = vld [vmem:[%s4646_s27 + $0x118] sm:$0xff] }
  0x1d   : > { %v261_v61 = vld [vmem:[%s4646_s27 + $0x120] sm:$0xff]  ;;  %v262_v0 = vld [vmem:[%s4646_s27 + $0x128] sm:$0xff]  ;;  %v263_v3 = vld [vmem:[%s4646_s27 + $0x130] sm:$0xff] }
  0x22   : > { %4330 = vmatmul.msk.f32.gmra.mxu0 %vm408_vm1, %v227_v4  ;;  %v1576_v4 = vld [vmem:[%s8719_s2 + $0x1e0] sm:$0xff] }
  0x2a   : > { %4331 = vmatmul.msk.f32.gmra.mxu0 %vm408_vm1, %v228_v5 }
  0x32   : > { %4332 = vmatmul.msk.f32.gmra.mxu0 %vm408_vm1, %v229_v6  ;;  %v264_v6 = vld [vmem:[%s4646_s27 + $0x138] sm:$0xff] }
  0x3a   : > { %4333 = vmatmul.msk.f32.gmra.mxu0 %vm408_vm1, %v230_v7  ;;  %v1588_v7 = vld [vmem:[%s8719_s2 + $0x240] sm:$0xff] }
  0x42   : > { %4334 = vmatmul.msk.f32.gmra.mxu0 %vm408_vm1, %v231_v8 }
  0x4a   : > { %4335 = vmatmul.msk.f32.gmra.mxu0 %vm408_vm1, %v232_v9  ;;  %v265_v9 = vld [vmem:[%s4646_s27 + $0x140] sm:$0xff] }
  0x52   : > { %4336 = vmatmul.msk.f32.gmra.mxu0 %vm408_vm1, %v233_v10  ;;  %v1600_v10 = vld [vmem:[%s8719_s2 + $0x2a0] sm:$0xff] }
  0x5a   : > { %4337 = vmatmul.msk.f32.gmra.mxu0 %vm408_vm1, %v234_v11 }
  0x62   : > { %4338 = vmatmul.msk.f32.gmra.mxu0 %vm408_vm1, %v235_v12  ;;  %v266_v12 = vld [vmem:[%s4646_s27 + $0x148] sm:$0xff] }
  0x6a   : > { %4339 = vmatmul.msk.f32.gmra.mxu0 %vm408_vm1, %v236_v13  ;;  %v1612_v13 = vld [vmem:[%s8719_s2 + $0x300] sm:$0xff] }
  0x72   : > { %4340 = vmatmul.msk.f32.gmra.mxu0 %vm408_vm1, %v237_v14 }
  0x7a   : > { %4341 = vmatmul.msk.f32.gmra.mxu0 %vm408_vm1, %v238_v15  ;;  %v267_v15 = vld [vmem:[%s4646_s27 + $0x150] sm:$0xff] }
  0x82   : > { %4342 = vmatmul.msk.f32.gmra.mxu0 %vm408_vm1, %v239_v16  ;;  %v1624_v16 = vld [vmem:[%s8719_s2 + $0x360] sm:$0xff] }
  0x8a   : > { %4343 = vmatmul.msk.f32.gmra.mxu0 %vm408_vm1, %v240_v17 }
  0x8f   : > { %v4680_v18 = vpop.f32.mrf.mxu0 }
  0x92   : > { %4344 = vmatmul.msk.f32.gmra.mxu0 %vm408_vm1, %v241_v19  ;;  %v1636_v19 = vld [vmem:[%s8719_s2 + $0x3c0] sm:$0xff] }
  0x97   : > { %v4684_v20 = vpop.f32.mrf.mxu0 }
  0x9a   : > { %4345 = vmatmul.msk.f32.gmra.mxu0 %vm408_vm1, %v242_v21  ;;  %v269_v21 = vld [vmem:[%s4646_s27 + $0x160] sm:$0xff] }
  0x9f   : > { %v4688_v22 = vpop.f32.mrf.mxu0 }
  0xa2   : > { %4346 = vmatmul.msk.f32.gmra.mxu0 %vm408_vm1, %v243_v23 }
  0xa7   : > { %v4692_v24 = vpop.f32.mrf.mxu0 }
  0xaa   : > { %4347 = vmatmul.msk.f32.gmra.mxu0 %vm408_vm1, %v244_v25  ;;  %v1660_v25 = vld [vmem:[%s8719_s2 + $0x480] sm:$0xff] }
  0xaf   : > { %v4696_v26 = vpop.f32.mrf.mxu0 }
  0xb2   : > { %4348 = vmatmul.msk.f32.gmra.mxu0 %vm408_vm1, %v245_v27  ;;  %v271_v27 = vld [vmem:[%s4646_s27 + $0x170] sm:$0xff] }
  0xb7   : > { %v988_v28 = vpop.f32.mrf.mxu0 }
  0xba   : > { %4349 = vmatmul.msk.f32.gmra.mxu0 %vm408_vm1, %v246_v29 }
  0xbf   : > { %v991_v30 = vpop.f32.mrf.mxu0 }
  0xc2   : > { %4350 = vmatmul.msk.f32.gmra.mxu0 %vm408_vm1, %v247_v31  ;;  %v1684_v31 = vld [vmem:[%s8719_s2 + $0x540] sm:$0xff] }
  0xc7   : > { %v994_v32 = vpop.f32.mrf.mxu0 }
  0xca   : > { %4351 = vmatmul.msk.f32.gmra.mxu0 %vm408_vm1, %v248_v33  ;;  %v273_v33 = vld [vmem:[%s4646_s27 + $0x180] sm:$0xff] }
  0xcf   : > { %v997_v34 = vpop.f32.mrf.mxu0 }
  0xd2   : > { %4352 = vmatmul.msk.f32.gmra.mxu0 %vm408_vm1, %v249_v35 }
  0xd7   : > { %v1000_v36 = vpop.f32.mrf.mxu0 }
  0xda   : > { %4353 = vmatmul.msk.f32.gmra.mxu0 %vm408_vm1, %v250_v37  ;;  %v1708_v37 = vld [vmem:[%s8719_s2 + $0x600] sm:$0xff] }
  0xdf   : > { %v1003_v38 = vpop.f32.mrf.mxu0 }
  0xe2   : > { %4354 = vmatmul.msk.f32.gmra.mxu0 %vm408_vm1, %v251_v39  ;;  %v275_v39 = vld [vmem:[%s4646_s27 + $0x190] sm:$0xff] }
  0xe7   : > { %v1006_v40 = vpop.f32.mrf.mxu0 }
  0xea   : > { %4355 = vmatmul.msk.f32.gmra.mxu0 %vm408_vm1, %v252_v41 }
  0xef   : > { %v1009_v42 = vpop.f32.mrf.mxu0 }
  0xf2   : > { %4356 = vmatmul.msk.f32.gmra.mxu0 %vm408_vm1, %v253_v43 }
  0xf7   : > { %v1012_v44 = vpop.f32.mrf.mxu0 }
  0xfa   : > { %4357 = vmatmul.msk.f32.gmra.mxu0 %vm408_vm1, %v254_v45  ;;  %v1529_v45 = vld [vmem:[%s8719_s2 + $0x68] sm:$0xff] }
  0xff   : > { %v1015_v46 = vpop.f32.mrf.mxu0 }
 0x102   : > { %4358 = vmatmul.msk.f32.gmra.mxu0 %vm408_vm1, %v255_v47  ;;  %v1732_v47 = vld [vmem:[%s8719_s2 + $0x6c0] sm:$0xff] }
 0x107   : > { %v1018_v48 = vpop.f32.mrf.mxu0 }
 0x108   : > { %2211 = vmatpush.msrb.mxu0 %v1018_v48  ;;  %4558 = vmatpush.msra.mxu1 %v1018_v48 }
 0x10a   : > { %4359 = vmatmul.msk.f32.gmra.mxu0 %vm408_vm1, %v256_v49  ;;  %4559 = vmatpush.msra.mxu1 %v1015_v46  ;;  %v277_v49 = vld [vmem:[%s4646_s27 + $0x1a0] sm:$0xff] }
 0x10b   : > { %2212 = vmatpush.msrb.mxu0 %v1015_v46 }
 0x10c   : > { %4560 = vmatpush.msra.mxu1 %v1012_v44 }
 0x10d   : > { %2213 = vmatpush.msrb.mxu0 %v1012_v44  ;;  %v276_v44 = vld [vmem:[%s4646_s27 + $0x198] sm:$0xff] }
 0x10e   : > { %4561 = vmatpush.msra.mxu1 %v1009_v42 }
 0x10f   : > { %2214 = vmatpush.msrb.mxu0 %v1009_v42  ;;  %v4722_v50 = vpop.f32.mrf.mxu0  ;;  %v1720_v42 = vld [vmem:[%s8719_s2 + $0x660] sm:$0xff] }
 0x110   : > { %4562 = vmatpush.msra.mxu1 %v1006_v40 }
 0x111   : > { %2215 = vmatpush.msrb.mxu0 %v1006_v40  ;;  %v1517_v40 = vld [vmem:[%s8719_s2 + $0x8] sm:$0xff] }
 0x112   : > { %4360 = vmatmul.msk.f32.gmra.mxu0 %vm408_vm1, %v257_v51  ;;  %4563 = vmatpush.msra.mxu1 %v1003_v38 }
 0x113   : > { %2216 = vmatpush.msrb.mxu0 %v1003_v38 }
 0x114   : > { %4564 = vmatpush.msra.mxu1 %v1000_v36 }
 0x115   : > { %2217 = vmatpush.msrb.mxu0 %v1000_v36  ;;  %v274_v36 = vld [vmem:[%s4646_s27 + $0x188] sm:$0xff] }
 0x116   : > { %4565 = vmatpush.msra.mxu1 %v997_v34 }
 0x117   : > { %2218 = vmatpush.msrb.mxu0 %v997_v34  ;;  %v4726_v52 = vpop.f32.mrf.mxu0  ;;  %v1696_v34 = vld [vmem:[%s8719_s2 + $0x5a0] sm:$0xff] }
 0x118   : > { %4566 = vmatpush.msra.mxu1 %v994_v32 }
 0x119   : > { %2219 = vmatpush.msrb.mxu0 %v994_v32 }
 0x11a   : > { %4361 = vmatmul.msk.f32.gmra.mxu0 %vm408_vm1, %v258_v53  ;;  %4567 = vmatpush.msra.mxu1 %v991_v30 }
 0x11b   : > { %2220 = vmatpush.msrb.mxu0 %v991_v30  ;;  %v272_v30 = vld [vmem:[%s4646_s27 + $0x178] sm:$0xff] }
 0x11c   : > { %4568 = vmatpush.msra.mxu1 %v988_v28 }
 0x11d   : > { %2221 = vmatpush.msrb.mxu0 %v988_v28  ;;  %v1672_v28 = vld [vmem:[%s8719_s2 + $0x4e0] sm:$0xff] }
 0x11e   : > { %4569 = vmatpush.msra.mxu1 %v4696_v26 }
 0x11f   : > { %2222 = vmatpush.msrb.mxu0 %v4696_v26  ;;  %v4732_v54 = vpop.f32.mrf.mxu0 }
 0x120   : > { %4570 = vmatpush.msra.mxu1 %v4692_v24 }
 0x121   : > { %2223 = vmatpush.msrb.mxu0 %v4692_v24  ;;  %v270_v24 = vld [vmem:[%s4646_s27 + $0x168] sm:$0xff] }
 0x122   : > { %4362 = vmatmul.msk.f32.gmra.mxu0 %vm408_vm1, %v259_v55  ;;  %4571 = vmatpush.msra.mxu1 %v4688_v22  ;;  %v1553_v55 = vld [vmem:[%s8719_s2 + $0x128] sm:$0xff] }
 0x123   : > { %2224 = vmatpush.msrb.mxu0 %v4688_v22  ;;  %v1648_v22 = vld [vmem:[%s8719_s2 + $0x420] sm:$0xff] }
 0x124   : > { %4572 = vmatpush.msra.mxu1 %v4684_v20 }
 0x125   : > { %2225 = vmatpush.msrb.mxu0 %v4684_v20 }
 0x126   : > { %4573 = vmatpush.msra.mxu1 %v4680_v18 }
 0x127   : > { %2226 = vmatpush.msrb.mxu0 %v4680_v18  ;;  %v4747_v57 = vpop.f32.mrf.mxu0  ;;  %2230 = vmatmul.f32.vlgmr.msra.gmra.mxu1 %v1528_v56  ;;  %v268_v18 = vld [vmem:[%s4646_s27 + $0x158] sm:$0xff] }
 0x12a   : > { %4363 = vmatmul.msk.f32.gmra.mxu0 %vm408_vm1, %v260_v58 }
 0x12f   : > { %v4754_v60 = vpop.f32.mrf.mxu0  ;;  %2233 = vmatmul.f32.gmra.mxu1 %v1540_v59  ;;  %v279_v59 = vld [vmem:[%s4646_s27 + $0x1b0] sm:$0xff] }
 0x132   : > { %4364 = vmatmul.msk.f32.gmra.mxu0 %vm408_vm1, %v261_v61 }
 0x137   : > { %v4761_v63 = vpop.f32.mrf.mxu0  ;;  %2236 = vmatmul.f32.gmra.mxu1 %v1552_v62  ;;  %v1768_v62 = vld [vmem:[%s8719_s2 + $0x7e0] sm:$0xff] }
 0x13a   : > { %4365 = vmatmul.msk.f32.gmra.mxu0 %vm408_vm1, %v262_v0  ;;  %v280_v0 = vld [vmem:[%s4646_s27 + $0x1b8] sm:$0xff] }
 0x13f   : > { %v4768_v2 = vpop.f32.mrf.mxu0  ;;  %2239 = vmatmul.f32.gmra.mxu1 %v1564_v1  ;;  %v1577_v1 = vld [vmem:[%s8719_s2 + $0x1e8] sm:$0xff] }
 0x142   : > { %4366 = vmatmul.msk.f32.gmra.mxu0 %vm408_vm1, %v263_v3  ;;  %v1780_v3 = vld [vmem:[%s8719_s2 + $0x840] sm:$0xff] }
 0x147   : > { %v1042_v5 = vpop.f32.mrf.mxu0  ;;  %2242 = vmatmul.f32.gmra.mxu1 %v1576_v4 }
 0x14a   : > { %4367 = vmatmul.msk.f32.gmra.mxu0 %vm408_vm1, %v264_v6  ;;  %v1589_v6 = vld [vmem:[%s8719_s2 + $0x248] sm:$0xff] }
 0x14f   : > { %v1045_v8 = vpop.f32.mrf.mxu0  ;;  %2245 = vmatmul.f32.gmra.mxu1 %v1588_v7 }
 0x152   : > { %4368 = vmatmul.msk.f32.gmra.mxu0 %vm408_vm1, %v265_v9 }
 0x157   : > { %v1048_v11 = vpop.f32.mrf.mxu0  ;;  %2248 = vmatmul.f32.gmra.mxu1 %v1600_v10  ;;  %v282_v10 = vld [vmem:[%s4646_s27 + $0x1c8] sm:$0xff] }
 0x15a   : > { %4369 = vmatmul.msk.f32.gmra.mxu0 %vm408_vm1, %v266_v12 }
 0x15f   : > { %v1051_v14 = vpop.f32.mrf.mxu0  ;;  %2251 = vmatmul.f32.gmra.mxu1 %v1612_v13  ;;  %v1804_v13 = vld [vmem:[%s8719_s2 + $0x900] sm:$0xff] }
 0x162   : > { %4370 = vmatmul.msk.f32.gmra.mxu0 %vm408_vm1, %v267_v15  ;;  %v283_v15 = vld [vmem:[%s4646_s27 + $0x1d0] sm:$0xff] }
 0x167   : > { %v1054_v17 = vpop.f32.mrf.mxu0  ;;  %2254 = vmatmul.f32.gmra.mxu1 %v1624_v16  ;;  %v1613_v16 = vld [vmem:[%s8719_s2 + $0x308] sm:$0xff] }
 0x16a   : > { %4371 = vmatmul.msk.f32.gmra.mxu0 %vm408_vm1, %v268_v18  ;;  %v1816_v18 = vld [vmem:[%s8719_s2 + $0x960] sm:$0xff] }
 0x16f   : > { %v1057_v20 = vpop.f32.mrf.mxu0  ;;  %2257 = vmatmul.f32.gmra.mxu1 %v1636_v19 }
 0x172   : > { %4372 = vmatmul.msk.f32.gmra.mxu0 %vm408_vm1, %v269_v21  ;;  %v1625_v21 = vld [vmem:[%s8719_s2 + $0x368] sm:$0xff] }
 0x177   : > { %v1060_v23 = vpop.f32.mrf.mxu0  ;;  %2260 = vmatmul.f32.gmra.mxu1 %v1648_v22 }
 0x17a   : > { %4373 = vmatmul.msk.f32.gmra.mxu0 %vm408_vm1, %v270_v24 }
 0x17f   : > { %v1063_v26 = vpop.f32.mrf.mxu0  ;;  %2263 = vmatmul.f32.gmra.mxu1 %v1660_v25  ;;  %v285_v25 = vld [vmem:[%s4646_s27 + $0x1e0] sm:$0xff] }
 0x182   : > { %4374 = vmatmul.msk.f32.gmra.mxu0 %vm408_vm1, %v271_v27 }
 0x187   : > { %v1066_v29 = vpop.f32.mrf.mxu0  ;;  %2266 = vmatmul.f32.gmra.mxu1 %v1672_v28  ;;  %v1840_v28 = vld [vmem:[%s8719_s2 + $0xa20] sm:$0xff] }
 0x188   : > { %2366 = vmatpush.msra.mxu2 %v1066_v29 }
 0x18a   : > { %4375 = vmatmul.msk.f32.gmra.mxu0 %vm408_vm1, %v272_v30  ;;  %2367 = vmatpush.msra.mxu2 %v1063_v26  ;;  %v1637_v26 = vld [vmem:[%s8719_s2 + $0x3c8] sm:$0xff] }
 0x18b   : > { %v286_v30 = vld [vmem:[%s4646_s27 + $0x1e8] sm:$0xff] }
 0x18c   : > { %2368 = vmatpush.msra.mxu2 %v1060_v23  ;;  %v1828_v23 = vld [vmem:[%s8719_s2 + $0x9c0] sm:$0xff] }
 0x18e   : > { %2369 = vmatpush.msra.mxu2 %v1057_v20  ;;  %v284_v20 = vld [vmem:[%s4646_s27 + $0x1d8] sm:$0xff] }
 0x18f   : > { %v4820_v32 = vpop.f32.mrf.mxu0  ;;  %2269 = vmatmul.f32.gmra.mxu1 %v1684_v31  ;;  %v1649_v31 = vld [vmem:[%s8719_s2 + $0x428] sm:$0xff] }
 0x190   : > { %2370 = vmatpush.msra.mxu2 %v1054_v17 }
 0x192   : > { %4376 = vmatmul.msk.f32.gmra.mxu0 %vm408_vm1, %v273_v33  ;;  %2371 = vmatpush.msra.mxu2 %v1051_v14 }
 0x194   : > { %2372 = vmatpush.msra.mxu2 %v1048_v11  ;;  %v1601_v11 = vld [vmem:[%s8719_s2 + $0x2a8] sm:$0xff] }
 0x196   : > { %2373 = vmatpush.msra.mxu2 %v1045_v8  ;;  %v1792_v8 = vld [vmem:[%s8719_s2 + $0x8a0] sm:$0xff] }
 0x197   : > { %v4827_v35 = vpop.f32.mrf.mxu0  ;;  %2272 = vmatmul.f32.gmra.mxu1 %v1696_v34  ;;  %v1852_v34 = vld [vmem:[%s8719_s2 + $0xa80] sm:$0xff] }
 0x198   : > { %2374 = vmatpush.msra.mxu2 %v1042_v5  ;;  %v281_v5 = vld [vmem:[%s4646_s27 + $0x1c0] sm:$0xff] }
 0x19a   : > { %4377 = vmatmul.msk.f32.gmra.mxu0 %vm408_vm1, %v274_v36  ;;  %2375 = vmatpush.msra.mxu2 %v4768_v2 }
 0x19c   : > { %2376 = vmatpush.msra.mxu2 %v4761_v63 }
 0x19e   : > { %2377 = vmatpush.msra.mxu2 %v4754_v60  ;;  %v1565_v60 = vld [vmem:[%s8719_s2 + $0x188] sm:$0xff] }
 0x19f   : > { %v4837_v38 = vpop.f32.mrf.mxu0  ;;  %2275 = vmatmul.f32.gmra.mxu1 %v1708_v37  ;;  %v287_v37 = vld [vmem:[%s4646_s27 + $0x1f0] sm:$0xff] }
 0x1a0   : > { %2378 = vmatpush.msra.mxu2 %v4747_v57  ;;  %v1756_v57 = vld [vmem:[%s8719_s2 + $0x780] sm:$0xff] }
 0x1a2   : > { %4378 = vmatmul.msk.f32.gmra.mxu0 %vm408_vm1, %v275_v39  ;;  %2379 = vmatpush.msra.mxu2 %v4732_v54  ;;  %v278_v54 = vld [vmem:[%s4646_s27 + $0x1a8] sm:$0xff] }
 0x1a3   : > { %v1661_v39 = vld [vmem:[%s8719_s2 + $0x488] sm:$0xff] }
 0x1a4   : > { %2380 = vmatpush.msra.mxu2 %v4726_v52  ;;  %v4847_v41 = vpop.f32.mrf.mxu1  ;;  %v1744_v52 = vld [vmem:[%s8719_s2 + $0x720] sm:$0xff] }
 0x1a6   : > { %2381 = vmatpush.msra.mxu2 %v4722_v50  ;;  %v1541_v50 = vld [vmem:[%s8719_s2 + $0xc8] sm:$0xff] }
 0x1a7   : > { %v4853_v43 = vpop.f32.mrf.mxu0  ;;  %2382 = vmatmul.f32.vlgmr.msra.gmra.mxu2 %v1517_v40  ;;  %2278 = vmatmul.f32.gmra.mxu1 %v1720_v42  ;;  %v1864_v42 = vld [vmem:[%s8719_s2 + $0xae0] sm:$0xff] }
 0x1aa   : > { %4379 = vmatmul.msk.f32.gmra.mxu0 %vm408_vm1, %v276_v44 }
 0x1ac   : > { %v4860_v46 = vpop.f32.mrf.mxu1 }
 0x1af   : > { %v4865_v48 = vpop.f32.mrf.mxu0  ;;  %2385 = vmatmul.f32.gmra.mxu2 %v1529_v45  ;;  %2281 = vmatmul.f32.gmra.mxu1 %v1732_v47  ;;  %v288_v45 = vld [vmem:[%s4646_s27 + $0x1f8] sm:$0xff]  ;;  %v1673_v47 = vld [vmem:[%s8719_s2 + $0x4e8] sm:$0xff] }
 0x1b2   : > { %4380 = vmatmul.msk.f32.gmra.mxu0 %vm408_vm1, %v277_v49 }
 0x1b4   : > { %v4872_v51 = vpop.f32.mrf.mxu1 }
 0x1b7   : > { %v4877_v53 = vpop.f32.mrf.mxu0  ;;  %2388 = vmatmul.f32.gmra.mxu2 %v1541_v50  ;;  %2284 = vmatmul.f32.gmra.mxu1 %v1744_v52  ;;  %v1876_v50 = vld [vmem:[%s8719_s2 + $0xb40] sm:$0xff] }
 0x1ba   : > { %4381 = vmatmul.msk.f32.gmra.mxu0 %vm408_vm1, %v278_v54  ;;  %v289_v54 = vld [vmem:[%s4646_s27 + $0x200] sm:$0xff] }
 0x1bc   : > { %v4884_v56 = vpop.f32.mrf.mxu1 }
 0x1bf   : > { %v4889_v58 = vpop.f32.mrf.mxu0  ;;  %2391 = vmatmul.f32.gmra.mxu2 %v1553_v55  ;;  %2287 = vmatmul.f32.gmra.mxu1 %v1756_v57  ;;  %v1685_v55 = vld [vmem:[%s8719_s2 + $0x548] sm:$0xff] }
 0x1c2   : > { %4382 = vmatmul.msk.f32.gmra.mxu0 %vm408_vm1, %v279_v59  ;;  %v1888_v59 = vld [vmem:[%s8719_s2 + $0xba0] sm:$0xff] }
 0x1c4   : > { %v4896_v61 = vpop.f32.mrf.mxu1 }
 0x1c7   : > { %v4901_v63 = vpop.f32.mrf.mxu0  ;;  %2394 = vmatmul.f32.gmra.mxu2 %v1565_v60  ;;  %2290 = vmatmul.f32.gmra.mxu1 %v1768_v62  ;;  %v290_v62 = vld [vmem:[%s4646_s27 + $0x208] sm:$0xff] }
 0x1ca   : > { %4383 = vmatmul.msk.f32.gmra.mxu0 %vm408_vm1, %v280_v0  ;;  %v1697_v0 = vld [vmem:[%s8719_s2 + $0x5a8] sm:$0xff] }
 0x1cc   : > { %v4908_v2 = vpop.f32.mrf.mxu1 }
 0x1cf   : > { %v4913_v4 = vpop.f32.mrf.mxu0  ;;  %2397 = vmatmul.f32.gmra.mxu2 %v1577_v1  ;;  %2293 = vmatmul.f32.gmra.mxu1 %v1780_v3  ;;  %v1900_v3 = vld [vmem:[%s8719_s2 + $0xc00] sm:$0xff] }
 0x1d2   : > { %4384 = vmatmul.msk.f32.gmra.mxu0 %vm408_vm1, %v281_v5 }
 0x1d4   : > { %v4920_v7 = vpop.f32.mrf.mxu1 }
 0x1d7   : > { %v4925_v9 = vpop.f32.mrf.mxu0  ;;  %2400 = vmatmul.f32.gmra.mxu2 %v1589_v6  ;;  %2296 = vmatmul.f32.gmra.mxu1 %v1792_v8  ;;  %v1530_v6 = vld [vmem:[%s8719_s2 + $0x70] sm:$0xff]  ;;  %v1721_v8 = vld [vmem:[%s8719_s2 + $0x668] sm:$0xff] }
 0x1da   : > { %4385 = vmatmul.msk.f32.gmra.mxu0 %vm408_vm1, %v282_v10 }
 0x1dc   : > { %v4932_v12 = vpop.f32.mrf.mxu1 }
 0x1df   : > { %v1099_v14 = vpop.f32.mrf.mxu0  ;;  %2403 = vmatmul.f32.gmra.mxu2 %v1601_v11  ;;  %2299 = vmatmul.f32.gmra.mxu1 %v1804_v13  ;;  %v293_v11 = vld [vmem:[%s4646_s27 + $0x220] sm:$0xff] }
 0x1e2   : > { %4386 = vmatmul.msk.f32.gmra.mxu0 %vm408_vm1, %v283_v15  ;;  %v1733_v15 = vld [vmem:[%s8719_s2 + $0x6c8] sm:$0xff] }
 0x1e4   : > { %v4942_v17 = vpop.f32.mrf.mxu1 }
 0x1e7   : > { %v1102_v19 = vpop.f32.mrf.mxu0  ;;  %2406 = vmatmul.f32.gmra.mxu2 %v1613_v16  ;;  %2302 = vmatmul.f32.gmra.mxu1 %v1816_v18  ;;  %v1936_v18 = vld [vmem:[%s8719_s2 + $0xd20] sm:$0xff] }
 0x1ea   : > { %4387 = vmatmul.msk.f32.gmra.mxu0 %vm408_vm1, %v284_v20  ;;  %v294_v20 = vld [vmem:[%s4646_s27 + $0x228] sm:$0xff] }
 0x1ec   : > { %v4952_v22 = vpop.f32.mrf.mxu1 }
 0x1ef   : > { %v1105_v24 = vpop.f32.mrf.mxu0  ;;  %2409 = vmatmul.f32.gmra.mxu2 %v1625_v21  ;;  %2305 = vmatmul.f32.gmra.mxu1 %v1828_v23  ;;  %v1554_v23 = vld [vmem:[%s8719_s2 + $0x130] sm:$0xff] }
 0x1f2   : > { %4388 = vmatmul.msk.f32.gmra.mxu0 %vm408_vm1, %v285_v25 }
 0x1f4   : > { %v4962_v27 = vpop.f32.mrf.mxu1 }
 0x1f7   : > { %v1108_v29 = vpop.f32.mrf.mxu0  ;;  %2412 = vmatmul.f32.gmra.mxu2 %v1637_v26  ;;  %2308 = vmatmul.f32.gmra.mxu1 %v1840_v28  ;;  %v1948_v26 = vld [vmem:[%s8719_s2 + $0xd80] sm:$0xff] }
 0x1fa   : > { %4389 = vmatmul.msk.f32.gmra.mxu0 %vm408_vm1, %v286_v30 }
 0x1fc   : > { %v4972_v33 = vpop.f32.mrf.mxu1 }
 0x1ff   : > { %v1111_v36 = vpop.f32.mrf.mxu0  ;;  %2415 = vmatmul.f32.gmra.mxu2 %v1649_v31  ;;  %2311 = vmatmul.f32.gmra.mxu1 %v1852_v34  ;;  %v1566_v31 = vld [vmem:[%s8719_s2 + $0x190] sm:$0xff]  ;;  %v1757_v34 = vld [vmem:[%s8719_s2 + $0x788] sm:$0xff] }
 0x202   : > { %4390 = vmatmul.msk.f32.gmra.mxu0 %vm408_vm1, %v287_v37  ;;  %v1960_v37 = vld [vmem:[%s8719_s2 + $0xde0] sm:$0xff] }
 0x204   : > { %v4982_v40 = vpop.f32.mrf.mxu1 }
 0x207   : > { %v1114_v44 = vpop.f32.mrf.mxu0  ;;  %2418 = vmatmul.f32.gmra.mxu2 %v1661_v39  ;;  %2314 = vmatmul.f32.gmra.mxu1 %v1864_v42  ;;  %v296_v42 = vld [vmem:[%s4646_s27 + $0x238] sm:$0xff] }
 0x208   : > { %2521 = vmatpush.msra.mxu3 %v1114_v44 }
 0x20a   : > { %4391 = vmatmul.msk.f32.gmra.mxu0 %vm408_vm1, %v288_v45  ;;  %2522 = vmatpush.msra.mxu3 %v1111_v36  ;;  %v1578_v45 = vld [vmem:[%s8719_s2 + $0x1f0] sm:$0xff] }
 0x20c   : > { %2523 = vmatpush.msra.mxu3 %v1108_v29  ;;  %v4992_v49 = vpop.f32.mrf.mxu1  ;;  %v295_v29 = vld [vmem:[%s4646_s27 + $0x230] sm:$0xff] }
 0x20e   : > { %2524 = vmatpush.msra.mxu3 %v1105_v24  ;;  %v1745_v24 = vld [vmem:[%s8719_s2 + $0x728] sm:$0xff] }
 0x20f   : > { %v4997_v52 = vpop.f32.mrf.mxu0  ;;  %2421 = vmatmul.f32.gmra.mxu2 %v1673_v47  ;;  %2317 = vmatmul.f32.gmra.mxu1 %v1876_v50  ;;  %v1769_v47 = vld [vmem:[%s8719_s2 + $0x7e8] sm:$0xff] }
 0x210   : > { %2525 = vmatpush.msra.mxu3 %v1102_v19 }
 0x212   : > { %4392 = vmatmul.msk.f32.gmra.mxu0 %vm408_vm1, %v289_v54  ;;  %2526 = vmatpush.msra.mxu3 %v1099_v14  ;;  %v1542_v14 = vld [vmem:[%s8719_s2 + $0xd0] sm:$0xff]  ;;  %v1972_v54 = vld [vmem:[%s8719_s2 + $0xe40] sm:$0xff] }
 0x214   : > { %2527 = vmatpush.msra.mxu3 %v4925_v9  ;;  %v5005_v57 = vpop.f32.mrf.mxu1  ;;  %v1924_v9 = vld [vmem:[%s8719_s2 + $0xcc0] sm:$0xff] }
 0x216   : > { %2528 = vmatpush.msra.mxu3 %v4913_v4  ;;  %v291_v4 = vld [vmem:[%s4646_s27 + $0x210] sm:$0xff] }
 0x217   : > { %v5011_v60 = vpop.f32.mrf.mxu0  ;;  %2424 = vmatmul.f32.gmra.mxu2 %v1685_v55  ;;  %2320 = vmatmul.f32.gmra.mxu1 %v1888_v59  ;;  %v297_v59 = vld [vmem:[%s4646_s27 + $0x240] sm:$0xff] }
 0x218   : > { %2529 = vmatpush.msra.mxu3 %v4901_v63 }
 0x21a   : > { %4393 = vmatmul.msk.f32.gmra.mxu0 %vm408_vm1, %v290_v62  ;;  %2530 = vmatpush.msra.mxu3 %v4889_v58 }
 0x21c   : > { %2531 = vmatpush.msra.mxu3 %v4877_v53  ;;  %v5021_v1 = vpop.f32.mrf.mxu1  ;;  %v1518_v53 = vld [vmem:[%s8719_s2 + $0x10] sm:$0xff] }
 0x21e   : > { %2532 = vmatpush.msra.mxu3 %v4865_v48  ;;  %v1709_v48 = vld [vmem:[%s8719_s2 + $0x608] sm:$0xff] }
 0x21f   : > { %v5027_v63 = vpop.f32.mrf.mxu0  ;;  %2427 = vmatmul.f32.gmra.mxu2 %v1697_v0  ;;  %2323 = vmatmul.f32.gmra.mxu1 %v1900_v3  ;;  %v1590_v0 = vld [vmem:[%s8719_s2 + $0x250] sm:$0xff]  ;;  %v1781_v3 = vld [vmem:[%s8719_s2 + $0x848] sm:$0xff] }
 0x220   : > { %2533 = vmatpush.msra.mxu3 %v4853_v43  ;;  %v1912_v43 = vld [vmem:[%s8719_s2 + $0xc60] sm:$0xff] }
 0x222   : > { %4394 = vmatmul.msk.f32.gmra.mxu0 %vm408_vm1, %v291_v4  ;;  %2534 = vmatpush.msra.mxu3 %v4837_v38 }
 0x224   : > { %2535 = vmatpush.msra.mxu3 %v4827_v35  ;;  %v5040_v58 = vpop.f32.mrf.mxu1  ;;  %v292_v35 = vld [vmem:[%s4646_s27 + $0x218] sm:$0xff] }
 0x226   : > { %2536 = vmatpush.msra.mxu3 %v4820_v32 }
 0x227   : > { %v5046_v38 = vpop.f32.mrf.mxu0  ;;  %2537 = vmatmul.f32.vlgmr.msra.gmra.mxu3 %v1518_v53  ;;  %2430 = vmatmul.f32.gmra.mxu2 %v1709_v48  ;;  %v1984_v53 = vld [vmem:[%s8719_s2 + $0xea0] sm:$0xff] }
 0x228   : > { %2326 = vmatmul.f32.gmra.mxu1 %v1912_v43  ;;  %v298_v43 = vld [vmem:[%s4646_s27 + $0x248] sm:$0xff] }
 0x22a   : > { %4395 = vmatmul.msk.f32.gmra.mxu0 %vm408_vm1, %v292_v35  ;;  %v5050_v5 = vpop.f32.mrf.mxu2 }
 0x22c   : > { %v5058_v32 = vpop.f32.mrf.mxu1 }
 0x22f   : > { %v5063_v10 = vpop.f32.mrf.mxu0  ;;  %2540 = vmatmul.f32.gmra.mxu3 %v1530_v6  ;;  %2433 = vmatmul.f32.gmra.mxu2 %v1721_v8  ;;  %v1602_v6 = vld [vmem:[%s8719_s2 + $0x2b0] sm:$0xff]  ;;  %v1793_v8 = vld [vmem:[%s8719_s2 + $0x8a8] sm:$0xff] }
 0x230   : > { %2329 = vmatmul.f32.gmra.mxu1 %v1924_v9 }
 0x232   : > { %4396 = vmatmul.msk.f32.gmra.mxu0 %vm408_vm1, %v293_v11  ;;  %v5067_v13 = vpop.f32.mrf.mxu2  ;;  %v1996_v11 = vld [vmem:[%s8719_s2 + $0xf00] sm:$0xff] }
 0x234   : > { %v5075_v16 = vpop.f32.mrf.mxu1 }
 0x237   : > { %v5080_v19 = vpop.f32.mrf.mxu0  ;;  %2543 = vmatmul.f32.gmra.mxu3 %v1542_v14  ;;  %2436 = vmatmul.f32.gmra.mxu2 %v1733_v15  ;;  %v299_v15 = vld [vmem:[%s4646_s27 + $0x250] sm:$0xff] }
 0x238   : > { %2332 = vmatmul.f32.gmra.mxu1 %v1936_v18 }
 0x23a   : > { %4397 = vmatmul.msk.f32.gmra.mxu0 %vm408_vm1, %v294_v20  ;;  %v5084_v21 = vpop.f32.mrf.mxu2  ;;  %v1614_v20 = vld [vmem:[%s8719_s2 + $0x310] sm:$0xff] }
 0x23c   : > { %v5092_v25 = vpop.f32.mrf.mxu1 }
 0x23f   : > { %v5097_v28 = vpop.f32.mrf.mxu0  ;;  %2546 = vmatmul.f32.gmra.mxu3 %v1554_v23  ;;  %2439 = vmatmul.f32.gmra.mxu2 %v1745_v24  ;;  %v1805_v23 = vld [vmem:[%s8719_s2 + $0x908] sm:$0xff] }
 0x240   : > { %2335 = vmatmul.f32.gmra.mxu1 %v1948_v26  ;;  %v2008_v26 = vld [vmem:[%s8719_s2 + $0xf60] sm:$0xff] }
 0x242   : > { %4398 = vmatmul.msk.f32.gmra.mxu0 %vm408_vm1, %v295_v29  ;;  %v5101_v30 = vpop.f32.mrf.mxu2 }
 0x244   : > { %v5109_v36 = vpop.f32.mrf.mxu1 }
 0x247   : > { %v5114_v39 = vpop.f32.mrf.mxu0  ;;  %2549 = vmatmul.f32.gmra.mxu3 %v1566_v31  ;;  %2442 = vmatmul.f32.gmra.mxu2 %v1757_v34  ;;  %v300_v31 = vld [vmem:[%s4646_s27 + $0x258] sm:$0xff] }
 0x248   : > { %2338 = vmatmul.f32.gmra.mxu1 %v1960_v37  ;;  %v1626_v37 = vld [vmem:[%s8719_s2 + $0x370] sm:$0xff] }
 0x24a   : > { %4399 = vmatmul.msk.f32.gmra.mxu0 %vm408_vm1, %v296_v42  ;;  %v5118_v44 = vpop.f32.mrf.mxu2  ;;  %v1817_v42 = vld [vmem:[%s8719_s2 + $0x968] sm:$0xff] }
 0x24c   : > { %v5126_v50 = vpop.f32.mrf.mxu1 }
 0x24f   : > { %v5131_v55 = vpop.f32.mrf.mxu0  ;;  %2552 = vmatmul.f32.gmra.mxu3 %v1578_v45  ;;  %2445 = vmatmul.f32.gmra.mxu2 %v1769_v47  ;;  %v2020_v47 = vld [vmem:[%s8719_s2 + $0xfc0] sm:$0xff] }
 0x250   : > { %2341 = vmatmul.f32.gmra.mxu1 %v1972_v54 }
 0x252   : > { %4400 = vmatmul.msk.f32.gmra.mxu0 %vm408_vm1, %v297_v59  ;;  %v5135_v62 = vpop.f32.mrf.mxu2  ;;  %v301_v59 = vld [vmem:[%s4646_s27 + $0x260] sm:$0xff] }
 0x254   : > { %v5143_v4 = vpop.f32.mrf.mxu1 }
 0x255   : > { %8723 = vst [vmem:[#allocation2_spill] sm:$0xff] %v5143_v4 }
 0x257   : > { %v5148_v48 = vpop.f32.mrf.mxu0  ;;  %2555 = vmatmul.f32.gmra.mxu3 %v1590_v0  ;;  %2448 = vmatmul.f32.gmra.mxu2 %v1781_v3  ;;  %v1638_v3 = vld [vmem:[%s8719_s2 + $0x3d0] sm:$0xff] }
 0x258   : > { %2344 = vmatmul.f32.gmra.mxu1 %v1984_v53  ;;  %v1829_v53 = vld [vmem:[%s8719_s2 + $0x9c8] sm:$0xff] }
 0x25a   : > { %4401 = vmatmul.msk.f32.gmra.mxu0 %vm408_vm1, %v298_v43  ;;  %v5152_v35 = vpop.f32.mrf.mxu2 }
 0x25c   : > { %v5160_v9 = vpop.f32.mrf.mxu1 }
 0x25d   : > { %8724 = vst [vmem:[#allocation3_spill] sm:$0xff] %v5160_v9  ;;  %v2046_v9 = vld [vmem:[%s8719_s2 + $0x1090] sm:$0xff] }
 0x25f   : > { %v5165_v14 = vpop.f32.mrf.mxu0  ;;  %2558 = vmatmul.f32.gmra.mxu3 %v1602_v6  ;;  %2451 = vmatmul.f32.gmra.mxu2 %v1793_v8  ;;  %v2032_v6 = vld [vmem:[%s8719_s2 + $0x1020] sm:$0xff] }
 0x260   : > { %2347 = vmatmul.f32.gmra.mxu1 %v1996_v11  ;;  %v302_v11 = vld [vmem:[%s4646_s27 + $0x268] sm:$0xff] }
 0x262   : > { %4402 = vmatmul.msk.f32.gmra.mxu0 %vm408_vm1, %v299_v15  ;;  %v5169_v18 = vpop.f32.mrf.mxu2 }
 0x264   : > { %v5177_v24 = vpop.f32.mrf.mxu1 }
 0x265   : > { %8725 = vst [vmem:[#allocation4_spill] sm:$0xff] %v5177_v24 }
 0x267   : > { %v1150_v29 = vpop.f32.mrf.mxu0  ;;  %2561 = vmatmul.f32.gmra.mxu3 %v1614_v20  ;;  %2454 = vmatmul.f32.gmra.mxu2 %v1805_v23  ;;  %v1650_v20 = vld [vmem:[%s8719_s2 + $0x430] sm:$0xff]  ;;  %v1841_v23 = vld [vmem:[%s8719_s2 + $0xa28] sm:$0xff] }
 0x268   : > { %2350 = vmatmul.f32.gmra.mxu1 %v2008_v26 }
 0x26a   : > { %4403 = vmatmul.msk.f32.gmra.mxu0 %vm408_vm1, %v300_v31  ;;  %v5184_v34 = vpop.f32.mrf.mxu2  ;;  %v2044_v31 = vld [vmem:[%s8719_s2 + $0x1080] sm:$0xff] }
 0x26c   : > { %v5192_v45 = vpop.f32.mrf.mxu1 }
 0x26d   : > { %8726 = vst [vmem:[#allocation5_spill] sm:$0xff] %v5192_v45 }
 0x26f   : > { %v1153_v54 = vpop.f32.mrf.mxu0  ;;  %2564 = vmatmul.f32.gmra.mxu3 %v1626_v37  ;;  %2457 = vmatmul.f32.gmra.mxu2 %v1817_v42  ;;  %v303_v42 = vld [vmem:[%s4646_s27 + $0x270] sm:$0xff] }
 0x270   : > { %2353 = vmatmul.f32.gmra.mxu1 %v2020_v47 }
 0x272   : > { %4404 = vmatmul.msk.f32.gmra.mxu0 %vm408_vm1, %v301_v59  ;;  %v5199_v0 = vpop.f32.mrf.mxu2  ;;  %v1662_v59 = vld [vmem:[%s8719_s2 + $0x490] sm:$0xff] }
 0x274   : > { %v5207_v43 = vpop.f32.mrf.mxu1 }
 0x275   : > { %8727 = vst [vmem:[#allocation6_spill] sm:$0xff] %v5207_v43  ;;  %v1806_v43 = vld [vmem:[%s8719_s2 + $0x910] sm:$0xff] }
 0x277   : > { %v1156_v8 = vpop.f32.mrf.mxu0  ;;  %2567 = vmatmul.f32.gmra.mxu3 %v1638_v3  ;;  %2460 = vmatmul.f32.gmra.mxu2 %v1829_v53  ;;  %v1853_v3 = vld [vmem:[%s8719_s2 + $0xa88] sm:$0xff] }
 0x278   : > { %2356 = vmatmul.f32.gmra.mxu1 %v2032_v6  ;;  %v2056_v6 = vld [vmem:[%s8719_s2 + $0x10e0] sm:$0x1] }
 0x27a   : > { %4405 = vmatmul.msk.f32.gmra.mxu0 %vm408_vm1, %v302_v11  ;;  %v5214_v15 = vpop.f32.mrf.mxu2 }
 0x27c   : > { %v5222_v26 = vpop.f32.mrf.mxu1 }
 0x27d   : > { %8728 = vst [vmem:[#allocation7_spill] sm:$0xff] %v5222_v26  ;;  %v1794_v26 = vld [vmem:[%s8719_s2 + $0x8b0] sm:$0xff] }
 0x27f   : > { %v1159_v37 = vpop.f32.mrf.mxu0  ;;  %2570 = vmatmul.f32.gmra.mxu3 %v1650_v20  ;;  %2463 = vmatmul.f32.gmra.mxu2 %v1841_v23  ;;  %v304_v20 = vld [vmem:[%s4646_s27 + $0x278] sm:$0xff] }
 0x280   : > { %2359 = vmatmul.f32.gmra.mxu1 %v2044_v31  ;;  %v1674_v31 = vld [vmem:[%s8719_s2 + $0x4f0] sm:$0xff] }
 0x282   : > { %4406 = vmatmul.msk.f32.gmra.mxu0 %vm408_vm1, %v303_v42  ;;  %v5229_v47 = vpop.f32.mrf.mxu2  ;;  %v1865_v42 = vld [vmem:[%s8719_s2 + $0xae8] sm:$0xff] }
 0x284   : > { %v5237_v53 = vpop.f32.mrf.mxu1 }
 0x285   : > { %8729 = vst [vmem:[#allocation8_spill] sm:$0xff] %v5237_v53 }
 0x287   : > { %v1162_v11 = vpop.f32.mrf.mxu0  ;;  %2573 = vmatmul.f32.gmra.mxu3 %v1662_v59  ;;  %2466 = vmatmul.f32.gmra.mxu2 %v1853_v3  ;;  %v305_v3 = vld [vmem:[%s4646_s27 + $0x280] sm:$0xff] }
 0x288   : > { %2676 = vmatpush.msrb.mxu1 %v1162_v11  ;;  %v1698_v11 = vld [vmem:[%s8719_s2 + $0x5b0] sm:$0xff] }
 0x289   : > { %2362 = vmatmul.f32.gmra.mxu1 %v2056_v6 }
 0x28a   : > { %4407 = vmatmul.msk.f32.gmra.mxu0 %vm408_vm1, %v304_v20  ;;  %2677 = vmatpush.msrb.mxu1 %v1159_v37  ;;  %v5244_v23 = vpop.f32.mrf.mxu2  ;;  %v1686_v37 = vld [vmem:[%s8719_s2 + $0x550] sm:$0xff] }
 0x28c   : > { %2678 = vmatpush.msrb.mxu1 %v1156_v8  ;;  %v5252_v53 = vpop.f32.mrf.mxu1 }
 0x28d   : > { %8730 = vst [vmem:[#allocation9_spill] sm:$0xff] %v5252_v53 }
 0x28e   : > { %2679 = vmatpush.msrb.mxu1 %v1153_v54  ;;  %v1877_v54 = vld [vmem:[%s8719_s2 + $0xb48] sm:$0xff] }
 0x28f   : > { %v5254_v59 = vpop.f32.mrf.mxu0  ;;  %2576 = vmatmul.f32.gmra.mxu3 %v1674_v31  ;;  %2469 = vmatmul.f32.gmra.mxu2 %v1865_v42  ;;  %v1519_v31 = vld [vmem:[%s8719_s2 + $0x18] sm:$0xff] }
 0x290   : > { %2680 = vmatpush.msrb.mxu1 %v1150_v29 }
 0x292   : > { %4408 = vmatmul.msk.f32.gmra.mxu0 %vm408_vm1, %v305_v3  ;;  %2681 = vmatpush.msrb.mxu1 %v5165_v14  ;;  %v5259_v8 = vpop.f32.mrf.mxu2  ;;  %v306_v14 = vld [vmem:[%s4646_s27 + $0x288] sm:$0xff] }
 0x294   : > { %2682 = vmatpush.msrb.mxu1 %v5148_v48  ;;  %v5268_v6 = vpop.f32.mrf.mxu1 }
 0x295   : > { %8731 = vst [vmem:[#allocation10_spill] sm:$0xff] %v5268_v6 }
 0x296   : > { %2683 = vmatpush.msrb.mxu1 %v5131_v55  ;;  %v1889_v55 = vld [vmem:[%s8719_s2 + $0xba8] sm:$0xff] }
 0x297   : > { %v5271_v29 = vpop.f32.mrf.mxu0  ;;  %2579 = vmatmul.f32.gmra.mxu3 %v1686_v37  ;;  %2472 = vmatmul.f32.gmra.mxu2 %v1877_v54  ;;  %v1722_v54 = vld [vmem:[%s8719_s2 + $0x670] sm:$0xff] }
 0x298   : > { %2684 = vmatpush.msrb.mxu1 %v5114_v39 }
 0x29a   : > { %4409 = vmatmul.msk.f32.gmra.mxu0 %vm408_vm1, %v306_v14  ;;  %2685 = vmatpush.msrb.mxu1 %v5097_v28  ;;  %v5277_v48 = vpop.f32.mrf.mxu2  ;;  %v307_v28 = vld [vmem:[%s4646_s27 + $0x290] sm:$0xff]  ;;  %v1913_v14 = vld [vmem:[%s8719_s2 + $0xc68] sm:$0xff] }
 0x29c   : > { %2686 = vmatpush.msrb.mxu1 %v5080_v19  ;;  %v5286_v20 = vpop.f32.mrf.mxu1 }
 0x29d   : > { %8732 = vst [vmem:[#allocation11_spill] sm:$0xff] %v5286_v20 }
 0x29e   : > { %2687 = vmatpush.msrb.mxu1 %v5063_v10  ;;  %v1710_v10 = vld [vmem:[%s8719_s2 + $0x610] sm:$0xff] }
 0x29f   : > { %v5289_v39 = vpop.f32.mrf.mxu0  ;;  %2582 = vmatmul.f32.gmra.mxu3 %v1698_v11  ;;  %2475 = vmatmul.f32.gmra.mxu2 %v1889_v55  ;;  %v2387_v55 = vadd.f32 %v5067_v13, %v4847_v41  ;;  %v1543_v41 = vld [vmem:[%s8719_s2 + $0xd8] sm:$0xff]  ;;  %v1925_v13 = vld [vmem:[%s8719_s2 + $0xcc8] sm:$0xff] }
 0x2a0   : > { %2688 = vmatpush.msrb.mxu1 %v5046_v38  ;;  %v1901_v38 = vld [vmem:[%s8719_s2 + $0xc08] sm:$0xff] }
 0x2a2   : > { %4410 = vmatmul.msk.f32.gmra.mxu0 %vm408_vm1, %v307_v28  ;;  %2689 = vmatpush.msrb.mxu1 %v5027_v63  ;;  %v5295_v19 = vpop.f32.mrf.mxu2 }
 0x2a4   : > { %2690 = vmatpush.msrb.mxu1 %v5011_v60  ;;  %v308_v60 = vld [vmem:[%s4646_s27 + $0x298] sm:$0xff] }
 0x2a5   : > { %v5307_v42 = vpop.f32.mrf.mxu1 }
 0x2a6   : > { %8733 = vst [vmem:[#allocation12_spill] sm:$0xff] %v5307_v42  ;;  %2691 = vmatpush.msrb.mxu1 %v4997_v52  ;;  %v1531_v52 = vld [vmem:[%s8719_s2 + $0x78] sm:$0xff] }
 0x2a7   : > { %v5310_v63 = vpop.f32.mrf.mxu0  ;;  %2585 = vmatmul.f32.gmra.mxu3 %v1710_v10  ;;  %2692 = vmatmul.f32.vlgmr.msrb.gmra.mxu1 %v1519_v31  ;;  %v309_v10 = vld [vmem:[%s4646_s27 + $0x2a0] sm:$0xff] }
 0x2a8   : > { %2478 = vmatmul.f32.gmra.mxu2 %v1901_v38 }
 0x2aa   : > { %4411 = vmatmul.msk.f32.gmra.mxu0 %vm408_vm1, %v308_v60  ;;  %v5314_v3 = vpop.f32.mrf.mxu3  ;;  %v5316_v37 = vpop.f32.mrf.mxu2 }
 0x2ad   : > { %v5327_v11 = vpop.f32.mrf.mxu1 }
 0x2ae   : > { %8734 = vst [vmem:[#allocation13_spill] sm:$0xff] %v5327_v11  ;;  %v1734_v11 = vld [vmem:[%s8719_s2 + $0x6d0] sm:$0xff] }
 0x2af   : > { %v5331_v28 = vpop.f32.mrf.mxu0  ;;  %2588 = vmatmul.f32.gmra.mxu3 %v1722_v54  ;;  %2695 = vmatmul.f32.gmra.mxu1 %v1531_v52  ;;  %v2390_v52 = vadd.f32 %v5084_v21, %v4860_v46  ;;  %v1555_v46 = vld [vmem:[%s8719_s2 + $0x138] sm:$0xff]  ;;  %v1937_v21 = vld [vmem:[%s8719_s2 + $0xd28] sm:$0xff] }
 0x2b0   : > { %2481 = vmatmul.f32.gmra.mxu2 %v1913_v14 }
 0x2b2   : > { %4412 = vmatmul.msk.f32.gmra.mxu0 %vm408_vm1, %v309_v10  ;;  %v2541_v31 = vpop.f32.mrf.mxu3  ;;  %v5335_v38 = vpop.f32.mrf.mxu2 }
 0x2b3   : > { %v5337_v60 = vadd.f32 %v2541_v31, %v2387_v55  ;;  %v310_v55 = vld [vmem:[%s4646_s27 + $0x2a8] sm:$0xff] }
 0x2b5   : > { %v5348_v54 = vpop.f32.mrf.mxu1 }
 0x2b6   : > { %8735 = vst [vmem:[#allocation14_spill] sm:$0xff] %v5348_v54  ;;  %v1746_v54 = vld [vmem:[%s8719_s2 + $0x730] sm:$0xff] }
 0x2b7   : > { %v5352_v14 = vpop.f32.mrf.mxu0  ;;  %2591 = vmatmul.f32.gmra.mxu3 %v1734_v11  ;;  %2698 = vmatmul.f32.gmra.mxu1 %v1543_v41  ;;  %v2393_v11 = vadd.f32 %v5101_v30, %v4872_v51  ;;  %v1758_v51 = vld [vmem:[%s8719_s2 + $0x790] sm:$0xff]  ;;  %v1567_v30 = vld [vmem:[%s8719_s2 + $0x198] sm:$0xff] }
 0x2b8   : > { %2484 = vmatmul.f32.gmra.mxu2 %v1925_v13  ;;  %v311_v13 = vld [vmem:[%s4646_s27 + $0x2b0] sm:$0xff] }
 0x2ba   : > { %4413 = vmatmul.msk.f32.gmra.mxu0 %vm408_vm1, %v310_v55  ;;  %v2544_v10 = vpop.f32.mrf.mxu3  ;;  %v5356_v31 = vpop.f32.mrf.mxu2 }
 0x2bb   : > { %v5358_v42 = vadd.f32 %v2544_v10, %v2390_v52 }
 0x2bd   : > { %v5374_v52 = vpop.f32.mrf.mxu1 }
 0x2be   : > { %8736 = vst [vmem:[#allocation15_spill] sm:$0xff] %v5374_v52 }
 0x2bf   : > { %v5371_v41 = vpop.f32.mrf.mxu0  ;;  %2594 = vmatmul.f32.gmra.mxu3 %v1746_v54  ;;  %2701 = vmatmul.f32.gmra.mxu1 %v1555_v46  ;;  %v1949_v54 = vld [vmem:[%s8719_s2 + $0xd88] sm:$0xff]  ;;  %v2396_v46 = vadd.f32 %v5118_v44, %v4884_v56  ;;  %v1770_v56 = vld [vmem:[%s8719_s2 + $0x7f0] sm:$0xff]  ;;  %v1579_v44 = vld [vmem:[%s8719_s2 + $0x1f8] sm:$0xff] }
 0x2c0   : > { %2487 = vmatmul.f32.gmra.mxu2 %v1937_v21 }
 0x2c2   : > { %4414 = vmatmul.msk.f32.gmra.mxu0 %vm408_vm1, %v311_v13  ;;  %v2547_v55 = vpop.f32.mrf.mxu3  ;;  %v5377_v10 = vpop.f32.mrf.mxu2 }
 0x2c3   : > { %v5379_v20 = vadd.f32 %v2547_v55, %v2393_v11  ;;  %v312_v11 = vld [vmem:[%s4646_s27 + $0x2b8] sm:$0xff] }
 0x2c5   : > { %v5395_v13 = vpop.f32.mrf.mxu1 }
 0x2c6   : > { %8737 = vst [vmem:[#allocation16_spill] sm:$0xff] %v5395_v13 }
 0x2c7   : > { %v5392_v21 = vpop.f32.mrf.mxu0  ;;  %2597 = vmatmul.f32.gmra.mxu3 %v1758_v51  ;;  %2704 = vmatmul.f32.gmra.mxu1 %v1567_v30  ;;  %v1961_v51 = vld [vmem:[%s8719_s2 + $0xde8] sm:$0xff]  ;;  %v2399_v30 = vadd.f32 %v5135_v62, %v4896_v61  ;;  %v1782_v61 = vld [vmem:[%s8719_s2 + $0x850] sm:$0xff]  ;;  %v1591_v62 = vld [vmem:[%s8719_s2 + $0x258] sm:$0xff] }
 0x2c8   : > { %2490 = vmatmul.f32.gmra.mxu2 %v1949_v54 }
 0x2ca   : > { %4415 = vmatmul.msk.f32.gmra.mxu0 %vm408_vm1, %v312_v11  ;;  %v2550_v55 = vpop.f32.mrf.mxu3  ;;  %v5398_v52 = vpop.f32.mrf.mxu2 }
 0x2cb   : > { %v5400_v6 = vadd.f32 %v2550_v55, %v2396_v46  ;;  %v313_v46 = vld [vmem:[%s4646_s27 + $0x2c0] sm:$0xff] }
 0x2cd   : > { %v5421_v53 = vpop.f32.mrf.mxu1 }
 0x2ce   : > { %8738 = vst [vmem:[#allocation17_spill] sm:$0xff] %v5421_v53 }
 0x2cf   : > { %v5413_v54 = vpop.f32.mrf.mxu0  ;;  %2600 = vmatmul.f32.gmra.mxu3 %v1770_v56  ;;  %2707 = vmatmul.f32.gmra.mxu1 %v1579_v44  ;;  %v1973_v56 = vld [vmem:[%s8719_s2 + $0xe48] sm:$0xff]  ;;  %v2402_v44 = vadd.f32 %v5152_v35, %v4908_v2  ;;  %v1603_v2 = vld [vmem:[%s8719_s2 + $0x2b8] sm:$0xff] }
 0x2d0   : > { %2493 = vmatmul.f32.gmra.mxu2 %v1961_v51 }
 0x2d2   : > { %4416 = vmatmul.msk.f32.gmra.mxu0 %vm408_vm1, %v313_v46  ;;  %v2553_v11 = vpop.f32.mrf.mxu3  ;;  %v5417_v55 = vpop.f32.mrf.mxu2 }
 0x2d3   : > { %v5419_v13 = vadd.f32 %v2553_v11, %v2399_v30  ;;  %v314_v30 = vld [vmem:[%s4646_s27 + $0x2c8] sm:$0xff] }
 0x2d5   : > { %v5448_v35 = vpop.f32.mrf.mxu1 }
 0x2d6   : > { %8740 = vst [vmem:[#allocation19_spill] sm:$0xff] %v5448_v35 }
 0x2d7   : > { %v5434_v51 = vpop.f32.mrf.mxu0  ;;  %2603 = vmatmul.f32.gmra.mxu3 %v1782_v61  ;;  %2710 = vmatmul.f32.gmra.mxu1 %v1591_v62  ;;  %v1985_v61 = vld [vmem:[%s8719_s2 + $0xea8] sm:$0xff]  ;;  %v2405_v62 = vadd.f32 %v5169_v18, %v4920_v7  ;;  %v1615_v7 = vld [vmem:[%s8719_s2 + $0x318] sm:$0xff] }
 0x2d8   : > { %2496 = vmatmul.f32.gmra.mxu2 %v1973_v56  ;;  %v1997_v18 = vld [vmem:[%s8719_s2 + $0xf08] sm:$0xff] }
 0x2da   : > { %4417 = vmatmul.msk.f32.gmra.mxu0 %vm408_vm1, %v314_v30  ;;  %v2556_v46 = vpop.f32.mrf.mxu3  ;;  %v5438_v11 = vpop.f32.mrf.mxu2 }
 0x2db   : > { %8739 = vst [vmem:[#allocation18_spill] sm:$0xff] %v5438_v11  ;;  %v5440_v53 = vadd.f32 %v2556_v46, %v2402_v44  ;;  %v315_v44 = vld [vmem:[%s4646_s27 + $0x2d0] sm:$0xff]  ;;  %v2061_v11 = vld [vmem:[%s8719_s2 + $0x1108] sm:$0x1] }
 0x2df   : > { %v5455_v56 = vpop.f32.mrf.mxu0  ;;  %2606 = vmatmul.f32.gmra.mxu3 %v1794_v26  ;;  %2713 = vmatmul.f32.gmra.mxu1 %v1603_v2  ;;  %v2408_v26 = vadd.f32 %v5184_v34, %v4932_v12  ;;  %v1818_v12 = vld [vmem:[%s8719_s2 + $0x970] sm:$0xff]  ;;  %v1627_v34 = vld [vmem:[%s8719_s2 + $0x378] sm:$0xff] }
 0x2e0   : > { %2499 = vmatmul.f32.gmra.mxu2 %v1985_v61  ;;  %v316_v61 = vld [vmem:[%s4646_s27 + $0x2d8] sm:$0xff] }
 0x2e2   : > { %4418 = vmatmul.msk.f32.gmra.mxu0 %vm408_vm1, %v315_v44  ;;  %v2559_v30 = vpop.f32.mrf.mxu3  ;;  %v5459_v46 = vpop.f32.mrf.mxu2 }
 0x2e3   : > { %8741 = vst [vmem:[#allocation20_spill] sm:$0xff] %v5459_v46  ;;  %v5461_v35 = vadd.f32 %v2559_v30, %v2405_v62  ;;  %v5477_v62 = vpop.f32.mrf.mxu1  ;;  %v1867_v46 = vld [vmem:[%s8719_s2 + $0xaf8] sm:$0xff] }
 0x2e4   : > { %8742 = vst [vmem:[#allocation21_spill] sm:$0xff] %v5477_v62 }
 0x2e7   : > { %v5474_v2 = vpop.f32.mrf.mxu0  ;;  %2609 = vmatmul.f32.gmra.mxu3 %v1806_v43  ;;  %2716 = vmatmul.f32.gmra.mxu1 %v1615_v7  ;;  %v2009_v43 = vld [vmem:[%s8719_s2 + $0xf68] sm:$0xff]  ;;  %v2411_v7 = vadd.f32 %v5199_v0, %v4942_v17  ;;  %v1639_v17 = vld [vmem:[%s8719_s2 + $0x3d8] sm:$0xff] }
 0x2e8   : > { %2502 = vmatmul.f32.gmra.mxu2 %v1997_v18  ;;  %v2021_v0 = vld [vmem:[%s8719_s2 + $0xfc8] sm:$0xff] }
 0x2ea   : > { %4419 = vmatmul.msk.f32.gmra.mxu0 %vm408_vm1, %v316_v61  ;;  %v2562_v44 = vpop.f32.mrf.mxu3  ;;  %v5480_v30 = vpop.f32.mrf.mxu2  ;;  %v317_v61 = vld [vmem:[%s4646_s27 + $0x2e0] sm:$0xff] }
 0x2eb   : > { %8743 = vst [vmem:[#allocation22_spill] sm:$0xff] %v5480_v30  ;;  %v5482_v45 = vadd.f32 %v2562_v44, %v2408_v26  ;;  %v5496_v26 = vpop.f32.mrf.mxu1  ;;  %v1830_v30 = vld [vmem:[%s8719_s2 + $0x9d0] sm:$0xff] }
 0x2ec   : > { %8744 = vst [vmem:[#allocation23_spill] sm:$0xff] %v5496_v26 }
 0x2ef   : > { %v1201_v18 = vpop.f32.mrf.mxu0  ;;  %2612 = vmatmul.f32.gmra.mxu3 %v1818_v12  ;;  %2719 = vmatmul.f32.gmra.mxu1 %v1627_v34  ;;  %v2414_v12 = vadd.f32 %v5214_v15, %v4952_v22  ;;  %v1651_v22 = vld [vmem:[%s8719_s2 + $0x438] sm:$0xff]  ;;  %v2033_v15 = vld [vmem:[%s8719_s2 + $0x1028] sm:$0xff] }
 0x2f0   : > { %2505 = vmatmul.f32.gmra.mxu2 %v2009_v43  ;;  %v318_v43 = vld [vmem:[%s4646_s27 + $0x2e8] sm:$0xff] }
 0x2f2   : > { %4420 = vmatmul.msk.f32.gmra.mxu0 %vm408_vm1, %v317_v61  ;;  %v2565_v44 = vpop.f32.mrf.mxu3  ;;  %v5499_v62 = vpop.f32.mrf.mxu2 }
 0x2f3   : > { %8745 = vst [vmem:[#allocation24_spill] sm:$0xff] %v5499_v62  ;;  %v5501_v24 = vadd.f32 %v2565_v44, %v2411_v7  ;;  %v5520_v26 = vpop.f32.mrf.mxu1  ;;  %v1842_v62 = vld [vmem:[%s8719_s2 + $0xa30] sm:$0xff] }
 0x2f4   : > { %8747 = vst [vmem:[#allocation26_spill] sm:$0xff] %v5520_v26  ;;  %v1854_v26 = vld [vmem:[%s8719_s2 + $0xa90] sm:$0xff] }
 0x2f7   : > { %v1204_v34 = vpop.f32.mrf.mxu0  ;;  %2615 = vmatmul.f32.gmra.mxu3 %v1830_v30  ;;  %2722 = vmatmul.f32.gmra.mxu1 %v1639_v17  ;;  %v2417_v30 = vadd.f32 %v5229_v47, %v4962_v27  ;;  %v1663_v27 = vld [vmem:[%s8719_s2 + $0x498] sm:$0xff] }
 0x2f8   : > { %2508 = vmatmul.f32.gmra.mxu2 %v2021_v0  ;;  %v319_v0 = vld [vmem:[%s4646_s27 + $0x2f0] sm:$0xff] }
 0x2fa   : > { %4421 = vmatmul.msk.f32.gmra.mxu0 %vm408_vm1, %v318_v43  ;;  %v2568_v7 = vpop.f32.mrf.mxu3  ;;  %v5516_v61 = vpop.f32.mrf.mxu2 }
 0x2fb   : > { %8746 = vst [vmem:[#allocation25_spill] sm:$0xff] %v5516_v61  ;;  %v5518_v44 = vadd.f32 %v2568_v7, %v2414_v12  ;;  %v5545_v47 = vpop.f32.mrf.mxu1 }
 0x2fc   : > { %8749 = vst [vmem:[#allocation28_spill] sm:$0xff] %v5545_v47 }
 0x2ff   : > { %v1207_v17 = vpop.f32.mrf.mxu0  ;;  %2618 = vmatmul.f32.gmra.mxu3 %v1842_v62  ;;  %2725 = vmatmul.f32.gmra.mxu1 %v1651_v22  ;;  %v2045_v62 = vld [vmem:[%s8719_s2 + $0x1088] sm:$0xff]  ;;  %v2420_v22 = vadd.f32 %v5244_v23, %v4972_v33  ;;  %v1866_v33 = vld [vmem:[%s8719_s2 + $0xaf0] sm:$0xff]  ;;  %v1675_v23 = vld [vmem:[%s8719_s2 + $0x4f8] sm:$0xff] }
 0x300   : > { %2511 = vmatmul.f32.gmra.mxu2 %v2033_v15 }
 0x302   : > { %4422 = vmatmul.msk.f32.gmra.mxu0 %vm408_vm1, %v319_v0  ;;  %v2571_v12 = vpop.f32.mrf.mxu3  ;;  %v5535_v43 = vpop.f32.mrf.mxu2 }
 0x303   : > { %8748 = vst [vmem:[#allocation27_spill] sm:$0xff] %v5535_v43  ;;  %v5537_v7 = vadd.f32 %v2571_v12, %v2417_v30  ;;  %v320_v30 = vld [vmem:[%s4646_s27 + $0x2f8] sm:$0xff] }
 0x304   : > { %v1831_v43 = vld [vmem:[%s8719_s2 + $0x9d8] sm:$0xff] }
 0x307   : > { %v1210_v15 = vpop.f32.mrf.mxu0  ;;  %2621 = vmatmul.f32.gmra.mxu3 %v1854_v26  ;;  %2728 = vmatmul.f32.gmra.mxu1 %v1663_v27  ;;  %v2057_v26 = vld [vmem:[%s8719_s2 + $0x10e8] sm:$0x1] }
 0x308   : > { %2831 = vmatpush.msrb.mxu2 %v1210_v15 }
 0x309   : > { %2514 = vmatmul.f32.gmra.mxu2 %v2045_v62  ;;  %v321_v62 = vld [vmem:[%s4646_s27 + $0x300] sm:$0xff] }
 0x30a   : > { %4423 = vmatmul.msk.f32.gmra.mxu0 %vm408_vm1, %v320_v30  ;;  %2832 = vmatpush.msrb.mxu2 %v1207_v17  ;;  %v2574_v0 = vpop.f32.mrf.mxu3  ;;  %v5554_v12 = vpop.f32.mrf.mxu2  ;;  %v2423_v17 = vadd.f32 %v5259_v8, %v4982_v40  ;;  %v1878_v40 = vld [vmem:[%s8719_s2 + $0xb50] sm:$0xff]  ;;  %v1687_v8 = vld [vmem:[%s8719_s2 + $0x558] sm:$0xff]  ;;  %v322_v30 = vld [vmem:[%s4646_s27 + $0x308] sm:$0xff] }
 0x30b   : > { %8750 = vst [vmem:[#allocation29_spill] sm:$0xff] %v5554_v12  ;;  %v5556_v47 = vadd.f32 %v2574_v0, %v2420_v22  ;;  %v2022_v12 = vld [vmem:[%s8719_s2 + $0xfd0] sm:$0xff] }
 0x30c   : > { %2833 = vmatpush.msrb.mxu2 %v1204_v34  ;;  %v5572_v34 = vpop.f32.mrf.mxu1 }
 0x30d   : > { %8751 = vst [vmem:[#allocation30_spill] sm:$0xff] %v5572_v34 }
 0x30e   : > { %2834 = vmatpush.msrb.mxu2 %v1201_v18 }
 0x30f   : > { %v5569_v27 = vpop.f32.mrf.mxu0  ;;  %2624 = vmatmul.f32.gmra.mxu3 %v1866_v33  ;;  %2731 = vmatmul.f32.gmra.mxu1 %v1675_v23  ;;  %v323_v23 = vld [vmem:[%s4646_s27 + $0x310] sm:$0xff] }
 0x310   : > { %2835 = vmatpush.msrb.mxu2 %v5474_v2 }
 0x311   : > { %2517 = vmatmul.f32.gmra.mxu2 %v2057_v26 }
 0x312   : > { %4424 = vmatmul.msk.f32.gmra.mxu0 %vm408_vm1, %v321_v62  ;;  %2836 = vmatpush.msrb.mxu2 %v5455_v56  ;;  %v2577_v18 = vpop.f32.mrf.mxu3  ;;  %v5577_v22 = vpop.f32.mrf.mxu2  ;;  %v2426_v56 = vadd.f32 %v5277_v48, %v4992_v49  ;;  %v1890_v49 = vld [vmem:[%s8719_s2 + $0xbb0] sm:$0xff]  ;;  %v1699_v48 = vld [vmem:[%s8719_s2 + $0x5b8] sm:$0xff] }
 0x313   : > { %8752 = vst [vmem:[#allocation31_spill] sm:$0xff] %v5577_v22  ;;  %v5579_v15 = vadd.f32 %v2577_v18, %v2423_v17  ;;  %v324_v62 = vld [vmem:[%s4646_s27 + $0x318] sm:$0xff] }
 0x314   : > { %2837 = vmatpush.msrb.mxu2 %v5434_v51  ;;  %v5595_v51 = vpop.f32.mrf.mxu1 }
 0x315   : > { %8753 = vst [vmem:[#allocation32_spill] sm:$0xff] %v5595_v51 }
 0x316   : > { %2838 = vmatpush.msrb.mxu2 %v5413_v54 }
 0x317   : > { %v5591_v2 = vpop.f32.mrf.mxu0  ;;  %2627 = vmatmul.f32.gmra.mxu3 %v1878_v40  ;;  %2734 = vmatmul.f32.gmra.mxu1 %v1687_v8 }
 0x318   : > { %2839 = vmatpush.msrb.mxu2 %v5392_v21 }
 0x31a   : > { %4425 = vmatmul.msk.f32.gmra.mxu0 %vm408_vm1, %v322_v30  ;;  %2840 = vmatpush.msrb.mxu2 %v5371_v41  ;;  %v2580_v0 = vpop.f32.mrf.mxu3  ;;  %v5599_v33 = vpop.f32.mrf.mxu2  ;;  %v2429_v41 = vadd.f32 %v5295_v19, %v5005_v57  ;;  %v1902_v19 = vld [vmem:[%s8719_s2 + $0xc10] sm:$0xff]  ;;  %v2435_v30 = vadd.f32 %v5335_v38, %v5040_v58  ;;  %v1735_v38 = vld [vmem:[%s8719_s2 + $0x6d8] sm:$0xff] }
 0x31b   : > { %8754 = vst [vmem:[#allocation33_spill] sm:$0xff] %v5599_v33  ;;  %v5601_v54 = vadd.f32 %v2580_v0, %v2426_v56  ;;  %v1926_v58 = vld [vmem:[%s8719_s2 + $0xcd0] sm:$0xff] }
 0x31c   : > { %2841 = vmatpush.msrb.mxu2 %v5352_v14 }
 0x31e   : > { %2842 = vmatpush.msrb.mxu2 %v5331_v28  ;;  %v2432_v28 = vadd.f32 %v5316_v37, %v5021_v1  ;;  %v1914_v1 = vld [vmem:[%s8719_s2 + $0xc70] sm:$0xff]  ;;  %v1532_v37 = vld [vmem:[%s8719_s2 + $0x80] sm:$0xff] }
 0x31f   : > { %v5613_v21 = vpop.f32.mrf.mxu0  ;;  %2630 = vmatmul.f32.gmra.mxu3 %v1890_v49  ;;  %2737 = vmatmul.f32.gmra.mxu1 %v1699_v48  ;;  %v325_v49 = vld [vmem:[%s4646_s27 + $0x320] sm:$0xff] }
 0x320   : > { %2843 = vmatpush.msrb.mxu2 %v5310_v63  ;;  %v1711_v63 = vld [vmem:[%s8719_s2 + $0x618] sm:$0xff] }
 0x322   : > { %4426 = vmatmul.msk.f32.gmra.mxu0 %vm408_vm1, %v323_v23  ;;  %2844 = vmatpush.msrb.mxu2 %v5289_v39  ;;  %v2583_v14 = vpop.f32.mrf.mxu3  ;;  %v5619_v26 = vpop.f32.mrf.mxu2  ;;  %v1520_v39 = vld [vmem:[%s8719_s2 + $0x20] sm:$0xff] }
 0x323   : > { %8755 = vst [vmem:[#allocation34_spill] sm:$0xff] %v5619_v26  ;;  %v5621_v17 = vadd.f32 %v2583_v14, %v2429_v41  ;;  %v2010_v26 = vld [vmem:[%s8719_s2 + $0xf70] sm:$0xff] }
 0x324   : > { %2845 = vmatpush.msrb.mxu2 %v5271_v29  ;;  %v5624_v57 = vpop.f32.mrf.mxu1 }
 0x326   : > { %2846 = vmatpush.msrb.mxu2 %v5254_v59  ;;  %v1723_v59 = vld [vmem:[%s8719_s2 + $0x678] sm:$0xff] }
 0x327   : > { %v5638_v29 = vpop.f32.mrf.mxu0  ;;  %2633 = vmatmul.f32.gmra.mxu3 %v1902_v19  ;;  %2740 = vmatmul.f32.gmra.mxu1 %v1711_v63  ;;  %v1544_v19 = vld [vmem:[%s8719_s2 + $0xe0] sm:$0xff]  ;;  %v2438_v63 = vadd.f32 %v5356_v31, %v5058_v32  ;;  %v1938_v32 = vld [vmem:[%s8719_s2 + $0xd30] sm:$0xff]  ;;  %v1747_v31 = vld [vmem:[%s8719_s2 + $0x738] sm:$0xff] }
 0x328   : > { %2847 = vmatmul.f32.vlgmr.msrb.gmra.mxu2 %v1520_v39 }
 0x32a   : > { %4427 = vmatmul.msk.f32.gmra.mxu0 %vm408_vm1, %v324_v62  ;;  %v2586_v18 = vpop.f32.mrf.mxu3 }
 0x32b   : > { %v5642_v40 = vadd.f32 %v2586_v18, %v2432_v28  ;;  %v5644_v8 = vpop.f32.mrf.mxu2  ;;  %v326_v28 = vld [vmem:[%s4646_s27 + $0x328] sm:$0xff] }
 0x32c   : > { %8756 = vst [vmem:[#allocation35_spill] sm:$0xff] %v5644_v8  ;;  %v5646_v56 = vpop.f32.mrf.mxu1 }
 0x32f   : > { %v5659_v0 = vpop.f32.mrf.mxu0  ;;  %2636 = vmatmul.f32.gmra.mxu3 %v1914_v1  ;;  %2743 = vmatmul.f32.gmra.mxu1 %v1723_v59 }
 0x330   : > { %2850 = vmatmul.f32.gmra.mxu2 %v1532_v37  ;;  %v1556_v37 = vld [vmem:[%s8719_s2 + $0x140] sm:$0xff] }
 0x332   : > { %4428 = vmatmul.msk.f32.gmra.mxu0 %vm408_vm1, %v325_v49  ;;  %v2589_v48 = vpop.f32.mrf.mxu3 }
 0x333   : > { %v5663_v41 = vadd.f32 %v2589_v48, %v2435_v30  ;;  %v5665_v23 = vpop.f32.mrf.mxu2  ;;  %v2441_v30 = vadd.f32 %v5377_v10, %v5075_v16  ;;  %v327_v48 = vld [vmem:[%s4646_s27 + $0x330] sm:$0xff]  ;;  %v1759_v10 = vld [vmem:[%s8719_s2 + $0x798] sm:$0xff] }
 0x334   : > { %8757 = vst [vmem:[#allocation36_spill] sm:$0xff] %v5665_v23  ;;  %v5667_v14 = vpop.f32.mrf.mxu1  ;;  %v1950_v16 = vld [vmem:[%s8719_s2 + $0xd90] sm:$0xff] }
 0x337   : > { %v5680_v39 = vpop.f32.mrf.mxu0  ;;  %2639 = vmatmul.f32.gmra.mxu3 %v1926_v58  ;;  %2746 = vmatmul.f32.gmra.mxu1 %v1735_v38 }
 0x338   : > { %2853 = vmatmul.f32.gmra.mxu2 %v1544_v19 }
 0x33a   : > { %4429 = vmatmul.msk.f32.gmra.mxu0 %vm408_vm1, %v326_v28  ;;  %v2592_v62 = vpop.f32.mrf.mxu3  ;;  %v1568_v28 = vld [vmem:[%s8719_s2 + $0x1a0] sm:$0xff] }
 0x33b   : > { %v5684_v18 = vadd.f32 %v2592_v62, %v2438_v63  ;;  %v5686_v1 = vpop.f32.mrf.mxu2  ;;  %v2444_v62 = vadd.f32 %v5398_v52, %v5092_v25  ;;  %v1962_v25 = vld [vmem:[%s8719_s2 + $0xdf0] sm:$0xff]  ;;  %v1771_v52 = vld [vmem:[%s8719_s2 + $0x7f8] sm:$0xff] }
 0x33c   : > { %8758 = vst [vmem:[#allocation37_spill] sm:$0xff] %v5686_v1  ;;  %v5688_v59 = vpop.f32.mrf.mxu1  ;;  %v1807_v1 = vld [vmem:[%s8719_s2 + $0x918] sm:$0xff] }
 0x33f   : > { %v5701_v49 = vpop.f32.mrf.mxu0  ;;  %2642 = vmatmul.f32.gmra.mxu3 %v1938_v32  ;;  %2749 = vmatmul.f32.gmra.mxu1 %v1747_v31  ;;  %v328_v31 = vld [vmem:[%s4646_s27 + $0x338] sm:$0xff] }
 0x340   : > { %2856 = vmatmul.f32.gmra.mxu2 %v1556_v37 }
 0x342   : > { %4430 = vmatmul.msk.f32.gmra.mxu0 %vm408_vm1, %v327_v48  ;;  %v2595_v58 = vpop.f32.mrf.mxu3 }
 0x343   : > { %v5705_v38 = vadd.f32 %v2595_v58, %v2441_v30  ;;  %v5707_v19 = vpop.f32.mrf.mxu2 }
 0x344   : > { %8759 = vst [vmem:[#allocation38_spill] sm:$0xff] %v5707_v19  ;;  %v5709_v63 = vpop.f32.mrf.mxu1  ;;  %v1998_v19 = vld [vmem:[%s8719_s2 + $0xf10] sm:$0xff] }
 0x347   : > { %v5722_v32 = vpop.f32.mrf.mxu0  ;;  %2645 = vmatmul.f32.gmra.mxu3 %v1950_v16  ;;  %2752 = vmatmul.f32.gmra.mxu1 %v1759_v10  ;;  %v1580_v16 = vld [vmem:[%s8719_s2 + $0x200] sm:$0xff]  ;;  %v2447_v10 = vadd.f32 %v5417_v55, %v5109_v36  ;;  %v1783_v36 = vld [vmem:[%s8719_s2 + $0x858] sm:$0xff] }
 0x348   : > { %2859 = vmatmul.f32.gmra.mxu2 %v1568_v28  ;;  %v1592_v55 = vld [vmem:[%s8719_s2 + $0x260] sm:$0xff] }
 0x34a   : > { %4431 = vmatmul.msk.f32.gmra.mxu0 %vm408_vm1, %v328_v31  ;;  %v2598_v37 = vpop.f32.mrf.mxu3 }
 0x34b   : > { %v5726_v30 = vadd.f32 %v2598_v37, %v2444_v62  ;;  %v5728_v48 = vpop.f32.mrf.mxu2  ;;  %v329_v62 = vld [vmem:[%s4646_s27 + $0x340] sm:$0xff] }
 0x34c   : > { %8760 = vst [vmem:[#allocation39_spill] sm:$0xff] %v5728_v48  ;;  %v5730_v58 = vpop.f32.mrf.mxu1  ;;  %v1974_v48 = vld [vmem:[%s8719_s2 + $0xe50] sm:$0xff] }
 0x34f   : > { %v5743_v28 = vpop.f32.mrf.mxu0  ;;  %2648 = vmatmul.f32.gmra.mxu3 %v1962_v25  ;;  %2755 = vmatmul.f32.gmra.mxu1 %v1771_v52  ;;  %v330_v52 = vld [vmem:[%s4646_s27 + $0x348] sm:$0xff] }
 0x350   : > { %2862 = vmatmul.f32.gmra.mxu2 %v1580_v16 }
 0x352   : > { %4432 = vmatmul.msk.f32.gmra.mxu0 %vm408_vm1, %v329_v62  ;;  %v2601_v31 = vpop.f32.mrf.mxu3 }
 0x353   : > { %v5747_v37 = vadd.f32 %v2601_v31, %v2447_v10  ;;  %v5749_v51 = vpop.f32.mrf.mxu2  ;;  %v1986_v31 = vld [vmem:[%s8719_s2 + $0xeb0] sm:$0xff] }
 0x354   : > { %8761 = vst [vmem:[#allocation40_spill] sm:$0xff] %v5749_v51  ;;  %v5751_v34 = vpop.f32.mrf.mxu1  ;;  %v1795_v51 = vld [vmem:[%s8719_s2 + $0x8b8] sm:$0xff] }
 0x357   : > { %v5762_v25 = vpop.f32.mrf.mxu0  ;;  %2651 = vmatmul.f32.gmra.mxu3 %v1974_v48  ;;  %2758 = vmatmul.f32.gmra.mxu1 %v1783_v36  ;;  %v1604_v48 = vld [vmem:[%s8719_s2 + $0x2c0] sm:$0xff] }
 0x358   : > { %2865 = vmatmul.f32.gmra.mxu2 %v1592_v55  ;;  %v331_v55 = vld [vmem:[%s4646_s27 + $0x350] sm:$0xff] }
 0x35a   : > { %4433 = vmatmul.msk.f32.gmra.mxu0 %vm408_vm1, %v330_v52  ;;  %v5766_v16 = vpop.f32.mrf.mxu3 }
 0x35b   : > { %8762 = vst [vmem:[#allocation41_spill] sm:$0xff] %v5766_v16  ;;  %v5768_v10 = vpop.f32.mrf.mxu2 }
 0x35c   : > { %8763 = vst [vmem:[#allocation42_spill] sm:$0xff] %v5768_v10  ;;  %v5770_v62 = vpop.f32.mrf.mxu1 }
 0x35f   : > { %v5781_v36 = vpop.f32.mrf.mxu0  ;;  %2654 = vmatmul.f32.gmra.mxu3 %v1986_v31  ;;  %2761 = vmatmul.f32.gmra.mxu1 %v1795_v51  ;;  %v1616_v51 = vld [vmem:[%s8719_s2 + $0x320] sm:$0xff] }
 0x360   : > { %2868 = vmatmul.f32.gmra.mxu2 %v1604_v48 }
 0x362   : > { %4434 = vmatmul.msk.f32.gmra.mxu0 %vm408_vm1, %v331_v55  ;;  %v5785_v52 = vpop.f32.mrf.mxu3  ;;  %v332_v55 = vld [vmem:[%s4646_s27 + $0x358] sm:$0xff] }
 0x363   : > { %8764 = vst [vmem:[#allocation43_spill] sm:$0xff] %v5785_v52  ;;  %v5798_v31 = vpop.f32.mrf.mxu2  ;;  %v1855_v52 = vld [vmem:[%s8719_s2 + $0xa98] sm:$0xff] }
 0x364   : > { %v5787_v10 = vpop.f32.mrf.mxu1  ;;  %8765 = vst [vmem:[#allocation44_spill] sm:$0xff] %v5798_v31  ;;  %v1819_v31 = vld [vmem:[%s8719_s2 + $0x978] sm:$0xff] }
 0x367   : > { %v5800_v48 = vpop.f32.mrf.mxu0  ;;  %2657 = vmatmul.f32.gmra.mxu3 %v1998_v19  ;;  %2764 = vmatmul.f32.gmra.mxu1 %v1807_v1  ;;  %v1628_v1 = vld [vmem:[%s8719_s2 + $0x380] sm:$0xff] }
 0x368   : > { %2871 = vmatmul.f32.gmra.mxu2 %v1616_v51  ;;  %v333_v51 = vld [vmem:[%s4646_s27 + $0x360] sm:$0xff] }
 0x36a   : > { %4435 = vmatmul.msk.f32.gmra.mxu0 %vm408_vm1, %v332_v55  ;;  %v5804_v23 = vpop.f32.mrf.mxu3 }
 0x36b   : > { %8766 = vst [vmem:[#allocation45_spill] sm:$0xff] %v5804_v23  ;;  %v5818_v55 = vpop.f32.mrf.mxu2  ;;  %v1843_v23 = vld [vmem:[%s8719_s2 + $0xa38] sm:$0xff] }
 0x36c   : > { %v5806_v8 = vpop.f32.mrf.mxu1  ;;  %8767 = vst [vmem:[#allocation46_spill] sm:$0xff] %v5818_v55 }
 0x36f   : > { %v1249_v19 = vpop.f32.mrf.mxu0  ;;  %2660 = vmatmul.f32.gmra.mxu3 %v2010_v26  ;;  %2767 = vmatmul.f32.gmra.mxu1 %v1819_v31  ;;  %v1640_v26 = vld [vmem:[%s8719_s2 + $0x3e0] sm:$0xff] }
 0x370   : > { %2874 = vmatmul.f32.gmra.mxu2 %v1628_v1  ;;  %v334_v1 = vld [vmem:[%s4646_s27 + $0x368] sm:$0xff] }
 0x372   : > { %4436 = vmatmul.msk.f32.gmra.mxu0 %vm408_vm1, %v333_v51  ;;  %v5821_v33 = vpop.f32.mrf.mxu3 }
 0x373   : > { %8768 = vst [vmem:[#allocation47_spill] sm:$0xff] %v5821_v33  ;;  %v5835_v51 = vpop.f32.mrf.mxu2  ;;  %v2034_v33 = vld [vmem:[%s8719_s2 + $0x1030] sm:$0xff] }
 0x374   : > { %v5823_v22 = vpop.f32.mrf.mxu1  ;;  %8769 = vst [vmem:[#allocation48_spill] sm:$0xff] %v5835_v51 }
 0x377   : > { %v1252_v31 = vpop.f32.mrf.mxu0  ;;  %2663 = vmatmul.f32.gmra.mxu3 %v2022_v12  ;;  %2770 = vmatmul.f32.gmra.mxu1 %v1831_v43  ;;  %v1652_v43 = vld [vmem:[%s8719_s2 + $0x440] sm:$0xff] }
 0x378   : > { %2877 = vmatmul.f32.gmra.mxu2 %v1640_v26  ;;  %v335_v26 = vld [vmem:[%s4646_s27 + $0x370] sm:$0xff] }
 0x37a   : > { %4437 = vmatmul.msk.f32.gmra.mxu0 %vm408_vm1, %v334_v1  ;;  %v5838_v55 = vpop.f32.mrf.mxu3 }
 0x37b   : > { %8770 = vst [vmem:[#allocation49_spill] sm:$0xff] %v5838_v55  ;;  %v5855_v51 = vpop.f32.mrf.mxu2 }
 0x37c   : > { %v5840_v61 = vpop.f32.mrf.mxu1  ;;  %8772 = vst [vmem:[#allocation51_spill] sm:$0xff] %v5855_v51 }
 0x37f   : > { %v1255_v12 = vpop.f32.mrf.mxu0  ;;  %2666 = vmatmul.f32.gmra.mxu3 %v2034_v33  ;;  %2773 = vmatmul.f32.gmra.mxu1 %v1843_v23  ;;  %v1664_v33 = vld [vmem:[%s8719_s2 + $0x4a0] sm:$0xff] }
 0x380   : > { %2880 = vmatmul.f32.gmra.mxu2 %v1652_v43  ;;  %v336_v43 = vld [vmem:[%s4646_s27 + $0x378] sm:$0xff] }
 0x382   : > { %4438 = vmatmul.msk.f32.gmra.mxu0 %vm408_vm1, %v335_v26  ;;  %v5853_v1 = vpop.f32.mrf.mxu3 }
 0x383   : > { %8771 = vst [vmem:[#allocation50_spill] sm:$0xff] %v5853_v1  ;;  %v2058_v1 = vld [vmem:[%s8719_s2 + $0x10f0] sm:$0x1] }
 0x384   : > { %v5857_v55 = vpop.f32.mrf.mxu1 }
 0x387   : > { %v1258_v23 = vpop.f32.mrf.mxu0  ;;  %2669 = vmatmul.f32.gmra.mxu3 %v2046_v9  ;;  %2776 = vmatmul.f32.gmra.mxu1 %v1855_v52  ;;  %v1676_v9 = vld [vmem:[%s8719_s2 + $0x500] sm:$0xff]  ;;  %v5883_v52 = vpop.f32.mrf.mxu2 }
 0x388   : > { %2986 = vmatpush.msrb.mxu3 %v1258_v23  ;;  %2883 = vmatmul.f32.gmra.mxu2 %v1664_v33  ;;  %8774 = vst [vmem:[#allocation53_spill] sm:$0xff] %v5883_v52  ;;  %v1545_v52 = vld [vmem:[%s8719_s2 + $0xe8] sm:$0xff] }
 0x38a   : > { %4439 = vmatmul.msk.f32.gmra.mxu0 %vm408_vm1, %v336_v43  ;;  %2987 = vmatpush.msrb.mxu3 %v1255_v12  ;;  %v5870_v26 = vpop.f32.mrf.mxu3 }
 0x38b   : > { %8773 = vst [vmem:[#allocation52_spill] sm:$0xff] %v5870_v26 }
 0x38c   : > { %2988 = vmatpush.msrb.mxu3 %v1252_v31  ;;  %v5872_v51 = vpop.f32.mrf.mxu1  ;;  %v337_v31 = vld [vmem:[%s4646_s27 + $0x380] sm:$0xff] }
 0x38e   : > { %2989 = vmatpush.msrb.mxu3 %v1249_v19  ;;  %v1879_v19 = vld [vmem:[%s8719_s2 + $0xb58] sm:$0xff] }
 0x38f   : > { %v5885_v12 = vpop.f32.mrf.mxu0  ;;  %2672 = vmatmul.f32.gmra.mxu3 %v2058_v1  ;;  %2779 = vmatmul.f32.gmra.mxu1 %v1867_v46  ;;  %v1688_v46 = vld [vmem:[%s8719_s2 + $0x560] sm:$0xff]  ;;  %v5906_v1 = vpop.f32.mrf.mxu2 }
 0x390   : > { %2990 = vmatpush.msrb.mxu3 %v5800_v48  ;;  %2886 = vmatmul.f32.gmra.mxu2 %v1676_v9  ;;  %8776 = vst [vmem:[#allocation55_spill] sm:$0xff] %v5906_v1  ;;  %v1700_v9 = vld [vmem:[%s8719_s2 + $0x5c0] sm:$0xff] }
 0x392   : > { %4440 = vmatmul.msk.f32.gmra.mxu0 %vm408_vm1, %v337_v31  ;;  %2991 = vmatpush.msrb.mxu3 %v5781_v36  ;;  %v5891_v33 = vpop.f32.mrf.mxu3  ;;  %v338_v36 = vld [vmem:[%s4646_s27 + $0x388] sm:$0xff]  ;;  %v339_v31 = vld [vmem:[%s4646_s27 + $0x390] sm:$0xff] }
 0x393   : > { %8775 = vst [vmem:[#allocation54_spill] sm:$0xff] %v5891_v33 }
 0x394   : > { %2992 = vmatpush.msrb.mxu3 %v5762_v25  ;;  %v5894_v23 = vpop.f32.mrf.mxu1 }
 0x396   : > { %2993 = vmatpush.msrb.mxu3 %v5743_v28  ;;  %v1891_v28 = vld [vmem:[%s8719_s2 + $0xbb8] sm:$0xff] }
 0x397   : > { %v5903_v48 = vpop.f32.mrf.mxu0  ;;  %2782 = vmatmul.f32.gmra.mxu1 %v1879_v19 }
 0x398   : > { %2994 = vmatpush.msrb.mxu3 %v5722_v32  ;;  %2889 = vmatmul.f32.gmra.mxu2 %v1688_v46  ;;  %v1712_v46 = vld [vmem:[%s8719_s2 + $0x620] sm:$0xff] }
 0x39a   : > { %4441 = vmatmul.msk.f32.gmra.mxu0 %vm408_vm1, %v338_v36  ;;  %2995 = vmatpush.msrb.mxu3 %v5701_v49  ;;  %v5911_v25 = vpop.f32.mrf.mxu3 }
 0x39b   : > { %8777 = vst [vmem:[#allocation56_spill] sm:$0xff] %v5911_v25 }
 0x39c   : > { %2996 = vmatpush.msrb.mxu3 %v5680_v39  ;;  %v5914_v43 = vpop.f32.mrf.mxu1  ;;  %v5927_v39 = vpop.f32.mrf.mxu2 }
 0x39d   : > { %8778 = vst [vmem:[#allocation57_spill] sm:$0xff] %v5927_v39 }
 0x39e   : > { %2997 = vmatpush.msrb.mxu3 %v5659_v0  ;;  %v1521_v0 = vld [vmem:[%s8719_s2 + $0x28] sm:$0xff] }
 0x39f   : > { %v5923_v32 = vpop.f32.mrf.mxu0  ;;  %2785 = vmatmul.f32.gmra.mxu1 %v1891_v28 }
 0x3a0   : > { %2998 = vmatpush.msrb.mxu3 %v5638_v29  ;;  %2892 = vmatmul.f32.gmra.mxu2 %v1700_v9  ;;  %v1903_v29 = vld [vmem:[%s8719_s2 + $0xc18] sm:$0xff]  ;;  %v1533_v9 = vld [vmem:[%s8719_s2 + $0x88] sm:$0xff] }
 0x3a2   : > { %4442 = vmatmul.msk.f32.gmra.mxu0 %vm408_vm1, %v339_v31  ;;  %2999 = vmatpush.msrb.mxu3 %v5613_v21  ;;  %v5931_v49 = vpop.f32.mrf.mxu3 }
 0x3a3   : > { %8779 = vst [vmem:[#allocation58_spill] sm:$0xff] %v5931_v49 }
 0x3a4   : > { %3000 = vmatpush.msrb.mxu3 %v5591_v2  ;;  %v5937_v19 = vpop.f32.mrf.mxu1  ;;  %v340_v2 = vld [vmem:[%s4646_s27 + $0x398] sm:$0xff] }
 0x3a6   : > { %3001 = vmatpush.msrb.mxu3 %v5569_v27  ;;  %v1915_v27 = vld [vmem:[%s8719_s2 + $0xc78] sm:$0xff] }
 0x3a7   : > { %v5946_v21 = vpop.f32.mrf.mxu0  ;;  %3002 = vmatmul.f32.vlgmr.msrb.gmra.mxu3 %v1521_v0  ;;  %2788 = vmatmul.f32.gmra.mxu1 %v1903_v29  ;;  %v1724_v0 = vld [vmem:[%s8719_s2 + $0x680] sm:$0xff] }
 0x3a8   : > { %2895 = vmatmul.f32.gmra.mxu2 %v1712_v46  ;;  %v341_v46 = vld [vmem:[%s4646_s27 + $0x3a0] sm:$0xff] }
 0x3aa   : > { %4443 = vmatmul.msk.f32.gmra.mxu0 %vm408_vm1, %v340_v2  ;;  %v5950_v36 = vpop.f32.mrf.mxu3  ;;  %v2697_v2 = vadd.f32 %v5646_v56, %v5337_v60  ;;  %v1736_v60 = vld [vmem:[%s8719_s2 + $0x6e0] sm:$0xff] }
 0x3ab   : > { %8780 = vst [vmem:[#allocation59_spill] sm:$0xff] %v5950_v36  ;;  %v5952_v28 = vpop.f32.mrf.mxu2 }
 0x3ac   : > { %v5957_v31 = vpop.f32.mrf.mxu1 }
 0x3af   : > { %v5965_v29 = vpop.f32.mrf.mxu0  ;;  %3005 = vmatmul.f32.gmra.mxu3 %v1533_v9  ;;  %2791 = vmatmul.f32.gmra.mxu1 %v1915_v27  ;;  %v1927_v9 = vld [vmem:[%s8719_s2 + $0xcd8] sm:$0xff]  ;;  %v342_v27 = vld [vmem:[%s4646_s27 + $0x3a8] sm:$0xff] }
 0x3b0   : > { %2898 = vmatmul.f32.gmra.mxu2 %v1724_v0 }
 0x3b2   : > { %4444 = vmatmul.msk.f32.gmra.mxu0 %vm408_vm1, %v341_v46  ;;  %v5971_v39 = vpop.f32.mrf.mxu3 }
 0x3b3   : > { %8781 = vst [vmem:[#allocation60_spill] sm:$0xff] %v5971_v39  ;;  %v2851_v1 = vpop.f32.mrf.mxu2 }
 0x3b4   : > { %v5976_v36 = vadd.f32 %v2851_v1, %v2697_v2  ;;  %v5978_v49 = vpop.f32.mrf.mxu1  ;;  %v2700_v1 = vadd.f32 %v5667_v14, %v5358_v42  ;;  %v1557_v2 = vld [vmem:[%s8719_s2 + $0x148] sm:$0xff]  ;;  %v1748_v42 = vld [vmem:[%s8719_s2 + $0x740] sm:$0xff] }
 0x3b7   : > { %v5986_v56 = vpop.f32.mrf.mxu0  ;;  %3008 = vmatmul.f32.gmra.mxu3 %v1545_v52  ;;  %2794 = vmatmul.f32.gmra.mxu1 %v1927_v9  ;;  %v1939_v52 = vld [vmem:[%s8719_s2 + $0xd38] sm:$0xff]  ;;  %v343_v9 = vld [vmem:[%s4646_s27 + $0x3b0] sm:$0xff] }
 0x3b8   : > { %2901 = vmatmul.f32.gmra.mxu2 %v1736_v60  ;;  %v2703_v60 = vadd.f32 %v5688_v59, %v5379_v20  ;;  %v1760_v20 = vld [vmem:[%s8719_s2 + $0x7a0] sm:$0xff] }
 0x3ba   : > { %4445 = vmatmul.msk.f32.gmra.mxu0 %vm408_vm1, %v342_v27  ;;  %v5992_v0 = vpop.f32.mrf.mxu3 }
 0x3bb   : > { %8782 = vst [vmem:[#allocation61_spill] sm:$0xff] %v5992_v0  ;;  %v2854_v46 = vpop.f32.mrf.mxu2 }
 0x3bc   : > { %v5997_v39 = vadd.f32 %v2854_v46, %v2700_v1  ;;  %v5999_v25 = vpop.f32.mrf.mxu1  ;;  %v1569_v46 = vld [vmem:[%s8719_s2 + $0x1a8] sm:$0xff] }
 0x3bf   : > { %v6007_v14 = vpop.f32.mrf.mxu0  ;;  %3011 = vmatmul.f32.gmra.mxu3 %v1557_v2  ;;  %2797 = vmatmul.f32.gmra.mxu1 %v1939_v52  ;;  %v1951_v2 = vld [vmem:[%s8719_s2 + $0xd98] sm:$0xff] }
 0x3c0   : > { %2904 = vmatmul.f32.gmra.mxu2 %v1748_v42  ;;  %v344_v52 = vld [vmem:[%s4646_s27 + $0x3b8] sm:$0xff]  ;;  %v2706_v42 = vadd.f32 %v5709_v63, %v5400_v6  ;;  %v1772_v6 = vld [vmem:[%s8719_s2 + $0x800] sm:$0xff] }
 0x3c2   : > { %4446 = vmatmul.msk.f32.gmra.mxu0 %vm408_vm1, %v343_v9  ;;  %v6013_v27 = vpop.f32.mrf.mxu3 }
 0x3c3   : > { %8783 = vst [vmem:[#allocation62_spill] sm:$0xff] %v6013_v27  ;;  %v2857_v1 = vpop.f32.mrf.mxu2 }
 0x3c4   : > { %v6018_v0 = vadd.f32 %v2857_v1, %v2703_v60  ;;  %v6020_v33 = vpop.f32.mrf.mxu1  ;;  %v1581_v1 = vld [vmem:[%s8719_s2 + $0x208] sm:$0xff] }
 0x3c7   : > { %v6028_v59 = vpop.f32.mrf.mxu0  ;;  %3014 = vmatmul.f32.gmra.mxu3 %v1569_v46  ;;  %2800 = vmatmul.f32.gmra.mxu1 %v1951_v2  ;;  %v1963_v46 = vld [vmem:[%s8719_s2 + $0xdf8] sm:$0xff]  ;;  %v345_v2 = vld [vmem:[%s4646_s27 + $0x3c0] sm:$0xff] }
 0x3c8   : > { %2907 = vmatmul.f32.gmra.mxu2 %v1760_v20  ;;  %v2709_v20 = vadd.f32 %v5730_v58, %v5419_v13  ;;  %v1784_v13 = vld [vmem:[%s8719_s2 + $0x860] sm:$0xff] }
 0x3ca   : > { %4447 = vmatmul.msk.f32.gmra.mxu0 %vm408_vm1, %v344_v52  ;;  %v6034_v9 = vpop.f32.mrf.mxu3 }
 0x3cb   : > { %8784 = vst [vmem:[#allocation63_spill] sm:$0xff] %v6034_v9  ;;  %v2860_v60 = vpop.f32.mrf.mxu2 }
 0x3cc   : > { %v6039_v27 = vadd.f32 %v2860_v60, %v2706_v42  ;;  %v6041_v26 = vpop.f32.mrf.mxu1  ;;  %v1593_v60 = vld [vmem:[%s8719_s2 + $0x268] sm:$0xff] }
 0x3cf   : > { %v6049_v63 = vpop.f32.mrf.mxu0  ;;  %3017 = vmatmul.f32.gmra.mxu3 %v1581_v1  ;;  %2803 = vmatmul.f32.gmra.mxu1 %v1963_v46  ;;  %v1975_v1 = vld [vmem:[%s8719_s2 + $0xe58] sm:$0xff]  ;;  %v346_v46 = vld [vmem:[%s4646_s27 + $0x3c8] sm:$0xff] }
 0x3d0   : > { %2910 = vmatmul.f32.gmra.mxu2 %v1772_v6  ;;  %v2712_v6 = vadd.f32 %v5751_v34, %v5440_v53  ;;  %v1796_v53 = vld [vmem:[%s8719_s2 + $0x8c0] sm:$0xff] }
 0x3d2   : > { %4448 = vmatmul.msk.f32.gmra.mxu0 %vm408_vm1, %v345_v2  ;;  %v6055_v52 = vpop.f32.mrf.mxu3 }
 0x3d3   : > { %8785 = vst [vmem:[#allocation64_spill] sm:$0xff] %v6055_v52  ;;  %v2863_v42 = vpop.f32.mrf.mxu2 }
 0x3d4   : > { %v6060_v9 = vadd.f32 %v2863_v42, %v2709_v20  ;;  %v6062_v4 = vpop.f32.mrf.mxu1  ;;  %v1605_v42 = vld [vmem:[%s8719_s2 + $0x2c8] sm:$0xff] }
 0x3d5   : > { %8786 = vst [vmem:[#allocation65_spill] sm:$0xff] %v6062_v4 }
 0x3d7   : > { %v6070_v58 = vpop.f32.mrf.mxu0  ;;  %3020 = vmatmul.f32.gmra.mxu3 %v1593_v60  ;;  %2806 = vmatmul.f32.gmra.mxu1 %v1975_v1  ;;  %v1987_v60 = vld [vmem:[%s8719_s2 + $0xeb8] sm:$0xff]  ;;  %v347_v1 = vld [vmem:[%s4646_s27 + $0x3d0] sm:$0xff] }
 0x3d8   : > { %2913 = vmatmul.f32.gmra.mxu2 %v1784_v13  ;;  %v2715_v13 = vadd.f32 %v5770_v62, %v5461_v35  ;;  %v1808_v35 = vld [vmem:[%s8719_s2 + $0x920] sm:$0xff] }
 0x3da   : > { %4449 = vmatmul.msk.f32.gmra.mxu0 %vm408_vm1, %v346_v46  ;;  %v6076_v2 = vpop.f32.mrf.mxu3 }
 0x3db   : > { %8787 = vst [vmem:[#allocation66_spill] sm:$0xff] %v6076_v2  ;;  %v2866_v20 = vpop.f32.mrf.mxu2 }
 0x3dc   : > { %v6081_v52 = vadd.f32 %v2866_v20, %v2712_v6  ;;  %v6083_v4 = vpop.f32.mrf.mxu1  ;;  %v1617_v6 = vld [vmem:[%s8719_s2 + $0x328] sm:$0xff] }
 0x3dd   : > { %8788 = vst [vmem:[#allocation67_spill] sm:$0xff] %v6083_v4 }
 0x3df   : > { %v6091_v34 = vpop.f32.mrf.mxu0  ;;  %3023 = vmatmul.f32.gmra.mxu3 %v1605_v42  ;;  %2809 = vmatmul.f32.gmra.mxu1 %v1987_v60  ;;  %v1999_v42 = vld [vmem:[%s8719_s2 + $0xf18] sm:$0xff] }
 0x3e0   : > { %2916 = vmatmul.f32.gmra.mxu2 %v1796_v53  ;;  %v348_v60 = vld [vmem:[%s4646_s27 + $0x3d8] sm:$0xff]  ;;  %v2718_v53 = vadd.f32 %v5787_v10, %v5482_v45 }
 0x3e2   : > { %4450 = vmatmul.msk.f32.gmra.mxu0 %vm408_vm1, %v347_v1  ;;  %v6100_v20 = vpop.f32.mrf.mxu3 }
 0x3e3   : > { %v2869_v46 = vpop.f32.mrf.mxu2  ;;  %8789 = vst [vmem:[#allocation68_spill] sm:$0xff] %v6100_v20 }
 0x3e4   : > { %v6102_v2 = vadd.f32 %v2869_v46, %v2715_v13  ;;  %v6104_v4 = vpop.f32.mrf.mxu1  ;;  %v1629_v13 = vld [vmem:[%s8719_s2 + $0x388] sm:$0xff] }
 0x3e5   : > { %8790 = vst [vmem:[#allocation69_spill] sm:$0xff] %v6104_v4 }
 0x3e7   : > { %v6112_v62 = vpop.f32.mrf.mxu0  ;;  %3026 = vmatmul.f32.gmra.mxu3 %v1617_v6  ;;  %2812 = vmatmul.f32.gmra.mxu1 %v1999_v42  ;;  %v2011_v6 = vld [vmem:[%s8719_s2 + $0xf78] sm:$0xff]  ;;  %v1820_v42 = vld [vmem:[%s8719_s2 + $0x980] sm:$0xff] }
 0x3e8   : > { %2919 = vmatmul.f32.gmra.mxu2 %v1808_v35  ;;  %v349_v35 = vld [vmem:[%s4646_s27 + $0x3e0] sm:$0xff] }
 0x3ea   : > { %4451 = vmatmul.msk.f32.gmra.mxu0 %vm408_vm1, %v348_v60  ;;  %v6131_v45 = vpop.f32.mrf.mxu3  ;;  %v2721_v60 = vadd.f32 %v5806_v8, %v5501_v24  ;;  %v350_v8 = vld [vmem:[%s4646_s27 + $0x3e8] sm:$0xff] }
 0x3eb   : > { %v2872_v1 = vpop.f32.mrf.mxu2  ;;  %8792 = vst [vmem:[#allocation71_spill] sm:$0xff] %v6131_v45 }
 0x3ec   : > { %v6121_v46 = vadd.f32 %v2872_v1, %v2718_v53  ;;  %v6123_v20 = vpop.f32.mrf.mxu1  ;;  %v1641_v1 = vld [vmem:[%s8719_s2 + $0x3e8] sm:$0xff] }
 0x3ed   : > { %8791 = vst [vmem:[#allocation70_spill] sm:$0xff] %v6123_v20 }
 0x3ef   : > { %v1297_v10 = vpop.f32.mrf.mxu0  ;;  %3029 = vmatmul.f32.gmra.mxu3 %v1629_v13  ;;  %2815 = vmatmul.f32.gmra.mxu1 %v2011_v6  ;;  %v2023_v13 = vld [vmem:[%s8719_s2 + $0xfd8] sm:$0xff]  ;;  %v1832_v6 = vld [vmem:[%s8719_s2 + $0x9e0] sm:$0xff] }
 0x3f0   : > { %2922 = vmatmul.f32.gmra.mxu2 %v1820_v42 }
 0x3f2   : > { %4452 = vmatmul.msk.f32.gmra.mxu0 %vm408_vm1, %v349_v35  ;;  %v6151_v42 = vpop.f32.mrf.mxu3  ;;  %v2724_v35 = vadd.f32 %v5823_v22, %v5518_v44  ;;  %v351_v22 = vld [vmem:[%s4646_s27 + $0x3f0] sm:$0xff] }
 0x3f3   : > { %v2875_v53 = vpop.f32.mrf.mxu2  ;;  %8794 = vst [vmem:[#allocation73_spill] sm:$0xff] %v6151_v42 }
 0x3f4   : > { %v6140_v20 = vadd.f32 %v2875_v53, %v2721_v60  ;;  %v6142_v4 = vpop.f32.mrf.mxu1  ;;  %v1653_v53 = vld [vmem:[%s8719_s2 + $0x448] sm:$0xff] }
 0x3f5   : > { %8793 = vst [vmem:[#allocation72_spill] sm:$0xff] %v6142_v4 }
 0x3f7   : > { %v1300_v24 = vpop.f32.mrf.mxu0  ;;  %3032 = vmatmul.f32.gmra.mxu3 %v1641_v1  ;;  %2818 = vmatmul.f32.gmra.mxu1 %v2023_v13  ;;  %v2035_v1 = vld [vmem:[%s8719_s2 + $0x1038] sm:$0xff]  ;;  %v1844_v13 = vld [vmem:[%s8719_s2 + $0xa40] sm:$0xff] }
 0x3f8   : > { %2925 = vmatmul.f32.gmra.mxu2 %v1832_v6  ;;  %v2727_v6 = vadd.f32 %v5840_v61, %v5537_v7  ;;  %v1856_v61 = vld [vmem:[%s8719_s2 + $0xaa0] sm:$0xff] }
 0x3fa   : > { %4453 = vmatmul.msk.f32.gmra.mxu0 %vm408_vm1, %v350_v8  ;;  %v6173_v8 = vpop.f32.mrf.mxu3 }
 0x3fb   : > { %v2878_v60 = vpop.f32.mrf.mxu2  ;;  %8796 = vst [vmem:[#allocation75_spill] sm:$0xff] %v6173_v8  ;;  %v1821_v8 = vld [vmem:[%s8719_s2 + $0x988] sm:$0xff] }
 0x3fc   : > { %v6159_v45 = vadd.f32 %v2878_v60, %v2724_v35  ;;  %v6161_v4 = vpop.f32.mrf.mxu1  ;;  %v1665_v60 = vld [vmem:[%s8719_s2 + $0x4a8] sm:$0xff] }
 0x3fd   : > { %8795 = vst [vmem:[#allocation74_spill] sm:$0xff] %v6161_v4 }
 0x3ff   : > { %v1303_v44 = vpop.f32.mrf.mxu0  ;;  %3035 = vmatmul.f32.gmra.mxu3 %v1653_v53  ;;  %2821 = vmatmul.f32.gmra.mxu1 %v2035_v1  ;;  %v2047_v53 = vld [vmem:[%s8719_s2 + $0x1098] sm:$0xff] }
 0x400   : > { %2928 = vmatmul.f32.gmra.mxu2 %v1844_v13  ;;  %v352_v1 = vld [vmem:[%s4646_s27 + $0x3f8] sm:$0xff]  ;;  %v2730_v13 = vadd.f32 %v5857_v55, %v5556_v47  ;;  %v1868_v47 = vld [vmem:[%s8719_s2 + $0xb00] sm:$0xff] }
 0x402   : > { %4454 = vmatmul.msk.f32.gmra.mxu0 %vm408_vm1, %v351_v22 }
 0x403   : > { %v2881_v35 = vpop.f32.mrf.mxu2 }
 0x404   : > { %v6178_v42 = vadd.f32 %v2881_v35, %v2727_v6  ;;  %v6180_v4 = vpop.f32.mrf.mxu1  ;;  %v1677_v6 = vld [vmem:[%s8719_s2 + $0x508] sm:$0xff]  ;;  %v6195_v35 = vpop.f32.mrf.mxu3 }
 0x405   : > { %8797 = vst [vmem:[#allocation76_spill] sm:$0xff] %v6180_v4 }
 0x406   : > { %8798 = vst [vmem:[#allocation77_spill] sm:$0xff] %v6195_v35 }
 0x407   : > { %v1306_v7 = vpop.f32.mrf.mxu0  ;;  %3038 = vmatmul.f32.gmra.mxu3 %v1665_v60  ;;  %2824 = vmatmul.f32.gmra.mxu1 %v2047_v53 }
 0x408   : > { %3141 = vmatpush.msra.mxu1 %v1306_v7  ;;  %2931 = vmatmul.f32.gmra.mxu2 %v1856_v61  ;;  %v2059_v61 = vld [vmem:[%s8719_s2 + $0x10f8] sm:$0x1] }
 0x40a   : > { %4455 = vmatmul.msk.f32.gmra.mxu0 %vm408_vm1, %v352_v1  ;;  %3142 = vmatpush.msra.mxu1 %v1303_v44  ;;  %v2733_v44 = vadd.f32 %v5872_v51, %v5579_v15 }
 0x40b   : > { %v2884_v22 = vpop.f32.mrf.mxu2 }
 0x40c   : > { %3143 = vmatpush.msra.mxu1 %v1300_v24  ;;  %v6197_v60 = vadd.f32 %v2884_v22, %v2730_v13  ;;  %v6199_v53 = vpop.f32.mrf.mxu1  ;;  %v353_v24 = vld [vmem:[%s4646_s27 + $0x400] sm:$0xff]  ;;  %v6227_v15 = vpop.f32.mrf.mxu3 }
 0x40d   : > { %8799 = vst [vmem:[#allocation78_spill] sm:$0xff] %v6199_v53 }
 0x40e   : > { %3144 = vmatpush.msra.mxu1 %v1297_v10  ;;  %v1689_v10 = vld [vmem:[%s8719_s2 + $0x568] sm:$0xff]  ;;  %8801 = vst [vmem:[#allocation80_spill] sm:$0xff] %v6227_v15 }
 0x40f   : > { %v6207_v55 = vpop.f32.mrf.mxu0  ;;  %3041 = vmatmul.f32.gmra.mxu3 %v1677_v6  ;;  %2827 = vmatmul.f32.gmra.mxu1 %v2059_v61 }
 0x410   : > { %3145 = vmatpush.msra.mxu1 %v6112_v62  ;;  %2934 = vmatmul.f32.gmra.mxu2 %v1868_v47  ;;  %v1880_v62 = vld [vmem:[%s8719_s2 + $0xb60] sm:$0xff] }
 0x412   : > { %4456 = vmatmul.msk.f32.gmra.mxu0 %vm408_vm1, %v353_v24  ;;  %3146 = vmatpush.msra.mxu1 %v6091_v34  ;;  %v2736_v34 = vadd.f32 %v5894_v23, %v5601_v54  ;;  %v355_v23 = vld [vmem:[%s4646_s27 + $0x410] sm:$0xff] }
 0x413   : > { %v2887_v7 = vpop.f32.mrf.mxu2 }
 0x414   : > { %3147 = vmatpush.msra.mxu1 %v6070_v58  ;;  %v6219_v1 = vadd.f32 %v2887_v7, %v2733_v44  ;;  %v6221_v13 = vpop.f32.mrf.mxu1  ;;  %v354_v58 = vld [vmem:[%s4646_s27 + $0x408] sm:$0xff] }
 0x415   : > { %8800 = vst [vmem:[#allocation79_spill] sm:$0xff] %v6221_v13  ;;  %v1798_v13 = vld [vmem:[%s8719_s2 + $0x8d0] sm:$0xff] }
 0x416   : > { %3148 = vmatpush.msra.mxu1 %v6049_v63  ;;  %v1701_v63 = vld [vmem:[%s8719_s2 + $0x5c8] sm:$0xff] }
 0x417   : > { %v6229_v51 = vpop.f32.mrf.mxu0  ;;  %3044 = vmatmul.f32.gmra.mxu3 %v1689_v10 }
 0x418   : > { %3149 = vmatpush.msra.mxu1 %v6028_v59  ;;  %2937 = vmatmul.f32.gmra.mxu2 %v1880_v62  ;;  %v1892_v59 = vld [vmem:[%s8719_s2 + $0xbc0] sm:$0xff]  ;;  %v1725_v62 = vld [vmem:[%s8719_s2 + $0x688] sm:$0xff] }
 0x41a   : > { %4457 = vmatmul.msk.f32.gmra.mxu0 %vm408_vm1, %v354_v58  ;;  %3150 = vmatpush.msra.mxu1 %v6007_v14  ;;  %v2739_v14 = vadd.f32 %v5914_v43, %v5621_v17  ;;  %v1904_v17 = vld [vmem:[%s8719_s2 + $0xc20] sm:$0xff] }
 0x41b   : > { %v2890_v22 = vpop.f32.mrf.mxu2 }
 0x41c   : > { %3151 = vmatpush.msra.mxu1 %v5986_v56  ;;  %v6241_v6 = vadd.f32 %v2890_v22, %v2736_v34  ;;  %v6243_v61 = vpop.f32.mrf.mxu1  ;;  %v6253_v56 = vpop.f32.mrf.mxu3  ;;  %v357_v22 = vld [vmem:[%s4646_s27 + $0x420] sm:$0xff] }
 0x41d   : > { %8802 = vst [vmem:[#allocation81_spill] sm:$0xff] %v6243_v61 }
 0x41e   : > { %3152 = vmatpush.msra.mxu1 %v5965_v29  ;;  %8803 = vst [vmem:[#allocation82_spill] sm:$0xff] %v6253_v56  ;;  %v1713_v29 = vld [vmem:[%s8719_s2 + $0x628] sm:$0xff] }
 0x41f   : > { %v6249_v54 = vpop.f32.mrf.mxu0  ;;  %3047 = vmatmul.f32.gmra.mxu3 %v1701_v63  ;;  %v2745_v63 = vadd.f32 %v5957_v31, %v5663_v41  ;;  %v1928_v41 = vld [vmem:[%s8719_s2 + $0xce0] sm:$0xff]  ;;  %v1809_v56 = vld [vmem:[%s8719_s2 + $0x928] sm:$0xff] }
 0x420   : > { %3153 = vmatpush.msra.mxu1 %v5946_v21  ;;  %2940 = vmatmul.f32.gmra.mxu2 %v1892_v59  ;;  %v1522_v21 = vld [vmem:[%s8719_s2 + $0x30] sm:$0xff] }
 0x422   : > { %4458 = vmatmul.msk.f32.gmra.mxu0 %vm408_vm1, %v355_v23  ;;  %3154 = vmatpush.msra.mxu1 %v5923_v32  ;;  %v2742_v32 = vadd.f32 %v5937_v19, %v5642_v40  ;;  %v1916_v40 = vld [vmem:[%s8719_s2 + $0xc80] sm:$0xff] }
 0x423   : > { %v2893_v47 = vpop.f32.mrf.mxu2 }
 0x424   : > { %3155 = vmatpush.msra.mxu1 %v5903_v48  ;;  %v6266_v24 = vadd.f32 %v2893_v47, %v2739_v14  ;;  %v6268_v44 = vpop.f32.mrf.mxu1  ;;  %v356_v48 = vld [vmem:[%s4646_s27 + $0x418] sm:$0xff]  ;;  %v1737_v47 = vld [vmem:[%s8719_s2 + $0x6e8] sm:$0xff] }
 0x425   : > { %8804 = vst [vmem:[#allocation83_spill] sm:$0xff] %v6268_v44 }
 0x426   : > { %3156 = vmatpush.msra.mxu1 %v5885_v12  ;;  %v1534_v12 = vld [vmem:[%s8719_s2 + $0x90] sm:$0xff] }
 0x427   : > { %v6274_v43 = vpop.f32.mrf.mxu0  ;;  %3050 = vmatmul.f32.gmra.mxu3 %v1713_v29  ;;  %3157 = vmatmul.f32.vlgmr.msra.gmra.mxu1 %v1522_v21  ;;  %v1546_v29 = vld [vmem:[%s8719_s2 + $0xf0] sm:$0xff] }
 0x428   : > { %2943 = vmatmul.f32.gmra.mxu2 %v1904_v17 }
 0x42a   : > { %4459 = vmatmul.msk.f32.gmra.mxu0 %vm408_vm1, %v356_v48  ;;  %v6280_v7 = vpop.f32.mrf.mxu3  ;;  %v2748_v48 = vadd.f32 %v5978_v49, %v5684_v18  ;;  %v1940_v18 = vld [vmem:[%s8719_s2 + $0xd40] sm:$0xff] }
 0x42b   : > { %v2896_v10 = vpop.f32.mrf.mxu2 }
 0x42c   : > { %v6288_v58 = vadd.f32 %v2896_v10, %v2742_v32  ;;  %v6290_v34 = vpop.f32.mrf.mxu1 }
 0x42d   : > { %8805 = vst [vmem:[#allocation84_spill] sm:$0xff] %v6290_v34 }
 0x42f   : > { %v6295_v19 = vpop.f32.mrf.mxu0  ;;  %3053 = vmatmul.f32.gmra.mxu3 %v1725_v62  ;;  %3160 = vmatmul.f32.gmra.mxu1 %v1534_v12  ;;  %v1749_v12 = vld [vmem:[%s8719_s2 + $0x748] sm:$0xff] }
 0x430   : > { %2946 = vmatmul.f32.gmra.mxu2 %v1916_v40  ;;  %v1558_v40 = vld [vmem:[%s8719_s2 + $0x150] sm:$0xff] }
 0x432   : > { %4460 = vmatmul.msk.f32.gmra.mxu0 %vm408_vm1, %v357_v22  ;;  %v3006_v59 = vpop.f32.mrf.mxu3 }
 0x433   : > { %v6302_v23 = vadd.f32 %v3006_v59, %v5976_v36  ;;  %v2899_v14 = vpop.f32.mrf.mxu2  ;;  %v358_v36 = vld [vmem:[%s4646_s27 + $0x428] sm:$0xff]  ;;  %v2751_v59 = vadd.f32 %v5999_v25, %v5705_v38  ;;  %v1952_v38 = vld [vmem:[%s8719_s2 + $0xda0] sm:$0xff] }
 0x434   : > { %v6310_v21 = vadd.f32 %v2899_v14, %v2745_v63  ;;  %v6312_v17 = vpop.f32.mrf.mxu1 }
 0x435   : > { %8806 = vst [vmem:[#allocation85_spill] sm:$0xff] %v6312_v17  ;;  %v1857_v17 = vld [vmem:[%s8719_s2 + $0xaa8] sm:$0xff] }
 0x437   : > { %v6317_v31 = vpop.f32.mrf.mxu0  ;;  %3056 = vmatmul.f32.gmra.mxu3 %v1737_v47  ;;  %3163 = vmatmul.f32.gmra.mxu1 %v1546_v29 }
 0x438   : > { %2949 = vmatmul.f32.gmra.mxu2 %v1928_v41  ;;  %v1761_v41 = vld [vmem:[%s8719_s2 + $0x7a8] sm:$0xff] }
 0x43a   : > { %4461 = vmatmul.msk.f32.gmra.mxu0 %vm408_vm1, %v358_v36  ;;  %v3009_v32 = vpop.f32.mrf.mxu3  ;;  %v1570_v36 = vld [vmem:[%s8719_s2 + $0x1b0] sm:$0xff] }
 0x43b   : > { %v6324_v10 = vadd.f32 %v3009_v32, %v5997_v39  ;;  %v2902_v62 = vpop.f32.mrf.mxu2  ;;  %v359_v39 = vld [vmem:[%s4646_s27 + $0x430] sm:$0xff] }
 0x43c   : > { %v6332_v22 = vadd.f32 %v2902_v62, %v2748_v48  ;;  %v6334_v63 = vpop.f32.mrf.mxu1  ;;  %v2754_v62 = vadd.f32 %v6020_v33, %v5726_v30  ;;  %v1964_v30 = vld [vmem:[%s8719_s2 + $0xe00] sm:$0xff] }
 0x43d   : > { %8807 = vst [vmem:[#allocation86_spill] sm:$0xff] %v6334_v63 }
 0x43f   : > { %v6339_v49 = vpop.f32.mrf.mxu0  ;;  %3059 = vmatmul.f32.gmra.mxu3 %v1749_v12  ;;  %3166 = vmatmul.f32.gmra.mxu1 %v1558_v40 }
 0x440   : > { %2952 = vmatmul.f32.gmra.mxu2 %v1940_v18 }
 0x442   : > { %4462 = vmatmul.msk.f32.gmra.mxu0 %vm408_vm1, %v359_v39  ;;  %v3012_v14 = vpop.f32.mrf.mxu3  ;;  %v1773_v39 = vld [vmem:[%s8719_s2 + $0x808] sm:$0xff] }
 0x443   : > { %v6346_v47 = vadd.f32 %v3012_v14, %v6018_v0  ;;  %v2905_v29 = vpop.f32.mrf.mxu2  ;;  %v360_v0 = vld [vmem:[%s4646_s27 + $0x438] sm:$0xff] }
 0x444   : > { %v6354_v48 = vadd.f32 %v2905_v29, %v2751_v59  ;;  %v6356_v32 = vpop.f32.mrf.mxu1  ;;  %v1582_v59 = vld [vmem:[%s8719_s2 + $0x210] sm:$0xff] }
 0x445   : > { %8808 = vst [vmem:[#allocation87_spill] sm:$0xff] %v6356_v32  ;;  %v1654_v32 = vld [vmem:[%s8719_s2 + $0x450] sm:$0xff] }
 0x447   : > { %v6361_v25 = vpop.f32.mrf.mxu0  ;;  %3062 = vmatmul.f32.gmra.mxu3 %v1761_v41  ;;  %3169 = vmatmul.f32.gmra.mxu1 %v1570_v36  ;;  %v2757_v41 = vadd.f32 %v6041_v26, %v5747_v37  ;;  %v1976_v37 = vld [vmem:[%s8719_s2 + $0xe60] sm:$0xff] }
 0x448   : > { %2955 = vmatmul.f32.gmra.mxu2 %v1952_v38 }
 0x44a   : > { %4463 = vmatmul.msk.f32.gmra.mxu0 %vm408_vm1, %v360_v0  ;;  %v3015_v12 = vpop.f32.mrf.mxu3 }
 0x44b   : > { %v6368_v40 = vadd.f32 %v3015_v12, %v6039_v27  ;;  %v2908_v18 = vpop.f32.mrf.mxu2  ;;  %v361_v27 = vld [vmem:[%s4646_s27 + $0x440] sm:$0xff]  ;;  %v1594_v12 = vld [vmem:[%s8719_s2 + $0x270] sm:$0xff] }
 0x44c   : > { %v6376_v14 = vadd.f32 %v2908_v18, %v2754_v62  ;;  %v6378_v29 = vpop.f32.mrf.mxu1  ;;  %v1785_v62 = vld [vmem:[%s8719_s2 + $0x868] sm:$0xff] }
 0x44d   : > { %8809 = vst [vmem:[#allocation88_spill] sm:$0xff] %v6378_v29 }
 0x44f   : > { %v6383_v33 = vpop.f32.mrf.mxu0  ;;  %3065 = vmatmul.f32.gmra.mxu3 %v1773_v39  ;;  %3172 = vmatmul.f32.gmra.mxu1 %v1582_v59  ;;  %v362_v39 = vld [vmem:[%s4646_s27 + $0x448] sm:$0xff] }
 0x450   : > { %2958 = vmatmul.f32.gmra.mxu2 %v1964_v30 }
 0x452   : > { %4464 = vmatmul.msk.f32.gmra.mxu0 %vm408_vm1, %v361_v27  ;;  %v3018_v36 = vpop.f32.mrf.mxu3 }
 0x453   : > { %v6390_v38 = vadd.f32 %v3018_v36, %v6060_v9  ;;  %v2911_v0 = vpop.f32.mrf.mxu2  ;;  %v1606_v36 = vld [vmem:[%s8719_s2 + $0x2d0] sm:$0xff] }
 0x454   : > { %v6398_v18 = vadd.f32 %v2911_v0, %v2757_v41  ;;  %v6403_v26 = vpop.f32.mrf.mxu1  ;;  %v1797_v41 = vld [vmem:[%s8719_s2 + $0x8c8] sm:$0xff]  ;;  %v1988_v0 = vld [vmem:[%s8719_s2 + $0xec0] sm:$0xff] }
 0x455   : > { %8810 = vst [vmem:[#allocation89_spill] sm:$0xff] %v6403_v26  ;;  %v1642_v26 = vld [vmem:[%s8719_s2 + $0x3f0] sm:$0xff] }
 0x457   : > { %v6405_v9 = vpop.f32.mrf.mxu0  ;;  %3068 = vmatmul.f32.gmra.mxu3 %v1785_v62  ;;  %3175 = vmatmul.f32.gmra.mxu1 %v1594_v12 }
 0x458   : > { %2961 = vmatmul.f32.gmra.mxu2 %v1976_v37 }
 0x45a   : > { %4465 = vmatmul.msk.f32.gmra.mxu0 %vm408_vm1, %v362_v39  ;;  %v3021_v59 = vpop.f32.mrf.mxu3 }
 0x45b   : > { %v6410_v30 = vadd.f32 %v3021_v59, %v6081_v52  ;;  %v6412_v27 = vpop.f32.mrf.mxu2  ;;  %v363_v52 = vld [vmem:[%s4646_s27 + $0x450] sm:$0xff] }
 0x45c   : > { %8811 = vst [vmem:[#allocation90_spill] sm:$0xff] %v6412_v27  ;;  %v6426_v12 = vpop.f32.mrf.mxu1  ;;  %v1858_v27 = vld [vmem:[%s8719_s2 + $0xab0] sm:$0xff] }
 0x45d   : > { %8812 = vst [vmem:[#allocation91_spill] sm:$0xff] %v6426_v12  ;;  %v1833_v12 = vld [vmem:[%s8719_s2 + $0x9e8] sm:$0xff] }
 0x45f   : > { %v6423_v62 = vpop.f32.mrf.mxu0  ;;  %3071 = vmatmul.f32.gmra.mxu3 %v1797_v41  ;;  %3178 = vmatmul.f32.gmra.mxu1 %v1606_v36  ;;  %v1618_v41 = vld [vmem:[%s8719_s2 + $0x330] sm:$0xff]  ;;  %v2000_v36 = vld [vmem:[%s8719_s2 + $0xf20] sm:$0xff] }
 0x460   : > { %2964 = vmatmul.f32.gmra.mxu2 %v1988_v0 }
 0x462   : > { %4466 = vmatmul.msk.f32.gmra.mxu0 %vm408_vm1, %v363_v52  ;;  %v3024_v37 = vpop.f32.mrf.mxu3 }
 0x463   : > { %v6430_v39 = vadd.f32 %v3024_v37, %v6102_v2  ;;  %v6432_v59 = vpop.f32.mrf.mxu2  ;;  %v364_v2 = vld [vmem:[%s4646_s27 + $0x458] sm:$0xff] }
 0x464   : > { %8813 = vst [vmem:[#allocation92_spill] sm:$0xff] %v6432_v59  ;;  %v6447_v37 = vpop.f32.mrf.mxu1  ;;  %v2037_v59 = vld [vmem:[%s8719_s2 + $0x1048] sm:$0xff] }
 0x465   : > { %8814 = vst [vmem:[#allocation93_spill] sm:$0xff] %v6447_v37 }
 0x467   : > { %v6443_v0 = vpop.f32.mrf.mxu0  ;;  %3074 = vmatmul.f32.gmra.mxu3 %v1809_v56  ;;  %3181 = vmatmul.f32.gmra.mxu1 %v1618_v41  ;;  %v1630_v56 = vld [vmem:[%s8719_s2 + $0x390] sm:$0xff]  ;;  %v2012_v41 = vld [vmem:[%s8719_s2 + $0xf80] sm:$0xff] }
 0x468   : > { %2967 = vmatmul.f32.gmra.mxu2 %v2000_v36 }
 0x46a   : > { %4467 = vmatmul.msk.f32.gmra.mxu0 %vm408_vm1, %v364_v2  ;;  %v3027_v52 = vpop.f32.mrf.mxu3 }
 0x46b   : > { %v6450_v15 = vadd.f32 %v3027_v52, %v6121_v46  ;;  %v6452_v35 = vpop.f32.mrf.mxu2  ;;  %v365_v46 = vld [vmem:[%s4646_s27 + $0x460] sm:$0xff] }
 0x46c   : > { %8815 = vst [vmem:[#allocation94_spill] sm:$0xff] %v6452_v35  ;;  %v2025_v35 = vld [vmem:[%s8719_s2 + $0xfe8] sm:$0xff] }
 0x46f   : > { %v1345_v36 = vpop.f32.mrf.mxu0  ;;  %3077 = vmatmul.f32.gmra.mxu3 %v1821_v8  ;;  %3184 = vmatmul.f32.gmra.mxu1 %v1630_v56  ;;  %v6476_v8 = vpop.f32.mrf.mxu1  ;;  %v2024_v56 = vld [vmem:[%s8719_s2 + $0xfe0] sm:$0xff] }
 0x470   : > { %2970 = vmatmul.f32.gmra.mxu2 %v2012_v41  ;;  %8817 = vst [vmem:[#allocation96_spill] sm:$0xff] %v6476_v8  ;;  %v1845_v8 = vld [vmem:[%s8719_s2 + $0xa48] sm:$0xff] }
 0x472   : > { %4468 = vmatmul.msk.f32.gmra.mxu0 %vm408_vm1, %v365_v46  ;;  %v3030_v2 = vpop.f32.mrf.mxu3 }
 0x473   : > { %v6466_v52 = vadd.f32 %v3030_v2, %v6140_v20  ;;  %v6468_v37 = vpop.f32.mrf.mxu2  ;;  %v366_v20 = vld [vmem:[%s4646_s27 + $0x468] sm:$0xff] }
 0x474   : > { %8816 = vst [vmem:[#allocation95_spill] sm:$0xff] %v6468_v37  ;;  %v1822_v37 = vld [vmem:[%s8719_s2 + $0x990] sm:$0xff] }
 0x477   : > { %v1348_v41 = vpop.f32.mrf.mxu0  ;;  %3080 = vmatmul.f32.gmra.mxu3 %v1833_v12  ;;  %3187 = vmatmul.f32.gmra.mxu1 %v1642_v26  ;;  %v2036_v26 = vld [vmem:[%s8719_s2 + $0x1040] sm:$0xff]  ;;  %v6497_v12 = vpop.f32.mrf.mxu1 }
 0x478   : > { %2973 = vmatmul.f32.gmra.mxu2 %v2024_v56  ;;  %8819 = vst [vmem:[#allocation98_spill] sm:$0xff] %v6497_v12  ;;  %v1666_v12 = vld [vmem:[%s8719_s2 + $0x4b0] sm:$0xff] }
 0x47a   : > { %4469 = vmatmul.msk.f32.gmra.mxu0 %vm408_vm1, %v366_v20  ;;  %v3033_v46 = vpop.f32.mrf.mxu3 }
 0x47b   : > { %v6484_v2 = vadd.f32 %v3033_v46, %v6159_v45  ;;  %v6486_v29 = vpop.f32.mrf.mxu2  ;;  %v367_v45 = vld [vmem:[%s4646_s27 + $0x470] sm:$0xff] }
 0x47c   : > { %8818 = vst [vmem:[#allocation97_spill] sm:$0xff] %v6486_v29  ;;  %v2013_v29 = vld [vmem:[%s8719_s2 + $0xf88] sm:$0xff] }
 0x47f   : > { %v1351_v56 = vpop.f32.mrf.mxu0  ;;  %3083 = vmatmul.f32.gmra.mxu3 %v1845_v8  ;;  %3190 = vmatmul.f32.gmra.mxu1 %v1654_v32  ;;  %v2048_v32 = vld [vmem:[%s8719_s2 + $0x10a0] sm:$0xff] }
 0x480   : > { %2976 = vmatmul.f32.gmra.mxu2 %v2036_v26  ;;  %v368_v26 = vld [vmem:[%s4646_s27 + $0x478] sm:$0xff] }
 0x482   : > { %4470 = vmatmul.msk.f32.gmra.mxu0 %vm408_vm1, %v367_v45  ;;  %v3036_v20 = vpop.f32.mrf.mxu3 }
 0x483   : > { %v6502_v46 = vadd.f32 %v3036_v20, %v6178_v42  ;;  %v6504_v63 = vpop.f32.mrf.mxu2  ;;  %v6516_v42 = vpop.f32.mrf.mxu1 }
 0x484   : > { %8820 = vst [vmem:[#allocation99_spill] sm:$0xff] %v6504_v63 }
 0x485   : > { %8821 = vst [vmem:[#allocation100_spill] sm:$0xff] %v6516_v42  ;;  %v1941_v42 = vld [vmem:[%s8719_s2 + $0xd48] sm:$0xff] }
 0x487   : > { %v1354_v8 = vpop.f32.mrf.mxu0  ;;  %3086 = vmatmul.f32.gmra.mxu3 %v1857_v17  ;;  %3193 = vmatmul.f32.gmra.mxu1 %v1666_v12  ;;  %v1869_v17 = vld [vmem:[%s8719_s2 + $0xb08] sm:$0xff]  ;;  %v1678_v12 = vld [vmem:[%s8719_s2 + $0x510] sm:$0xff] }
 0x488   : > { %3296 = vmatpush.msra.mxu2 %v1354_v8 }
 0x489   : > { %2979 = vmatmul.f32.gmra.mxu2 %v2048_v32  ;;  %v2060_v32 = vld [vmem:[%s8719_s2 + $0x1100] sm:$0x1] }
 0x48a   : > { %4471 = vmatmul.msk.f32.gmra.mxu0 %vm408_vm1, %v368_v26  ;;  %v3039_v45 = vpop.f32.mrf.mxu3  ;;  %3297 = vmatpush.msra.mxu2 %v1351_v56 }
 0x48b   : > { %v6520_v20 = vadd.f32 %v3039_v45, %v6197_v60  ;;  %v6522_v34 = vpop.f32.mrf.mxu2  ;;  %v369_v60 = vld [vmem:[%s4646_s27 + $0x480] sm:$0xff]  ;;  %v6539_v8 = vpop.f32.mrf.mxu1  ;;  %v1881_v45 = vld [vmem:[%s8719_s2 + $0xb68] sm:$0xff] }
 0x48c   : > { %8822 = vst [vmem:[#allocation101_spill] sm:$0xff] %v6522_v34  ;;  %3298 = vmatpush.msra.mxu2 %v1348_v41  ;;  %v2001_v34 = vld [vmem:[%s8719_s2 + $0xf28] sm:$0xff] }
 0x48d   : > { %8823 = vst [vmem:[#allocation102_spill] sm:$0xff] %v6539_v8 }
 0x48e   : > { %3299 = vmatpush.msra.mxu2 %v1345_v36 }
 0x48f   : > { %v6533_v56 = vpop.f32.mrf.mxu0  ;;  %3089 = vmatmul.f32.gmra.mxu3 %v1869_v17  ;;  %3196 = vmatmul.f32.gmra.mxu1 %v1678_v12 }
 0x490   : > { %3300 = vmatpush.msra.mxu2 %v6443_v0  ;;  %v1690_v0 = vld [vmem:[%s8719_s2 + $0x570] sm:$0xff] }
 0x491   : > { %2982 = vmatmul.f32.gmra.mxu2 %v2060_v32 }
 0x492   : > { %4472 = vmatmul.msk.f32.gmra.mxu0 %vm408_vm1, %v369_v60  ;;  %v3042_v41 = vpop.f32.mrf.mxu3  ;;  %3301 = vmatpush.msra.mxu2 %v6423_v62 }
 0x493   : > { %v6542_v36 = vadd.f32 %v3042_v41, %v6219_v1  ;;  %v6544_v26 = vpop.f32.mrf.mxu2  ;;  %v370_v1 = vld [vmem:[%s4646_s27 + $0x488] sm:$0xff]  ;;  %v6565_v32 = vpop.f32.mrf.mxu1 }
 0x494   : > { %8824 = vst [vmem:[#allocation103_spill] sm:$0xff] %v6544_v26  ;;  %3302 = vmatpush.msra.mxu2 %v6405_v9 }
 0x495   : > { %8826 = vst [vmem:[#allocation105_spill] sm:$0xff] %v6565_v32 }
 0x496   : > { %3303 = vmatpush.msra.mxu2 %v6383_v33  ;;  %v1893_v33 = vld [vmem:[%s8719_s2 + $0xbc8] sm:$0xff] }
 0x497   : > { %v6554_v62 = vpop.f32.mrf.mxu0  ;;  %3092 = vmatmul.f32.gmra.mxu3 %v1881_v45  ;;  %3199 = vmatmul.f32.gmra.mxu1 %v1690_v0 }
 0x498   : > { %3304 = vmatpush.msra.mxu2 %v6361_v25  ;;  %v1702_v25 = vld [vmem:[%s8719_s2 + $0x5d0] sm:$0xff] }
 0x49a   : > { %4473 = vmatmul.msk.f32.gmra.mxu0 %vm408_vm1, %v370_v1  ;;  %v3045_v9 = vpop.f32.mrf.mxu3  ;;  %3305 = vmatpush.msra.mxu2 %v6339_v49 }
 0x49b   : > { %v6561_v17 = vadd.f32 %v3045_v9, %v6241_v6  ;;  %v6563_v12 = vpop.f32.mrf.mxu2  ;;  %v371_v6 = vld [vmem:[%s4646_s27 + $0x490] sm:$0xff] }
 0x49c   : > { %8825 = vst [vmem:[#allocation104_spill] sm:$0xff] %v6563_v12  ;;  %3306 = vmatpush.msra.mxu2 %v6317_v31  ;;  %v1977_v12 = vld [vmem:[%s8719_s2 + $0xe68] sm:$0xff] }
 0x49e   : > { %3307 = vmatpush.msra.mxu2 %v6295_v19  ;;  %v1905_v19 = vld [vmem:[%s8719_s2 + $0xc28] sm:$0xff] }
 0x49f   : > { %v6575_v49 = vpop.f32.mrf.mxu0  ;;  %3095 = vmatmul.f32.gmra.mxu3 %v1893_v33  ;;  %3202 = vmatmul.f32.gmra.mxu1 %v1702_v25  ;;  %v1726_v25 = vld [vmem:[%s8719_s2 + $0x690] sm:$0xff] }
 0x4a0   : > { %3308 = vmatpush.msra.mxu2 %v6274_v43  ;;  %v1714_v43 = vld [vmem:[%s8719_s2 + $0x630] sm:$0xff] }
 0x4a2   : > { %4474 = vmatmul.msk.f32.gmra.mxu0 %vm408_vm1, %v371_v6  ;;  %v3048_v31 = vpop.f32.mrf.mxu3  ;;  %3309 = vmatpush.msra.mxu2 %v6249_v54  ;;  %v1523_v54 = vld [vmem:[%s8719_s2 + $0x38] sm:$0xff] }
 0x4a3   : > { %v6582_v60 = vadd.f32 %v3048_v31, %v6266_v24  ;;  %v6584_v41 = vpop.f32.mrf.mxu2  ;;  %v1535_v6 = vld [vmem:[%s8719_s2 + $0x98] sm:$0xff] }
 0x4a4   : > { %8827 = vst [vmem:[#allocation106_spill] sm:$0xff] %v6584_v41  ;;  %v6586_v45 = vpop.f32.mrf.mxu1  ;;  %3310 = vmatpush.msra.mxu2 %v6229_v51  ;;  %v372_v51 = vld [vmem:[%s4646_s27 + $0x498] sm:$0xff]  ;;  %v1965_v41 = vld [vmem:[%s8719_s2 + $0xe08] sm:$0xff] }
 0x4a6   : > { %3311 = vmatpush.msra.mxu2 %v6207_v55  ;;  %v1917_v55 = vld [vmem:[%s8719_s2 + $0xc88] sm:$0xff] }
 0x4a7   : > { %v6599_v24 = vpop.f32.mrf.mxu0  ;;  %3098 = vmatmul.f32.gmra.mxu3 %v1905_v19  ;;  %3205 = vmatmul.f32.gmra.mxu1 %v1714_v43 }
 0x4a8   : > { %3312 = vmatmul.f32.vlgmr.msra.gmra.mxu2 %v1523_v54 }
 0x4aa   : > { %4475 = vmatmul.msk.f32.gmra.mxu0 %vm408_vm1, %v372_v51  ;;  %v3051_v0 = vpop.f32.mrf.mxu3 }
 0x4ab   : > { %v6604_v1 = vadd.f32 %v3051_v0, %v6288_v58  ;;  %v6606_v9 = vpop.f32.mrf.mxu2  ;;  %v373_v58 = vld [vmem:[%s4646_s27 + $0x4a0] sm:$0xff]  ;;  %v1929_v0 = vld [vmem:[%s8719_s2 + $0xce8] sm:$0xff] }
 0x4ac   : > { %8828 = vst [vmem:[#allocation107_spill] sm:$0xff] %v6606_v9  ;;  %v6608_v33 = vpop.f32.mrf.mxu1  ;;  %v1953_v9 = vld [vmem:[%s8719_s2 + $0xda8] sm:$0xff] }
 0x4af   : > { %v6619_v31 = vpop.f32.mrf.mxu0  ;;  %3101 = vmatmul.f32.gmra.mxu3 %v1917_v55  ;;  %3208 = vmatmul.f32.gmra.mxu1 %v1726_v25  ;;  %v1738_v55 = vld [vmem:[%s8719_s2 + $0x6f0] sm:$0xff]  ;;  %v1547_v25 = vld [vmem:[%s8719_s2 + $0xf8] sm:$0xff] }
 0x4b0   : > { %3315 = vmatmul.f32.gmra.mxu2 %v1535_v6 }
 0x4b2   : > { %4476 = vmatmul.msk.f32.gmra.mxu0 %vm408_vm1, %v373_v58  ;;  %v3054_v19 = vpop.f32.mrf.mxu3 }
 0x4b3   : > { %v6624_v43 = vadd.f32 %v3054_v19, %v6310_v21  ;;  %v6626_v54 = vpop.f32.mrf.mxu2  ;;  %v374_v21 = vld [vmem:[%s4646_s27 + $0x4a8] sm:$0xff] }
 0x4b4   : > { %8829 = vst [vmem:[#allocation108_spill] sm:$0xff] %v6626_v54  ;;  %v6628_v51 = vpop.f32.mrf.mxu1 }
 0x4b7   : > { %v6639_v6 = vpop.f32.mrf.mxu0  ;;  %3104 = vmatmul.f32.gmra.mxu3 %v1929_v0  ;;  %3211 = vmatmul.f32.gmra.mxu1 %v1738_v55  ;;  %v1750_v0 = vld [vmem:[%s8719_s2 + $0x750] sm:$0xff]  ;;  %v1559_v55 = vld [vmem:[%s8719_s2 + $0x158] sm:$0xff] }
 0x4b8   : > { %3318 = vmatmul.f32.gmra.mxu2 %v1547_v25 }
 0x4ba   : > { %4477 = vmatmul.msk.f32.gmra.mxu0 %vm408_vm1, %v374_v21  ;;  %v3057_v58 = vpop.f32.mrf.mxu3 }
 0x4bb   : > { %v6644_v19 = vadd.f32 %v3057_v58, %v6332_v22  ;;  %v6646_v32 = vpop.f32.mrf.mxu2  ;;  %v375_v22 = vld [vmem:[%s4646_s27 + $0x4b0] sm:$0xff] }
 0x4bc   : > { %8830 = vst [vmem:[#allocation109_spill] sm:$0xff] %v6646_v32  ;;  %v6648_v8 = vpop.f32.mrf.mxu1 }
 0x4bf   : > { %v6659_v25 = vpop.f32.mrf.mxu0  ;;  %3107 = vmatmul.f32.gmra.mxu3 %v1941_v42  ;;  %3214 = vmatmul.f32.gmra.mxu1 %v1750_v0  ;;  %v1762_v42 = vld [vmem:[%s8719_s2 + $0x7b0] sm:$0xff]  ;;  %v1571_v0 = vld [vmem:[%s8719_s2 + $0x1b8] sm:$0xff] }
 0x4c0   : > { %3321 = vmatmul.f32.gmra.mxu2 %v1559_v55 }
 0x4c2   : > { %4478 = vmatmul.msk.f32.gmra.mxu0 %vm408_vm1, %v375_v22  ;;  %v3060_v21 = vpop.f32.mrf.mxu3 }
 0x4c3   : > { %v6664_v58 = vadd.f32 %v3060_v21, %v6354_v48  ;;  %v6666_v32 = vpop.f32.mrf.mxu2  ;;  %v376_v48 = vld [vmem:[%s4646_s27 + $0x4b8] sm:$0xff] }
 0x4c4   : > { %8831 = vst [vmem:[#allocation110_spill] sm:$0xff] %v6666_v32  ;;  %v6668_v54 = vpop.f32.mrf.mxu1 }
 0x4c7   : > { %v6679_v55 = vpop.f32.mrf.mxu0  ;;  %3110 = vmatmul.f32.gmra.mxu3 %v1953_v9  ;;  %3217 = vmatmul.f32.gmra.mxu1 %v1762_v42  ;;  %v1774_v9 = vld [vmem:[%s8719_s2 + $0x810] sm:$0xff]  ;;  %v1583_v42 = vld [vmem:[%s8719_s2 + $0x218] sm:$0xff] }
 0x4c8   : > { %3324 = vmatmul.f32.gmra.mxu2 %v1571_v0 }
 0x4ca   : > { %4479 = vmatmul.msk.f32.gmra.mxu0 %vm408_vm1, %v376_v48  ;;  %v3063_v22 = vpop.f32.mrf.mxu3 }
 0x4cb   : > { %v6684_v21 = vadd.f32 %v3063_v22, %v6376_v14  ;;  %v6686_v32 = vpop.f32.mrf.mxu2  ;;  %v377_v14 = vld [vmem:[%s4646_s27 + $0x4c0] sm:$0xff] }
 0x4cc   : > { %8832 = vst [vmem:[#allocation111_spill] sm:$0xff] %v6686_v32  ;;  %v6688_v44 = vpop.f32.mrf.mxu1 }
 0x4cf   : > { %v6699_v0 = vpop.f32.mrf.mxu0  ;;  %3113 = vmatmul.f32.gmra.mxu3 %v1965_v41  ;;  %3220 = vmatmul.f32.gmra.mxu1 %v1774_v9  ;;  %v1786_v41 = vld [vmem:[%s8719_s2 + $0x870] sm:$0xff]  ;;  %v1595_v9 = vld [vmem:[%s8719_s2 + $0x278] sm:$0xff] }
 0x4d0   : > { %3327 = vmatmul.f32.gmra.mxu2 %v1583_v42 }
 0x4d2   : > { %4480 = vmatmul.msk.f32.gmra.mxu0 %vm408_vm1, %v377_v14  ;;  %v3066_v48 = vpop.f32.mrf.mxu3 }
 0x4d3   : > { %v6704_v22 = vadd.f32 %v3066_v48, %v6398_v18  ;;  %v6706_v32 = vpop.f32.mrf.mxu2  ;;  %v378_v18 = vld [vmem:[%s4646_s27 + $0x4c8] sm:$0xff] }
 0x4d4   : > { %8833 = vst [vmem:[#allocation112_spill] sm:$0xff] %v6706_v32  ;;  %v6708_v61 = vpop.f32.mrf.mxu1  ;;  %v1989_v32 = vld [vmem:[%s8719_s2 + $0xec8] sm:$0xff] }
 0x4d7   : > { %v6719_v42 = vpop.f32.mrf.mxu0  ;;  %3116 = vmatmul.f32.gmra.mxu3 %v1977_v12  ;;  %3223 = vmatmul.f32.gmra.mxu1 %v1786_v41  ;;  %v1607_v12 = vld [vmem:[%s8719_s2 + $0x2d8] sm:$0xff] }
 0x4d8   : > { %3330 = vmatmul.f32.gmra.mxu2 %v1595_v9 }
 0x4da   : > { %4481 = vmatmul.msk.f32.gmra.mxu0 %vm408_vm1, %v378_v18  ;;  %v6723_v14 = vpop.f32.mrf.mxu3  ;;  %v379_v18 = vld [vmem:[%s4646_s27 + $0x4d0] sm:$0xff] }
 0x4db   : > { %8834 = vst [vmem:[#allocation113_spill] sm:$0xff] %v6723_v14  ;;  %v6736_v41 = vpop.f32.mrf.mxu2  ;;  %v1846_v14 = vld [vmem:[%s8719_s2 + $0xa50] sm:$0xff] }
 0x4dc   : > { %v6725_v48 = vpop.f32.mrf.mxu1  ;;  %8835 = vst [vmem:[#allocation114_spill] sm:$0xff] %v6736_v41  ;;  %v1810_v41 = vld [vmem:[%s8719_s2 + $0x930] sm:$0xff] }
 0x4df   : > { %v6738_v9 = vpop.f32.mrf.mxu0  ;;  %3119 = vmatmul.f32.gmra.mxu3 %v1989_v32  ;;  %3226 = vmatmul.f32.gmra.mxu1 %v1798_v13  ;;  %v1619_v13 = vld [vmem:[%s8719_s2 + $0x338] sm:$0xff] }
 0x4e0   : > { %3333 = vmatmul.f32.gmra.mxu2 %v1607_v12  ;;  %v380_v12 = vld [vmem:[%s4646_s27 + $0x4d8] sm:$0xff] }
 0x4e2   : > { %4482 = vmatmul.msk.f32.gmra.mxu0 %vm408_vm1, %v379_v18  ;;  %v6742_v26 = vpop.f32.mrf.mxu3 }
 0x4e3   : > { %8836 = vst [vmem:[#allocation115_spill] sm:$0xff] %v6742_v26  ;;  %v6758_v18 = vpop.f32.mrf.mxu2  ;;  %v1834_v26 = vld [vmem:[%s8719_s2 + $0x9f0] sm:$0xff] }
 0x4e4   : > { %v6744_v53 = vpop.f32.mrf.mxu1  ;;  %8837 = vst [vmem:[#allocation116_spill] sm:$0xff] %v6758_v18 }
 0x4e7   : > { %v6755_v32 = vpop.f32.mrf.mxu0  ;;  %3122 = vmatmul.f32.gmra.mxu3 %v2001_v34  ;;  %3229 = vmatmul.f32.gmra.mxu1 %v1810_v41  ;;  %v1631_v34 = vld [vmem:[%s8719_s2 + $0x398] sm:$0xff] }
 0x4e8   : > { %3336 = vmatmul.f32.gmra.mxu2 %v1619_v13  ;;  %v381_v13 = vld [vmem:[%s4646_s27 + $0x4e0] sm:$0xff] }
 0x4ea   : > { %4483 = vmatmul.msk.f32.gmra.mxu0 %vm408_vm1, %v380_v12  ;;  %v6761_v4 = vpop.f32.mrf.mxu3 }
 0x4eb   : > { %8838 = vst [vmem:[#allocation117_spill] sm:$0xff] %v6761_v4  ;;  %v6775_v12 = vpop.f32.mrf.mxu2 }
 0x4ec   : > { %v6763_v63 = vpop.f32.mrf.mxu1  ;;  %8839 = vst [vmem:[#allocation118_spill] sm:$0xff] %v6775_v12 }
 0x4ef   : > { %v1393_v41 = vpop.f32.mrf.mxu0  ;;  %3125 = vmatmul.f32.gmra.mxu3 %v2013_v29  ;;  %3232 = vmatmul.f32.gmra.mxu1 %v1822_v37  ;;  %v1643_v29 = vld [vmem:[%s8719_s2 + $0x3f8] sm:$0xff] }
 0x4f0   : > { %3339 = vmatmul.f32.gmra.mxu2 %v1631_v34  ;;  %v382_v34 = vld [vmem:[%s4646_s27 + $0x4e8] sm:$0xff] }
 0x4f2   : > { %4484 = vmatmul.msk.f32.gmra.mxu0 %vm408_vm1, %v381_v13  ;;  %v6778_v18 = vpop.f32.mrf.mxu3 }
 0x4f3   : > { %8840 = vst [vmem:[#allocation119_spill] sm:$0xff] %v6778_v18  ;;  %v6795_v12 = vpop.f32.mrf.mxu2 }
 0x4f4   : > { %v6780_v4 = vpop.f32.mrf.mxu1  ;;  %8842 = vst [vmem:[#allocation121_spill] sm:$0xff] %v6795_v12 }
 0x4f7   : > { %v1396_v37 = vpop.f32.mrf.mxu0  ;;  %3128 = vmatmul.f32.gmra.mxu3 %v2025_v35  ;;  %3235 = vmatmul.f32.gmra.mxu1 %v1834_v26  ;;  %v1655_v35 = vld [vmem:[%s8719_s2 + $0x458] sm:$0xff] }
 0x4f8   : > { %3342 = vmatmul.f32.gmra.mxu2 %v1643_v29  ;;  %v383_v29 = vld [vmem:[%s4646_s27 + $0x4f0] sm:$0xff] }
 0x4fa   : > { %4485 = vmatmul.msk.f32.gmra.mxu0 %vm408_vm1, %v382_v34  ;;  %v6793_v13 = vpop.f32.mrf.mxu3 }
 0x4fb   : > { %8841 = vst [vmem:[#allocation120_spill] sm:$0xff] %v6793_v13  ;;  %v2049_v13 = vld [vmem:[%s8719_s2 + $0x10a8] sm:$0xff] }
 0x4fc   : > { %v6797_v18 = vpop.f32.mrf.mxu1 }
 0x4ff   : > { %v1399_v26 = vpop.f32.mrf.mxu0  ;;  %3131 = vmatmul.f32.gmra.mxu3 %v2037_v59  ;;  %3238 = vmatmul.f32.gmra.mxu1 %v1846_v14  ;;  %v1667_v59 = vld [vmem:[%s8719_s2 + $0x4b8] sm:$0xff]  ;;  %v6823_v14 = vpop.f32.mrf.mxu2 }
 0x500   : > { %3345 = vmatmul.f32.gmra.mxu2 %v1655_v35  ;;  %8844 = vst [vmem:[#allocation123_spill] sm:$0xff] %v6823_v14 }
 0x502   : > { %4486 = vmatmul.msk.f32.gmra.mxu0 %vm408_vm1, %v383_v29  ;;  %v6810_v34 = vpop.f32.mrf.mxu3  ;;  %v384_v29 = vld [vmem:[%s4646_s27 + $0x4f8] sm:$0xff] }
 0x503   : > { %8843 = vst [vmem:[#allocation122_spill] sm:$0xff] %v6810_v34 }
 0x504   : > { %v6812_v12 = vpop.f32.mrf.mxu1 }
 0x507   : > { %v1402_v35 = vpop.f32.mrf.mxu0  ;;  %3134 = vmatmul.f32.gmra.mxu3 %v2049_v13  ;;  %3241 = vmatmul.f32.gmra.mxu1 %v1858_v27  ;;  %v1870_v27 = vld [vmem:[%s8719_s2 + $0xb10] sm:$0xff]  ;;  %v1679_v13 = vld [vmem:[%s8719_s2 + $0x518] sm:$0xff] }
 0x508   : > { %3348 = vmatmul.f32.gmra.mxu2 %v1667_v59  ;;  %3451 = vmatpush.msra.mxu3 %v1402_v35 }
 0x50a   : > { %4487 = vmatmul.msk.f32.gmra.mxu0 %vm408_vm1, %v384_v29  ;;  %v6827_v34 = vpop.f32.mrf.mxu3  ;;  %3452 = vmatpush.msra.mxu3 %v1399_v26  ;;  %v385_v26 = vld [vmem:[%s4646_s27 + $0x500] sm:$0xff] }
 0x50b   : > { %8845 = vst [vmem:[#allocation124_spill] sm:$0xff] %v6827_v34 }
 0x50c   : > { %v6829_v16 = vpop.f32.mrf.mxu1  ;;  %3453 = vmatpush.msra.mxu3 %v1396_v37  ;;  %v6843_v37 = vpop.f32.mrf.mxu2 }
 0x50d   : > { %8846 = vst [vmem:[#allocation125_spill] sm:$0xff] %v6843_v37 }
 0x50e   : > { %3454 = vmatpush.msra.mxu3 %v1393_v41  ;;  %v1691_v41 = vld [vmem:[%s8719_s2 + $0x578] sm:$0xff] }
 0x50f   : > { %v6840_v59 = vpop.f32.mrf.mxu0  ;;  %3137 = vmatmul.f32.gmra.mxu3 %v2061_v11  ;;  %3244 = vmatmul.f32.gmra.mxu1 %v1870_v27  ;;  %v1882_v11 = vld [vmem:[%s8719_s2 + $0xb70] sm:$0xff]  ;;  %v386_v27 = vld [vmem:[%s4646_s27 + $0x508] sm:$0xff] }
 0x510   : > { %3351 = vmatmul.f32.gmra.mxu2 %v1679_v13  ;;  %3455 = vmatpush.msra.mxu3 %v6755_v32 }
 0x512   : > { %4488 = vmatmul.msk.f32.gmra.mxu0 %vm408_vm1, %v385_v26  ;;  %v6847_v35 = vpop.f32.mrf.mxu3  ;;  %3456 = vmatpush.msra.mxu3 %v6738_v9 }
 0x513   : > { %8847 = vst [vmem:[#allocation126_spill] sm:$0xff] %v6847_v35 }
 0x514   : > { %v6850_v29 = vpop.f32.mrf.mxu1  ;;  %3457 = vmatpush.msra.mxu3 %v6719_v42  ;;  %v6864_v9 = vpop.f32.mrf.mxu2 }
 0x515   : > { %8848 = vst [vmem:[#allocation127_spill] sm:$0xff] %v6864_v9 }
 0x516   : > { %3458 = vmatpush.msra.mxu3 %v6699_v0  ;;  %v1894_v0 = vld [vmem:[%s8719_s2 + $0xbd0] sm:$0xff] }
 0x517   : > { %v6860_v32 = vpop.f32.mrf.mxu0  ;;  %3247 = vmatmul.f32.gmra.mxu1 %v1882_v11  ;;  %v387_v11 = vld [vmem:[%s4646_s27 + $0x510] sm:$0xff] }
 0x518   : > { %3354 = vmatmul.f32.gmra.mxu2 %v1691_v41  ;;  %3459 = vmatpush.msra.mxu3 %v6679_v55  ;;  %v1703_v55 = vld [vmem:[%s8719_s2 + $0x5d8] sm:$0xff] }
 0x51a   : > { %4489 = vmatmul.msk.f32.gmra.mxu0 %vm408_vm1, %v386_v27  ;;  %v6867_v42 = vpop.f32.mrf.mxu3  ;;  %3460 = vmatpush.msra.mxu3 %v6659_v25  ;;  %v1715_v27 = vld [vmem:[%s8719_s2 + $0x638] sm:$0xff] }
 0x51b   : > { %8849 = vst [vmem:[#allocation128_spill] sm:$0xff] %v6867_v42 }
 0x51c   : > { %v6870_v13 = vpop.f32.mrf.mxu1  ;;  %3461 = vmatpush.msra.mxu3 %v6639_v6  ;;  %v6888_v25 = vpop.f32.mrf.mxu2 }
 0x51d   : > { %8851 = vst [vmem:[#allocation130_spill] sm:$0xff] %v6888_v25  ;;  %v1918_v25 = vld [vmem:[%s8719_s2 + $0xc90] sm:$0xff] }
 0x51e   : > { %3462 = vmatpush.msra.mxu3 %v6619_v31  ;;  %v1906_v31 = vld [vmem:[%s8719_s2 + $0xc30] sm:$0xff] }
 0x51f   : > { %v6880_v26 = vpop.f32.mrf.mxu0  ;;  %3250 = vmatmul.f32.gmra.mxu1 %v1894_v0 }
 0x520   : > { %3357 = vmatmul.f32.gmra.mxu2 %v1703_v55  ;;  %3463 = vmatpush.msra.mxu3 %v6599_v24  ;;  %v1524_v24 = vld [vmem:[%s8719_s2 + $0x40] sm:$0xff] }
 0x522   : > { %4490 = vmatmul.msk.f32.gmra.mxu0 %vm408_vm1, %v387_v11  ;;  %v6885_v6 = vpop.f32.mrf.mxu3  ;;  %3464 = vmatpush.msra.mxu3 %v6575_v49 }
 0x523   : > { %8850 = vst [vmem:[#allocation129_spill] sm:$0xff] %v6885_v6 }
 0x524   : > { %v6890_v41 = vpop.f32.mrf.mxu1  ;;  %3465 = vmatpush.msra.mxu3 %v6554_v62  ;;  %v388_v62 = vld [vmem:[%s4646_s27 + $0x518] sm:$0xff] }
 0x526   : > { %3466 = vmatpush.msra.mxu3 %v6533_v56  ;;  %v1536_v56 = vld [vmem:[%s8719_s2 + $0xa0] sm:$0xff] }
 0x527   : > { %v6903_v49 = vpop.f32.mrf.mxu0  ;;  %3253 = vmatmul.f32.gmra.mxu1 %v1906_v31  ;;  %3467 = vmatmul.f32.vlgmr.msra.gmra.mxu3 %v1524_v24  ;;  %v1727_v31 = vld [vmem:[%s8719_s2 + $0x698] sm:$0xff] }
 0x528   : > { %3360 = vmatmul.f32.gmra.mxu2 %v1715_v27  ;;  %v389_v27 = vld [vmem:[%s4646_s27 + $0x520] sm:$0xff] }
 0x52a   : > { %4491 = vmatmul.msk.f32.gmra.mxu0 %vm408_vm1, %v388_v62  ;;  %v6907_v0 = vpop.f32.mrf.mxu3  ;;  %v3162_v62 = vadd.f32 %v6608_v33, %v6302_v23  ;;  %v1739_v23 = vld [vmem:[%s8719_s2 + $0x6f8] sm:$0xff] }
 0x52b   : > { %8852 = vst [vmem:[#allocation131_spill] sm:$0xff] %v6907_v0  ;;  %v6909_v55 = vpop.f32.mrf.mxu2 }
 0x52c   : > { %v6911_v11 = vpop.f32.mrf.mxu1 }
 0x52f   : > { %v6922_v24 = vpop.f32.mrf.mxu0  ;;  %3256 = vmatmul.f32.gmra.mxu1 %v1918_v25  ;;  %3470 = vmatmul.f32.gmra.mxu3 %v1536_v56  ;;  %v1930_v25 = vld [vmem:[%s8719_s2 + $0xcf0] sm:$0xff]  ;;  %v1548_v56 = vld [vmem:[%s8719_s2 + $0x100] sm:$0xff] }
 0x530   : > { %3363 = vmatmul.f32.gmra.mxu2 %v1727_v31  ;;  %v3165_v31 = vadd.f32 %v6628_v51, %v6324_v10  ;;  %v1751_v10 = vld [vmem:[%s8719_s2 + $0x758] sm:$0xff] }
 0x532   : > { %4492 = vmatmul.msk.f32.gmra.mxu0 %vm408_vm1, %v389_v27  ;;  %v6928_v9 = vpop.f32.mrf.mxu3 }
 0x533   : > { %8853 = vst [vmem:[#allocation132_spill] sm:$0xff] %v6928_v9  ;;  %v3316_v37 = vpop.f32.mrf.mxu2 }
 0x534   : > { %v6930_v14 = vadd.f32 %v3316_v37, %v3162_v62  ;;  %v6932_v0 = vpop.f32.mrf.mxu1  ;;  %v390_v37 = vld [vmem:[%s4646_s27 + $0x528] sm:$0xff] }
 0x537   : > { %v6943_v33 = vpop.f32.mrf.mxu0  ;;  %3259 = vmatmul.f32.gmra.mxu1 %v1930_v25  ;;  %3473 = vmatmul.f32.gmra.mxu3 %v1548_v56  ;;  %v1942_v25 = vld [vmem:[%s8719_s2 + $0xd50] sm:$0xff]  ;;  %v1560_v56 = vld [vmem:[%s8719_s2 + $0x160] sm:$0xff] }
 0x538   : > { %3366 = vmatmul.f32.gmra.mxu2 %v1739_v23  ;;  %v391_v23 = vld [vmem:[%s4646_s27 + $0x530] sm:$0xff] }
 0x53a   : > { %4493 = vmatmul.msk.f32.gmra.mxu0 %vm408_vm1, %v390_v37  ;;  %v6949_v27 = vpop.f32.mrf.mxu3  ;;  %v3168_v37 = vadd.f32 %v6648_v8, %v6346_v47  ;;  %v1763_v47 = vld [vmem:[%s8719_s2 + $0x7b8] sm:$0xff] }
 0x53b   : > { %8854 = vst [vmem:[#allocation133_spill] sm:$0xff] %v6949_v27  ;;  %v3319_v62 = vpop.f32.mrf.mxu2 }
 0x53c   : > { %v6951_v9 = vadd.f32 %v3319_v62, %v3165_v31  ;;  %v6953_v6 = vpop.f32.mrf.mxu1 }
 0x53f   : > { %v6964_v51 = vpop.f32.mrf.mxu0  ;;  %3262 = vmatmul.f32.gmra.mxu1 %v1942_v25  ;;  %3476 = vmatmul.f32.gmra.mxu3 %v1560_v56  ;;  %v1954_v25 = vld [vmem:[%s8719_s2 + $0xdb0] sm:$0xff]  ;;  %v1572_v56 = vld [vmem:[%s8719_s2 + $0x1c0] sm:$0xff] }
 0x540   : > { %3369 = vmatmul.f32.gmra.mxu2 %v1751_v10  ;;  %v392_v10 = vld [vmem:[%s4646_s27 + $0x538] sm:$0xff] }
 0x542   : > { %4494 = vmatmul.msk.f32.gmra.mxu0 %vm408_vm1, %v391_v23  ;;  %v6970_v31 = vpop.f32.mrf.mxu3  ;;  %v3171_v23 = vadd.f32 %v6668_v54, %v6368_v40  ;;  %v1775_v40 = vld [vmem:[%s8719_s2 + $0x818] sm:$0xff] }
 0x543   : > { %8855 = vst [vmem:[#allocation134_spill] sm:$0xff] %v6970_v31  ;;  %v3322_v62 = vpop.f32.mrf.mxu2 }
 0x544   : > { %v6972_v27 = vadd.f32 %v3322_v62, %v3168_v37  ;;  %v6974_v42 = vpop.f32.mrf.mxu1 }
 0x547   : > { %v6985_v8 = vpop.f32.mrf.mxu0  ;;  %3265 = vmatmul.f32.gmra.mxu1 %v1954_v25  ;;  %3479 = vmatmul.f32.gmra.mxu3 %v1572_v56  ;;  %v1966_v25 = vld [vmem:[%s8719_s2 + $0xe10] sm:$0xff]  ;;  %v1584_v56 = vld [vmem:[%s8719_s2 + $0x220] sm:$0xff] }
 0x548   : > { %3372 = vmatmul.f32.gmra.mxu2 %v1763_v47  ;;  %v393_v47 = vld [vmem:[%s4646_s27 + $0x540] sm:$0xff] }
 0x54a   : > { %4495 = vmatmul.msk.f32.gmra.mxu0 %vm408_vm1, %v392_v10  ;;  %v6991_v37 = vpop.f32.mrf.mxu3  ;;  %v3174_v10 = vadd.f32 %v6688_v44, %v6390_v38  ;;  %v1787_v44 = vld [vmem:[%s8719_s2 + $0x878] sm:$0xff] }
 0x54b   : > { %8856 = vst [vmem:[#allocation135_spill] sm:$0xff] %v6991_v37  ;;  %v3325_v62 = vpop.f32.mrf.mxu2 }
 0x54c   : > { %v6993_v31 = vadd.f32 %v3325_v62, %v3171_v23  ;;  %v6995_v35 = vpop.f32.mrf.mxu1 }
 0x54f   : > { %v7006_v54 = vpop.f32.mrf.mxu0  ;;  %3268 = vmatmul.f32.gmra.mxu1 %v1966_v25  ;;  %3482 = vmatmul.f32.gmra.mxu3 %v1584_v56  ;;  %v1978_v25 = vld [vmem:[%s8719_s2 + $0xe70] sm:$0xff]  ;;  %v1596_v56 = vld [vmem:[%s8719_s2 + $0x280] sm:$0xff] }
 0x550   : > { %3375 = vmatmul.f32.gmra.mxu2 %v1775_v40  ;;  %v394_v40 = vld [vmem:[%s4646_s27 + $0x548] sm:$0xff] }
 0x552   : > { %4496 = vmatmul.msk.f32.gmra.mxu0 %vm408_vm1, %v393_v47  ;;  %v7012_v23 = vpop.f32.mrf.mxu3  ;;  %v3177_v47 = vadd.f32 %v6708_v61, %v6410_v30  ;;  %v1799_v61 = vld [vmem:[%s8719_s2 + $0x8d8] sm:$0xff] }
 0x553   : > { %8857 = vst [vmem:[#allocation136_spill] sm:$0xff] %v7012_v23  ;;  %v3328_v62 = vpop.f32.mrf.mxu2 }
 0x554   : > { %v7014_v37 = vadd.f32 %v3328_v62, %v3174_v10  ;;  %v7016_v34 = vpop.f32.mrf.mxu1 }
 0x555   : > { %8858 = vst [vmem:[#allocation137_spill] sm:$0xff] %v7016_v34 }
 0x557   : > { %v7027_v38 = vpop.f32.mrf.mxu0  ;;  %3271 = vmatmul.f32.gmra.mxu1 %v1978_v25  ;;  %3485 = vmatmul.f32.gmra.mxu3 %v1596_v56  ;;  %v1990_v25 = vld [vmem:[%s8719_s2 + $0xed0] sm:$0xff]  ;;  %v1608_v56 = vld [vmem:[%s8719_s2 + $0x2e0] sm:$0xff] }
 0x558   : > { %3378 = vmatmul.f32.gmra.mxu2 %v1787_v44  ;;  %v395_v44 = vld [vmem:[%s4646_s27 + $0x550] sm:$0xff] }
 0x55a   : > { %4497 = vmatmul.msk.f32.gmra.mxu0 %vm408_vm1, %v394_v40  ;;  %v7033_v62 = vpop.f32.mrf.mxu3  ;;  %v3180_v40 = vadd.f32 %v6725_v48, %v6430_v39 }
 0x55b   : > { %v3331_v10 = vpop.f32.mrf.mxu2  ;;  %8859 = vst [vmem:[#allocation138_spill] sm:$0xff] %v7033_v62 }
 0x55c   : > { %v7035_v23 = vadd.f32 %v3331_v10, %v3177_v47  ;;  %v7037_v34 = vpop.f32.mrf.mxu1 }
 0x55d   : > { %8860 = vst [vmem:[#allocation139_spill] sm:$0xff] %v7037_v34  ;;  %v2002_v34 = vld [vmem:[%s8719_s2 + $0xf30] sm:$0xff] }
 0x55f   : > { %v7048_v30 = vpop.f32.mrf.mxu0  ;;  %3274 = vmatmul.f32.gmra.mxu1 %v1990_v25  ;;  %3488 = vmatmul.f32.gmra.mxu3 %v1608_v56  ;;  %v1620_v25 = vld [vmem:[%s8719_s2 + $0x340] sm:$0xff]  ;;  %v1811_v56 = vld [vmem:[%s8719_s2 + $0x938] sm:$0xff] }
 0x560   : > { %3381 = vmatmul.f32.gmra.mxu2 %v1799_v61  ;;  %v396_v61 = vld [vmem:[%s4646_s27 + $0x558] sm:$0xff] }
 0x562   : > { %4498 = vmatmul.msk.f32.gmra.mxu0 %vm408_vm1, %v395_v44  ;;  %v7067_v39 = vpop.f32.mrf.mxu3  ;;  %v3183_v44 = vadd.f32 %v6744_v53, %v6450_v15  ;;  %v397_v15 = vld [vmem:[%s4646_s27 + $0x560] sm:$0xff] }
 0x563   : > { %v3334_v47 = vpop.f32.mrf.mxu2  ;;  %8862 = vst [vmem:[#allocation141_spill] sm:$0xff] %v7067_v39  ;;  %v1632_v39 = vld [vmem:[%s8719_s2 + $0x3a0] sm:$0xff] }
 0x564   : > { %v7054_v10 = vadd.f32 %v3334_v47, %v3180_v40  ;;  %v7056_v62 = vpop.f32.mrf.mxu1 }
 0x565   : > { %8861 = vst [vmem:[#allocation140_spill] sm:$0xff] %v7056_v62  ;;  %v2014_v62 = vld [vmem:[%s8719_s2 + $0xf90] sm:$0xff] }
 0x567   : > { %v7069_v48 = vpop.f32.mrf.mxu0  ;;  %3277 = vmatmul.f32.gmra.mxu1 %v2002_v34  ;;  %3491 = vmatmul.f32.gmra.mxu3 %v1620_v25  ;;  %v1823_v34 = vld [vmem:[%s8719_s2 + $0x998] sm:$0xff] }
 0x568   : > { %3384 = vmatmul.f32.gmra.mxu2 %v1811_v56 }
 0x56a   : > { %4499 = vmatmul.msk.f32.gmra.mxu0 %vm408_vm1, %v396_v61  ;;  %v7089_v56 = vpop.f32.mrf.mxu3  ;;  %v3186_v61 = vadd.f32 %v6763_v63, %v6466_v52  ;;  %v398_v63 = vld [vmem:[%s4646_s27 + $0x568] sm:$0xff] }
 0x56b   : > { %v3337_v40 = vpop.f32.mrf.mxu2  ;;  %8864 = vst [vmem:[#allocation143_spill] sm:$0xff] %v7089_v56 }
 0x56c   : > { %v7075_v47 = vadd.f32 %v3337_v40, %v3183_v44  ;;  %v7086_v25 = vpop.f32.mrf.mxu1 }
 0x56d   : > { %8863 = vst [vmem:[#allocation142_spill] sm:$0xff] %v7086_v25  ;;  %v2026_v25 = vld [vmem:[%s8719_s2 + $0xff0] sm:$0xff] }
 0x56f   : > { %v1441_v53 = vpop.f32.mrf.mxu0  ;;  %3280 = vmatmul.f32.gmra.mxu1 %v2014_v62  ;;  %3494 = vmatmul.f32.gmra.mxu3 %v1632_v39  ;;  %v1644_v62 = vld [vmem:[%s8719_s2 + $0x400] sm:$0xff]  ;;  %v1835_v39 = vld [vmem:[%s8719_s2 + $0x9f8] sm:$0xff] }
 0x570   : > { %3387 = vmatmul.f32.gmra.mxu2 %v1823_v34 }
 0x572   : > { %4500 = vmatmul.msk.f32.gmra.mxu0 %vm408_vm1, %v397_v15  ;;  %v3189_v15 = vadd.f32 %v6780_v4, %v6484_v2  ;;  %v399_v2 = vld [vmem:[%s4646_s27 + $0x570] sm:$0xff] }
 0x573   : > { %v3340_v44 = vpop.f32.mrf.mxu2 }
 0x574   : > { %v7094_v40 = vadd.f32 %v3340_v44, %v3186_v61  ;;  %v7106_v52 = vpop.f32.mrf.mxu1  ;;  %v7110_v61 = vpop.f32.mrf.mxu3 }
 0x575   : > { %8865 = vst [vmem:[#allocation144_spill] sm:$0xff] %v7106_v52 }
 0x576   : > { %8866 = vst [vmem:[#allocation145_spill] sm:$0xff] %v7110_v61 }
 0x577   : > { %v1444_v34 = vpop.f32.mrf.mxu0  ;;  %3283 = vmatmul.f32.gmra.mxu1 %v2026_v25  ;;  %3497 = vmatmul.f32.gmra.mxu3 %v1644_v62  ;;  %v2038_v25 = vld [vmem:[%s8719_s2 + $0x1050] sm:$0xff]  ;;  %v1656_v62 = vld [vmem:[%s8719_s2 + $0x460] sm:$0xff] }
 0x578   : > { %3390 = vmatmul.f32.gmra.mxu2 %v1835_v39  ;;  %v1847_v39 = vld [vmem:[%s8719_s2 + $0xa58] sm:$0xff] }
 0x57a   : > { %4501 = vmatmul.msk.f32.gmra.mxu0 %vm408_vm1, %v398_v63  ;;  %v3192_v63 = vadd.f32 %v6797_v18, %v6502_v46  ;;  %v1859_v46 = vld [vmem:[%s8719_s2 + $0xab8] sm:$0xff] }
 0x57b   : > { %v3343_v44 = vpop.f32.mrf.mxu2 }
 0x57c   : > { %v7113_v56 = vadd.f32 %v3343_v44, %v3189_v15  ;;  %v7127_v15 = vpop.f32.mrf.mxu1  ;;  %v7130_v61 = vpop.f32.mrf.mxu3 }
 0x57d   : > { %8867 = vst [vmem:[#allocation146_spill] sm:$0xff] %v7127_v15  ;;  %v1778_v15 = vld [vmem:[%s8719_s2 + $0x830] sm:$0xff] }
 0x57e   : > { %8868 = vst [vmem:[#allocation147_spill] sm:$0xff] %v7130_v61 }
 0x57f   : > { %v1447_v4 = vpop.f32.mrf.mxu0  ;;  %3286 = vmatmul.f32.gmra.mxu1 %v2038_v25  ;;  %3500 = vmatmul.f32.gmra.mxu3 %v1656_v62  ;;  %v2050_v25 = vld [vmem:[%s8719_s2 + $0x10b0] sm:$0xff]  ;;  %v1668_v62 = vld [vmem:[%s8719_s2 + $0x4c0] sm:$0xff] }
 0x580   : > { %3393 = vmatmul.f32.gmra.mxu2 %v1847_v39  ;;  %v400_v39 = vld [vmem:[%s4646_s27 + $0x578] sm:$0xff] }
 0x582   : > { %4502 = vmatmul.msk.f32.gmra.mxu0 %vm408_vm1, %v399_v2  ;;  %v3195_v2 = vadd.f32 %v6812_v12, %v6520_v20  ;;  %v1871_v20 = vld [vmem:[%s8719_s2 + $0xb18] sm:$0xff] }
 0x583   : > { %v3346_v44 = vpop.f32.mrf.mxu2 }
 0x584   : > { %v7132_v52 = vadd.f32 %v3346_v44, %v3192_v63  ;;  %v7147_v44 = vpop.f32.mrf.mxu1  ;;  %v7160_v12 = vpop.f32.mrf.mxu3 }
 0x585   : > { %8869 = vst [vmem:[#allocation148_spill] sm:$0xff] %v7147_v44 }
 0x586   : > { %8870 = vst [vmem:[#allocation149_spill] sm:$0xff] %v7160_v12 }
 0x587   : > { %v1450_v18 = vpop.f32.mrf.mxu0  ;;  %3289 = vmatmul.f32.gmra.mxu1 %v2050_v25  ;;  %3503 = vmatmul.f32.gmra.mxu3 %v1668_v62  ;;  %v2062_v25 = vld [vmem:[%s8719_s2 + $0x1110] sm:$0x1]  ;;  %v1680_v62 = vld [vmem:[%s8719_s2 + $0x520] sm:$0xff] }
 0x588   : > { %3396 = vmatmul.f32.gmra.mxu2 %v1859_v46  ;;  %3606 = vmatpush.msrb.mxu1 %v1450_v18  ;;  %v3198_v46 = vadd.f32 %v6829_v16, %v6542_v36  ;;  %v402_v36 = vld [vmem:[%s4646_s27 + $0x588] sm:$0xff] }
 0x58a   : > { %4503 = vmatmul.msk.f32.gmra.mxu0 %vm408_vm1, %v400_v39  ;;  %3607 = vmatpush.msrb.mxu1 %v1447_v4 }
 0x58b   : > { %v3349_v63 = vpop.f32.mrf.mxu2 }
 0x58c   : > { %v7149_v61 = vadd.f32 %v3349_v63, %v3195_v2  ;;  %3608 = vmatpush.msrb.mxu1 %v1444_v34  ;;  %v401_v34 = vld [vmem:[%s4646_s27 + $0x580] sm:$0xff]  ;;  %v7179_v2 = vpop.f32.mrf.mxu1 }
 0x58d   : > { %8871 = vst [vmem:[#allocation150_spill] sm:$0xff] %v7179_v2  ;;  %v1909_v2 = vld [vmem:[%s8719_s2 + $0xc48] sm:$0xff] }
 0x58e   : > { %3609 = vmatpush.msrb.mxu1 %v1441_v53  ;;  %v1692_v53 = vld [vmem:[%s8719_s2 + $0x580] sm:$0xff] }
 0x58f   : > { %v7162_v4 = vpop.f32.mrf.mxu0  ;;  %3292 = vmatmul.f32.gmra.mxu1 %v2062_v25  ;;  %3506 = vmatmul.f32.gmra.mxu3 %v1680_v62 }
 0x590   : > { %3399 = vmatmul.f32.gmra.mxu2 %v1871_v20  ;;  %3610 = vmatpush.msrb.mxu1 %v7069_v48  ;;  %v1883_v48 = vld [vmem:[%s8719_s2 + $0xb78] sm:$0xff] }
 0x592   : > { %4504 = vmatmul.msk.f32.gmra.mxu0 %vm408_vm1, %v401_v34  ;;  %3611 = vmatpush.msrb.mxu1 %v7048_v30  ;;  %v7185_v30 = vpop.f32.mrf.mxu3  ;;  %v1716_v34 = vld [vmem:[%s8719_s2 + $0x640] sm:$0xff] }
 0x593   : > { %v3352_v18 = vpop.f32.mrf.mxu2  ;;  %8872 = vst [vmem:[#allocation151_spill] sm:$0xff] %v7185_v30  ;;  %v1633_v30 = vld [vmem:[%s8719_s2 + $0x3a8] sm:$0xff] }
 0x594   : > { %v7170_v39 = vadd.f32 %v3352_v18, %v3198_v46  ;;  %3612 = vmatpush.msrb.mxu1 %v7027_v38  ;;  %v3201_v38 = vadd.f32 %v6850_v29, %v6561_v17  ;;  %v403_v29 = vld [vmem:[%s4646_s27 + $0x590] sm:$0xff] }
 0x596   : > { %3613 = vmatpush.msrb.mxu1 %v7006_v54  ;;  %v1704_v54 = vld [vmem:[%s8719_s2 + $0x5e0] sm:$0xff] }
 0x597   : > { %v7182_v16 = vpop.f32.mrf.mxu0  ;;  %3509 = vmatmul.f32.gmra.mxu3 %v1692_v53 }
 0x598   : > { %3402 = vmatmul.f32.gmra.mxu2 %v1883_v48  ;;  %3614 = vmatpush.msrb.mxu1 %v6985_v8  ;;  %v1895_v8 = vld [vmem:[%s8719_s2 + $0xbd8] sm:$0xff] }
 0x59a   : > { %4505 = vmatmul.msk.f32.gmra.mxu0 %vm408_vm1, %v402_v36  ;;  %3615 = vmatpush.msrb.mxu1 %v6964_v51  ;;  %v7205_v51 = vpop.f32.mrf.mxu1  ;;  %v7210_v62 = vpop.f32.mrf.mxu3  ;;  %v1537_v36 = vld [vmem:[%s8719_s2 + $0xa8] sm:$0xff] }
 0x59b   : > { %v3355_v63 = vpop.f32.mrf.mxu2  ;;  %8873 = vst [vmem:[#allocation152_spill] sm:$0xff] %v7205_v51 }
 0x59c   : > { %v7192_v25 = vadd.f32 %v3355_v63, %v3201_v38  ;;  %3616 = vmatpush.msrb.mxu1 %v6943_v33  ;;  %v3204_v33 = vadd.f32 %v6870_v13, %v6582_v60  ;;  %8874 = vst [vmem:[#allocation153_spill] sm:$0xff] %v7210_v62  ;;  %v1907_v60 = vld [vmem:[%s8719_s2 + $0xc38] sm:$0xff]  ;;  %v405_v38 = vld [vmem:[%s4646_s27 + $0x5a0] sm:$0xf]  ;;  %v3210_v63 = vadd.f32 %v6911_v11, %v6624_v43 }
 0x59d   : > { %v1931_v43 = vld [vmem:[%s8719_s2 + $0xcf8] sm:$0xff]  ;;  %v1824_v62 = vld [vmem:[%s8719_s2 + $0x9a0] sm:$0xff] }
 0x59e   : > { %3617 = vmatpush.msrb.mxu1 %v6922_v24 }
 0x59f   : > { %v7202_v17 = vpop.f32.mrf.mxu0  ;;  %3512 = vmatmul.f32.gmra.mxu3 %v1704_v54 }
 0x5a0   : > { %3405 = vmatmul.f32.gmra.mxu2 %v1895_v8  ;;  %3618 = vmatpush.msrb.mxu1 %v6903_v49  ;;  %v1525_v49 = vld [vmem:[%s8719_s2 + $0x48] sm:$0xff] }
 0x5a2   : > { %4506 = vmatmul.msk.f32.gmra.mxu0 %vm408_vm1, %v403_v29  ;;  %3619 = vmatpush.msrb.mxu1 %v6880_v26  ;;  %v3207_v26 = vadd.f32 %v6890_v41, %v6604_v1  ;;  %v7232_v46 = vpop.f32.mrf.mxu1  ;;  %v1919_v1 = vld [vmem:[%s8719_s2 + $0xc98] sm:$0xff] }
 0x5a3   : > { %v3358_v24 = vpop.f32.mrf.mxu2  ;;  %8875 = vst [vmem:[#allocation154_spill] sm:$0xff] %v7232_v46  ;;  %v2063_v46 = vld [vmem:[%s8719_s2 + $0x1118] sm:$0x1] }
 0x5a4   : > { %v7214_v20 = vadd.f32 %v3358_v24, %v3204_v33  ;;  %3620 = vmatpush.msrb.mxu1 %v6860_v32  ;;  %v404_v32 = vld [vmem:[%s4646_s27 + $0x598] sm:$0xff] }
 0x5a6   : > { %3621 = vmatpush.msrb.mxu1 %v6840_v59  ;;  %v1728_v59 = vld [vmem:[%s8719_s2 + $0x6a0] sm:$0xff] }
 0x5a7   : > { %v7227_v13 = vpop.f32.mrf.mxu0  ;;  %3515 = vmatmul.f32.gmra.mxu3 %v1716_v34  ;;  %3622 = vmatmul.f32.vlgmr.msrb.gmra.mxu1 %v1525_v49  ;;  %v1740_v34 = vld [vmem:[%s8719_s2 + $0x700] sm:$0xff]  ;;  %v1549_v49 = vld [vmem:[%s8719_s2 + $0x108] sm:$0xff] }
 0x5a8   : > { %3408 = vmatmul.f32.gmra.mxu2 %v1907_v60  ;;  %v3213_v60 = vadd.f32 %v6932_v0, %v6644_v19  ;;  %v1943_v19 = vld [vmem:[%s8719_s2 + $0xd58] sm:$0xff] }
 0x5aa   : > { %4507 = vmatmul.msk.f32.gmra.mxu0 %vm408_vm1, %v404_v32  ;;  %v7235_v18 = vpop.f32.mrf.mxu3  ;;  %v7257_v33 = vpop.f32.mrf.mxu1 }
 0x5ab   : > { %v3361_v53 = vpop.f32.mrf.mxu2  ;;  %8876 = vst [vmem:[#allocation155_spill] sm:$0xff] %v7257_v33  ;;  %v1669_v33 = vld [vmem:[%s8719_s2 + $0x4c8] sm:$0xff] }
 0x5ac   : > { %v7237_v48 = vadd.f32 %v3361_v53, %v3207_v26 }
 0x5af   : > { %v7248_v41 = vpop.f32.mrf.mxu0  ;;  %3518 = vmatmul.f32.gmra.mxu3 %v1728_v59  ;;  %3625 = vmatmul.f32.gmra.mxu1 %v1537_v36  ;;  %v1752_v36 = vld [vmem:[%s8719_s2 + $0x760] sm:$0xff] }
 0x5b0   : > { %3411 = vmatmul.f32.gmra.mxu2 %v1919_v1  ;;  %v1561_v1 = vld [vmem:[%s8719_s2 + $0x168] sm:$0xff] }
 0x5b2   : > { %4508 = vmatmul.msk.f32.gmra.mxu0 %vm408_vm1, %v405_v38  ;;  %v3471_v54 = vpop.f32.mrf.mxu3  ;;  %v7291_v0 = vpop.f32.mrf.mxu1 }
 0x5b3   : > { %v3364_v8 = vpop.f32.mrf.mxu2  ;;  %v7255_v29 = vadd.f32 %v3471_v54, %v6930_v14  ;;  %v1516_v14 = vld [vmem:[%s8719_s2] sm:$0xff]  ;;  %8877 = vst [vmem:[#allocation156_spill] sm:$0xff] %v7291_v0 }
 0x5b4   : > { %v7259_v24 = vadd.f32 %v3364_v8, %v3210_v63  ;;  %v1860_v0 = vld [vmem:[%s8719_s2 + $0xac0] sm:$0xff] }
 0x5b7   : > { %v7270_v11 = vpop.f32.mrf.mxu0  ;;  %3521 = vmatmul.f32.gmra.mxu3 %v1740_v34  ;;  %3628 = vmatmul.f32.gmra.mxu1 %v1549_v49  ;;  %v1764_v49 = vld [vmem:[%s8719_s2 + $0x7c0] sm:$0xff] }
 0x5b8   : > { %3414 = vmatmul.f32.gmra.mxu2 %v1931_v43  ;;  %v1573_v43 = vld [vmem:[%s8719_s2 + $0x1c8] sm:$0xff] }
 0x5ba   : > { %2227 = vmatmul.f32.vlgmr.msrb.gmra.mxu0 %v1516_v14  ;;  %v3474_v32 = vpop.f32.mrf.mxu3  ;;  %v1955_v14 = vld [vmem:[%s8719_s2 + $0xdb8] sm:$0xff] }
 0x5bb   : > { %v3367_v26 = vpop.f32.mrf.mxu2  ;;  %v7278_v53 = vadd.f32 %v3474_v32, %v6951_v9  ;;  %v3216_v9 = vadd.f32 %v6953_v6, %v6664_v58  ;;  %v7313_v6 = vpop.f32.mrf.mxu1 }
 0x5bc   : > { %v7280_v59 = vadd.f32 %v3367_v26, %v3213_v60  ;;  %8878 = vst [vmem:[#allocation157_spill] sm:$0xff] %v7313_v6  ;;  %v1657_v6 = vld [vmem:[%s8719_s2 + $0x468] sm:$0xff] }
 0x5bf   : > { %v7293_v38 = vpop.f32.mrf.mxu0  ;;  %3524 = vmatmul.f32.gmra.mxu3 %v1752_v36  ;;  %3631 = vmatmul.f32.gmra.mxu1 %v1561_v1  ;;  %v1776_v1 = vld [vmem:[%s8719_s2 + $0x820] sm:$0xff] }
 0x5c0   : > { %3417 = vmatmul.f32.gmra.mxu2 %v1943_v19  ;;  %v1585_v19 = vld [vmem:[%s8719_s2 + $0x228] sm:$0xff] }
 0x5c2   : > { %v3477_v63 = vpop.f32.mrf.mxu3 }
 0x5c3   : > { %v3370_v54 = vpop.f32.mrf.mxu2  ;;  %v7298_v8 = vadd.f32 %v3477_v63, %v6972_v27  ;;  %v3219_v27 = vadd.f32 %v6974_v42, %v6684_v21  ;;  %v3222_v42 = vadd.f32 %v6995_v35, %v6704_v22  ;;  %v1979_v22 = vld [vmem:[%s8719_s2 + $0xe78] sm:$0xff] }
 0x5c4   : > { %v7300_v34 = vadd.f32 %v3370_v54, %v3216_v9  ;;  %v1967_v9 = vld [vmem:[%s8719_s2 + $0xe18] sm:$0xff] }
 0x5c7   : > { %v7311_v58 = vpop.f32.mrf.mxu0  ;;  %3527 = vmatmul.f32.gmra.mxu3 %v1764_v49  ;;  %3634 = vmatmul.f32.gmra.mxu1 %v1573_v43 }
 0x5c8   : > { %3420 = vmatmul.f32.gmra.mxu2 %v1955_v14  ;;  %v1788_v14 = vld [vmem:[%s8719_s2 + $0x880] sm:$0xff] }
 0x5ca   : > { %v3480_v60 = vpop.f32.mrf.mxu3 }
 0x5cb   : > { %v3373_v32 = vpop.f32.mrf.mxu2  ;;  %v7318_v26 = vadd.f32 %v3480_v60, %v6993_v31  ;;  %v7335_v31 = vpop.f32.mrf.mxu1 }
 0x5cc   : > { %v7320_v36 = vadd.f32 %v3373_v32, %v3219_v27  ;;  %8879 = vst [vmem:[#allocation158_spill] sm:$0xff] %v7335_v31  ;;  %v1597_v27 = vld [vmem:[%s8719_s2 + $0x288] sm:$0xff]  ;;  %v1848_v31 = vld [vmem:[%s8719_s2 + $0xa60] sm:$0xff] }
 0x5cf   : > { %v7331_v21 = vpop.f32.mrf.mxu0  ;;  %3530 = vmatmul.f32.gmra.mxu3 %v1776_v1  ;;  %3637 = vmatmul.f32.gmra.mxu1 %v1585_v19  ;;  %v1800_v19 = vld [vmem:[%s8719_s2 + $0x8e0] sm:$0xff] }
 0x5d0   : > { %3423 = vmatmul.f32.gmra.mxu2 %v1967_v9  ;;  %v1609_v9 = vld [vmem:[%s8719_s2 + $0x2e8] sm:$0xff] }
 0x5d2   : > { %v3483_v63 = vpop.f32.mrf.mxu3 }
 0x5d3   : > { %v3376_v54 = vpop.f32.mrf.mxu2  ;;  %v7338_v49 = vadd.f32 %v3483_v63, %v7014_v37  ;;  %v7358_v1 = vpop.f32.mrf.mxu1 }
 0x5d4   : > { %v7340_v43 = vadd.f32 %v3376_v54, %v3222_v42  ;;  %8881 = vst [vmem:[#allocation160_spill] sm:$0xff] %v7358_v1  ;;  %v1991_v42 = vld [vmem:[%s8719_s2 + $0xed8] sm:$0xff]  ;;  %v1645_v1 = vld [vmem:[%s8719_s2 + $0x408] sm:$0xff] }
 0x5d7   : > { %v7351_v35 = vpop.f32.mrf.mxu0  ;;  %3533 = vmatmul.f32.gmra.mxu3 %v1788_v14  ;;  %3640 = vmatmul.f32.gmra.mxu1 %v1597_v27  ;;  %v1812_v27 = vld [vmem:[%s8719_s2 + $0x940] sm:$0xff] }
 0x5d8   : > { %3426 = vmatmul.f32.gmra.mxu2 %v1979_v22  ;;  %v1621_v22 = vld [vmem:[%s8719_s2 + $0x348] sm:$0xff] }
 0x5da   : > { %v3486_v37 = vpop.f32.mrf.mxu3 }
 0x5db   : > { %v7353_v60 = vpop.f32.mrf.mxu2  ;;  %v7356_v32 = vadd.f32 %v3486_v37, %v7035_v23  ;;  %v2003_v37 = vld [vmem:[%s8719_s2 + $0xf38] sm:$0xff] }
 0x5dc   : > { %8880 = vst [vmem:[#allocation159_spill] sm:$0xff] %v7353_v60 }
 0x5df   : > { %v7369_v63 = vpop.f32.mrf.mxu0  ;;  %3536 = vmatmul.f32.gmra.mxu3 %v1800_v19  ;;  %3643 = vmatmul.f32.gmra.mxu1 %v1609_v9  ;;  %v7385_v19 = vpop.f32.mrf.mxu1 }
 0x5e0   : > { %3429 = vmatmul.f32.gmra.mxu2 %v1991_v42  ;;  %8883 = vst [vmem:[#allocation162_spill] sm:$0xff] %v7385_v19  ;;  %v1836_v19 = vld [vmem:[%s8719_s2 + $0xa00] sm:$0xff] }
 0x5e2   : > { %v3489_v23 = vpop.f32.mrf.mxu3 }
 0x5e3   : > { %v7371_v54 = vpop.f32.mrf.mxu2  ;;  %v7374_v14 = vadd.f32 %v3489_v23, %v7054_v10 }
 0x5e4   : > { %8882 = vst [vmem:[#allocation161_spill] sm:$0xff] %v7371_v54  ;;  %v2029_v54 = vld [vmem:[%s8719_s2 + $0x1008] sm:$0xff] }
 0x5e7   : > { %v1486_v9 = vpop.f32.mrf.mxu0  ;;  %3539 = vmatmul.f32.gmra.mxu3 %v1812_v27  ;;  %3646 = vmatmul.f32.gmra.mxu1 %v1621_v22  ;;  %v2015_v27 = vld [vmem:[%s8719_s2 + $0xf98] sm:$0xff] }
 0x5e8   : > { %3432 = vmatmul.f32.gmra.mxu2 %v2003_v37  ;;  %v7401_v37 = vpop.f32.mrf.mxu1 }
 0x5e9   : > { %8885 = vst [vmem:[#allocation164_spill] sm:$0xff] %v7401_v37 }
 0x5ea   : > { %v3492_v10 = vpop.f32.mrf.mxu3 }
 0x5eb   : > { %v7387_v42 = vpop.f32.mrf.mxu2  ;;  %v7390_v23 = vadd.f32 %v3492_v10, %v7075_v47 }
 0x5ec   : > { %8884 = vst [vmem:[#allocation163_spill] sm:$0xff] %v7387_v42  ;;  %v1826_v42 = vld [vmem:[%s8719_s2 + $0x9b0] sm:$0xff] }
 0x5ef   : > { %v1489_v22 = vpop.f32.mrf.mxu0  ;;  %3542 = vmatmul.f32.gmra.mxu3 %v1824_v62  ;;  %3649 = vmatmul.f32.gmra.mxu1 %v1633_v30  ;;  %v2027_v30 = vld [vmem:[%s8719_s2 + $0xff8] sm:$0xff] }
 0x5f0   : > { %3435 = vmatmul.f32.gmra.mxu2 %v2015_v27  ;;  %v7417_v27 = vpop.f32.mrf.mxu1 }
 0x5f1   : > { %8887 = vst [vmem:[#allocation166_spill] sm:$0xff] %v7417_v27 }
 0x5f2   : > { %v3495_v47 = vpop.f32.mrf.mxu3 }
 0x5f3   : > { %v7403_v10 = vpop.f32.mrf.mxu2  ;;  %v7406_v12 = vadd.f32 %v3495_v47, %v7094_v40 }
 0x5f4   : > { %8886 = vst [vmem:[#allocation165_spill] sm:$0xff] %v7403_v10 }
 0x5f7   : > { %v1492_v62 = vpop.f32.mrf.mxu0  ;;  %3545 = vmatmul.f32.gmra.mxu3 %v1836_v19  ;;  %3652 = vmatmul.f32.gmra.mxu1 %v1645_v1  ;;  %v2039_v1 = vld [vmem:[%s8719_s2 + $0x1058] sm:$0xff] }
 0x5f8   : > { %3438 = vmatmul.f32.gmra.mxu2 %v2027_v30 }
 0x5fa   : > { %v3498_v40 = vpop.f32.mrf.mxu3 }
 0x5fb   : > { %v7419_v47 = vpop.f32.mrf.mxu2  ;;  %v7422_v37 = vadd.f32 %v3498_v40, %v7113_v56  ;;  %v7438_v40 = vpop.f32.mrf.mxu1 }
 0x5fc   : > { %8888 = vst [vmem:[#allocation167_spill] sm:$0xff] %v7419_v47  ;;  %v1993_v47 = vld [vmem:[%s8719_s2 + $0xee8] sm:$0xff] }
 0x5fd   : > { %8890 = vst [vmem:[#allocation169_spill] sm:$0xff] %v7438_v40  ;;  %v1872_v40 = vld [vmem:[%s8719_s2 + $0xb20] sm:$0xff] }
 0x5ff   : > { %v1495_v19 = vpop.f32.mrf.mxu0  ;;  %3548 = vmatmul.f32.gmra.mxu3 %v1848_v31  ;;  %3655 = vmatmul.f32.gmra.mxu1 %v1657_v6  ;;  %v2051_v6 = vld [vmem:[%s8719_s2 + $0x10b8] sm:$0xff] }
 0x600   : > { %3441 = vmatmul.f32.gmra.mxu2 %v2039_v1 }
 0x602   : > { %v3501_v30 = vpop.f32.mrf.mxu3 }
 0x603   : > { %v7433_v27 = vpop.f32.mrf.mxu2  ;;  %v7436_v56 = vadd.f32 %v3501_v30, %v7132_v52 }
 0x604   : > { %8889 = vst [vmem:[#allocation168_spill] sm:$0xff] %v7433_v27 }
 0x607   : > { %v1498_v31 = vpop.f32.mrf.mxu0  ;;  %3551 = vmatmul.f32.gmra.mxu3 %v1860_v0  ;;  %3658 = vmatmul.f32.gmra.mxu1 %v1669_v33  ;;  %v1681_v33 = vld [vmem:[%s8719_s2 + $0x528] sm:$0xff]  ;;  %v7463_v0 = vpop.f32.mrf.mxu1 }
 0x608   : > { %3444 = vmatmul.f32.gmra.mxu2 %v2051_v6  ;;  %8892 = vst [vmem:[#allocation171_spill] sm:$0xff] %v7463_v0  ;;  %v1634_v0 = vld [vmem:[%s8719_s2 + $0x3b0] sm:$0xff] }
 0x609   : > { %3761 = vmatpush.msrb.mxu2 %v1498_v31  ;;  %v1884_v31 = vld [vmem:[%s8719_s2 + $0xb80] sm:$0xff] }
 0x60a   : > { %v3504_v52 = vpop.f32.mrf.mxu3 }
 0x60b   : > { %v7449_v1 = vpop.f32.mrf.mxu2  ;;  %v7452_v30 = vadd.f32 %v3504_v52, %v7149_v61  ;;  %3762 = vmatpush.msrb.mxu2 %v1495_v19 }
 0x60c   : > { %8891 = vst [vmem:[#allocation170_spill] sm:$0xff] %v7449_v1  ;;  %v1742_v1 = vld [vmem:[%s8719_s2 + $0x710] sm:$0xff] }
 0x60d   : > { %3763 = vmatpush.msrb.mxu2 %v1492_v62 }
 0x60f   : > { %3764 = vmatpush.msrb.mxu2 %v1489_v22  ;;  %v7465_v6 = vpop.f32.mrf.mxu0  ;;  %3554 = vmatmul.f32.gmra.mxu3 %v1872_v40 }
 0x610   : > { %3447 = vmatmul.f32.gmra.mxu2 %v2063_v46  ;;  %3661 = vmatmul.f32.gmra.mxu1 %v1681_v33  ;;  %v1693_v46 = vld [vmem:[%s8719_s2 + $0x588] sm:$0xff] }
 0x611   : > { %3765 = vmatpush.msrb.mxu2 %v1486_v9 }
 0x612   : > { %v3507_v61 = vpop.f32.mrf.mxu3 }
 0x613   : > { %v7468_v62 = vadd.f32 %v3507_v61, %v7170_v39  ;;  %3766 = vmatpush.msrb.mxu2 %v7369_v63  ;;  %v7471_v19 = vpop.f32.mrf.mxu2  ;;  %v7481_v39 = vpop.f32.mrf.mxu1 }
 0x614   : > { %8893 = vst [vmem:[#allocation172_spill] sm:$0xff] %v7471_v19 }
 0x615   : > { %3767 = vmatpush.msrb.mxu2 %v7351_v35  ;;  %8894 = vst [vmem:[#allocation173_spill] sm:$0xff] %v7481_v39  ;;  %v1896_v35 = vld [vmem:[%s8719_s2 + $0xbe0] sm:$0xff] }
 0x617   : > { %3768 = vmatpush.msrb.mxu2 %v7331_v21  ;;  %v1504_v9 = vpop.f32.mrf.mxu0  ;;  %3557 = vmatmul.f32.gmra.mxu3 %v1884_v31  ;;  %v1705_v21 = vld [vmem:[%s8719_s2 + $0x5e8] sm:$0xff]  ;;  %v1920_v31 = vld [vmem:[%s8719_s2 + $0xca0] sm:$0xff] }
 0x618   : > { %3664 = vmatmul.f32.gmra.mxu1 %v1693_v46  ;;  %v1538_v46 = vld [vmem:[%s8719_s2 + $0xb0] sm:$0xff] }
 0x619   : > { %3769 = vmatpush.msrb.mxu2 %v7311_v58 }
 0x61a   : > { %v3510_v63 = vpop.f32.mrf.mxu3 }
 0x61b   : > { %v7485_v22 = vadd.f32 %v3510_v63, %v7192_v25  ;;  %3770 = vmatpush.msrb.mxu2 %v7293_v38  ;;  %v7495_v40 = vpop.f32.mrf.mxu2  ;;  %v7499_v25 = vpop.f32.mrf.mxu1 }
 0x61c   : > { %8895 = vst [vmem:[#allocation174_spill] sm:$0xff] %v7495_v40  ;;  %v1682_v40 = vld [vmem:[%s8719_s2 + $0x530] sm:$0xff] }
 0x61d   : > { %3771 = vmatpush.msrb.mxu2 %v7270_v11  ;;  %8896 = vst [vmem:[#allocation175_spill] sm:$0xff] %v7499_v25  ;;  %v1908_v11 = vld [vmem:[%s8719_s2 + $0xc40] sm:$0xff]  ;;  %v1622_v25 = vld [vmem:[%s8719_s2 + $0x350] sm:$0xff] }
 0x61f   : > { %3772 = vmatpush.msrb.mxu2 %v7248_v41  ;;  %v1507_v58 = vpop.f32.mrf.mxu0  ;;  %3560 = vmatmul.f32.gmra.mxu3 %v1896_v35  ;;  %v1717_v41 = vld [vmem:[%s8719_s2 + $0x648] sm:$0xff] }
 0x620   : > { %3667 = vmatmul.f32.gmra.mxu1 %v1705_v21 }
 0x621   : > { %3773 = vmatpush.msrb.mxu2 %v7227_v13  ;;  %v1526_v13 = vld [vmem:[%s8719_s2 + $0x50] sm:$0xff] }
 0x622   : > { %v3513_v38 = vpop.f32.mrf.mxu3 }
 0x623   : > { %v7502_v52 = vadd.f32 %v3513_v38, %v7214_v20  ;;  %3774 = vmatpush.msrb.mxu2 %v7202_v17  ;;  %v7516_v33 = vpop.f32.mrf.mxu2  ;;  %v1932_v38 = vld [vmem:[%s8719_s2 + $0xd00] sm:$0xff] }
 0x624   : > { %8897 = vst [vmem:[#allocation176_spill] sm:$0xff] %v7516_v33  ;;  %v1873_v33 = vld [vmem:[%s8719_s2 + $0xb28] sm:$0xff] }
 0x625   : > { %3775 = vmatpush.msrb.mxu2 %v7182_v16  ;;  %v7521_v16 = vpop.f32.mrf.mxu1 }
 0x626   : > { %8898 = vst [vmem:[#allocation177_spill] sm:$0xff] %v7521_v16  ;;  %v1813_v16 = vld [vmem:[%s8719_s2 + $0x948] sm:$0xff] }
 0x627   : > { %3776 = vmatpush.msrb.mxu2 %v7162_v4  ;;  %v1510_v20 = vpop.f32.mrf.mxu0  ;;  %3563 = vmatmul.f32.gmra.mxu3 %v1908_v11  ;;  %v1729_v4 = vld [vmem:[%s8719_s2 + $0x6a8] sm:$0xff] }
 0x628   : > { %3670 = vmatmul.f32.gmra.mxu1 %v1717_v41  ;;  %3777 = vmatmul.f32.vlgmr.msrb.gmra.mxu2 %v1526_v13  ;;  %v1741_v11 = vld [vmem:[%s8719_s2 + $0x708] sm:$0xff]  ;;  %v1550_v41 = vld [vmem:[%s8719_s2 + $0x110] sm:$0xff] }
 0x62a   : > { %v3516_v17 = vpop.f32.mrf.mxu3 }
 0x62b   : > { %v7519_v61 = vadd.f32 %v3516_v17, %v7237_v48  ;;  %v7532_v48 = vpop.f32.mrf.mxu2 }
 0x62c   : > { %8899 = vst [vmem:[#allocation178_spill] sm:$0xff] %v7532_v48  ;;  %v1861_v48 = vld [vmem:[%s8719_s2 + $0xac8] sm:$0xff] }
 0x62d   : > { %v7546_v13 = vpop.f32.mrf.mxu1 }
 0x62e   : > { %8900 = vst [vmem:[#allocation179_spill] sm:$0xff] %v7546_v13  ;;  %v2004_v13 = vld [vmem:[%s8719_s2 + $0xf40] sm:$0xff] }
 0x62f   : > { %3566 = vmatmul.f32.gmra.mxu3 %v1920_v31  ;;  %v1513_v63 = vpop.f32.mrf.mxu0  ;;  %v1944_v31 = vld [vmem:[%s8719_s2 + $0xd60] sm:$0xff] }
 0x630   : > { %3673 = vmatmul.f32.gmra.mxu1 %v1729_v4  ;;  %3780 = vmatmul.f32.gmra.mxu2 %v1538_v46  ;;  %v1956_v46 = vld [vmem:[%s8719_s2 + $0xdc0] sm:$0xff] }
 0x631   : > { %4509 = vmatpush.msk.msrb.mxu3 %vm2207_vm2, %v1513_v63  ;;  %v1765_v63 = vld [vmem:[%s8719_s2 + $0x7c8] sm:$0xff] }
 0x632   : > { %v3519_v35 = vpop.f32.mrf.mxu3 }
 0x633   : > { %v7535_v21 = vadd.f32 %v3519_v35, %v7259_v24  ;;  %3928 = vmatpush.msrb.mxu3 %v1510_v20  ;;  %v7552_v17 = vpop.f32.mrf.mxu2  ;;  %v1574_v35 = vld [vmem:[%s8719_s2 + $0x1d0] sm:$0xff] }
 0x634   : > { %8901 = vst [vmem:[#allocation180_spill] sm:$0xff] %v7552_v17  ;;  %v2052_v17 = vld [vmem:[%s8719_s2 + $0x10c0] sm:$0xff] }
 0x635   : > { %3929 = vmatpush.msrb.mxu3 %v1507_v58  ;;  %v1753_v58 = vld [vmem:[%s8719_s2 + $0x768] sm:$0xff]  ;;  %v7563_v4 = vpop.f32.mrf.mxu1 }
 0x637   : > { %3569 = vmatmul.f32.gmra.mxu3 %v1932_v38 }
 0x638   : > { %3676 = vmatmul.f32.gmra.mxu1 %v1741_v11  ;;  %3783 = vmatmul.f32.gmra.mxu2 %v1550_v41 }
 0x639   : > { %3930 = vmatpush.msrb.mxu3 %v1504_v9  ;;  %v1562_v9 = vld [vmem:[%s8719_s2 + $0x170] sm:$0xff] }
 0x63a   : > { %v3522_v24 = vpop.f32.mrf.mxu3 }
 0x63b   : > { %v7549_v20 = vadd.f32 %v3522_v24, %v7280_v59  ;;  %3931 = vmatpush.msrb.mxu3 %v7465_v6  ;;  %v7577_v38 = vpop.f32.mrf.mxu2  ;;  %v1968_v24 = vld [vmem:[%s8719_s2 + $0xe20] sm:$0xff] }
 0x63c   : > { %8902 = vst [vmem:[#allocation181_spill] sm:$0xff] %v7577_v38  ;;  %v1849_v38 = vld [vmem:[%s8719_s2 + $0xa68] sm:$0xff] }
 0x63d   : > { %v7579_v11 = vpop.f32.mrf.mxu1 }
 0x63f   : > { %3572 = vmatmul.f32.gmra.mxu3 %v1944_v31  ;;  %v1777_v31 = vld [vmem:[%s8719_s2 + $0x828] sm:$0xff] }
 0x640   : > { %3679 = vmatmul.f32.gmra.mxu1 %v1753_v58  ;;  %3786 = vmatmul.f32.gmra.mxu2 %v1562_v9  ;;  %v1586_v58 = vld [vmem:[%s8719_s2 + $0x230] sm:$0xff] }
 0x642   : > { %v3525_v59 = vpop.f32.mrf.mxu3 }
 0x643   : > { %v7566_v6 = vadd.f32 %v3525_v59, %v7300_v34  ;;  %v7593_v9 = vpop.f32.mrf.mxu2 }
 0x644   : > { %8903 = vst [vmem:[#allocation182_spill] sm:$0xff] %v7593_v9  ;;  %v1646_v9 = vld [vmem:[%s8719_s2 + $0x410] sm:$0xff] }
 0x645   : > { %v7595_v59 = vpop.f32.mrf.mxu1 }
 0x647   : > { %3575 = vmatmul.f32.gmra.mxu3 %v1956_v46 }
 0x648   : > { %3682 = vmatmul.f32.gmra.mxu1 %v1765_v63  ;;  %3789 = vmatmul.f32.gmra.mxu2 %v1574_v35  ;;  %v1980_v63 = vld [vmem:[%s8719_s2 + $0xe80] sm:$0xff]  ;;  %v1789_v35 = vld [vmem:[%s8719_s2 + $0x888] sm:$0xff] }
 0x64a   : > { %v3528_v34 = vpop.f32.mrf.mxu3 }
 0x64b   : > { %v7582_v41 = vadd.f32 %v3528_v34, %v7320_v36  ;;  %v1598_v34 = vld [vmem:[%s8719_s2 + $0x290] sm:$0xff] }
 0x64f   : > { %3578 = vmatmul.f32.gmra.mxu3 %v1968_v24  ;;  %v7609_v24 = vpop.f32.mrf.mxu2 }
 0x650   : > { %3685 = vmatmul.f32.gmra.mxu1 %v1777_v31  ;;  %3792 = vmatmul.f32.gmra.mxu2 %v1586_v58  ;;  %8905 = vst [vmem:[#allocation184_spill] sm:$0xff] %v7609_v24  ;;  %v1992_v58 = vld [vmem:[%s8719_s2 + $0xee0] sm:$0xff]  ;;  %v1837_v24 = vld [vmem:[%s8719_s2 + $0xa08] sm:$0xff] }
 0x652   : > { %v3531_v36 = vpop.f32.mrf.mxu3 }
 0x653   : > { %v7598_v46 = vadd.f32 %v3531_v36, %v7340_v43  ;;  %v7613_v43 = vpop.f32.mrf.mxu1  ;;  %v1801_v36 = vld [vmem:[%s8719_s2 + $0x8e8] sm:$0xff] }
 0x655   : > { %8904 = vst [vmem:[#allocation183_spill] sm:$0xff] %v7598_v46  ;;  %v1683_v46 = vld [vmem:[%s8719_s2 + $0x538] sm:$0xff] }
 0x657   : > { %3581 = vmatmul.f32.gmra.mxu3 %v1980_v63  ;;  %v1610_v63 = vld [vmem:[%s8719_s2 + $0x2f0] sm:$0xff] }
 0x658   : > { %3688 = vmatmul.f32.gmra.mxu1 %v1789_v35  ;;  %3795 = vmatmul.f32.gmra.mxu2 %v1598_v34  ;;  %v7626_v34 = vpop.f32.mrf.mxu2 }
 0x659   : > { %8908 = vst [vmem:[#allocation187_spill] sm:$0xff] %v7626_v34 }
 0x65a   : > { %v7611_v31 = vpop.f32.mrf.mxu3 }
 0x65b   : > { %8906 = vst [vmem:[#allocation185_spill] sm:$0xff] %v7611_v31  ;;  %v7637_v39 = vpop.f32.mrf.mxu1  ;;  %v1838_v31 = vld [vmem:[%s8719_s2 + $0xa10] sm:$0xff] }
 0x65f   : > { %3584 = vmatmul.f32.gmra.mxu3 %v1992_v58 }
 0x660   : > { %3691 = vmatmul.f32.gmra.mxu1 %v1801_v36  ;;  %3798 = vmatmul.f32.gmra.mxu2 %v1610_v63  ;;  %v2016_v36 = vld [vmem:[%s8719_s2 + $0xfa0] sm:$0xff]  ;;  %v1825_v63 = vld [vmem:[%s8719_s2 + $0x9a8] sm:$0xff]  ;;  %v7650_v34 = vpop.f32.mrf.mxu2 }
 0x661   : > { %8910 = vst [vmem:[#allocation189_spill] sm:$0xff] %v7650_v34  ;;  %v2040_v34 = vld [vmem:[%s8719_s2 + $0x1060] sm:$0xff] }
 0x662   : > { %v7624_v35 = vpop.f32.mrf.mxu3 }
 0x663   : > { %8907 = vst [vmem:[#allocation186_spill] sm:$0xff] %v7624_v35 }
 0x667   : > { %3587 = vmatmul.f32.gmra.mxu3 %v2004_v13  ;;  %v7652_v13 = vpop.f32.mrf.mxu1 }
 0x668   : > { %3694 = vmatmul.f32.gmra.mxu1 %v1813_v16  ;;  %3801 = vmatmul.f32.gmra.mxu2 %v1622_v25  ;;  %v2028_v16 = vld [vmem:[%s8719_s2 + $0x1000] sm:$0xff] }
 0x66a   : > { %v7639_v58 = vpop.f32.mrf.mxu3 }
 0x66b   : > { %8909 = vst [vmem:[#allocation188_spill] sm:$0xff] %v7639_v58  ;;  %v1814_v58 = vld [vmem:[%s8719_s2 + $0x950] sm:$0xff] }
 0x66f   : > { %3590 = vmatmul.f32.gmra.mxu3 %v2016_v36  ;;  %v7665_v36 = vpop.f32.mrf.mxu2 }
 0x670   : > { %3697 = vmatmul.f32.gmra.mxu1 %v1825_v63  ;;  %3804 = vmatmul.f32.gmra.mxu2 %v1634_v0  ;;  %8912 = vst [vmem:[#allocation191_spill] sm:$0xff] %v7665_v36  ;;  %v7667_v0 = vpop.f32.mrf.mxu1 }
 0x672   : > { %v7654_v25 = vpop.f32.mrf.mxu3 }
 0x673   : > { %8911 = vst [vmem:[#allocation190_spill] sm:$0xff] %v7654_v25  ;;  %v1802_v25 = vld [vmem:[%s8719_s2 + $0x8f0] sm:$0xff] }
 0x677   : > { %3593 = vmatmul.f32.gmra.mxu3 %v2028_v16  ;;  %v1658_v16 = vld [vmem:[%s8719_s2 + $0x470] sm:$0xff] }
 0x678   : > { %3700 = vmatmul.f32.gmra.mxu1 %v1837_v24  ;;  %3807 = vmatmul.f32.gmra.mxu2 %v1646_v9  ;;  %v7680_v9 = vpop.f32.mrf.mxu2  ;;  %v7684_v36 = vpop.f32.mrf.mxu1 }
 0x679   : > { %8914 = vst [vmem:[#allocation193_spill] sm:$0xff] %v7680_v9  ;;  %v2064_v9 = vld [vmem:[%s8719_s2 + $0x1120] sm:$0x1] }
 0x67a   : > { %v7669_v63 = vpop.f32.mrf.mxu3 }
 0x67b   : > { %8913 = vst [vmem:[#allocation192_spill] sm:$0xff] %v7669_v63  ;;  %v1981_v63 = vld [vmem:[%s8719_s2 + $0xe88] sm:$0xff] }
 0x67f   : > { %3596 = vmatmul.f32.gmra.mxu3 %v2040_v34  ;;  %v1670_v34 = vld [vmem:[%s8719_s2 + $0x4d0] sm:$0xff] }
 0x680   : > { %3703 = vmatmul.f32.gmra.mxu1 %v1849_v38  ;;  %3810 = vmatmul.f32.gmra.mxu2 %v1658_v16  ;;  %v7697_v16 = vpop.f32.mrf.mxu2  ;;  %v7708_v51 = vpop.f32.mrf.mxu1 }
 0x681   : > { %8917 = vst [vmem:[#allocation196_spill] sm:$0xff] %v7697_v16  ;;  %v1694_v16 = vld [vmem:[%s8719_s2 + $0x590] sm:$0xff] }
 0x682   : > { %v7682_v24 = vpop.f32.mrf.mxu3 }
 0x683   : > { %8915 = vst [vmem:[#allocation194_spill] sm:$0xff] %v7682_v24  ;;  %v1766_v24 = vld [vmem:[%s8719_s2 + $0x7d0] sm:$0xff] }
 0x687   : > { %3599 = vmatmul.f32.gmra.mxu3 %v2052_v17  ;;  %v1527_v17 = vld [vmem:[%s8719_s2 + $0x58] sm:$0xff] }
 0x688   : > { %3706 = vmatmul.f32.gmra.mxu1 %v1861_v48  ;;  %3813 = vmatmul.f32.gmra.mxu2 %v1670_v34  ;;  %v1885_v34 = vld [vmem:[%s8719_s2 + $0xb88] sm:$0xff]  ;;  %v7721_v19 = vpop.f32.mrf.mxu2 }
 0x689   : > { %8919 = vst [vmem:[#allocation198_spill] sm:$0xff] %v7721_v19  ;;  %v1706_v19 = vld [vmem:[%s8719_s2 + $0x5f0] sm:$0xff] }
 0x68a   : > { %v7695_v38 = vpop.f32.mrf.mxu3 }
 0x68b   : > { %8916 = vst [vmem:[#allocation195_spill] sm:$0xff] %v7695_v38  ;;  %v1921_v38 = vld [vmem:[%s8719_s2 + $0xca8] sm:$0xff] }
 0x68f   : > { %3602 = vmatmul.f32.gmra.mxu3 %v2064_v9  ;;  %v1539_v9 = vld [vmem:[%s8719_s2 + $0xb8] sm:$0xff] }
 0x690   : > { %3709 = vmatmul.f32.gmra.mxu1 %v1873_v33  ;;  %3816 = vmatmul.f32.gmra.mxu2 %v1682_v40  ;;  %v7724_v40 = vpop.f32.mrf.mxu1 }
 0x692   : > { %v7710_v48 = vpop.f32.mrf.mxu3 }
 0x693   : > { %8918 = vst [vmem:[#allocation197_spill] sm:$0xff] %v7710_v48  ;;  %v1897_v48 = vld [vmem:[%s8719_s2 + $0xbe8] sm:$0xff] }
 0x697   : > { %4510 = vmatmul.msk.f32.vlgmr.msrb.gmra.mxu3 %vm2068_vm3, %v1527_v17  ;;  %v7738_v17 = vpop.f32.mrf.mxu2 }
 0x698   : > { %3712 = vmatmul.f32.gmra.mxu1 %v1885_v34  ;;  %3819 = vmatmul.f32.gmra.mxu2 %v1694_v16  ;;  %8921 = vst [vmem:[#allocation200_spill] sm:$0xff] %v7738_v17  ;;  %v7740_v16 = vpop.f32.mrf.mxu1 }
 0x69a   : > { %v7726_v33 = vpop.f32.mrf.mxu3 }
 0x69b   : > { %8920 = vst [vmem:[#allocation199_spill] sm:$0xff] %v7726_v33  ;;  %v1551_v33 = vld [vmem:[%s8719_s2 + $0x118] sm:$0xff] }
 0x69f   : > { %4511 = vmatmul.msk.f32.gmra.mxu3 %vm2068_vm3, %v1539_v9  ;;  %v1718_v9 = vld [vmem:[%s8719_s2 + $0x650] sm:$0xff] }
 0x6a0   : > { %3715 = vmatmul.f32.gmra.mxu1 %v1897_v48  ;;  %3822 = vmatmul.f32.gmra.mxu2 %v1706_v19  ;;  %v7754_v19 = vpop.f32.mrf.mxu2  ;;  %v7758_v17 = vpop.f32.mrf.mxu1 }
 0x6a1   : > { %8923 = vst [vmem:[#allocation202_spill] sm:$0xff] %v7754_v19  ;;  %v1575_v19 = vld [vmem:[%s8719_s2 + $0x1d8] sm:$0xff] }
 0x6a2   : > { %v7742_v34 = vpop.f32.mrf.mxu3 }
 0x6a3   : > { %8922 = vst [vmem:[#allocation201_spill] sm:$0xff] %v7742_v34  ;;  %v1563_v34 = vld [vmem:[%s8719_s2 + $0x178] sm:$0xff] }
 0x6a7   : > { %4512 = vmatmul.msk.f32.gmra.mxu3 %vm2068_vm3, %v1551_v33  ;;  %v1730_v33 = vld [vmem:[%s8719_s2 + $0x6b0] sm:$0xff] }
 0x6a8   : > { %3718 = vmatmul.f32.gmra.mxu1 %v1909_v2  ;;  %3825 = vmatmul.f32.gmra.mxu2 %v1718_v9  ;;  %v7772_v9 = vpop.f32.mrf.mxu2  ;;  %v7783_v44 = vpop.f32.mrf.mxu1 }
 0x6a9   : > { %8926 = vst [vmem:[#allocation205_spill] sm:$0xff] %v7772_v9  ;;  %v1945_v9 = vld [vmem:[%s8719_s2 + $0xd68] sm:$0xff] }
 0x6aa   : > { %v7756_v48 = vpop.f32.mrf.mxu3 }
 0x6ab   : > { %8924 = vst [vmem:[#allocation203_spill] sm:$0xff] %v7756_v48  ;;  %v1933_v48 = vld [vmem:[%s8719_s2 + $0xd08] sm:$0xff] }
 0x6af   : > { %4513 = vmatmul.msk.f32.gmra.mxu3 %vm2068_vm3, %v1563_v34 }
 0x6b0   : > { %3721 = vmatmul.f32.gmra.mxu1 %v1921_v38  ;;  %3828 = vmatmul.f32.gmra.mxu2 %v1730_v33  ;;  %v7788_v34 = vpop.f32.mrf.mxu2  ;;  %v1587_v33 = vld [vmem:[%s8719_s2 + $0x238] sm:$0xff] }
 0x6b2   : > { %v7770_v2 = vpop.f32.mrf.mxu3 }
 0x6b3   : > { %8925 = vst [vmem:[#allocation204_spill] sm:$0xff] %v7770_v2  ;;  %v1754_v2 = vld [vmem:[%s8719_s2 + $0x770] sm:$0xff] }
 0x6b7   : > { %4514 = vmatmul.msk.f32.gmra.mxu3 %vm2068_vm3, %v1575_v19  ;;  %v7800_v19 = vpop.f32.mrf.mxu1 }
 0x6b8   : > { %3724 = vmatmul.f32.gmra.mxu1 %v1933_v48  ;;  %3831 = vmatmul.f32.gmra.mxu2 %v1742_v1  ;;  %v1599_v48 = vld [vmem:[%s8719_s2 + $0x298] sm:$0xff]  ;;  %v7813_v27 = vpop.f32.mrf.mxu2 }
 0x6ba   : > { %v7786_v38 = vpop.f32.mrf.mxu3 }
 0x6bb   : > { %8927 = vst [vmem:[#allocation206_spill] sm:$0xff] %v7786_v38  ;;  %v1957_v38 = vld [vmem:[%s8719_s2 + $0xdc8] sm:$0xff] }
 0x6bf   : > { %4515 = vmatmul.msk.f32.gmra.mxu3 %vm2068_vm3, %v1587_v33  ;;  %v1611_v33 = vld [vmem:[%s8719_s2 + $0x2f8] sm:$0xff] }
 0x6c0   : > { %3727 = vmatmul.f32.gmra.mxu1 %v1945_v9  ;;  %3834 = vmatmul.f32.gmra.mxu2 %v1754_v2  ;;  %v7816_v2 = vpop.f32.mrf.mxu1 }
 0x6c2   : > { %v7802_v1 = vpop.f32.mrf.mxu3 }
 0x6c3   : > { %8928 = vst [vmem:[#allocation207_spill] sm:$0xff] %v7802_v1  ;;  %v1969_v1 = vld [vmem:[%s8719_s2 + $0xe28] sm:$0xff] }
 0x6c7   : > { %4516 = vmatmul.msk.f32.gmra.mxu3 %vm2068_vm3, %v1599_v48 }
 0x6c8   : > { %3730 = vmatmul.f32.gmra.mxu1 %v1957_v38  ;;  %3837 = vmatmul.f32.gmra.mxu2 %v1766_v24  ;;  %v7830_v38 = vpop.f32.mrf.mxu2  ;;  %v7834_v48 = vpop.f32.mrf.mxu1 }
 0x6ca   : > { %v7818_v9 = vpop.f32.mrf.mxu3 }
 0x6cb   : > { %8929 = vst [vmem:[#allocation208_spill] sm:$0xff] %v7818_v9  ;;  %v1623_v9 = vld [vmem:[%s8719_s2 + $0x358] sm:$0xff] }
 0x6cf   : > { %4517 = vmatmul.msk.f32.gmra.mxu3 %vm2068_vm3, %v1611_v33  ;;  %v1790_v33 = vld [vmem:[%s8719_s2 + $0x890] sm:$0xff] }
 0x6d0   : > { %3733 = vmatmul.f32.gmra.mxu1 %v1969_v1  ;;  %3840 = vmatmul.f32.gmra.mxu2 %v1778_v15  ;;  %v7846_v15 = vpop.f32.mrf.mxu2  ;;  %v7859_v10 = vpop.f32.mrf.mxu1 }
 0x6d2   : > { %v7832_v24 = vpop.f32.mrf.mxu3 }
 0x6d3   : > { %8930 = vst [vmem:[#allocation209_spill] sm:$0xff] %v7832_v24  ;;  %v1635_v24 = vld [vmem:[%s8719_s2 + $0x3b8] sm:$0xff] }
 0x6d7   : > { %4518 = vmatmul.msk.f32.gmra.mxu3 %vm2068_vm3, %v1623_v9 }
 0x6d8   : > { %3736 = vmatmul.f32.gmra.mxu1 %v1981_v63  ;;  %3843 = vmatmul.f32.gmra.mxu2 %v1790_v33  ;;  %v7864_v9 = vpop.f32.mrf.mxu2  ;;  %v1647_v33 = vld [vmem:[%s8719_s2 + $0x418] sm:$0xff] }
 0x6da   : > { %v7848_v1 = vpop.f32.mrf.mxu3 }
 0x6db   : > { %8931 = vst [vmem:[#allocation210_spill] sm:$0xff] %v7848_v1  ;;  %v2005_v1 = vld [vmem:[%s8719_s2 + $0xf48] sm:$0xff] }
 0x6df   : > { %4519 = vmatmul.msk.f32.gmra.mxu3 %vm2068_vm3, %v1635_v24  ;;  %v1659_v24 = vld [vmem:[%s8719_s2 + $0x478] sm:$0xff] }
 0x6e0   : > { %3739 = vmatmul.f32.gmra.mxu1 %v1993_v47  ;;  %3846 = vmatmul.f32.gmra.mxu2 %v1802_v25  ;;  %v7876_v47 = vpop.f32.mrf.mxu1  ;;  %v7889_v35 = vpop.f32.mrf.mxu2 }
 0x6e2   : > { %v7862_v63 = vpop.f32.mrf.mxu3 }
 0x6e3   : > { %8932 = vst [vmem:[#allocation211_spill] sm:$0xff] %v7862_v63  ;;  %v2017_v63 = vld [vmem:[%s8719_s2 + $0xfa8] sm:$0xff] }
 0x6e7   : > { %4520 = vmatmul.msk.f32.gmra.mxu3 %vm2068_vm3, %v1647_v33  ;;  %v2228_v33 = vpop.f32.mrf.mxu0 }
 0x6e8   : > { %3742 = vmatmul.f32.gmra.mxu1 %v2005_v1  ;;  %3849 = vmatmul.f32.gmra.mxu2 %v1814_v58  ;;  %v7892_v58 = vpop.f32.mrf.mxu1 }
 0x6ea   : > { %v7878_v25 = vpop.f32.mrf.mxu3 }
 0x6eb   : > { %8933 = vst [vmem:[#allocation212_spill] sm:$0xff] %v7878_v25  ;;  %v1671_v25 = vld [vmem:[%s8719_s2 + $0x4d8] sm:$0xff] }
 0x6ef   : > { %4521 = vmatmul.msk.f32.gmra.mxu3 %vm2068_vm3, %v1659_v24 }
 0x6f0   : > { %3745 = vmatmul.f32.gmra.mxu1 %v2017_v63  ;;  %3852 = vmatmul.f32.gmra.mxu2 %v1826_v42  ;;  %v2384_v63 = vadd.f32 %v5050_v5, %v2228_v33  ;;  %v7907_v42 = vpop.f32.mrf.mxu2  ;;  %v7912_v60 = vpop.f32.mrf.mxu1  ;;  %v2041_v5 = vld [vmem:[%s8719_s2 + $0x1068] sm:$0xff] }
 0x6f2   : > { %v7894_v1 = vpop.f32.mrf.mxu3 }
 0x6f3   : > { %8934 = vst [vmem:[#allocation213_spill] sm:$0xff] %v7894_v1  ;;  %v2539_v1 = vadd.f32 %v5314_v3, %v2384_v63  ;;  %v1695_v63 = vld [vmem:[%s8719_s2 + $0x598] sm:$0xff] }
 0x6f7   : > { %4522 = vmatmul.msk.f32.gmra.mxu3 %vm2068_vm3, %v1671_v25  ;;  %v1850_v25 = vld [vmem:[%s8719_s2 + $0xa70] sm:$0xff] }
 0x6f8   : > { %3748 = vmatmul.f32.gmra.mxu1 %v2029_v54  ;;  %3855 = vmatmul.f32.gmra.mxu2 %v1838_v31  ;;  %v2694_v54 = vadd.f32 %v5624_v57, %v2539_v1  ;;  %v7925_v3 = vpop.f32.mrf.mxu2  ;;  %v1862_v57 = vld [vmem:[%s8719_s2 + $0xad0] sm:$0xff] }
 0x6fa   : > { %v7909_v24 = vpop.f32.mrf.mxu3  ;;  %v2849_v33 = vadd.f32 %v5952_v28, %v2694_v54  ;;  %v1707_v54 = vld [vmem:[%s8719_s2 + $0x5f8] sm:$0xff] }
 0x6fb   : > { %8935 = vst [vmem:[#allocation214_spill] sm:$0xff] %v7909_v24  ;;  %v2053_v24 = vld [vmem:[%s8719_s2 + $0x10c8] sm:$0xff] }
 0x6fc   : > { %v3004_v1 = vadd.f32 %v6280_v7, %v2849_v33  ;;  %v1874_v7 = vld [vmem:[%s8719_s2 + $0xb30] sm:$0xff] }
 0x6ff   : > { %4523 = vmatmul.msk.f32.gmra.mxu3 %vm2068_vm3, %v1683_v46  ;;  %v7939_v46 = vpop.f32.mrf.mxu1 }
 0x700   : > { %3751 = vmatmul.f32.gmra.mxu1 %v2041_v5  ;;  %3858 = vmatmul.f32.gmra.mxu2 %v1850_v25  ;;  %v3159_v5 = vadd.f32 %v6586_v45, %v3004_v1  ;;  %v7946_v25 = vpop.f32.mrf.mxu2  ;;  %v1886_v1 = vld [vmem:[%s8719_s2 + $0xb90] sm:$0xff] }
 0x702   : > { %v7927_v31 = vpop.f32.mrf.mxu3 }
 0x703   : > { %8936 = vst [vmem:[#allocation215_spill] sm:$0xff] %v7927_v31  ;;  %v2065_v31 = vld [vmem:[%s8719_s2 + $0x1128] sm:$0x1] }
 0x707   : > { %4524 = vmatmul.msk.f32.gmra.mxu3 %vm2068_vm3, %v1695_v63  ;;  %v7959_v33 = vpop.f32.mrf.mxu1 }
 0x708   : > { %3754 = vmatmul.f32.gmra.mxu1 %v2053_v24  ;;  %3861 = vmatmul.f32.gmra.mxu2 %v1862_v57  ;;  %v3314_v24 = vadd.f32 %v6909_v55, %v3159_v5  ;;  %v1719_v57 = vld [vmem:[%s8719_s2 + $0x658] sm:$0xff]  ;;  %v7970_v55 = vpop.f32.mrf.mxu2 }
 0x70a   : > { %v7943_v28 = vpop.f32.mrf.mxu3  ;;  %v3469_v63 = vadd.f32 %v7235_v18, %v3314_v24  ;;  %v7978_v18 = vld [vmem:[%s8720_s3] ss:$0 sm:$0xff] }
 0x70b   : > { %v7983_v24 = vld [vmem:[%s8721_s4] ss:$0 sm:$0xff] }
 0x70c   : > { %v3624_v5 = vadd.f32 %v7563_v4, %v3469_v63  ;;  %v1731_v4 = vld [vmem:[%s8719_s2 + $0x6b8] sm:$0xff] }
 0x70f   : > { %4525 = vmatmul.msk.f32.gmra.mxu3 %vm2068_vm3, %v1707_v54 }
 0x710   : > { %3757 = vmatmul.f32.gmra.mxu1 %v2065_v31  ;;  %3864 = vmatmul.f32.gmra.mxu2 %v1874_v7  ;;  %v3779_v31 = vadd.f32 %v7788_v34, %v3624_v5  ;;  %v1898_v34 = vld [vmem:[%s8719_s2 + $0xbf0] sm:$0xff]  ;;  %v7997_v5 = vpop.f32.mrf.mxu2 }
 0x712   : > { %v7961_v45 = vpop.f32.mrf.mxu3 }
 0x717   : > { %4526 = vmatmul.msk.f32.gmra.mxu3 %vm2068_vm3, %v1719_v57  ;;  %v3627_v57 = vadd.f32 %v7579_v11, %v7255_v29  ;;  %v1743_v11 = vld [vmem:[%s8719_s2 + $0x718] sm:$0xff] }
 0x718   : > { %3867 = vmatmul.f32.gmra.mxu2 %v1886_v1 }
 0x71a   : > { %v3933_v54 = vpop.f32.mrf.mxu3 }
 0x71b   : > { %v3934_v7 = vadd.f32 %v3933_v54, %v3779_v31  ;;  %v3782_v31 = vadd.f32 %v7813_v27, %v3627_v57 }
 0x71d   : > { %v4075_v63 = vmul.f32 %v7978_v18, %v3934_v7 }
 0x71f   : > { %v4125_v1 = vadd.f32 %v7983_v24, %v4075_v63  ;;  %4527 = vmatmul.msk.f32.gmra.mxu3 %vm2068_vm3, %v1731_v4  ;;  %v1910_v63 = vld [vmem:[%s8719_s2 + $0xc50] sm:$0xff] }
 0x720   : > { %3870 = vmatmul.f32.gmra.mxu2 %v1898_v34  ;;  %v3630_v34 = vadd.f32 %v7595_v59, %v7278_v53  ;;  %v1922_v59 = vld [vmem:[%s8719_s2 + $0xcb0] sm:$0xff] }
 0x721   : > { %v4171_v54 = vmax.f32 %v4125_v1, 0.0 }
 0x722   : > { %v3936_v7 = vpop.f32.mrf.mxu3  ;;  %v3785_v57 = vadd.f32 %v7830_v38, %v3630_v34  ;;  %v3633_v38 = vadd.f32 %v7613_v43, %v7298_v8  ;;  %v1934_v43 = vld [vmem:[%s8719_s2 + $0xd10] sm:$0xff] }
 0x723   : > { %4218 = vst.msk [vmem:[%s8002_s30] sm:$0xff] %vm4217_vm4, %v4171_v54  ;;  %v3937_v29 = vadd.f32 %v3936_v7, %v3782_v31  ;;  %v8019_v31 = vpop.f32.mrf.mxu2 }
 0x725   : > { %v4076_v4 = vmul.f32 %v7978_v18, %v3937_v29  ;;  %v1755_v29 = vld [vmem:[%s8719_s2 + $0x778] sm:$0xff] }
 0x727   : > { %v4126_v27 = vadd.f32 %v7983_v24, %v4076_v4  ;;  %4528 = vmatmul.msk.f32.gmra.mxu3 %vm2068_vm3, %v1743_v11  ;;  %v3788_v4 = vadd.f32 %v7846_v15, %v3633_v38  ;;  %v3636_v15 = vadd.f32 %v7637_v39, %v7318_v26  ;;  %v1779_v38 = vld [vmem:[%s8719_s2 + $0x838] sm:$0xff]  ;;  %v1946_v26 = vld [vmem:[%s8719_s2 + $0xd70] sm:$0xff] }
 0x728   : > { %3873 = vmatmul.f32.gmra.mxu2 %v1910_v63 }
 0x729   : > { %v4172_v1 = vmax.f32 %v4126_v27, 0.0 }
 0x72a   : > { %v3939_v54 = vpop.f32.mrf.mxu3 }
 0x72b   : > { %4219 = vst.msk [vmem:[%s8002_s30 + $0x8] sm:$0xff] %vm4217_vm4, %v4172_v1  ;;  %v3940_v7 = vadd.f32 %v3939_v54, %v3785_v57  ;;  %v8037_v57 = vpop.f32.mrf.mxu2  ;;  %v1767_v1 = vld [vmem:[%s8719_s2 + $0x7d8] sm:$0xff] }
 0x72d   : > { %v4077_v53 = vmul.f32 %v7978_v18, %v3940_v7  ;;  %v3791_v7 = vadd.f32 %v7864_v9, %v3636_v15  ;;  %v3639_v9 = vadd.f32 %v7652_v13, %v7338_v49  ;;  %v1958_v49 = vld [vmem:[%s8719_s2 + $0xdd0] sm:$0xff]  ;;  %v3642_v13 = vadd.f32 %v7667_v0, %v7356_v32 }
 0x72e   : > { %v1970_v0 = vld [vmem:[%s8719_s2 + $0xe30] sm:$0xff] }
 0x72f   : > { %v4127_v11 = vadd.f32 %v7983_v24, %v4077_v53  ;;  %4529 = vmatmul.msk.f32.gmra.mxu3 %vm2068_vm3, %v1755_v29 }
 0x730   : > { %3876 = vmatmul.f32.gmra.mxu2 %v1922_v59 }
 0x731   : > { %v4173_v63 = vmax.f32 %v4127_v11, 0.0 }
 0x732   : > { %v3942_v34 = vpop.f32.mrf.mxu3 }
 0x733   : > { %4220 = vst.msk [vmem:[%s8002_s30 + $0x10] sm:$0xff] %vm4217_vm4, %v4173_v63  ;;  %v3943_v27 = vadd.f32 %v3942_v34, %v3788_v4  ;;  %v8060_v39 = vpop.f32.mrf.mxu2  ;;  %v3794_v63 = vadd.f32 %v7889_v35, %v3639_v9 }
 0x735   : > { %v4078_v8 = vmul.f32 %v7978_v18, %v3943_v27 }
 0x737   : > { %v4128_v54 = vadd.f32 %v7983_v24, %v4078_v8  ;;  %4530 = vmatmul.msk.f32.gmra.mxu3 %vm2068_vm3, %v1767_v1  ;;  %v1791_v8 = vld [vmem:[%s8719_s2 + $0x898] sm:$0xff] }
 0x738   : > { %3879 = vmatmul.f32.gmra.mxu2 %v1934_v43 }
 0x739   : > { %v4174_v29 = vmax.f32 %v4128_v54, 0.0  ;;  %v3797_v54 = vadd.f32 %v7907_v42, %v3642_v13 }
 0x73a   : > { %v3945_v53 = vpop.f32.mrf.mxu3 }
 0x73b   : > { %4221 = vst.msk [vmem:[%s8002_s30 + $0x18] sm:$0xff] %vm4217_vm4, %v4174_v29  ;;  %v3946_v59 = vadd.f32 %v3945_v53, %v3791_v7  ;;  %v8080_v15 = vpop.f32.mrf.mxu2 }
 0x73d   : > { %v4079_v11 = vmul.f32 %v7978_v18, %v3946_v59  ;;  %v1803_v59 = vld [vmem:[%s8719_s2 + $0x8f8] sm:$0xff] }
 0x73f   : > { %v4129_v4 = vadd.f32 %v7983_v24, %v4079_v11  ;;  %4531 = vmatmul.msk.f32.gmra.mxu3 %vm2068_vm3, %v1779_v38  ;;  %v3645_v38 = vadd.f32 %v7684_v36, %v7374_v14  ;;  %v1982_v36 = vld [vmem:[%s8719_s2 + $0xe90] sm:$0xff] }
 0x740   : > { %3882 = vmatmul.f32.gmra.mxu2 %v1946_v26 }
 0x741   : > { %v4175_v34 = vmax.f32 %v4129_v4, 0.0  ;;  %v3800_v11 = vadd.f32 %v7925_v3, %v3645_v38  ;;  %v3648_v3 = vadd.f32 %v7708_v51, %v7390_v23  ;;  %v1994_v23 = vld [vmem:[%s8719_s2 + $0xef0] sm:$0xff] }
 0x742   : > { %v3948_v27 = vpop.f32.mrf.mxu3 }
 0x743   : > { %4222 = vst.msk [vmem:[%s8002_s30 + $0x20] sm:$0xff] %vm4217_vm4, %v4175_v34  ;;  %v3949_v1 = vadd.f32 %v3948_v27, %v3794_v63  ;;  %v8097_v9 = vpop.f32.mrf.mxu2  ;;  %v1815_v34 = vld [vmem:[%s8719_s2 + $0x958] sm:$0xff] }
 0x745   : > { %v4080_v43 = vmul.f32 %v7978_v18, %v3949_v1  ;;  %v3803_v1 = vadd.f32 %v7946_v25, %v3648_v3  ;;  %v3651_v25 = vadd.f32 %v7724_v40, %v7406_v12  ;;  %v2006_v12 = vld [vmem:[%s8719_s2 + $0xf50] sm:$0xff] }
 0x747   : > { %v4130_v35 = vadd.f32 %v7983_v24, %v4080_v43  ;;  %4532 = vmatmul.msk.f32.gmra.mxu3 %vm2068_vm3, %v1791_v8 }
 0x748   : > { %3885 = vmatmul.f32.gmra.mxu2 %v1958_v49 }
 0x749   : > { %v4176_v7 = vmax.f32 %v4130_v35, 0.0  ;;  %v1827_v35 = vld [vmem:[%s8719_s2 + $0x9b8] sm:$0xff] }
 0x74a   : > { %v3951_v29 = vpop.f32.mrf.mxu3 }
 0x74b   : > { %4223 = vst.msk [vmem:[%s8002_s30 + $0x28] sm:$0xff] %vm4217_vm4, %v4176_v7  ;;  %v3952_v53 = vadd.f32 %v3951_v29, %v3797_v54  ;;  %v8115_v13 = vpop.f32.mrf.mxu2  ;;  %v3806_v7 = vadd.f32 %v7970_v55, %v3651_v25  ;;  %v3654_v55 = vadd.f32 %v7740_v16, %v7422_v37  ;;  %v2018_v37 = vld [vmem:[%s8719_s2 + $0xfb0] sm:$0xff]  ;;  %v3657_v16 = vadd.f32 %v7758_v17, %v7436_v56 }
 0x74c   : > { %v2030_v17 = vld [vmem:[%s8719_s2 + $0x1010] sm:$0xff] }
 0x74d   : > { %v4081_v32 = vmul.f32 %v7978_v18, %v3952_v53 }
 0x74f   : > { %v4131_v42 = vadd.f32 %v7983_v24, %v4081_v32  ;;  %4533 = vmatmul.msk.f32.gmra.mxu3 %vm2068_vm3, %v1803_v59  ;;  %v1839_v32 = vld [vmem:[%s8719_s2 + $0xa18] sm:$0xff] }
 0x750   : > { %3888 = vmatmul.f32.gmra.mxu2 %v1970_v0 }
 0x751   : > { %v4177_v26 = vmax.f32 %v4131_v42, 0.0  ;;  %v3809_v42 = vadd.f32 %v7997_v5, %v3654_v55 }
 0x752   : > { %v3954_v4 = vpop.f32.mrf.mxu3 }
 0x753   : > { %4224 = vst.msk [vmem:[%s8002_s30 + $0x30] sm:$0xff] %vm4217_vm4, %v4177_v26  ;;  %v3955_v63 = vadd.f32 %v3954_v4, %v3800_v11  ;;  %v8138_v40 = vpop.f32.mrf.mxu2 }
 0x755   : > { %v4082_v14 = vmul.f32 %v7978_v18, %v3955_v63  ;;  %v1851_v63 = vld [vmem:[%s8719_s2 + $0xa78] sm:$0xff] }
 0x757   : > { %v4132_v27 = vadd.f32 %v7983_v24, %v4082_v14  ;;  %4534 = vmatmul.msk.f32.gmra.mxu3 %vm2068_vm3, %v1815_v34 }
 0x758   : > { %3891 = vmatmul.f32.gmra.mxu2 %v1982_v36  ;;  %v3812_v36 = vadd.f32 %v8019_v31, %v3657_v16 }
 0x759   : > { %v4178_v8 = vmax.f32 %v4132_v27, 0.0 }
 0x75a   : > { %v3957_v43 = vpop.f32.mrf.mxu3 }
 0x75b   : > { %4225 = vst.msk [vmem:[%s8002_s30 + $0x38] sm:$0xff] %vm4217_vm4, %v4178_v8  ;;  %v3958_v49 = vadd.f32 %v3957_v43, %v3803_v1  ;;  %v8158_v14 = vpop.f32.mrf.mxu2  ;;  %v1863_v8 = vld [vmem:[%s8719_s2 + $0xad8] sm:$0xff]  ;;  %v3660_v43 = vadd.f32 %v7783_v44, %v7452_v30  ;;  %v2042_v30 = vld [vmem:[%s8719_s2 + $0x1070] sm:$0xff] }
 0x75d   : > { %v4083_v51 = vmul.f32 %v7978_v18, %v3958_v49  ;;  %v3815_v49 = vadd.f32 %v8037_v57, %v3660_v43  ;;  %v3663_v57 = vadd.f32 %v7800_v19, %v7468_v62  ;;  %v2054_v19 = vld [vmem:[%s8719_s2 + $0x10d0] sm:$0xff] }
 0x75f   : > { %v4133_v54 = vadd.f32 %v7983_v24, %v4083_v51  ;;  %4535 = vmatmul.msk.f32.gmra.mxu3 %vm2068_vm3, %v1827_v35 }
 0x760   : > { %3894 = vmatmul.f32.gmra.mxu2 %v1994_v23 }
 0x761   : > { %v4179_v29 = vmax.f32 %v4133_v54, 0.0  ;;  %v1875_v54 = vld [vmem:[%s8719_s2 + $0xb38] sm:$0xff] }
 0x762   : > { %v3960_v53 = vpop.f32.mrf.mxu3 }
 0x763   : > { %4226 = vst.msk [vmem:[%s8002_s30 + $0x40] sm:$0xff] %vm4217_vm4, %v4179_v29  ;;  %v3961_v59 = vadd.f32 %v3960_v53, %v3806_v7  ;;  %v8175_v51 = vpop.f32.mrf.mxu2  ;;  %v3818_v29 = vadd.f32 %v8060_v39, %v3663_v57  ;;  %v3666_v39 = vadd.f32 %v7816_v2, %v7485_v22  ;;  %v2066_v22 = vld [vmem:[%s8719_s2 + $0x1130] sm:$0x1] }
 0x765   : > { %v4084_v0 = vmul.f32 %v7978_v18, %v3961_v59 }
 0x767   : > { %v4134_v38 = vadd.f32 %v7983_v24, %v4084_v0  ;;  %4536 = vmatmul.msk.f32.gmra.mxu3 %vm2068_vm3, %v1839_v32 }
 0x768   : > { %3897 = vmatmul.f32.gmra.mxu2 %v2006_v12  ;;  %v1887_v12 = vld [vmem:[%s8719_s2 + $0xb98] sm:$0xff] }
 0x769   : > { %v4180_v11 = vmax.f32 %v4134_v38, 0.0  ;;  %v3821_v38 = vadd.f32 %v8080_v15, %v3666_v39  ;;  %v3669_v15 = vadd.f32 %v7834_v48, %v7502_v52  ;;  %v8229_v52 = vpop.f32.mrf.mxu1  ;;  %v3672_v48 = vadd.f32 %v7859_v10, %v7519_v61 }
 0x76a   : > { %v3963_v26 = vpop.f32.mrf.mxu3  ;;  %v3675_v61 = vadd.f32 %v7876_v47, %v7535_v21  ;;  %v1935_v21 = vld [vmem:[%s8719_s2 + $0xd18] sm:$0xff] }
 0x76b   : > { %4227 = vst.msk [vmem:[%s8002_s30 + $0x48] sm:$0xff] %vm4217_vm4, %v4180_v11  ;;  %v3964_v4 = vadd.f32 %v3963_v26, %v3809_v42  ;;  %v8193_v0 = vpop.f32.mrf.mxu2 }
 0x76d   : > { %v4085_v34 = vmul.f32 %v7978_v18, %v3964_v4  ;;  %v1899_v4 = vld [vmem:[%s8719_s2 + $0xbf8] sm:$0xff] }
 0x76f   : > { %v4135_v5 = vadd.f32 %v7983_v24, %v4085_v34  ;;  %4537 = vmatmul.msk.f32.gmra.mxu3 %vm2068_vm3, %v1851_v63 }
 0x770   : > { %3900 = vmatmul.f32.gmra.mxu2 %v2018_v37  ;;  %v3824_v37 = vadd.f32 %v8097_v9, %v3669_v15 }
 0x771   : > { %v4181_v3 = vmax.f32 %v4135_v5, 0.0 }
 0x772   : > { %v3966_v27 = vpop.f32.mrf.mxu3 }
 0x773   : > { %4228 = vst.msk [vmem:[%s8002_s30 + $0x50] sm:$0xff] %vm4217_vm4, %v4181_v3  ;;  %v3967_v1 = vadd.f32 %v3966_v27, %v3812_v36  ;;  %v8216_v2 = vpop.f32.mrf.mxu2  ;;  %v1911_v3 = vld [vmem:[%s8719_s2 + $0xc58] sm:$0xff] }
 0x775   : > { %v4086_v56 = vmul.f32 %v7978_v18, %v3967_v1 }
 0x777   : > { %v4136_v31 = vadd.f32 %v7983_v24, %v4086_v56  ;;  %4538 = vmatmul.msk.f32.gmra.mxu3 %vm2068_vm3, %v1863_v8  ;;  %v3827_v8 = vadd.f32 %v8115_v13, %v3672_v48  ;;  %v3830_v13 = vadd.f32 %v8138_v40, %v3675_v61  ;;  %v8945_v61 = vld [vmem:[#allocation43_spill] sm:$0xff] }
 0x778   : > { %3903 = vmatmul.f32.gmra.mxu2 %v2030_v17 }
 0x779   : > { %v4182_v35 = vmax.f32 %v4136_v31, 0.0  ;;  %v1923_v31 = vld [vmem:[%s8719_s2 + $0xcb8] sm:$0xff] }
 0x77a   : > { %v3969_v23 = vpop.f32.mrf.mxu3 }
 0x77b   : > { %4229 = vst.msk [vmem:[%s8002_s30 + $0x58] sm:$0xff] %vm4217_vm4, %v4182_v35  ;;  %v3970_v25 = vadd.f32 %v3969_v23, %v3815_v49  ;;  %v8235_v9 = vpop.f32.mrf.mxu2  ;;  %v8248_v35 = vpop.f32.mrf.mxu1 }
 0x77d   : > { %v4087_v44 = vmul.f32 %v7978_v18, %v3970_v25 }
 0x77f   : > { %v4137_v7 = vadd.f32 %v7983_v24, %v4087_v44  ;;  %4539 = vmatmul.msk.f32.gmra.mxu3 %vm2068_vm3, %v1875_v54 }
 0x780   : > { %3906 = vmatmul.f32.gmra.mxu2 %v2042_v30  ;;  %v3678_v30 = vadd.f32 %v7892_v58, %v7549_v20  ;;  %v1947_v20 = vld [vmem:[%s8719_s2 + $0xd78] sm:$0xff] }
 0x781   : > { %v4183_v53 = vmax.f32 %v4137_v7, 0.0 }
 0x782   : > { %v3972_v59 = vpop.f32.mrf.mxu3  ;;  %v3833_v40 = vadd.f32 %v8158_v14, %v3678_v30 }
 0x783   : > { %4230 = vst.msk [vmem:[%s8002_s30 + $0x60] sm:$0xff] %vm4217_vm4, %v4183_v53  ;;  %v3973_v32 = vadd.f32 %v3972_v59, %v3818_v29  ;;  %v8251_v25 = vpop.f32.mrf.mxu2  ;;  %v8264_v29 = vpop.f32.mrf.mxu1 }
 0x785   : > { %v4088_v62 = vmul.f32 %v7978_v18, %v3973_v32 }
 0x787   : > { %v4138_v55 = vadd.f32 %v7983_v24, %v4088_v62  ;;  %4540 = vmatmul.msk.f32.gmra.mxu3 %vm2068_vm3, %v1887_v12  ;;  %v3681_v12 = vadd.f32 %v7912_v60, %v7566_v6  ;;  %v8937_v60 = vld [vmem:[#allocation18_spill] sm:$0xff] }
 0x788   : > { %3909 = vmatmul.f32.gmra.mxu2 %v2054_v19  ;;  %v2450_v6 = vadd.f32 %v8937_v60, %v5126_v50 }
 0x789   : > { %v4184_v42 = vmax.f32 %v4138_v55, 0.0  ;;  %v3836_v62 = vadd.f32 %v8175_v51, %v3681_v12  ;;  %v3684_v51 = vadd.f32 %v7939_v46, %v7582_v41  ;;  %v8940_v41 = vld [vmem:[#allocation2_spill] sm:$0xff]  ;;  %v8941_v46 = vld [vmem:[#allocation20_spill] sm:$0xff] }
 0x78a   : > { %v3975_v11 = vpop.f32.mrf.mxu3 }
 0x78b   : > { %4231 = vst.msk [vmem:[%s8002_s30 + $0x68] sm:$0xff] %vm4217_vm4, %v4184_v42  ;;  %v3976_v26 = vadd.f32 %v3975_v11, %v3821_v38  ;;  %v8268_v32 = vpop.f32.mrf.mxu2  ;;  %v8281_v38 = vpop.f32.mrf.mxu1  ;;  %v1959_v42 = vld [vmem:[%s8719_s2 + $0xdd8] sm:$0xff]  ;;  %v3839_v15 = vadd.f32 %v8193_v0, %v3684_v51  ;;  %v8955_v51 = vld [vmem:[#allocation139_spill] sm:$0xff] }
 0x78d   : > { %v4089_v63 = vmul.f32 %v7978_v18, %v3976_v26 }
 0x78f   : > { %v4139_v34 = vadd.f32 %v7983_v24, %v4089_v63  ;;  %4541 = vmatmul.msk.f32.gmra.mxu3 %vm2068_vm3, %v1899_v4  ;;  %v8938_v63 = vld [vmem:[#allocation41_spill] sm:$0xff] }
 0x790   : > { %3912 = vmatmul.f32.gmra.mxu2 %v2066_v22  ;;  %v2605_v22 = vadd.f32 %v8938_v63, %v2450_v6  ;;  %v8954_v6 = vld [vmem:[#allocation45_spill] sm:$0xff] }
 0x791   : > { %v4185_v16 = vmax.f32 %v4139_v34, 0.0 }
 0x792   : > { %v3978_v5 = vpop.f32.mrf.mxu3 }
 0x793   : > { %4232 = vst.msk [vmem:[%s8002_s30 + $0x70] sm:$0xff] %vm4217_vm4, %v4185_v16  ;;  %v3979_v36 = vadd.f32 %v3978_v5, %v3824_v37  ;;  %v8289_v26 = vpop.f32.mrf.mxu2  ;;  %v8939_v16 = vld [vmem:[#allocation65_spill] sm:$0xff]  ;;  %v8307_v0 = vpop.f32.mrf.mxu1 }
 0x794   : > { %v2760_v5 = vadd.f32 %v8939_v16, %v2605_v22 }
 0x795   : > { %v4090_v27 = vmul.f32 %v7978_v18, %v3979_v36  ;;  %v1971_v36 = vld [vmem:[%s8719_s2 + $0xe38] sm:$0xff] }
 0x797   : > { %v4140_v1 = vadd.f32 %v7983_v24, %v4090_v27  ;;  %4542 = vmatmul.msk.f32.gmra.mxu3 %vm2068_vm3, %v1911_v3  ;;  %v2453_v3 = vadd.f32 %v8941_v46, %v8940_v41  ;;  %v8942_v27 = vld [vmem:[#allocation90_spill] sm:$0xff]  ;;  %v8958_v41 = vld [vmem:[#allocation4_spill] sm:$0xff] }
 0x798   : > { %v2915_v48 = vadd.f32 %v8942_v27, %v2760_v5  ;;  %v8957_v5 = vld [vmem:[#allocation161_spill] sm:$0xff]  ;;  %v8959_v46 = vld [vmem:[#allocation24_spill] sm:$0xff]  ;;  %v8960_v27 = vld [vmem:[#allocation94_spill] sm:$0xff] }
 0x799   : > { %v4186_v56 = vmax.f32 %v4140_v1, 0.0 }
 0x79a   : > { %v3981_v17 = vpop.f32.mrf.mxu3 }
 0x79b   : > { %4233 = vst.msk [vmem:[%s8002_s30 + $0x78] sm:$0xff] %vm4217_vm4, %v4186_v56  ;;  %v3982_v43 = vadd.f32 %v3981_v17, %v3827_v8  ;;  %v8943_v8 = vld [vmem:[#allocation113_spill] sm:$0xff]  ;;  %v8944_v17 = vld [vmem:[#allocation183_spill] sm:$0xff]  ;;  %v8335_v60 = vpop.f32.mrf.mxu1 }
 0x79c   : > { %v3070_v56 = vadd.f32 %v8943_v8, %v2915_v48  ;;  %v8961_v48 = vld [vmem:[#allocation186_spill] sm:$0xff] }
 0x79d   : > { %v4091_v10 = vmul.f32 %v7978_v18, %v3982_v43  ;;  %v3687_v43 = vadd.f32 %v7959_v33, %v8944_v17 }
 0x79f   : > { %v4141_v49 = vadd.f32 %v7983_v24, %v4091_v10  ;;  %4543 = vmatmul.msk.f32.gmra.mxu3 %vm2068_vm3, %v1923_v31  ;;  %v8314_v10 = vpop.f32.mrf.mxu2 }
 0x7a1   : > { %v4187_v23 = vmax.f32 %v4141_v49, 0.0  ;;  %v2608_v49 = vadd.f32 %v8945_v61, %v2453_v3  ;;  %v2459_v3 = vadd.f32 %v8959_v46, %v8958_v41  ;;  %v8963_v61 = vld [vmem:[#allocation47_spill] sm:$0xff]  ;;  %v8976_v41 = vld [vmem:[#allocation6_spill] sm:$0xff] }
 0x7a2   : > { %v3984_v54 = vpop.f32.mrf.mxu3  ;;  %v8977_v46 = vld [vmem:[#allocation27_spill] sm:$0xff] }
 0x7a3   : > { %4234 = vst.msk [vmem:[%s8002_s30 + $0x80] sm:$0xff] %vm4217_vm4, %v4187_v23  ;;  %v3985_v44 = vadd.f32 %v3984_v54, %v3830_v13  ;;  %v8946_v13 = vld [vmem:[#allocation137_spill] sm:$0xff]  ;;  %v3842_v54 = vadd.f32 %v8216_v2, %v3687_v43 }
 0x7a4   : > { %v3225_v23 = vadd.f32 %v8946_v13, %v3070_v56  ;;  %v8962_v56 = vld [vmem:[#allocation117_spill] sm:$0xff]  ;;  %v8964_v13 = vld [vmem:[#allocation140_spill] sm:$0xff] }
 0x7a5   : > { %v4092_v47 = vmul.f32 %v7978_v18, %v3985_v44 }
 0x7a7   : > { %v4142_v57 = vadd.f32 %v7983_v24, %v4092_v47  ;;  %4544 = vmatmul.msk.f32.gmra.mxu3 %vm2068_vm3, %v1935_v21  ;;  %v8947_v47 = vld [vmem:[#allocation67_spill] sm:$0xff] }
 0x7a8   : > { %v2763_v30 = vadd.f32 %v8947_v47, %v2608_v49  ;;  %v2614_v49 = vadd.f32 %v8963_v61, %v2459_v3  ;;  %v2465_v3 = vadd.f32 %v8977_v46, %v8976_v41  ;;  %v8981_v61 = vld [vmem:[#allocation50_spill] sm:$0xff]  ;;  %v8995_v41 = vld [vmem:[#allocation31_spill] sm:$0xff] }
 0x7a9   : > { %v4188_v7 = vmax.f32 %v4142_v57, 0.0  ;;  %v8948_v57 = vld [vmem:[#allocation159_spill] sm:$0xff] }
 0x7aa   : > { %v3987_v53 = vpop.f32.mrf.mxu3 }
 0x7ab   : > { %4235 = vst.msk [vmem:[%s8002_s30 + $0x88] sm:$0xff] %vm4217_vm4, %v4188_v7  ;;  %v3988_v59 = vadd.f32 %v3987_v53, %v3833_v40  ;;  %v3380_v40 = vadd.f32 %v8948_v57, %v3225_v23  ;;  %v1983_v7 = vld [vmem:[%s8719_s2 + $0xe98] sm:$0xff]  ;;  %v8949_v53 = vld [vmem:[#allocation3_spill] sm:$0xff] }
 0x7ad   : > { %v4093_v58 = vmul.f32 %v7978_v18, %v3988_v59  ;;  %v8950_v59 = vld [vmem:[#allocation22_spill] sm:$0xff] }
 0x7af   : > { %v4143_v14 = vadd.f32 %v7983_v24, %v4093_v58  ;;  %4545 = vmatmul.msk.f32.gmra.mxu3 %vm2068_vm3, %v1947_v20  ;;  %v2456_v20 = vadd.f32 %v8950_v59, %v8949_v53  ;;  %v8951_v58 = vld [vmem:[#allocation92_spill] sm:$0xff]  ;;  %v2007_v53 = vld [vmem:[%s8719_s2 + $0xf58] sm:$0xff] }
 0x7b0   : > { %v2918_v12 = vadd.f32 %v8951_v58, %v2763_v30  ;;  %v8965_v30 = vld [vmem:[#allocation70_spill] sm:$0xff]  ;;  %v8967_v59 = vld [vmem:[#allocation5_spill] sm:$0xff]  ;;  %v8969_v58 = vld [vmem:[#allocation95_spill] sm:$0xff] }
 0x7b1   : > { %v4189_v19 = vmax.f32 %v4143_v14, 0.0  ;;  %v8952_v14 = vld [vmem:[#allocation185_spill] sm:$0xff]  ;;  %v2769_v57 = vadd.f32 %v8965_v30, %v2614_v49  ;;  %v2620_v49 = vadd.f32 %v8981_v61, %v2465_v3  ;;  %v8983_v30 = vld [vmem:[#allocation74_spill] sm:$0xff] }
 0x7b2   : > { %v3990_v39 = vpop.f32.mrf.mxu3  ;;  %v3535_v2 = vadd.f32 %v8952_v14, %v3380_v40  ;;  %v8966_v40 = vld [vmem:[#allocation163_spill] sm:$0xff]  ;;  %v8970_v14 = vld [vmem:[#allocation188_spill] sm:$0xff]  ;;  %v8996_v3 = vld [vmem:[#allocation101_spill] sm:$0xff] }
 0x7b3   : > { %4236 = vst.msk [vmem:[%s8002_s30 + $0x90] sm:$0xff] %vm4217_vm4, %v4189_v19  ;;  %v3991_v55 = vadd.f32 %v3990_v39, %v3836_v62  ;;  %v8953_v19 = vld [vmem:[#allocation115_spill] sm:$0xff] }
 0x7b4   : > { %v3073_v39 = vadd.f32 %v8953_v19, %v2918_v12  ;;  %v2924_v12 = vadd.f32 %v8969_v58, %v2769_v57  ;;  %v8971_v19 = vld [vmem:[#allocation119_spill] sm:$0xff]  ;;  %v2775_v57 = vadd.f32 %v8983_v30, %v2620_v49  ;;  %v9000_v49 = vld [vmem:[#allocation148_spill] sm:$0xff]  ;;  %v9001_v30 = vld [vmem:[#allocation78_spill] sm:$0xff] }
 0x7b5   : > { %v4094_v11 = vmul.f32 %v7978_v18, %v3991_v55  ;;  %v3690_v55 = vadd.f32 %v8229_v52, %v3535_v2 }
 0x7b7   : > { %v4144_v4 = vadd.f32 %v7983_v24, %v4094_v11  ;;  %4546 = vmatmul.msk.f32.gmra.mxu3 %vm2068_vm3, %v1959_v42  ;;  %v2611_v11 = vadd.f32 %v8954_v6, %v2456_v20  ;;  %v3845_v63 = vadd.f32 %v8235_v9, %v3690_v55  ;;  %v8968_v20 = vld [vmem:[#allocation25_spill] sm:$0xff] }
 0x7b8   : > { %v8972_v6 = vld [vmem:[#allocation49_spill] sm:$0xff] }
 0x7b9   : > { %v4190_v34 = vmax.f32 %v4144_v4, 0.0  ;;  %v3228_v4 = vadd.f32 %v8955_v51, %v3073_v39  ;;  %v3079_v39 = vadd.f32 %v8971_v19, %v2924_v12  ;;  %v8973_v51 = vld [vmem:[#allocation142_spill] sm:$0xff]  ;;  %v8988_v12 = vld [vmem:[#allocation192_spill] sm:$0xff] }
 0x7ba   : > { %v3993_v37 = vpop.f32.mrf.mxu3 }
 0x7bb   : > { %4237 = vst.msk [vmem:[%s8002_s30 + $0x98] sm:$0xff] %vm4217_vm4, %v4190_v34  ;;  %v3994_v50 = vadd.f32 %v3993_v37, %v3839_v15  ;;  %v8340_v15 = vpop.f32.mrf.mxu2  ;;  %v8956_v37 = vld [vmem:[#allocation69_spill] sm:$0xff]  ;;  %v3383_v52 = vadd.f32 %v8957_v5, %v3228_v4  ;;  %v3234_v4 = vadd.f32 %v8973_v51, %v3079_v39  ;;  %v8991_v51 = vld [vmem:[#allocation146_spill] sm:$0xff] }
 0x7bc   : > { %v2766_v16 = vadd.f32 %v8956_v37, %v2611_v11  ;;  %v8974_v37 = vld [vmem:[#allocation72_spill] sm:$0xff]  ;;  %v8975_v5 = vld [vmem:[#allocation165_spill] sm:$0xff] }
 0x7bd   : > { %v4095_v1 = vmul.f32 %v7978_v18, %v3994_v50 }
 0x7be   : > { %v2921_v9 = vadd.f32 %v8960_v27, %v2766_v16  ;;  %v8978_v27 = vld [vmem:[#allocation97_spill] sm:$0xff] }
 0x7bf   : > { %v4145_v31 = vadd.f32 %v7983_v24, %v4095_v1  ;;  %4547 = vmatmul.msk.f32.gmra.mxu3 %vm2068_vm3, %v1971_v36  ;;  %v1995_v36 = vld [vmem:[%s8719_s2 + $0xef8] sm:$0xff]  ;;  %v3538_v1 = vadd.f32 %v8961_v48, %v3383_v52  ;;  %v3389_v52 = vadd.f32 %v8975_v5, %v3234_v4  ;;  %v8993_v5 = vld [vmem:[#allocation168_spill] sm:$0xff] }
 0x7c0   : > { %v3076_v17 = vadd.f32 %v8962_v56, %v2921_v9  ;;  %v8979_v9 = vld [vmem:[#allocation190_spill] sm:$0xff]  ;;  %v8980_v56 = vld [vmem:[#allocation120_spill] sm:$0xff] }
 0x7c1   : > { %v4191_v44 = vmax.f32 %v4145_v31, 0.0  ;;  %v3693_v43 = vadd.f32 %v8248_v35, %v3538_v1  ;;  %v3544_v48 = vadd.f32 %v8979_v9, %v3389_v52 }
 0x7c2   : > { %v3996_v21 = vpop.f32.mrf.mxu3  ;;  %v3231_v23 = vadd.f32 %v8964_v13, %v3076_v17  ;;  %v8982_v13 = vld [vmem:[#allocation144_spill] sm:$0xff] }
 0x7c3   : > { %4238 = vst.msk [vmem:[%s8002_s30 + $0xa0] sm:$0xff] %vm4217_vm4, %v4191_v44  ;;  %v3997_v33 = vadd.f32 %v3996_v21, %v3842_v54  ;;  %v3848_v54 = vadd.f32 %v8251_v25, %v3693_v43  ;;  %v8361_v21 = vpop.f32.mrf.mxu1  ;;  %v2462_v25 = vadd.f32 %v8968_v20, %v8967_v59  ;;  %v3699_v43 = vadd.f32 %v8281_v38, %v3544_v48  ;;  %v2031_v38 = vld [vmem:[%s8719_s2 + $0x1018] sm:$0xff]  ;;  %v8998_v48 = vld [vmem:[#allocation124_spill] sm:$0xff] }
 0x7c4   : > { %v8986_v59 = vld [vmem:[#allocation29_spill] sm:$0xff] }
 0x7c5   : > { %v4096_v62 = vmul.f32 %v7978_v18, %v3997_v33  ;;  %v3386_v33 = vadd.f32 %v8966_v40, %v3231_v23  ;;  %v2617_v11 = vadd.f32 %v8972_v6, %v2462_v25  ;;  %v8984_v40 = vld [vmem:[#allocation167_spill] sm:$0xff]  ;;  %v8990_v6 = vld [vmem:[#allocation52_spill] sm:$0xff] }
 0x7c6   : > { %v8987_v25 = vld [vmem:[#allocation99_spill] sm:$0xff] }
 0x7c7   : > { %v4146_v42 = vadd.f32 %v7983_v24, %v4096_v62  ;;  %4548 = vmatmul.msk.f32.gmra.mxu3 %vm2068_vm3, %v1983_v7  ;;  %v8367_v7 = vpop.f32.mrf.mxu2  ;;  %v3541_v2 = vadd.f32 %v8970_v14, %v3386_v33  ;;  %v2772_v16 = vadd.f32 %v8974_v37, %v2617_v11  ;;  %v2930_v58 = vadd.f32 %v8987_v25, %v2775_v57  ;;  %v8992_v37 = vld [vmem:[#allocation76_spill] sm:$0xff]  ;;  %v9006_v25 = vld [vmem:[#allocation195_spill] sm:$0xff] }
 0x7c9   : > { %v4192_v22 = vmax.f32 %v4146_v42, 0.0  ;;  %v3696_v55 = vadd.f32 %v8264_v29, %v3541_v2 }
 0x7ca   : > { %v3999_v34 = vpop.f32.mrf.mxu3 }
 0x7cb   : > { %4239 = vst.msk [vmem:[%s8002_s30 + $0xa8] sm:$0xff] %vm4217_vm4, %v4192_v22  ;;  %v4000_v50 = vadd.f32 %v3999_v34, %v3845_v63  ;;  %v3851_v63 = vadd.f32 %v8268_v32, %v3696_v55  ;;  %v8388_v29 = vpop.f32.mrf.mxu1  ;;  %v2927_v32 = vadd.f32 %v8978_v27, %v2772_v16 }
 0x7cd   : > { %v4097_v8 = vmul.f32 %v7978_v18, %v4000_v50  ;;  %v3082_v17 = vadd.f32 %v8980_v56, %v2927_v32  ;;  %v8997_v32 = vld [vmem:[#allocation194_spill] sm:$0xff] }
 0x7cf   : > { %v4147_v31 = vadd.f32 %v7983_v24, %v4097_v8  ;;  %4549 = vmatmul.msk.f32.gmra.mxu3 %vm2068_vm3, %v1995_v36  ;;  %v2019_v36 = vld [vmem:[%s8719_s2 + $0xfb8] sm:$0xff]  ;;  %v8398_v8 = vpop.f32.mrf.mxu2  ;;  %v3237_v23 = vadd.f32 %v8982_v13, %v3082_v17 }
 0x7d1   : > { %v4193_v44 = vmax.f32 %v4147_v31, 0.0  ;;  %v3392_v33 = vadd.f32 %v8984_v40, %v3237_v23  ;;  %v9002_v40 = vld [vmem:[#allocation170_spill] sm:$0xff] }
 0x7d2   : > { %v4002_v47 = vpop.f32.mrf.mxu3 }
 0x7d3   : > { %4240 = vst.msk [vmem:[%s8002_s30 + $0xb0] sm:$0xff] %vm4217_vm4, %v4193_v44  ;;  %v4003_v35 = vadd.f32 %v4002_v47, %v3848_v54  ;;  %v3854_v54 = vadd.f32 %v8289_v26, %v3699_v43  ;;  %v3547_v26 = vadd.f32 %v8988_v12, %v3392_v33  ;;  %v8419_v2 = vpop.f32.mrf.mxu1 }
 0x7d5   : > { %v4098_v62 = vmul.f32 %v7978_v18, %v4003_v35  ;;  %v3702_v39 = vadd.f32 %v8307_v0, %v3547_v26  ;;  %v9007_v26 = vld [vmem:[#allocation126_spill] sm:$0xff] }
 0x7d7   : > { %v4148_v42 = vadd.f32 %v7983_v24, %v4098_v62  ;;  %4550 = vmatmul.msk.f32.gmra.mxu3 %vm2068_vm3, %v2007_v53  ;;  %v8985_v53 = vld [vmem:[#allocation7_spill] sm:$0xff]  ;;  %v8989_v62 = vld [vmem:[#allocation122_spill] sm:$0xff] }
 0x7d8   : > { %v2468_v20 = vadd.f32 %v8986_v59, %v8985_v53  ;;  %v3085_v19 = vadd.f32 %v8989_v62, %v2930_v58  ;;  %v9004_v53 = vld [vmem:[#allocation33_spill] sm:$0xff] }
 0x7d9   : > { %v4194_v22 = vmax.f32 %v4148_v42, 0.0  ;;  %v8425_v42 = vpop.f32.mrf.mxu2 }
 0x7da   : > { %v4005_v34 = vpop.f32.mrf.mxu3  ;;  %v2623_v11 = vadd.f32 %v8990_v6, %v2468_v20  ;;  %v3240_v4 = vadd.f32 %v8991_v51, %v3085_v19  ;;  %v9005_v20 = vld [vmem:[#allocation103_spill] sm:$0xff]  ;;  %v9009_v6 = vld [vmem:[#allocation150_spill] sm:$0xff] }
 0x7db   : > { %4241 = vst.msk [vmem:[%s8002_s30 + $0xb8] sm:$0xff] %vm4217_vm4, %v4194_v22  ;;  %v4006_v50 = vadd.f32 %v4005_v34, %v3851_v63  ;;  %v3857_v63 = vadd.f32 %v8314_v10, %v3702_v39  ;;  %v8446_v43 = vpop.f32.mrf.mxu1  ;;  %v9008_v39 = vld [vmem:[#allocation56_spill] sm:$0xff] }
 0x7dc   : > { %v2778_v16 = vadd.f32 %v8992_v37, %v2623_v11  ;;  %v3395_v52 = vadd.f32 %v8993_v5, %v3240_v4 }
 0x7dd   : > { %v4099_v1 = vmul.f32 %v7978_v18, %v4006_v50  ;;  %v2043_v50 = vld [vmem:[%s8719_s2 + $0x1078] sm:$0xff] }
 0x7de   : > { %v2933_v27 = vadd.f32 %v8996_v3, %v2778_v16  ;;  %v3550_v10 = vadd.f32 %v8997_v32, %v3395_v52  ;;  %v9011_v16 = vld [vmem:[#allocation172_spill] sm:$0xff]  ;;  %v9015_v3 = vld [vmem:[#allocation197_spill] sm:$0xff] }
 0x7df   : > { %v4149_v31 = vadd.f32 %v7983_v24, %v4099_v1  ;;  %4551 = vmatmul.msk.f32.gmra.mxu3 %vm2068_vm3, %v2019_v36  ;;  %v8994_v36 = vld [vmem:[#allocation8_spill] sm:$0xff] }
 0x7e0   : > { %v2471_v46 = vadd.f32 %v8995_v41, %v8994_v36  ;;  %v3088_v1 = vadd.f32 %v8998_v48, %v2933_v27  ;;  %v3705_v56 = vadd.f32 %v8335_v60, %v3550_v10  ;;  %v9013_v36 = vld [vmem:[#allocation34_spill] sm:$0xff]  ;;  %v9014_v41 = vld [vmem:[#allocation104_spill] sm:$0xff] }
 0x7e1   : > { %v4195_v44 = vmax.f32 %v4149_v31, 0.0  ;;  %v8999_v31 = vld [vmem:[#allocation54_spill] sm:$0xff]  ;;  %v9016_v10 = vld [vmem:[#allocation128_spill] sm:$0xff] }
 0x7e2   : > { %v4008_v47 = vpop.f32.mrf.mxu3  ;;  %v2626_v61 = vadd.f32 %v8999_v31, %v2471_v46  ;;  %v3243_v13 = vadd.f32 %v9000_v49, %v3088_v1  ;;  %v3860_v23 = vadd.f32 %v8340_v15, %v3705_v56  ;;  %v9017_v56 = vld [vmem:[#allocation58_spill] sm:$0xff]  ;;  %v9018_v31 = vld [vmem:[#allocation152_spill] sm:$0xff] }
 0x7e3   : > { %4242 = vst.msk [vmem:[%s8002_s30 + $0xc0] sm:$0xff] %vm4217_vm4, %v4195_v44  ;;  %v4009_v35 = vadd.f32 %v4008_v47, %v3854_v54  ;;  %v8451_v44 = vpop.f32.mrf.mxu2 }
 0x7e4   : > { %v2781_v57 = vadd.f32 %v9001_v30, %v2626_v61  ;;  %v3398_v60 = vadd.f32 %v9002_v40, %v3243_v13  ;;  %v9020_v30 = vld [vmem:[#allocation174_spill] sm:$0xff] }
 0x7e5   : > { %v4100_v14 = vmul.f32 %v7978_v18, %v4009_v35  ;;  %v2055_v35 = vld [vmem:[%s8719_s2 + $0x10d8] sm:$0xff] }
 0x7e6   : > { %v2936_v15 = vadd.f32 %v9005_v20, %v2781_v57  ;;  %v3553_v58 = vadd.f32 %v9006_v25, %v3398_v60  ;;  %v9021_v60 = vld [vmem:[#allocation11_spill] sm:$0xff]  ;;  %v9025_v25 = vld [vmem:[#allocation129_spill] sm:$0xff] }
 0x7e7   : > { %v4150_v55 = vadd.f32 %v7983_v24, %v4100_v14  ;;  %4552 = vmatmul.msk.f32.gmra.mxu3 %vm2068_vm3, %v2031_v38  ;;  %v9003_v38 = vld [vmem:[#allocation9_spill] sm:$0xff] }
 0x7e8   : > { %v2474_v59 = vadd.f32 %v9004_v53, %v9003_v38  ;;  %v3091_v14 = vadd.f32 %v9007_v26, %v2936_v15  ;;  %v3708_v62 = vadd.f32 %v8361_v21, %v3553_v58  ;;  %v9023_v38 = vld [vmem:[#allocation106_spill] sm:$0xff] }
 0x7e9   : > { %v4196_v22 = vmax.f32 %v4150_v55, 0.0 }
 0x7ea   : > { %v4011_v34 = vpop.f32.mrf.mxu3  ;;  %v2629_v55 = vadd.f32 %v9008_v39, %v2474_v59  ;;  %v3246_v11 = vadd.f32 %v9009_v6, %v3091_v14  ;;  %v3863_v51 = vadd.f32 %v8367_v7, %v3708_v62  ;;  %v9024_v59 = vld [vmem:[#allocation199_spill] sm:$0xff] }
 0x7eb   : > { %4243 = vst.msk [vmem:[%s8002_s30 + $0xc8] sm:$0xff] %vm4217_vm4, %v4196_v22  ;;  %v4012_v0 = vadd.f32 %v4011_v34, %v3857_v63  ;;  %v8472_v63 = vpop.f32.mrf.mxu1  ;;  %v9010_v34 = vld [vmem:[#allocation79_spill] sm:$0xff]  ;;  %v8478_v52 = vpop.f32.mrf.mxu2 }
 0x7ec   : > { %v2784_v37 = vadd.f32 %v9010_v34, %v2629_v55  ;;  %v3401_v5 = vadd.f32 %v9011_v16, %v3246_v11  ;;  %v9026_v14 = vld [vmem:[#allocation59_spill] sm:$0xff]  ;;  %v9030_v16 = vld [vmem:[#allocation12_spill] sm:$0xff] }
 0x7ed   : > { %v4101_v9 = vmul.f32 %v7978_v18, %v4012_v0  ;;  %v2067_v0 = vld [vmem:[%s8719_s2 + $0x1138] sm:$0x1] }
 0x7ee   : > { %v2939_v46 = vadd.f32 %v9014_v41, %v2784_v37  ;;  %v3556_v27 = vadd.f32 %v9015_v3, %v3401_v5  ;;  %v9031_v5 = vld [vmem:[#allocation36_spill] sm:$0xff]  ;;  %v9034_v41 = vld [vmem:[#allocation131_spill] sm:$0xff] }
 0x7ef   : > { %v4151_v17 = vadd.f32 %v7983_v24, %v4101_v9  ;;  %4553 = vmatmul.msk.f32.gmra.mxu3 %vm2068_vm3, %v2043_v50  ;;  %v9012_v50 = vld [vmem:[#allocation10_spill] sm:$0xff] }
 0x7f0   : > { %v2477_v7 = vadd.f32 %v9013_v36, %v9012_v50  ;;  %v3094_v9 = vadd.f32 %v9016_v10, %v2939_v46  ;;  %v3711_v48 = vadd.f32 %v8388_v29, %v3556_v27  ;;  %v9033_v50 = vld [vmem:[#allocation201_spill] sm:$0xff]  ;;  %v9035_v10 = vld [vmem:[#allocation60_spill] sm:$0xff] }
 0x7f1   : > { %v4197_v54 = vmax.f32 %v4151_v17, 0.0 }
 0x7f2   : > { %v4014_v47 = vpop.f32.mrf.mxu3  ;;  %v2632_v17 = vadd.f32 %v9017_v56, %v2477_v7  ;;  %v3249_v61 = vadd.f32 %v9018_v31, %v3094_v9  ;;  %v3866_v49 = vadd.f32 %v8398_v8, %v3711_v48  ;;  %v9036_v48 = vld [vmem:[#allocation155_spill] sm:$0xff] }
 0x7f3   : > { %4244 = vst.msk [vmem:[%s8002_s30 + $0xd0] sm:$0xff] %vm4217_vm4, %v4197_v54  ;;  %v4015_v33 = vadd.f32 %v4014_v47, %v3860_v23  ;;  %v9019_v54 = vld [vmem:[#allocation81_spill] sm:$0xff]  ;;  %v3722_v29 = vpop.f32.mrf.mxu1  ;;  %v3877_v15 = vpop.f32.mrf.mxu2 }
 0x7f4   : > { %v2787_v47 = vadd.f32 %v9019_v54, %v2632_v17  ;;  %v3404_v57 = vadd.f32 %v9020_v30, %v3249_v61  ;;  %v9037_v61 = vld [vmem:[#allocation84_spill] sm:$0xff] }
 0x7f5   : > { %v4102_v12 = vmul.f32 %v7978_v18, %v4015_v33  ;;  %v9022_v33 = vld [vmem:[#allocation35_spill] sm:$0xff] }
 0x7f6   : > { %v2942_v53 = vadd.f32 %v9023_v38, %v2787_v47  ;;  %v3559_v20 = vadd.f32 %v9024_v59, %v3404_v57  ;;  %v9039_v47 = vld [vmem:[#allocation13_spill] sm:$0xff]  ;;  %v9041_v57 = vld [vmem:[#allocation108_spill] sm:$0xff] }
 0x7f7   : > { %v4152_v19 = vadd.f32 %v7983_v24, %v4102_v12  ;;  %4554 = vmatmul.msk.f32.gmra.mxu3 %vm2068_vm3, %v2055_v35  ;;  %v2480_v35 = vadd.f32 %v9022_v33, %v9021_v60  ;;  %v9042_v60 = vld [vmem:[#allocation203_spill] sm:$0xff] }
 0x7f8   : > { %v3097_v58 = vadd.f32 %v9025_v25, %v2942_v53  ;;  %v3714_v12 = vadd.f32 %v8419_v2, %v3559_v20  ;;  %v2483_v2 = vadd.f32 %v9031_v5, %v9030_v16  ;;  %v9051_v16 = vld [vmem:[#allocation204_spill] sm:$0xff] }
 0x7f9   : > { %v4198_v4 = vmax.f32 %v4152_v19, 0.0  ;;  %v2635_v62 = vadd.f32 %v9026_v14, %v2480_v35  ;;  %v9027_v19 = vld [vmem:[#allocation154_spill] sm:$0xff] }
 0x7fa   : > { %v4017_v22 = vpop.f32.mrf.mxu3  ;;  %v3252_v39 = vadd.f32 %v9027_v19, %v3097_v58  ;;  %v3869_v55 = vadd.f32 %v8425_v42, %v3714_v12  ;;  %v2638_v9 = vadd.f32 %v9035_v10, %v2483_v2  ;;  %v9045_v58 = vld [vmem:[#allocation156_spill] sm:$0xff]  ;;  %v9052_v2 = vld [vmem:[#allocation133_spill] sm:$0xff] }
 0x7fb   : > { %4245 = vst.msk [vmem:[%s8002_s30 + $0xd8] sm:$0xff] %vm4217_vm4, %v4198_v4  ;;  %v4018_v21 = vadd.f32 %v4017_v22, %v3863_v51  ;;  %v9028_v51 = vld [vmem:[#allocation83_spill] sm:$0xff]  ;;  %v9029_v22 = vld [vmem:[#allocation176_spill] sm:$0xff]  ;;  %v3725_v42 = vpop.f32.mrf.mxu1 }
 0x7fc   : > { %v2790_v4 = vadd.f32 %v9028_v51, %v2635_v62  ;;  %v3407_v34 = vadd.f32 %v9029_v22, %v3252_v39  ;;  %v9046_v39 = vld [vmem:[#allocation85_spill] sm:$0xff] }
 0x7fd   : > { %v4103_v32 = vmul.f32 %v7978_v18, %v4018_v21  ;;  %v9032_v21 = vld [vmem:[#allocation107_spill] sm:$0xff] }
 0x7fe   : > { %v3562_v36 = vadd.f32 %v9033_v50, %v3407_v34  ;;  %v9050_v34 = vld [vmem:[#allocation109_spill] sm:$0xff] }
 0x7ff   : > { %v4153_v1 = vadd.f32 %v7983_v24, %v4103_v32  ;;  %4555 = vmatmul.msk.f32.gmra.mxu3 %vm2068_vm3, %v2067_v0  ;;  %v2945_v0 = vadd.f32 %v9032_v21, %v2790_v4  ;;  %v3880_v32 = vpop.f32.mrf.mxu2  ;;  %v9049_v4 = vld [vmem:[#allocation38_spill] sm:$0xff] }
 0x800   : > { %v3717_v3 = vadd.f32 %v8446_v43, %v3562_v36  ;;  %v9040_v43 = vld [vmem:[#allocation37_spill] sm:$0xff]  ;;  %v9053_v36 = vld [vmem:[#allocation62_spill] sm:$0xff] }
 0x801   : > { %v4199_v13 = vmax.f32 %v4153_v1, 0.0  ;;  %v3100_v46 = vadd.f32 %v9034_v41, %v2945_v0  ;;  %v2486_v30 = vadd.f32 %v9040_v43, %v9039_v47  ;;  %v9054_v41 = vld [vmem:[#allocation157_spill] sm:$0xff]  ;;  %v9060_v47 = vld [vmem:[#allocation206_spill] sm:$0xff] }
 0x802   : > { %v4020_v23 = vpop.f32.mrf.mxu3  ;;  %v3872_v56 = vadd.f32 %v8451_v44, %v3717_v3  ;;  %v9043_v44 = vld [vmem:[#allocation132_spill] sm:$0xff] }
 0x803   : > { %4246 = vst.msk [vmem:[%s8002_s30 + $0xe0] sm:$0xff] %vm4217_vm4, %v4199_v13  ;;  %v4021_v40 = vadd.f32 %v4020_v23, %v3866_v49  ;;  %v3255_v1 = vadd.f32 %v9036_v48, %v3100_v46  ;;  %v2793_v49 = vadd.f32 %v9037_v61, %v2638_v9  ;;  %v9038_v13 = vld [vmem:[#allocation178_spill] sm:$0xff]  ;;  %v3728_v20 = vpop.f32.mrf.mxu1 }
 0x804   : > { %v9055_v48 = vld [vmem:[#allocation86_spill] sm:$0xff] }
 0x805   : > { %v4104_v8 = vmul.f32 %v7978_v18, %v4021_v40  ;;  %v3410_v23 = vadd.f32 %v9038_v13, %v3255_v1  ;;  %v2948_v40 = vadd.f32 %v9041_v57, %v2793_v49  ;;  %v9058_v49 = vld [vmem:[#allocation39_spill] sm:$0xff] }
 0x807   : > { %v4154_v26 = vadd.f32 %v7983_v24, %v4104_v8  ;;  %v3565_v33 = vadd.f32 %v9042_v60, %v3410_v23  ;;  %v3103_v38 = vadd.f32 %v9043_v44, %v2948_v40  ;;  %v9044_v8 = vld [vmem:[#allocation61_spill] sm:$0xff]  ;;  %v3883_v62 = vpop.f32.mrf.mxu2  ;;  %v9059_v23 = vld [vmem:[#allocation110_spill] sm:$0xff] }
 0x808   : > { %v2641_v25 = vadd.f32 %v9044_v8, %v2486_v30  ;;  %v9061_v30 = vld [vmem:[#allocation134_spill] sm:$0xff] }
 0x809   : > { %v4200_v6 = vmax.f32 %v4154_v26, 0.0  ;;  %v3720_v53 = vadd.f32 %v8472_v63, %v3565_v33  ;;  %v3258_v12 = vadd.f32 %v9045_v58, %v3103_v38  ;;  %v9048_v63 = vld [vmem:[#allocation14_spill] sm:$0xff]  ;;  %v9062_v33 = vld [vmem:[#allocation63_spill] sm:$0xff] }
 0x80a   : > { %v4023_v11 = vpop.f32.mrf.mxu3  ;;  %v2489_v22 = vadd.f32 %v9049_v4, %v9048_v63  ;;  %v9063_v44 = vld [vmem:[#allocation158_spill] sm:$0xff]  ;;  %v9070_v4 = vld [vmem:[#allocation135_spill] sm:$0xff] }
 0x80b   : > { %4247 = vst.msk [vmem:[%s8002_s30 + $0xe8] sm:$0xff] %vm4217_vm4, %v4200_v6  ;;  %v4024_v37 = vadd.f32 %v4023_v11, %v3869_v55  ;;  %v3875_v26 = vadd.f32 %v8478_v52, %v3720_v53  ;;  %v2796_v55 = vadd.f32 %v9046_v39, %v2641_v25  ;;  %v9047_v6 = vld [vmem:[#allocation180_spill] sm:$0xff]  ;;  %v3731_v10 = vpop.f32.mrf.mxu1  ;;  %v9064_v25 = vld [vmem:[#allocation87_spill] sm:$0xff] }
 0x80c   : > { %v3413_v11 = vadd.f32 %v9047_v6, %v3258_v12  ;;  %v9065_v12 = vld [vmem:[#allocation182_spill] sm:$0xff]  ;;  %v9067_v39 = vld [vmem:[#allocation40_spill] sm:$0xff]  ;;  %v9069_v6 = vld [vmem:[#allocation207_spill] sm:$0xff] }
 0x80d   : > { %v4105_v7 = vmul.f32 %v7978_v18, %v4024_v37  ;;  %v2951_v37 = vadd.f32 %v9050_v34, %v2796_v55  ;;  %v9068_v55 = vld [vmem:[#allocation111_spill] sm:$0xff] }
 0x80e   : > { %v3568_v5 = vadd.f32 %v9051_v16, %v3413_v11 }
 0x80f   : > { %v4155_v27 = vadd.f32 %v7983_v24, %v4105_v7  ;;  %v3106_v21 = vadd.f32 %v9052_v2, %v2951_v37  ;;  %v2644_v7 = vadd.f32 %v9053_v36, %v2489_v22  ;;  %v3886_v61 = vpop.f32.mrf.mxu2  ;;  %v8584_v37 = vld [vmem:[%s8721_s4] ss:$0 sm:$0xff]  ;;  %v9072_v2 = vld [vmem:[#allocation160_spill] sm:$0xff] }
 0x810   : > { %v3723_v0 = vadd.f32 %v3722_v29, %v3568_v5  ;;  %v9057_v29 = vld [vmem:[#allocation15_spill] sm:$0xff]  ;;  %v9071_v5 = vld [vmem:[#allocation64_spill] sm:$0xff] }
 0x811   : > { %v4201_v17 = vmax.f32 %v4155_v27, 0.0  ;;  %v3261_v46 = vadd.f32 %v9054_v41, %v3106_v21  ;;  %v2799_v1 = vadd.f32 %v9055_v48, %v2644_v7  ;;  %v2492_v13 = vadd.f32 %v9058_v49, %v9057_v29  ;;  %v9073_v7 = vld [vmem:[#allocation88_spill] sm:$0xff] }
 0x812   : > { %v4026_v31 = vpop.f32.mrf.mxu3  ;;  %v3878_v3 = vadd.f32 %v3877_v15, %v3723_v0  ;;  %v9079_v49 = vld [vmem:[#allocation136_spill] sm:$0xff] }
 0x813   : > { %4248 = vst.msk [vmem:[%s8002_s30 + $0xf0] sm:$0xff] %vm4217_vm4, %v4201_v17  ;;  %v4027_v54 = vadd.f32 %v4026_v31, %v3872_v56  ;;  %v9056_v56 = vld [vmem:[#allocation181_spill] sm:$0xff] }
 0x814   : > { %v3416_v17 = vadd.f32 %v9056_v56, %v3261_v46  ;;  %v9074_v46 = vld [vmem:[#allocation184_spill] sm:$0xff] }
 0x815   : > { %v4106_v35 = vmul.f32 %v7978_v18, %v4027_v54  ;;  %v2954_v54 = vadd.f32 %v9059_v23, %v2799_v1  ;;  %v9077_v1 = vld [vmem:[#allocation112_spill] sm:$0xff] }
 0x816   : > { %v3571_v43 = vadd.f32 %v9060_v47, %v3416_v17  ;;  %v9078_v17 = vld [vmem:[#allocation208_spill] sm:$0xff] }
 0x817   : > { %v4156_v59 = vadd.f32 %v7983_v24, %v4106_v35  ;;  %v3109_v57 = vadd.f32 %v9061_v30, %v2954_v54  ;;  %v2647_v35 = vadd.f32 %v9062_v33, %v2492_v13  ;;  %v3889_v63 = vpop.f32.mrf.mxu2  ;;  %v9081_v30 = vld [vmem:[#allocation162_spill] sm:$0xff] }
 0x818   : > { %v3726_v40 = vadd.f32 %v3725_v42, %v3571_v43  ;;  %v9080_v43 = vld [vmem:[#allocation66_spill] sm:$0xff] }
 0x819   : > { %v4202_v14 = vmax.f32 %v4156_v59, 0.0  ;;  %v3264_v38 = vadd.f32 %v9063_v44, %v3109_v57  ;;  %v2802_v58 = vadd.f32 %v9064_v25, %v2647_v35  ;;  %v9082_v35 = vld [vmem:[#allocation89_spill] sm:$0xff]  ;;  %v9085_v25 = vld [vmem:[#allocation44_spill] sm:$0xff] }
 0x81a   : > { %v4029_v19 = vpop.f32.mrf.mxu3  ;;  %v3881_v53 = vadd.f32 %v3880_v32, %v3726_v40  ;;  %v8577_v32 = vld [vmem:[%s8720_s3] ss:$0 sm:$0xff] }
 0x81b   : > { %4249 = vst.msk [vmem:[%s8002_s30 + $0xf8] sm:$0xff] %vm4217_vm4, %v4202_v14  ;;  %v4030_v51 = vadd.f32 %v4029_v19, %v3875_v26  ;;  %v3419_v26 = vadd.f32 %v9065_v12, %v3264_v38  ;;  %v9066_v19 = vld [vmem:[#allocation16_spill] sm:$0xff]  ;;  %v9083_v38 = vld [vmem:[#allocation187_spill] sm:$0xff] }
 0x81c   : > { %v2495_v42 = vadd.f32 %v9067_v39, %v9066_v19 }
 0x81d   : > { %v4107_v52 = vmul.f32 %v7978_v18, %v4030_v51  ;;  %v3574_v11 = vadd.f32 %v9069_v6, %v3419_v26  ;;  %v9087_v26 = vld [vmem:[#allocation209_spill] sm:$0xff]  ;;  %v9089_v6 = vld [vmem:[#allocation68_spill] sm:$0xff] }
 0x81f   : > { %v4157_v50 = vadd.f32 %v7983_v24, %v4107_v52  ;;  %v3729_v34 = vadd.f32 %v3728_v20, %v3574_v11  ;;  %v2650_v52 = vadd.f32 %v9071_v5, %v2495_v42  ;;  %v3892_v47 = vpop.f32.mrf.mxu2 }
 0x821   : > { %v4203_v27 = vmax.f32 %v4157_v50, 0.0  ;;  %v3884_v0 = vadd.f32 %v3883_v62, %v3729_v34  ;;  %v2805_v41 = vadd.f32 %v9073_v7, %v2650_v52  ;;  %v9091_v52 = vld [vmem:[#allocation91_spill] sm:$0xff] }
 0x822   : > { %v4032_v9 = vpop.f32.mrf.mxu3 }
 0x823   : > { %4250 = vst.msk [vmem:[%s8002_s30 + $0x100] sm:$0xff] %vm4217_vm4, %v4203_v27  ;;  %v4033_v31 = vadd.f32 %v4032_v9, %v3878_v3  ;;  %v9075_v27 = vld [vmem:[#allocation17_spill] sm:$0xff]  ;;  %v9076_v9 = vld [vmem:[#allocation42_spill] sm:$0xff]  ;;  %v2960_v56 = vadd.f32 %v9077_v1, %v2805_v41  ;;  %v9095_v41 = vld [vmem:[#allocation116_spill] sm:$0xff] }
 0x824   : > { %v2498_v48 = vadd.f32 %v9076_v9, %v9075_v27  ;;  %v9097_v27 = vld [vmem:[#allocation141_spill] sm:$0xff] }
 0x825   : > { %v4108_v15 = vmul.f32 %v7978_v18, %v4033_v31  ;;  %v3734_v18 = vpop.f32.mrf.mxu1  ;;  %v3115_v13 = vadd.f32 %v9079_v49, %v2960_v56  ;;  %v9098_v56 = vld [vmem:[#allocation71_spill] sm:$0xff] }
 0x827   : > { %v4158_v60 = vadd.f32 %v7983_v24, %v4108_v15  ;;  %v2957_v24 = vadd.f32 %v9068_v55, %v2802_v58  ;;  %v2653_v15 = vadd.f32 %v9080_v43, %v2498_v48  ;;  %v3270_v57 = vadd.f32 %v9081_v30, %v3115_v13  ;;  %v9086_v58 = vld [vmem:[#allocation114_spill] sm:$0xff]  ;;  %v9100_v43 = vld [vmem:[#allocation93_spill] sm:$0xff]  ;;  %v9101_v30 = vld [vmem:[#allocation191_spill] sm:$0xff] }
 0x829   : > { %v4204_v59 = vmax.f32 %v4158_v60, 0.0  ;;  %v3112_v22 = vadd.f32 %v9070_v4, %v2957_v24  ;;  %v2808_v44 = vadd.f32 %v9082_v35, %v2653_v15 }
 0x82a   : > { %v4035_v8 = vpop.f32.mrf.mxu3 }
 0x82b   : > { %4251 = vst.msk [vmem:[%s8002_s30 + $0x108] sm:$0xff] %vm4217_vm4, %v4204_v59  ;;  %v4036_v14 = vadd.f32 %v4035_v8, %v3881_v53  ;;  %v3267_v21 = vadd.f32 %v9072_v2, %v3112_v22  ;;  %v3425_v53 = vadd.f32 %v9083_v38, %v3270_v57  ;;  %v9084_v8 = vld [vmem:[#allocation19_spill] sm:$0xff]  ;;  %v2963_v12 = vadd.f32 %v9086_v58, %v2808_v44  ;;  %v9104_v44 = vld [vmem:[#allocation118_spill] sm:$0xff] }
 0x82d   : > { %v4109_v51 = vmul.f32 %v8577_v32, %v4036_v14  ;;  %v3422_v3 = vadd.f32 %v9074_v46, %v3267_v21  ;;  %v3737_v62 = vpop.f32.mrf.mxu1  ;;  %v3580_v14 = vadd.f32 %v9087_v26, %v3425_v53  ;;  %v9092_v21 = vld [vmem:[#allocation189_spill] sm:$0xff]  ;;  %v9105_v53 = vld [vmem:[#allocation211_spill] sm:$0xff] }
 0x82f   : > { %v4159_v16 = vadd.f32 %v8584_v37, %v4109_v51  ;;  %v3577_v31 = vadd.f32 %v9078_v17, %v3422_v3  ;;  %v3735_v42 = vadd.f32 %v3734_v18, %v3580_v14  ;;  %v9090_v51 = vld [vmem:[#allocation164_spill] sm:$0xff]  ;;  %v9094_v18 = vld [vmem:[#allocation46_spill] sm:$0xff]  ;;  %v9108_v14 = vld [vmem:[#allocation169_spill] sm:$0xff] }
 0x830   : > { %v9096_v3 = vld [vmem:[#allocation210_spill] sm:$0xff] }
 0x831   : > { %v4205_v50 = vmax.f32 %v4159_v16, 0.0  ;;  %v3732_v23 = vadd.f32 %v3731_v10, %v3577_v31  ;;  %v2501_v10 = vadd.f32 %v9085_v25, %v9084_v8  ;;  %v3890_v22 = vadd.f32 %v3889_v63, %v3735_v42  ;;  %v3895_v16 = vpop.f32.mrf.mxu2  ;;  %v9099_v31 = vld [vmem:[#allocation166_spill] sm:$0xff]  ;;  %v9106_v8 = vld [vmem:[#allocation143_spill] sm:$0xff] }
 0x832   : > { %v4038_v36 = vpop.f32.mrf.mxu3 }
 0x833   : > { %4252 = vst.msk [vmem:[%s8002_s30 + $0x110] sm:$0xff] %vm4217_vm4, %v4205_v50  ;;  %v4039_v20 = vadd.f32 %v4038_v36, %v3884_v0  ;;  %v3887_v40 = vadd.f32 %v3886_v61, %v3732_v23  ;;  %v9088_v61 = vld [vmem:[#allocation138_spill] sm:$0xff]  ;;  %v2656_v11 = vadd.f32 %v9089_v6, %v2501_v10  ;;  %v9093_v36 = vld [vmem:[#allocation21_spill] sm:$0xff] }
 0x834   : > { %v3118_v39 = vadd.f32 %v9088_v61, %v2963_v12  ;;  %v2504_v7 = vadd.f32 %v9094_v18, %v9093_v36  ;;  %v9107_v12 = vld [vmem:[#allocation73_spill] sm:$0xff] }
 0x835   : > { %v4110_v29 = vmul.f32 %v8577_v32, %v4039_v20  ;;  %v3740_v24 = vpop.f32.mrf.mxu1  ;;  %v2811_v2 = vadd.f32 %v9091_v52, %v2656_v11  ;;  %v9110_v11 = vld [vmem:[#allocation193_spill] sm:$0xff] }
 0x836   : > { %v3273_v4 = vadd.f32 %v9090_v51, %v3118_v39  ;;  %v2659_v17 = vadd.f32 %v9098_v56, %v2504_v7  ;;  %v9113_v52 = vld [vmem:[#allocation121_spill] sm:$0xff] }
 0x837   : > { %v4160_v54 = vadd.f32 %v8584_v37, %v4110_v29  ;;  %v2966_v46 = vadd.f32 %v9095_v41, %v2811_v2  ;;  %v9115_v36 = vld [vmem:[#allocation145_spill] sm:$0xff] }
 0x838   : > { %v3428_v0 = vadd.f32 %v9092_v21, %v3273_v4  ;;  %v2814_v15 = vadd.f32 %v9100_v43, %v2659_v17  ;;  %v9114_v21 = vld [vmem:[#allocation212_spill] sm:$0xff] }
 0x839   : > { %v4206_v60 = vmax.f32 %v4160_v54, 0.0  ;;  %v3121_v9 = vadd.f32 %v9097_v27, %v2966_v46  ;;  %v9116_v46 = vld [vmem:[#allocation75_spill] sm:$0xff]  ;;  %v9119_v17 = vld [vmem:[#allocation196_spill] sm:$0xff] }
 0x83a   : > { %v4041_v33 = vpop.f32.mrf.mxu3  ;;  %v3583_v20 = vadd.f32 %v9096_v3, %v3428_v0  ;;  %v2969_v38 = vadd.f32 %v9104_v44, %v2814_v15  ;;  %v9123_v15 = vld [vmem:[#allocation213_spill] sm:$0xff] }
 0x83b   : > { %4253 = vst.msk [vmem:[%s8002_s30 + $0x118] sm:$0xff] %vm4217_vm4, %v4206_v60  ;;  %v4042_v59 = vadd.f32 %v4041_v33, %v3887_v40  ;;  %v3276_v29 = vadd.f32 %v9099_v31, %v3121_v9  ;;  %v3898_v60 = vpop.f32.mrf.mxu2  ;;  %v9103_v33 = vld [vmem:[#allocation48_spill] sm:$0xff] }
 0x83c   : > { %v3738_v48 = vadd.f32 %v3737_v62, %v3583_v20  ;;  %v9102_v62 = vld [vmem:[#allocation23_spill] sm:$0xff]  ;;  %v3124_v25 = vadd.f32 %v9106_v8, %v2969_v38  ;;  %v9125_v38 = vld [vmem:[#allocation77_spill] sm:$0xff] }
 0x83d   : > { %v4111_v19 = vmul.f32 %v8577_v32, %v4042_v59  ;;  %v3743_v23 = vpop.f32.mrf.mxu1  ;;  %v3431_v57 = vadd.f32 %v9101_v30, %v3276_v29  ;;  %v2507_v35 = vadd.f32 %v9103_v33, %v9102_v62  ;;  %v9117_v20 = vld [vmem:[#allocation171_spill] sm:$0xff] }
 0x83e   : > { %v3893_v49 = vadd.f32 %v3892_v47, %v3738_v48 }
 0x83f   : > { %v4161_v55 = vadd.f32 %v8584_v37, %v4111_v19  ;;  %v3586_v59 = vadd.f32 %v9105_v53, %v3431_v57  ;;  %v2662_v26 = vadd.f32 %v9107_v12, %v2507_v35  ;;  %v3279_v19 = vadd.f32 %v9108_v14, %v3124_v25 }
 0x841   : > { %v4207_v34 = vmax.f32 %v4161_v55, 0.0  ;;  %v3741_v10 = vadd.f32 %v3740_v24, %v3586_v59  ;;  %v9109_v55 = vld [vmem:[#allocation96_spill] sm:$0xff]  ;;  %v3434_v51 = vadd.f32 %v9110_v11, %v3279_v19  ;;  %v9126_v59 = vld [vmem:[#allocation173_spill] sm:$0xff]  ;;  %v9132_v11 = vld [vmem:[#allocation214_spill] sm:$0xff] }
 0x842   : > { %v4044_v5 = vpop.f32.mrf.mxu3  ;;  %v2817_v6 = vadd.f32 %v9109_v55, %v2662_v26  ;;  %v9128_v26 = vld [vmem:[#allocation198_spill] sm:$0xff]  ;;  %v9131_v55 = vld [vmem:[#allocation125_spill] sm:$0xff] }
 0x843   : > { %4254 = vst.msk [vmem:[%s8002_s30 + $0x120] sm:$0xff] %vm4217_vm4, %v4207_v34  ;;  %v4045_v50 = vadd.f32 %v4044_v5, %v3890_v22  ;;  %v3896_v61 = vadd.f32 %v3895_v16, %v3741_v10  ;;  %v9111_v34 = vld [vmem:[#allocation26_spill] sm:$0xff]  ;;  %v9112_v5 = vld [vmem:[#allocation51_spill] sm:$0xff]  ;;  %v3589_v0 = vadd.f32 %v9114_v21, %v3434_v51 }
 0x844   : > { %v2510_v24 = vadd.f32 %v9112_v5, %v9111_v34  ;;  %v2972_v2 = vadd.f32 %v9113_v52, %v2817_v6 }
 0x845   : > { %v4112_v63 = vmul.f32 %v8577_v32, %v4045_v50  ;;  %v3746_v22 = vpop.f32.mrf.mxu1  ;;  %v3901_v50 = vpop.f32.mrf.mxu2  ;;  %v3744_v7 = vadd.f32 %v3743_v23, %v3589_v0  ;;  %v9122_v23 = vld [vmem:[#allocation123_spill] sm:$0xff] }
 0x846   : > { %v3127_v18 = vadd.f32 %v9115_v36, %v2972_v2  ;;  %v2665_v3 = vadd.f32 %v9116_v46, %v2510_v24  ;;  %v9134_v2 = vld [vmem:[#allocation80_spill] sm:$0xff]  ;;  %v9135_v0 = vld [vmem:[#allocation175_spill] sm:$0xff] }
 0x847   : > { %v4162_v1 = vadd.f32 %v8584_v37, %v4112_v63  ;;  %v3899_v27 = vadd.f32 %v3898_v60, %v3744_v7  ;;  %v9124_v60 = vld [vmem:[#allocation147_spill] sm:$0xff] }
 0x848   : > { %v3282_v63 = vadd.f32 %v9117_v20, %v3127_v18 }
 0x849   : > { %v4208_v13 = vmax.f32 %v4162_v1, 0.0  ;;  %v9118_v1 = vld [vmem:[#allocation98_spill] sm:$0xff] }
 0x84a   : > { %v4047_v54 = vpop.f32.mrf.mxu3  ;;  %v2820_v56 = vadd.f32 %v9118_v1, %v2665_v3  ;;  %v3437_v31 = vadd.f32 %v9119_v17, %v3282_v63  ;;  %v9137_v3 = vld [vmem:[#allocation200_spill] sm:$0xff]  ;;  %v9140_v1 = vld [vmem:[#allocation127_spill] sm:$0xff] }
 0x84b   : > { %4255 = vst.msk [vmem:[%s8002_s30 + $0x128] sm:$0xff] %vm4217_vm4, %v4208_v13  ;;  %v4048_v40 = vadd.f32 %v4047_v54, %v3893_v49  ;;  %v9120_v49 = vld [vmem:[#allocation28_spill] sm:$0xff]  ;;  %v9121_v13 = vld [vmem:[#allocation53_spill] sm:$0xff]  ;;  %v9141_v17 = vld [vmem:[#allocation215_spill] sm:$0xff] }
 0x84c   : > { %v2513_v54 = vadd.f32 %v9121_v13, %v9120_v49  ;;  %v2975_v43 = vadd.f32 %v9122_v23, %v2820_v56  ;;  %v3592_v30 = vadd.f32 %v9123_v15, %v3437_v31  ;;  %v9142_v49 = vld [vmem:[#allocation151_spill] sm:$0xff] }
 0x84d   : > { %v4113_v47 = vmul.f32 %v8577_v32, %v4048_v40  ;;  %v3749_v40 = vpop.f32.mrf.mxu1  ;;  %v3904_v44 = vpop.f32.mrf.mxu2 }
 0x84e   : > { %v3130_v62 = vadd.f32 %v9124_v60, %v2975_v43  ;;  %v3747_v33 = vadd.f32 %v3746_v22, %v3592_v30  ;;  %v2668_v53 = vadd.f32 %v9125_v38, %v2513_v54  ;;  %v9133_v22 = vld [vmem:[#allocation149_spill] sm:$0xff]  ;;  %v9143_v43 = vld [vmem:[#allocation82_spill] sm:$0xff] }
 0x84f   : > { %v4163_v58 = vadd.f32 %v8584_v37, %v4113_v47  ;;  %v9144_v30 = vld [vmem:[#allocation177_spill] sm:$0xff]  ;;  %v9146_v38 = vld [vmem:[#allocation202_spill] sm:$0xff] }
 0x850   : > { %v3285_v47 = vadd.f32 %v9126_v59, %v3130_v62  ;;  %v3902_v8 = vadd.f32 %v3901_v50, %v3747_v33 }
 0x851   : > { %v4209_v39 = vmax.f32 %v4163_v58, 0.0  ;;  %v9127_v58 = vld [vmem:[#allocation100_spill] sm:$0xff] }
 0x852   : > { %v4050_v42 = vpop.f32.mrf.mxu3  ;;  %v2823_v12 = vadd.f32 %v9127_v58, %v2668_v53  ;;  %v3440_v14 = vadd.f32 %v9128_v26, %v3285_v47 }
 0x853   : > { %4256 = vst.msk [vmem:[%s8002_s30 + $0x130] sm:$0xff] %vm4217_vm4, %v4209_v39  ;;  %v4051_v4 = vadd.f32 %v4050_v42, %v3896_v61  ;;  %v9129_v61 = vld [vmem:[#allocation30_spill] sm:$0xff]  ;;  %v9130_v39 = vld [vmem:[#allocation55_spill] sm:$0xff] }
 0x854   : > { %v2516_v42 = vadd.f32 %v9130_v39, %v9129_v61  ;;  %v2978_v6 = vadd.f32 %v9131_v55, %v2823_v12  ;;  %v3595_v51 = vadd.f32 %v9132_v11, %v3440_v14  ;;  %v9148_v12 = vld [vmem:[#allocation153_spill] sm:$0xff]  ;;  %v9149_v61 = vld [vmem:[#allocation179_spill] sm:$0xff] }
 0x855   : > { %v4114_v16 = vmul.f32 %v8577_v32, %v4051_v4  ;;  %v3752_v52 = vpop.f32.mrf.mxu1  ;;  %v3907_v18 = vpop.f32.mrf.mxu2  ;;  %v9150_v11 = vld [vmem:[#allocation205_spill] sm:$0xff] }
 0x856   : > { %v3133_v34 = vadd.f32 %v9133_v22, %v2978_v6  ;;  %v3750_v5 = vadd.f32 %v3749_v40, %v3595_v51  ;;  %v2671_v21 = vadd.f32 %v9134_v2, %v2516_v42 }
 0x857   : > { %v4164_v41 = vadd.f32 %v8584_v37, %v4114_v16 }
 0x858   : > { %v3288_v16 = vadd.f32 %v9135_v0, %v3133_v34  ;;  %v3905_v50 = vadd.f32 %v3904_v44, %v3750_v5 }
 0x859   : > { %v4210_v9 = vmax.f32 %v4164_v41, 0.0  ;;  %v9136_v41 = vld [vmem:[#allocation102_spill] sm:$0xff] }
 0x85a   : > { %v4053_v48 = vpop.f32.mrf.mxu3  ;;  %v2826_v46 = vadd.f32 %v9136_v41, %v2671_v21  ;;  %v3443_v20 = vadd.f32 %v9137_v3, %v3288_v16 }
 0x85b   : > { %4257 = vst.msk [vmem:[%s8002_s30 + $0x138] sm:$0xff] %vm4217_vm4, %v4210_v9  ;;  %v4054_v29 = vadd.f32 %v4053_v48, %v3899_v27  ;;  %v9138_v27 = vld [vmem:[#allocation32_spill] sm:$0xff]  ;;  %v9139_v9 = vld [vmem:[#allocation57_spill] sm:$0xff] }
 0x85c   : > { %v2519_v48 = vadd.f32 %v9139_v9, %v9138_v27  ;;  %v2981_v56 = vadd.f32 %v9140_v1, %v2826_v46  ;;  %v3598_v31 = vadd.f32 %v9141_v17, %v3443_v20 }
 0x85d   : > { %v4115_v57 = vmul.f32 %v8577_v32, %v4054_v29  ;;  %v3755_v62 = vpop.f32.mrf.mxu1  ;;  %v3910_v47 = vpop.f32.mrf.mxu2 }
 0x85e   : > { %v3136_v13 = vadd.f32 %v9142_v49, %v2981_v56  ;;  %v3753_v54 = vadd.f32 %v3752_v52, %v3598_v31  ;;  %v2674_v15 = vadd.f32 %v9143_v43, %v2519_v48 }
 0x85f   : > { %v4165_v35 = vadd.f32 %v8584_v37, %v4115_v57 }
 0x860   : > { %v3291_v57 = vadd.f32 %v9144_v30, %v3136_v13  ;;  %v3908_v40 = vadd.f32 %v3907_v18, %v3753_v54 }
 0x861   : > { %v4211_v25 = vmax.f32 %v4165_v35, 0.0  ;;  %v9145_v35 = vld [vmem:[#allocation105_spill] sm:$0xff] }
 0x862   : > { %v4056_v10 = vpop.f32.mrf.mxu3  ;;  %v2829_v44 = vadd.f32 %v9145_v35, %v2674_v15  ;;  %v3446_v53 = vadd.f32 %v9146_v38, %v3291_v57 }
 0x863   : > { %4258 = vst.msk [vmem:[%s8002_s30 + $0x140] sm:$0xff] %vm4217_vm4, %v4211_v25  ;;  %v4057_v19 = vadd.f32 %v4056_v10, %v3902_v8  ;;  %v9147_v8 = vld [vmem:[#allocation130_spill] sm:$0xff] }
 0x864   : > { %v2984_v25 = vadd.f32 %v9147_v8, %v2829_v44  ;;  %v3601_v10 = vadd.f32 %v7943_v28, %v3446_v53 }
 0x865   : > { %v4116_v4 = vmul.f32 %v8577_v32, %v4057_v19  ;;  %v3758_v28 = vpop.f32.mrf.mxu1  ;;  %v3913_v5 = vpop.f32.mrf.mxu2 }
 0x866   : > { %v3139_v26 = vadd.f32 %v9148_v12, %v2984_v25  ;;  %v3756_v14 = vadd.f32 %v3755_v62, %v3601_v10 }
 0x867   : > { %v4166_v24 = vadd.f32 %v8584_v37, %v4116_v4 }
 0x868   : > { %v3294_v39 = vadd.f32 %v9149_v61, %v3139_v26  ;;  %v3911_v42 = vadd.f32 %v3910_v47, %v3756_v14 }
 0x869   : > { %v4212_v36 = vmax.f32 %v4166_v24, 0.0 }
 0x86a   : > { %v4059_v7 = vpop.f32.mrf.mxu3  ;;  %v3449_v51 = vadd.f32 %v9150_v11, %v3294_v39 }
 0x86b   : > { %4259 = vst.msk [vmem:[%s8002_s30 + $0x148] sm:$0xff] %vm4217_vm4, %v4212_v36  ;;  %v4060_v63 = vadd.f32 %v4059_v7, %v3905_v50 }
 0x86c   : > { %v3604_v22 = vadd.f32 %v7961_v45, %v3449_v51 }
 0x86d   : > { %v4117_v29 = vmul.f32 %v8577_v32, %v4060_v63 }
 0x86e   : > { %v3759_v24 = vadd.f32 %v3758_v28, %v3604_v22 }
 0x86f   : > { %v4167_v23 = vadd.f32 %v8584_v37, %v4117_v29 }
 0x870   : > { %v3914_v2 = vadd.f32 %v3913_v5, %v3759_v24 }
 0x871   : > { %v4213_v60 = vmax.f32 %v4167_v23, 0.0 }
 0x872   : > { %v4062_v33 = vpop.f32.mrf.mxu3 }
 0x873   : > { %4260 = vst.msk [vmem:[%s8002_s30 + $0x150] sm:$0xff] %vm4217_vm4, %v4213_v60  ;;  %v4063_v59 = vadd.f32 %v4062_v33, %v3908_v40 }
 0x875   : > { %v4118_v58 = vmul.f32 %v8577_v32, %v4063_v59 }
 0x877   : > { %v4168_v19 = vadd.f32 %v8584_v37, %v4118_v58 }
 0x879   : > { %v4214_v55 = vmax.f32 %v4168_v19, 0.0 }
 0x87a   : > { %v4065_v6 = vpop.f32.mrf.mxu3 }
 0x87b   : > { %4261 = vst.msk [vmem:[%s8002_s30 + $0x158] sm:$0xff] %vm4217_vm4, %v4214_v55  ;;  %v4066_v4 = vadd.f32 %v4065_v6, %v3911_v42 }
 0x87d   : > { %v4119_v34 = vmul.f32 %v8577_v32, %v4066_v4 }
 0x87f   : > { %v4169_v52 = vadd.f32 %v8584_v37, %v4119_v34 }
 0x881   : > { %v4215_v21 = vmax.f32 %v4169_v52, 0.0 }
 0x882   : > { %v4068_v0 = vpop.f32.mrf.mxu3 }
 0x883   : > { %4262 = vst.msk [vmem:[%s8002_s30 + $0x160] sm:$0xff] %vm4217_vm4, %v4215_v21  ;;  %v4069_v16 = vadd.f32 %v4068_v0, %v3914_v2 }
 0x885   : > { %v4120_v50 = vmul.f32 %v8577_v32, %v4069_v16 }
 0x887   : > { %v4170_v36 = vadd.f32 %v8584_v37, %v4120_v50 }
 0x889   : > { %v4216_v18 = vmax.f32 %v4170_v36, 0.0 }
 0x88b   : > { %4264 = vst.msk [vmem:[%s8002_s30 + $0x168] sm:$0x1] %vm4263_vm5, %v4216_v18 }
 0x88c PF: > { %s15_s18 = sadd.s32 1, %s4594_s18  }
 0x88d   : > { %p12_p4 = scmp.ge.s32.totalorder %s15_s18, 4  }
 0x88f   :  { %14 = sbr.rel (!%p12_p4) target bundleno = 1 (0x1), region = 70 }

// kernel: rotation_model_forward.6
= control target key start
LH: loop header
LB: loop body
LE: loop exit
PB: predicated region body
PF: predicated region fallthrough
CT: control target
= control target key end

     0   :  { %s720_s18 = smov 0   ;;  %s1202_s0 = inlined_call_operand.vmem [shape: f32[2,4,1152], index: 0, kind: input, shape index: {}]   ;;  %s1203_s1 = inlined_call_operand.vmem [shape: f32[1152,128], index: 1, kind: input, shape index: {}]   ;;  %s1204_s2 = inlined_call_operand.vmem [shape: f32[1,4], index: 2, kind: input, shape index: {}]   ;;  %s1205_s3 = inlined_call_operand.vmem [shape: f32[1,128], index: 3, kind: input, shape index: {}]   ;;  %s1206_s4 = inlined_call_operand.vmem [shape: f32[1,128], index: 4, kind: input, shape index: {}]   ;;  %s1207_s5 = inlined_call_operand.vmem [shape: f32[2,1,128], index: 5, kind: output, shape index: {}]  }
   0x1 LB: > { %s663_s19 = sadd.s32 4294967295, %s688_s18   ;;  %p667_p0 = scmp.ge.s32.totalorder %s688_s18, 1  ;;  %s688_s18 = sphi %s720_s18, %s15_s18  }
   0x2   : > { %p187_p1 = scmp.lt.s32.totalorder %s688_s18, 3 }
   0x4   : > { %p188_p2 = pnand %p667_p0, %p187_p1 }
   0x5   : > { %p874_p3 = scmp.lt.s32.totalorder (!%p188_p2), %s663_s19, 1 }
   0x6   : > { %191 = sbr.rel (%p188_p2) target bundleno = 369 (0x171), region = 40 }
   0xb   : > { %v241_v0 = vld [vmem:[%s1203_s1 + $0x78] sm:$0xff]  ;;  %v240_v1 = vld [vmem:[%s1203_s1 + $0x70] sm:$0xff]  ;;  %v239_v4 = vld [vmem:[%s1203_s1 + $0x68] sm:$0xff]  ;;  %s1210_s19 = smov (!%p874_p3, %s663_s19), 1  ;;  %vm586_vm0 = vcmask 1043456   ;;  %vm582_vm1 = vcmask 31744  }
   0xc   : > { %401 = vmatpush.msra.mxu0 %v241_v0  ;;  %v273_v2 = vld [vmem:[%s1203_s1 + $0x178] sm:$0xff]  ;;  %v272_v3 = vld [vmem:[%s1203_s1 + $0x170] sm:$0xff]  ;;  %v271_v7 = vld [vmem:[%s1203_s1 + $0x168] sm:$0xff]  ;;  %s673_s9 = smul.u32 36, %s1210_s19  ;;  %s220_s23 = scalar_lea.vmem %s1207_s5, %s1210_s19 }
   0xd   : > { %441 = vmatpush.msra.mxu2 %v273_v2  ;;  %v289_v5 = vld [vmem:[%s1203_s1 + $0x1f8] sm:$0xff]  ;;  %v288_v8 = vld [vmem:[%s1203_s1 + $0x1f0] sm:$0xff]  ;;  %v238_v9 = vld [vmem:[%s1203_s1 + $0x60] sm:$0xff] }
   0xe   : > { %v257_v6 = vld [vmem:[%s1203_s1 + $0xf8] sm:$0xff]  ;;  %402 = vmatpush.msra.mxu0 %v240_v1  ;;  %461 = vmatpush.msra.mxu3 %v289_v5  ;;  %v256_v10 = vld [vmem:[%s1203_s1 + $0xf0] sm:$0xff]  ;;  %v287_v11 = vld [vmem:[%s1203_s1 + $0x1e8] sm:$0xff]  ;;  %s960_s30 = scalar_lea.vmem %s1202_s0, %s673_s9 }
   0xf   : > { %442 = vmatpush.msra.mxu2 %v272_v3  ;;  %421 = vmatpush.msra.mxu1 %v257_v6  ;;  %v270_v12 = vld [vmem:[%s1203_s1 + $0x160] sm:$0xff]  ;;  %v255_v13 = vld [vmem:[%s1203_s1 + $0xe8] sm:$0xff]  ;;  %v237_v14 = vld [vmem:[%s1203_s1 + $0x58] sm:$0xff] }
  0x10   : > { %403 = vmatpush.msra.mxu0 %v239_v4  ;;  %462 = vmatpush.msra.mxu3 %v288_v8  ;;  %v286_v15 = vld [vmem:[%s1203_s1 + $0x1e0] sm:$0xff]  ;;  %v269_v16 = vld [vmem:[%s1203_s1 + $0x158] sm:$0xff]  ;;  %v236_v18 = vld [vmem:[%s1203_s1 + $0x50] sm:$0xff] }
  0x11   : > { %443 = vmatpush.msra.mxu2 %v271_v7  ;;  %422 = vmatpush.msra.mxu1 %v256_v10  ;;  %v254_v17 = vld [vmem:[%s1203_s1 + $0xe0] sm:$0xff]  ;;  %v285_v19 = vld [vmem:[%s1203_s1 + $0x1d8] sm:$0xff]  ;;  %v268_v20 = vld [vmem:[%s1203_s1 + $0x150] sm:$0xff] }
  0x12   : > { %404 = vmatpush.msra.mxu0 %v238_v9  ;;  %463 = vmatpush.msra.mxu3 %v287_v11  ;;  %v253_v21 = vld [vmem:[%s1203_s1 + $0xd8] sm:$0xff]  ;;  %v235_v22 = vld [vmem:[%s1203_s1 + $0x48] sm:$0xff]  ;;  %v284_v23 = vld [vmem:[%s1203_s1 + $0x1d0] sm:$0xff] }
  0x13   : > { %444 = vmatpush.msra.mxu2 %v270_v12  ;;  %423 = vmatpush.msra.mxu1 %v255_v13  ;;  %v267_v24 = vld [vmem:[%s1203_s1 + $0x148] sm:$0xff]  ;;  %v252_v25 = vld [vmem:[%s1203_s1 + $0xd0] sm:$0xff]  ;;  %v234_v26 = vld [vmem:[%s1203_s1 + $0x40] sm:$0xff] }
  0x14   : > { %405 = vmatpush.msra.mxu0 %v237_v14  ;;  %464 = vmatpush.msra.mxu3 %v286_v15  ;;  %v283_v27 = vld [vmem:[%s1203_s1 + $0x1c8] sm:$0xff]  ;;  %v266_v28 = vld [vmem:[%s1203_s1 + $0x140] sm:$0xff]  ;;  %v233_v30 = vld [vmem:[%s1203_s1 + $0x38] sm:$0xff] }
  0x15   : > { %445 = vmatpush.msra.mxu2 %v269_v16  ;;  %424 = vmatpush.msra.mxu1 %v254_v17  ;;  %v251_v29 = vld [vmem:[%s1203_s1 + $0xc8] sm:$0xff]  ;;  %v282_v31 = vld [vmem:[%s1203_s1 + $0x1c0] sm:$0xff]  ;;  %v265_v32 = vld [vmem:[%s1203_s1 + $0x138] sm:$0xff] }
  0x16   : > { %406 = vmatpush.msra.mxu0 %v236_v18  ;;  %465 = vmatpush.msra.mxu3 %v285_v19  ;;  %v250_v33 = vld [vmem:[%s1203_s1 + $0xc0] sm:$0xff]  ;;  %v232_v34 = vld [vmem:[%s1203_s1 + $0x30] sm:$0xff]  ;;  %v281_v35 = vld [vmem:[%s1203_s1 + $0x1b8] sm:$0xff] }
  0x17   : > { %446 = vmatpush.msra.mxu2 %v268_v20  ;;  %425 = vmatpush.msra.mxu1 %v253_v21  ;;  %v264_v36 = vld [vmem:[%s1203_s1 + $0x130] sm:$0xff]  ;;  %v249_v37 = vld [vmem:[%s1203_s1 + $0xb8] sm:$0xff]  ;;  %v231_v38 = vld [vmem:[%s1203_s1 + $0x28] sm:$0xff] }
  0x18   : > { %407 = vmatpush.msra.mxu0 %v235_v22  ;;  %466 = vmatpush.msra.mxu3 %v284_v23  ;;  %v280_v39 = vld [vmem:[%s1203_s1 + $0x1b0] sm:$0xff]  ;;  %v263_v40 = vld [vmem:[%s1203_s1 + $0x128] sm:$0xff]  ;;  %v230_v42 = vld [vmem:[%s1203_s1 + $0x20] sm:$0xff] }
  0x19   : > { %447 = vmatpush.msra.mxu2 %v267_v24  ;;  %426 = vmatpush.msra.mxu1 %v252_v25  ;;  %v248_v41 = vld [vmem:[%s1203_s1 + $0xb0] sm:$0xff]  ;;  %v279_v43 = vld [vmem:[%s1203_s1 + $0x1a8] sm:$0xff]  ;;  %v262_v44 = vld [vmem:[%s1203_s1 + $0x120] sm:$0xff] }
  0x1a   : > { %408 = vmatpush.msra.mxu0 %v234_v26  ;;  %467 = vmatpush.msra.mxu3 %v283_v27  ;;  %v247_v45 = vld [vmem:[%s1203_s1 + $0xa8] sm:$0xff]  ;;  %v229_v46 = vld [vmem:[%s1203_s1 + $0x18] sm:$0xff]  ;;  %v278_v47 = vld [vmem:[%s1203_s1 + $0x1a0] sm:$0xff] }
  0x1b   : > { %448 = vmatpush.msra.mxu2 %v266_v28  ;;  %427 = vmatpush.msra.mxu1 %v251_v29  ;;  %v261_v48 = vld [vmem:[%s1203_s1 + $0x118] sm:$0xff]  ;;  %v246_v49 = vld [vmem:[%s1203_s1 + $0xa0] sm:$0xff]  ;;  %v228_v50 = vld [vmem:[%s1203_s1 + $0x10] sm:$0xff] }
  0x1c   : > { %409 = vmatpush.msra.mxu0 %v233_v30  ;;  %468 = vmatpush.msra.mxu3 %v282_v31  ;;  %v277_v51 = vld [vmem:[%s1203_s1 + $0x198] sm:$0xff]  ;;  %v260_v52 = vld [vmem:[%s1203_s1 + $0x110] sm:$0xff]  ;;  %v227_v54 = vld [vmem:[%s1203_s1 + $0x8] sm:$0xff] }
  0x1d   : > { %449 = vmatpush.msra.mxu2 %v265_v32  ;;  %428 = vmatpush.msra.mxu1 %v250_v33  ;;  %v245_v53 = vld [vmem:[%s1203_s1 + $0x98] sm:$0xff]  ;;  %v276_v55 = vld [vmem:[%s1203_s1 + $0x190] sm:$0xff]  ;;  %v259_v56 = vld [vmem:[%s1203_s1 + $0x108] sm:$0xff] }
  0x1e   : > { %410 = vmatpush.msra.mxu0 %v232_v34  ;;  %469 = vmatpush.msra.mxu3 %v281_v35  ;;  %v244_v57 = vld [vmem:[%s1203_s1 + $0x90] sm:$0xff]  ;;  %v226_v58 = vld [vmem:[%s1203_s1] sm:$0xff]  ;;  %v275_v59 = vld [vmem:[%s1203_s1 + $0x188] sm:$0xff] }
  0x1f   : > { %450 = vmatpush.msra.mxu2 %v264_v36  ;;  %429 = vmatpush.msra.mxu1 %v249_v37  ;;  %v305_v60 = vld [vmem:[%s1203_s1 + $0x278] sm:$0xff]  ;;  %v258_v61 = vld [vmem:[%s1203_s1 + $0x100] sm:$0xff]  ;;  %v243_v63 = vld [vmem:[%s1203_s1 + $0x88] sm:$0xff] }
  0x20   : > { %411 = vmatpush.msra.mxu0 %v231_v38  ;;  %470 = vmatpush.msra.mxu3 %v280_v39  ;;  %v337_v62 = vld [vmem:[%s1203_s1 + $0x378] sm:$0xff]  ;;  %v304_v0 = vld [vmem:[%s1203_s1 + $0x270] sm:$0xff]  ;;  %v274_v1 = vld [vmem:[%s1203_s1 + $0x180] sm:$0xff] }
  0x21   : > { %451 = vmatpush.msra.mxu2 %v263_v40  ;;  %430 = vmatpush.msra.mxu1 %v248_v41  ;;  %v336_v2 = vld [vmem:[%s1203_s1 + $0x370] sm:$0xff]  ;;  %v353_v3 = vld [vmem:[%s1203_s1 + $0x3f8] sm:$0xff]  ;;  %v303_v4 = vld [vmem:[%s1203_s1 + $0x268] sm:$0xff] }
  0x22   : > { %412 = vmatpush.msra.mxu0 %v230_v42  ;;  %471 = vmatpush.msra.mxu3 %v279_v43  ;;  %v242_v5 = vld [vmem:[%s1203_s1 + $0x80] sm:$0xff]  ;;  %v321_v6 = vld [vmem:[%s1203_s1 + $0x2f8] sm:$0xff]  ;;  %v335_v7 = vld [vmem:[%s1203_s1 + $0x368] sm:$0xff] }
  0x23   : > { %452 = vmatpush.msra.mxu2 %v262_v44  ;;  %431 = vmatpush.msra.mxu1 %v247_v45  ;;  %v302_v8 = vld [vmem:[%s1203_s1 + $0x260] sm:$0xff]  ;;  %v352_v9 = vld [vmem:[%s1203_s1 + $0x3f0] sm:$0xff]  ;;  %v301_v12 = vld [vmem:[%s1203_s1 + $0x258] sm:$0xff] }
  0x24   : > { %413 = vmatpush.msra.mxu0 %v229_v46  ;;  %472 = vmatpush.msra.mxu3 %v278_v47  ;;  %v320_v10 = vld [vmem:[%s1203_s1 + $0x2f0] sm:$0xff]  ;;  %v334_v11 = vld [vmem:[%s1203_s1 + $0x360] sm:$0xff]  ;;  %v351_v13 = vld [vmem:[%s1203_s1 + $0x3e8] sm:$0xff] }
  0x25   : > { %453 = vmatpush.msra.mxu2 %v261_v48  ;;  %432 = vmatpush.msra.mxu1 %v246_v49  ;;  %v222_v14 = vld [vmem:[%s960_s30 + $0x8] sm:$0xff]  ;;  %v333_v16 = vld [vmem:[%s1203_s1 + $0x358] sm:$0xff]  ;;  %v221_v17 = vld [vmem:[%s960_s30] sm:$0xff] }
  0x26   : > { %414 = vmatpush.msra.mxu0 %v228_v50  ;;  %473 = vmatpush.msra.mxu3 %v277_v51  ;;  %v319_v15 = vld [vmem:[%s1203_s1 + $0x2e8] sm:$0xff]  ;;  %377 = vst [vmem:[#allocation1 + $0x10] ss:$2 sm:$0xff] %v222_v14  ;;  %v300_v18 = vld [vmem:[%s1203_s1 + $0x250] sm:$0xff]  ;;  %v350_v19 = vld [vmem:[%s1203_s1 + $0x3e0] sm:$0xff] }
  0x27   : > { %454 = vmatpush.msra.mxu2 %v260_v52  ;;  %433 = vmatpush.msra.mxu1 %v245_v53  ;;  %375 = vst [vmem:[#allocation1] ss:$2 sm:$0xff] %v221_v17  ;;  %v318_v20 = vld [vmem:[%s1203_s1 + $0x2e0] sm:$0xff]  ;;  %v332_v21 = vld [vmem:[%s1203_s1 + $0x350] sm:$0xff]  ;;  %v299_v22 = vld [vmem:[%s1203_s1 + $0x248] sm:$0xff] }
  0x28   : > { %415 = vmatpush.msra.mxu0 %v227_v54  ;;  %474 = vmatpush.msra.mxu3 %v276_v55  ;;  %v349_v23 = vld [vmem:[%s1203_s1 + $0x3d8] sm:$0xff]  ;;  %v298_v24 = vld [vmem:[%s1203_s1 + $0x240] sm:$0xff]  ;;  %v331_v26 = vld [vmem:[%s1203_s1 + $0x348] sm:$0xff] }
  0x29   : > { %455 = vmatpush.msra.mxu2 %v259_v56  ;;  %434 = vmatpush.msra.mxu1 %v244_v57  ;;  %v317_v25 = vld [vmem:[%s1203_s1 + $0x2d8] sm:$0xff]  ;;  %v348_v28 = vld [vmem:[%s1203_s1 + $0x3d0] sm:$0xff]  ;;  %v330_v31 = vld [vmem:[%s1203_s1 + $0x340] sm:$0xff] }
  0x2a   : > { %416 = vmatpush.msra.mxu0 %v226_v58  ;;  %475 = vmatpush.msra.mxu3 %v275_v59  ;;  %v297_v27 = vld [vmem:[%s1203_s1 + $0x238] sm:$0xff]  ;;  %v316_v29 = vld [vmem:[%s1203_s1 + $0x2d0] sm:$0xff]  ;;  %v347_v32 = vld [vmem:[%s1203_s1 + $0x3c8] sm:$0xff] }
  0x2b   : > { %456 = vmatpush.msra.mxu2 %v258_v61  ;;  %435 = vmatpush.msra.mxu1 %v243_v63  ;;  %v224_v30 = vld [vmem:[%s960_s30 + $0x18] sm:$0xff]  ;;  %v225_v33 = vld [vmem:[%s960_s30 + $0x20] sm:$0xf]  ;;  %v315_v34 = vld [vmem:[%s1203_s1 + $0x2c8] sm:$0xff] }
  0x2c   : > { %481 = vmatpush.msrb.mxu0 %v305_v60  ;;  %476 = vmatpush.msra.mxu3 %v274_v1  ;;  %381 = vst [vmem:[#allocation1 + $0x30] ss:$2 sm:$0xff] %v224_v30  ;;  %v329_v35 = vld [vmem:[%s1203_s1 + $0x338] sm:$0xff]  ;;  %v223_v36 = vld [vmem:[%s960_s30 + $0x10] sm:$0xff]  ;;  %v346_v40 = vld [vmem:[%s1203_s1 + $0x3c0] sm:$0xff] }
  0x2d   : > { %521 = vmatpush.msrb.mxu2 %v337_v62  ;;  %436 = vmatpush.msra.mxu1 %v242_v5  ;;  %v296_v39 = vld [vmem:[%s1203_s1 + $0x230] sm:$0xff]  ;;  %v314_v41 = vld [vmem:[%s1203_s1 + $0x2c0] sm:$0xff]  ;;  %379 = vst [vmem:[#allocation1 + $0x20] ss:$2 sm:$0xff] %v223_v36  ;;  %v295_v43 = vld [vmem:[%s1203_s1 + $0x228] sm:$0xff] }
  0x2e   : > { %482 = vmatpush.msrb.mxu0 %v304_v0  ;;  %541 = vmatpush.msrb.mxu3 %v353_v3  ;;  %v382_v37 = vld.sshfl [vmem:[#allocation1] sm:$0xff pattern:$0x75316420]  ;;  %v1039_v38 = vld.sshfl [vmem:[#allocation1 + $0x8] sm:$0xff pattern:$0x75316420] }
  0x2f   : > { %522 = vmatpush.msrb.mxu2 %v336_v2  ;;  %501 = vmatpush.msrb.mxu1 %v321_v6  ;;  %390 = vst [vmem:[#allocation1] ss:$2 sm:$0xff] %v225_v33  ;;  %v328_v42 = vld [vmem:[%s1203_s1 + $0x330] sm:$0xff]  ;;  %v345_v44 = vld [vmem:[%s1203_s1 + $0x3b8] sm:$0xff]  ;;  %v327_v46 = vld [vmem:[%s1203_s1 + $0x328] sm:$0xff] }
  0x30   : > { %483 = vmatpush.msrb.mxu0 %v303_v4  ;;  %542 = vmatpush.msrb.mxu3 %v352_v9  ;;  %v313_v45 = vld [vmem:[%s1203_s1 + $0x2b8] sm:$0xff]  ;;  %v294_v47 = vld [vmem:[%s1203_s1 + $0x220] sm:$0xff]  ;;  %v344_v48 = vld [vmem:[%s1203_s1 + $0x3b0] sm:$0xff] }
  0x31   : > { %523 = vmatpush.msrb.mxu2 %v335_v7  ;;  %502 = vmatpush.msrb.mxu1 %v320_v10  ;;  %v312_v49 = vld [vmem:[%s1203_s1 + $0x2b0] sm:$0xff]  ;;  %v326_v50 = vld [vmem:[%s1203_s1 + $0x320] sm:$0xff]  ;;  %v293_v51 = vld [vmem:[%s1203_s1 + $0x218] sm:$0xff] }
  0x32   : > { %484 = vmatpush.msrb.mxu0 %v302_v8  ;;  %543 = vmatpush.msrb.mxu3 %v351_v13  ;;  %v343_v52 = vld [vmem:[%s1203_s1 + $0x3a8] sm:$0xff]  ;;  %v384_v53 = vld.sshfl [vmem:[#allocation1 + $0x10] sm:$0xff pattern:$0x75316420]  ;;  %v325_v56 = vld [vmem:[%s1203_s1 + $0x318] sm:$0xff] }
  0x33   : > { %524 = vmatpush.msrb.mxu2 %v334_v11  ;;  %503 = vmatpush.msrb.mxu1 %v319_v15  ;;  %v311_v54 = vld [vmem:[%s1203_s1 + $0x2a8] sm:$0xff]  ;;  %v292_v55 = vld [vmem:[%s1203_s1 + $0x210] sm:$0xff]  ;;  %v342_v57 = vld [vmem:[%s1203_s1 + $0x3a0] sm:$0xff] }
  0x34   : > { %485 = vmatpush.msrb.mxu0 %v301_v12  ;;  %544 = vmatpush.msrb.mxu3 %v350_v19  ;;  %v291_v58 = vld [vmem:[%s1203_s1 + $0x208] sm:$0xff]  ;;  %v385_v59 = vld.sshfl [vmem:[#allocation1 + $0x18] sm:$0xff pattern:$0x75316420]  ;;  %v310_v60 = vld [vmem:[%s1203_s1 + $0x2a0] sm:$0xff] }
  0x35   : > { %525 = vmatpush.msrb.mxu2 %v333_v16  ;;  %504 = vmatpush.msrb.mxu1 %v318_v20  ;;  %v324_v61 = vld [vmem:[%s1203_s1 + $0x310] sm:$0xff]  ;;  %v290_v62 = vld [vmem:[%s1203_s1 + $0x200] sm:$0xff]  ;;  %v341_v63 = vld [vmem:[%s1203_s1 + $0x398] sm:$0xff] }
  0x36   : > { %486 = vmatpush.msrb.mxu0 %v300_v18  ;;  %545 = vmatpush.msrb.mxu3 %v349_v23  ;;  %v369_v0 = vld [vmem:[%s1203_s1 + $0x478] sm:$0xff]  ;;  %v323_v2 = vld [vmem:[%s1203_s1 + $0x308] sm:$0xff]  ;;  %v340_v3 = vld [vmem:[%s1203_s1 + $0x390] sm:$0xff] }
  0x37   : > { %526 = vmatpush.msrb.mxu2 %v332_v21  ;;  %505 = vmatpush.msrb.mxu1 %v317_v25  ;;  %v309_v1 = vld [vmem:[%s1203_s1 + $0x298] sm:$0xff]  ;;  %v368_v4 = vld [vmem:[%s1203_s1 + $0x470] sm:$0xff]  ;;  %v322_v6 = vld [vmem:[%s1203_s1 + $0x300] sm:$0xff] }
  0x38   : > { %487 = vmatpush.msrb.mxu0 %v299_v22  ;;  %546 = vmatpush.msrb.mxu3 %v348_v28  ;;  %v308_v5 = vld [vmem:[%s1203_s1 + $0x290] sm:$0xff]  ;;  %v339_v7 = vld [vmem:[%s1203_s1 + $0x388] sm:$0xff]  ;;  %v338_v11 = vld [vmem:[%s1203_s1 + $0x380] sm:$0xff] }
  0x39   : > { %527 = vmatpush.msrb.mxu2 %v331_v26  ;;  %506 = vmatpush.msrb.mxu1 %v316_v29  ;;  %v388_v8 = vld.sshfl [vmem:[#allocation1 + $0x30] sm:$0xff pattern:$0x75316420]  ;;  %v367_v9 = vld [vmem:[%s1203_s1 + $0x468] sm:$0xff]  ;;  %v366_v14 = vld [vmem:[%s1203_s1 + $0x460] sm:$0xff] }
  0x3a   : > { %488 = vmatpush.msrb.mxu0 %v298_v24  ;;  %547 = vmatpush.msrb.mxu3 %v347_v32  ;;  %v307_v10 = vld [vmem:[%s1203_s1 + $0x288] sm:$0xff]  ;;  %v386_v12 = vld.sshfl [vmem:[#allocation1 + $0x20] sm:$0xff pattern:$0x75316420]  ;;  %v365_v17 = vld [vmem:[%s1203_s1 + $0x458] sm:$0xff] }
  0x3b   : > { %528 = vmatpush.msrb.mxu2 %v330_v31  ;;  %507 = vmatpush.msrb.mxu1 %v315_v34  ;;  %v389_v13 = vld.sshfl [vmem:[#allocation1 + $0x38] sm:$0xff pattern:$0x75316420]  ;;  %v306_v15 = vld [vmem:[%s1203_s1 + $0x280] sm:$0xff]  ;;  %v364_v18 = vld [vmem:[%s1203_s1 + $0x450] sm:$0xff] }
  0x3c   : > { %489 = vmatpush.msrb.mxu0 %v297_v27  ;;  %548 = vmatpush.msrb.mxu3 %v346_v40  ;;  %v387_v16 = vld.sshfl [vmem:[#allocation1 + $0x28] sm:$0xff pattern:$0x75316420]  ;;  %v362_v20 = vld [vmem:[%s1203_s1 + $0x440] sm:$0xff]  ;;  %v361_v21 = vld [vmem:[%s1203_s1 + $0x438] sm:$0xff] }
  0x3d   : > { %529 = vmatpush.msrb.mxu2 %v329_v35  ;;  %508 = vmatpush.msrb.mxu1 %v314_v41  ;;  %v363_v19 = vld [vmem:[%s1203_s1 + $0x448] sm:$0xff]  ;;  %v360_v22 = vld [vmem:[%s1203_s1 + $0x430] sm:$0xff]  ;;  %v358_v24 = vld [vmem:[%s1203_s1 + $0x420] sm:$0xff] }
  0x3e   : > { %490 = vmatpush.msrb.mxu0 %v296_v39  ;;  %549 = vmatpush.msrb.mxu3 %v345_v44  ;;  %v359_v23 = vld [vmem:[%s1203_s1 + $0x428] sm:$0xff]  ;;  %v357_v25 = vld [vmem:[%s1203_s1 + $0x418] sm:$0xff]  ;;  %v356_v26 = vld [vmem:[%s1203_s1 + $0x410] sm:$0xff] }
  0x3f   : > { %530 = vmatpush.msrb.mxu2 %v328_v42  ;;  %509 = vmatpush.msrb.mxu1 %v313_v45  ;;  %v355_v27 = vld [vmem:[%s1203_s1 + $0x408] sm:$0xff]  ;;  %v354_v28 = vld [vmem:[%s1203_s1 + $0x400] sm:$0xff] }
  0x40   : > { %491 = vmatpush.msrb.mxu0 %v295_v43  ;;  %550 = vmatpush.msrb.mxu3 %v344_v48  ;;  %v391_v29 = vld.sshfl [vmem:[#allocation1] sm:$0xff pattern:$0x75316420] }
  0x41   : > { %531 = vmatpush.msrb.mxu2 %v327_v46  ;;  %510 = vmatpush.msrb.mxu1 %v312_v49  ;;  %v610_v48 = vld [vmem:[%s1205_s3] sm:$0x1] }
  0x42   : > { %492 = vmatpush.msrb.mxu0 %v294_v47  ;;  %551 = vmatpush.msrb.mxu3 %v343_v52  ;;  %v581_v47 = vld [vmem:[%s1204_s2] sm:$0x1] }
  0x43   : > { %532 = vmatpush.msrb.mxu2 %v326_v50  ;;  %511 = vmatpush.msrb.mxu1 %v311_v54  ;;  %v612_v50 = vld [vmem:[%s1206_s4] sm:$0x1] }
  0x44   : > { %493 = vmatpush.msrb.mxu0 %v293_v51  ;;  %457 = vmatmul.f32.vlgmr.msra.gmra.mxu2 %v384_v53 }
  0x45   : > { %533 = vmatpush.msrb.mxu2 %v325_v56  ;;  %552 = vmatpush.msrb.mxu3 %v342_v57 }
  0x46   : > { %494 = vmatpush.msrb.mxu0 %v292_v55  ;;  %477 = vmatmul.f32.vlgmr.msra.gmra.mxu3 %v385_v59 }
  0x47   : > { %417 = vmatmul.f32.vlgmr.msra.gmra.mxu0 %v382_v37  ;;  %512 = vmatpush.msrb.mxu1 %v310_v60 }
  0x48   : > { %495 = vmatpush.msrb.mxu0 %v291_v58  ;;  %534 = vmatpush.msrb.mxu2 %v324_v61 }
  0x49   : > { %553 = vmatpush.msrb.mxu3 %v341_v63  ;;  %437 = vmatmul.f32.vlgmr.msra.gmra.mxu1 %v1039_v38 }
  0x4a   : > { %496 = vmatpush.msrb.mxu0 %v290_v62  ;;  %513 = vmatpush.msrb.mxu1 %v309_v1 }
  0x4b   : > { %535 = vmatpush.msrb.mxu2 %v323_v2  ;;  %554 = vmatpush.msrb.mxu3 %v340_v3 }
  0x4c   : > { %561 = vmatpush.msra.mxu0 %v369_v0  ;;  %514 = vmatpush.msrb.mxu1 %v308_v5 }
  0x4d   : > { %536 = vmatpush.msrb.mxu2 %v322_v6  ;;  %555 = vmatpush.msrb.mxu3 %v339_v7 }
  0x4e   : > { %562 = vmatpush.msra.mxu0 %v368_v4  ;;  %537 = vmatmul.f32.vlgmr.msrb.gmra.mxu2 %v388_v8 }
  0x4f   : > { %515 = vmatpush.msrb.mxu1 %v307_v10  ;;  %556 = vmatpush.msrb.mxu3 %v338_v11 }
  0x50   : > { %563 = vmatpush.msra.mxu0 %v367_v9  ;;  %557 = vmatmul.f32.vlgmr.msrb.gmra.mxu3 %v389_v13 }
  0x51   : > { %497 = vmatmul.f32.vlgmr.msrb.gmra.mxu0 %v386_v12  ;;  %516 = vmatpush.msrb.mxu1 %v306_v15 }
  0x52   : > { %564 = vmatpush.msra.mxu0 %v366_v14  ;;  %517 = vmatmul.f32.vlgmr.msrb.gmra.mxu1 %v387_v16 }
  0x54   : > { %565 = vmatpush.msra.mxu0 %v365_v17 }
  0x56   : > { %566 = vmatpush.msra.mxu0 %v364_v18 }
  0x58   : > { %567 = vmatpush.msra.mxu0 %v363_v19 }
  0x5a   : > { %568 = vmatpush.msra.mxu0 %v362_v20 }
  0x5c   : > { %569 = vmatpush.msra.mxu0 %v361_v21 }
  0x5e   : > { %570 = vmatpush.msra.mxu0 %v360_v22 }
  0x60   : > { %571 = vmatpush.msra.mxu0 %v359_v23 }
  0x62   : > { %572 = vmatpush.msra.mxu0 %v358_v24 }
  0x64   : > { %573 = vmatpush.msra.mxu0 %v357_v25 }
  0x66   : > { %574 = vmatpush.msra.mxu0 %v356_v26 }
  0x68   : > { %575 = vmatpush.msra.mxu0 %v355_v27 }
  0x6a   : > { %576 = vmatpush.msra.mxu0 %v354_v28 }
  0x6b   : > { %577 = vmatmul.f32.vlgmr.msra.gmra.mxu0 %v391_v29 }
  0xc4   : > { %v418_v31 = vpop.f32.mrf.mxu0 }
  0xc6   : > { %v438_v30 = vpop.f32.mrf.mxu1 }
  0xc7   : > { %v439_v32 = vadd.f32 %v438_v30, %v418_v31  ;;  %v458_v33 = vpop.f32.mrf.mxu2 }
  0xc9   : > { %v459_v34 = vadd.f32 %v458_v33, %v439_v32  ;;  %v478_v35 = vpop.f32.mrf.mxu3 }
  0xcb   : > { %v479_v36 = vadd.f32 %v478_v35, %v459_v34 }
  0xce   : > { %v498_v37 = vpop.f32.mrf.mxu0 }
  0xcf   : > { %v499_v38 = vadd.f32 %v498_v37, %v479_v36  ;;  %v518_v39 = vpop.f32.mrf.mxu1 }
  0xd1   : > { %v519_v40 = vadd.f32 %v518_v39, %v499_v38  ;;  %v538_v41 = vpop.f32.mrf.mxu2 }
  0xd3   : > { %v539_v42 = vadd.f32 %v538_v41, %v519_v40  ;;  %v558_v43 = vpop.f32.mrf.mxu3 }
  0xd5   : > { %v559_v44 = vadd.f32 %v558_v43, %v539_v42 }
  0xe8   : > { %v578_v45 = vpop.f32.mrf.mxu0 }
  0xe9   : > { %v579_v46 = vadd.f32 %v578_v45, %v559_v44 }
  0xeb   : > { %669 = vmatpush.msk.msra.mxu1 %vm586_vm0, %v579_v46 }
  0xec   : > { %670 = vmatmul.msk.f32.vlgmr.msra.gmra.mxu1 %vm582_vm1, %v581_v47 }
 0x169   : > { %v607_v49 = vpop.f32.mrf.mxu1 }
 0x16a   : > { %v611_v51 = vmul.f32 %v610_v48, %v607_v49 }
 0x16c   : > { %v613_v52 = vadd.f32 %v612_v50, %v611_v51 }
 0x16e   : > { %v614_v53 = vmax.f32 %v613_v52, 0.0 }
 0x170   : > { %615 = vst [vmem:[%s220_s23] sm:$0x1] %v614_v53 }
 0x171 PF: > { %s15_s18 = sadd.s32 1, %s688_s18  }
 0x172   : > { %p12_p4 = scmp.ge.s32.totalorder %s15_s18, 4  }
 0x174   :  { %14 = sbr.rel (!%p12_p4) target bundleno = 1 (0x1), region = 73 }

// kernel: rotation_model_forward.7
= control target key start
LH: loop header
LB: loop body
LE: loop exit
PB: predicated region body
PF: predicated region fallthrough
CT: control target
= control target key end

     0   :  { %s294_s0 = inlined_call_operand.vmem [shape: f32[2,128], index: 0, kind: input, shape index: {}]   ;;  %s295_s1 = inlined_call_operand.vmem [shape: f32[128,64], index: 1, kind: input, shape index: {}]   ;;  %s296_s2 = inlined_call_operand.vmem [shape: f32[1,64], index: 2, kind: input, shape index: {}]   ;;  %s297_s3 = inlined_call_operand.vmem [shape: f32[64,4], index: 3, kind: input, shape index: {}]   ;;  %s298_s4 = inlined_call_operand.vmem [shape: f32[1,4], index: 4, kind: input, shape index: {}]   ;;  %s299_s5 = inlined_call_operand.hbm [shape: f32[2,4], index: 5, kind: output, shape index: {}]  }
   0x1   :  { %v37_v0 = vld [vmem:[%s295_s1 + $0x78] sm:$0xff]  ;;  %v36_v1 = vld [vmem:[%s295_s1 + $0x70] sm:$0xff]  ;;  %v35_v2 = vld [vmem:[%s295_s1 + $0x68] sm:$0xff] }
   0x2   :  { %42 = vmatpush.msra.mxu0 %v37_v0  ;;  %v34_v3 = vld [vmem:[%s295_s1 + $0x60] sm:$0xff]  ;;  %v70_v4 = vld [vmem:[%s297_s3 + $0x38] sm:$0xff]  ;;  %v69_v6 = vld [vmem:[%s297_s3 + $0x30] sm:$0xff] }
   0x3   :  { %v33_v5 = vld [vmem:[%s295_s1 + $0x58] sm:$0xff]  ;;  %87 = vmatpush.msra.mxu1 %v70_v4  ;;  %v68_v7 = vld [vmem:[%s297_s3 + $0x28] sm:$0xff]  ;;  %v32_v8 = vld [vmem:[%s295_s1 + $0x50] sm:$0xff] }
   0x4   :  { %43 = vmatpush.msra.mxu0 %v36_v1 }
   0x5   :  { %88 = vmatpush.msra.mxu1 %v69_v6 }
   0x6   :  { %44 = vmatpush.msra.mxu0 %v35_v2 }
   0x8   :  { %45 = vmatpush.msra.mxu0 %v34_v3 }
   0x9   :  { %10 = vsyncpa [#allocation3], 0  ;;  %v67_v9 = vld [vmem:[%s297_s3 + $0x20] sm:$0xff]  ;;  %v31_v10 = vld [vmem:[%s295_s1 + $0x48] sm:$0xff]  ;;  %89 = vmatpush.msra.mxu1 %v68_v7  ;;  %vm75_vm0 = vcmask 523264   ;;  %vm100_vm1 = vcmask 25600  }
   0xa   :  { %46 = vmatpush.msra.mxu0 %v33_v5  ;;  %v66_v11 = vld [vmem:[%s297_s3 + $0x18] sm:$0xff]  ;;  %v30_v12 = vld [vmem:[%s295_s1 + $0x40] sm:$0xff]  ;;  %v28_v14 = vld [vmem:[%s295_s1 + $0x30] sm:$0xff]  ;;  %s133_s21 = sshll.u32 %s299_s5, 4  ;;  %s134_s21 = int_to_ptr.hbm [resolvable:$true] %s133_s21 }
   0xb   :  { %90 = vmatpush.msra.mxu1 %v67_v9  ;;  %v29_v13 = vld [vmem:[%s295_s1 + $0x38] sm:$0xff]  ;;  %v27_v15 = vld [vmem:[%s295_s1 + $0x28] sm:$0xff]  ;;  %v26_v16 = vld [vmem:[%s295_s1 + $0x20] sm:$0xff] }
   0xc   :  { %47 = vmatpush.msra.mxu0 %v32_v8  ;;  %v25_v17 = vld [vmem:[%s295_s1 + $0x18] sm:$0xff]  ;;  %v24_v18 = vld [vmem:[%s295_s1 + $0x10] sm:$0xff]  ;;  %v23_v19 = vld [vmem:[%s295_s1 + $0x8] sm:$0xff] }
   0xd   :  { %91 = vmatpush.msra.mxu1 %v66_v11  ;;  %v22_v20 = vld [vmem:[%s295_s1] sm:$0xff]  ;;  %v65_v22 = vld [vmem:[%s297_s3 + $0x10] sm:$0xff]  ;;  %v64_v23 = vld [vmem:[%s297_s3 + $0x8] sm:$0xff] }
   0xe   :  { %48 = vmatpush.msra.mxu0 %v31_v10  ;;  %v21_v21 = vld [vmem:[%s294_s0] sm:$0x3] }
   0xf   :  { %92 = vmatpush.msra.mxu1 %v65_v22  ;;  %v63_v24 = vld [vmem:[%s297_s3] sm:$0xff] }
  0x10   :  { %49 = vmatpush.msra.mxu0 %v30_v12  ;;  %v144_v25 = vld [vmem:[%s296_s2] ss:$0 sm:$0xff]  ;;  %s176_s2 = smov [#allocation2]  }
  0x11   :  { %93 = vmatpush.msra.mxu1 %v64_v23  ;;  %v145_v29 = vld [vmem:[%s298_s4] ss:$0 sm:$0xff]  ;;  %s131_s3 = sshll.u32 %s176_s2, 4  ;;  %s132_s3 = int_to_ptr.vmem [resolvable:$true] %s131_s3 }
  0x12   :  { %50 = vmatpush.msra.mxu0 %v29_v13 }
  0x13   :  { %94 = vmatpush.msra.mxu1 %v63_v24 }
  0x14   :  { %51 = vmatpush.msra.mxu0 %v28_v14 }
  0x16   :  { %52 = vmatpush.msra.mxu0 %v27_v15 }
  0x18   :  { %53 = vmatpush.msra.mxu0 %v26_v16 }
  0x1a   :  { %54 = vmatpush.msra.mxu0 %v25_v17 }
  0x1c   :  { %55 = vmatpush.msra.mxu0 %v24_v18 }
  0x1e   :  { %56 = vmatpush.msra.mxu0 %v23_v19 }
  0x20   :  { %57 = vmatpush.msra.mxu0 %v22_v20 }
  0x21   :  { %58 = vmatmul.f32.vlgmr.msra.gmra.mxu0 %v21_v21 }
  0x9e   :  { %v59_v26 = vpop.f32.mrf.mxu0 }
  0x9f   :  { %v60_v27 = vadd.f32 %v144_v25, %v59_v26 }
  0xa1   :  { %v62_v28 = vmax.f32 %v60_v27, 0.0 }
  0xa3   :  { %142 = vmatmul.msk.f32.vlgmr.msra.gmra.mxu1 %vm75_vm0, %v62_v28 }
 0x120   :  { %v96_v30 = vpop.f32.mrf.mxu1 }
 0x121   :  { %v97_v31 = vadd.f32 %v145_v29, %v96_v30 }
 0x123   :  { %v99_v32 = vmax.f32 %v97_v31, 0.0 }
 0x125   :  { %v101_v33 = vsel %vm100_vm1, %v99_v32, -inf }
 0x126   :  { %102 = vmax.xlane.f32.xlu0 %v101_v33 }
 0x199   :  { %v103_v34 = vpop.xlane.xlu0 %102 }
 0x19a   :  { %v104_v35 = vsub.f32 %v99_v32, %v103_v34 }
 0x19c   :  { %v105_v36 = vmul.f32 1.442695, %v104_v35 }
 0x19e   :  { %146 = vpow2.f32 %v105_v36 }
 0x1a4   :  { %v147_v37 = vpop.eup %146 }
 0x1a5   :  { %v107_v38 = vsel %vm100_vm1, %v147_v37, 0.0 }
 0x1a6   :  { %108 = vadd.xlane.f32.xlu0 %v107_v38 }
 0x219   :  { %v109_v39 = vpop.xlane.xlu0 %108 }
 0x21a   :  { %148 = vrcp.f32 %v109_v39  ;;  %v121_v43 = vand.u32 2147483648, %v109_v39  ;;  %v119_v45 = vand.u32 2147483647, %v109_v39  ;;  %vm115_vm3 = vweird.f32 %v109_v39 }
 0x21c   :  { %v122_v47 = vor.u32 1.1754944e-38, %v121_v43  ;;  %vm120_vm5 = vcmp.eq.f32.partialorder %v119_v45, 8.507059e+37 }
 0x220   :  { %v149_v40 = vpop.eup %148 }
 0x221   :  { %v111_v41 = vmul.f32 %v149_v40, %v109_v39  ;;  %vm116_vm2 = vweird.f32 %v149_v40 }
 0x222   :  { %vm117_vm4 = vmor %vm115_vm3, %vm116_vm2 }
 0x223   :  { %v112_v42 = vsub.f32 1.0, %v111_v41 }
 0x225   :  { %v113_v44 = vmul.f32 %v149_v40, %v112_v42 }
 0x227   :  { %v114_v46 = vadd.f32 %v149_v40, %v113_v44 }
 0x229   :  { %v118_v48 = vsel %vm117_vm4, %v149_v40, %v114_v46 }
 0x22a   :  { %v123_v49 = vsel %vm120_vm5, %v122_v47, %v118_v48 }
 0x22b   :  { %v124_v50 = vmul.f32 %v147_v37, %v123_v49 }
 0x22d   :  { %125 = vst.msk [vmem:[#allocation2] sm:$0x3] %vm100_vm1, %v124_v50 }
 0x22e   :  { %136 = dma.vmem_to_hbm [thread:$0]  %s132_s3, 32, %s134_s21, [#allocation3]  }
 0x22f   :  { %174 = dma.done.wait [#allocation3], 32  }
 0x230   :  { %175 = vsyncadd [#allocation3], 4294967264 }
 0x231   :  { %141 = vsyncpa [#allocation3], 1 }

</bundles_post_ra>
